<compile_context>
chip_gen: v7x
topology: tpu7x:2x2x1
jax: 0.10.0
libtpu: 0.0.40
codegen_flags: <defaults>
</compile_context>

<pallas_src>
import math
import functools

import jax
import jax.numpy as jnp
from jax.experimental import pallas as pl
from jax.experimental.pallas import tpu as pltpu


def _round_up(x, m):
    return (x + m - 1) // m * m


def _pick_tm(M):
    """Pick an M tile (multiple of 8, <=128) that divides M, avoiding padding."""
    if M < 8:
        return M, M                      # block == full dim (allowed)
    M_pad = _round_up(M, 8)
    best = 8
    for tm in range(min(128, M_pad), 7, -8):
        if M_pad % tm == 0:
            best = tm
            break
    if best < 64 and M_pad > 256:        # tiny divisor on a big M: pad instead
        return 128, _round_up(M_pad, 128)
    return best, M_pad


# ----------------------------------------------------------------------------
# Pallas kernel: tiled matmul + bias (+ optional ReLU)
#   bf16 inputs, f32 accumulation, grid = (M, N, K) with K innermost reduction
# ----------------------------------------------------------------------------
def _mm_bias_act_kernel(a_ref, w_ref, b_ref, o_ref, acc_ref, *, apply_relu):
    k = pl.program_id(2)

    @pl.when(k == 0)
    def _():
        acc_ref[...] = jnp.zeros_like(acc_ref)

    acc_ref[...] += jnp.dot(a_ref[...], w_ref[...],
                            preferred_element_type=jnp.float32)

    @pl.when(k == pl.num_programs(2) - 1)
    def _():
        r = acc_ref[...] + b_ref[...]
        if apply_relu:
            r = jnp.maximum(r, 0.0)
        o_ref[...] = r.astype(o_ref.dtype)


def matmul_bias_act(a, w, b, *, apply_relu, out_dtype=jnp.float32):
    """out = a @ w + b (row-broadcast bias), optional ReLU.

    a: (M, K), w: (K, N), b: (N,).  Inputs are cast to bf16 for the MXU,
    accumulation is f32, output dtype is `out_dtype`.
    """
    M, K = a.shape
    K2, N = w.shape
    assert K == K2

    TM, M_pad = _pick_tm(M)

    K_pad = _round_up(K, 128)            # lane-dense contraction
    if K_pad <= 4096:
        TK = K_pad                       # single K step
    else:
        K_pad = _round_up(K_pad, 2048)
        TK = 2048

    N_pad = _round_up(N, 128)            # lane-dense output stores
    TN = 256 if N_pad % 256 == 0 else 128

    a_p = a.astype(jnp.bfloat16)
    if (M_pad, K_pad) != (M, K):
        a_p = jnp.pad(a_p, ((0, M_pad - M), (0, K_pad - K)))
    w_p = w.astype(jnp.bfloat16)
    if (K_pad, N_pad) != (K, N):
        w_p = jnp.pad(w_p, ((0, K_pad - K), (0, N_pad - N)))
    b_p = b.astype(jnp.float32)
    if N_pad != N:
        b_p = jnp.pad(b_p, ((0, N_pad - N),))
    b2 = b_p.reshape(1, N_pad)

    grid = (M_pad // TM, N_pad // TN, K_pad // TK)

    out = pl.pallas_call(
        functools.partial(_mm_bias_act_kernel, apply_relu=apply_relu),
        out_shape=jax.ShapeDtypeStruct((M_pad, N_pad), out_dtype),
        grid_spec=pltpu.PrefetchScalarGridSpec(
            num_scalar_prefetch=0,
            grid=grid,
            in_specs=[
                pl.BlockSpec((TM, TK), lambda i, j, k: (i, k)),
                pl.BlockSpec((TK, TN), lambda i, j, k: (k, j)),
                pl.BlockSpec((1, TN), lambda i, j, k: (0, j)),
            ],
            out_specs=pl.BlockSpec((TM, TN), lambda i, j, k: (i, j)),
            scratch_shapes=[pltpu.VMEM((TM, TN), jnp.float32)],
        ),
        compiler_params=pltpu.CompilerParams(
            dimension_semantics=("parallel", "parallel", "arbitrary"),
        ),
    )(a_p, w_p, b2)

    if (M_pad, N_pad) != (M, N):
        out = out[:M, :N]
    return out


# ----------------------------------------------------------------------------
# Conv2d(k=3, s=2, p=1) + ReLU via im2col (glue) + Pallas matmul kernel
# ----------------------------------------------------------------------------
def conv3x3_s2_relu(x_nhwc, w_oihw, bias):
    B, H, W, Cin = x_nhwc.shape
    Cout = w_oihw.shape[0]
    Ho = (H + 2 - 3) // 2 + 1
    Wo = (W + 2 - 3) // 2 + 1

    xp = jnp.pad(x_nhwc.astype(jnp.bfloat16), ((0, 0), (1, 1), (1, 1), (0, 0)))
    cols = []
    for kh in range(3):
        for kw in range(3):
            cols.append(xp[:, kh:kh + 2 * Ho - 1:2, kw:kw + 2 * Wo - 1:2, :])
    patches = jnp.stack(cols, axis=3)            # (B, Ho, Wo, 9, Cin)
    a = patches.reshape(B * Ho * Wo, 9 * Cin)

    # (Cout, Cin, kh, kw) -> (kh, kw, Cin, Cout) -> (9*Cin, Cout), matching
    # the (kh, kw, cin) flatten order of `patches`.
    wmat = jnp.transpose(w_oihw, (2, 3, 1, 0)).reshape(9 * Cin, Cout)

    out = matmul_bias_act(a, wmat, bias, apply_relu=True, out_dtype=jnp.bfloat16)
    return out.reshape(B, Ho, Wo, Cout)


# ----------------------------------------------------------------------------
# Pallas kernel: AngularPenaltySMLoss, tiled over classes with online softmax
# ----------------------------------------------------------------------------
def _angular_kernel(feat_ref, w_ref, lab_ref, loss_ref,
                    m_sc, l_sc, cos_sc, *,
                    cos_m, sin_m, th, mm, num_classes, tc):
    c_idx = pl.program_id(0)

    @pl.when(c_idx == 0)
    def _():
        m_sc[...] = jnp.full_like(m_sc, -1e30)
        l_sc[...] = jnp.zeros_like(l_sc)
        cos_sc[...] = jnp.zeros_like(cos_sc)

    # F.normalize(x, p=2, dim=1)  (rsqrt -> EUP, no VALU divide)
    x = feat_ref[...].astype(jnp.float32)                       # (B, D)
    x_n = x * jax.lax.rsqrt(
        jnp.maximum(jnp.sum(x * x, axis=1, keepdims=True), 1e-24))

    # per-tile weight row normalization
    w = w_ref[...].astype(jnp.float32)                          # (TC, D)
    w_n = w * jax.lax.rsqrt(
        jnp.maximum(jnp.sum(w * w, axis=1, keepdims=True), 1e-30))

    # cosine logits for this class tile; contract last dims (no in-kernel .T)
    wf = jax.lax.dot_general(x_n, w_n, (((1,), (1,)), ((), ())),
                             preferred_element_type=jnp.float32)  # (B, TC)

    labels = lab_ref[...]                                       # (B, 1) int32
    col = jax.lax.broadcasted_iota(jnp.int32, wf.shape, 1) + c_idx * tc
    is_target = col == labels
    valid = col < num_classes
    one_hot = jnp.where(is_target, 1.0, 0.0)

    # gather target logit (accumulated across tiles; exactly one hit)
    cos_sc[...] += jnp.sum(one_hot * wf, axis=1, keepdims=True)

    # online log-sum-exp over valid, non-target columns
    keep = jnp.logical_and(valid, jnp.logical_not(is_target))
    wf_for_max = jnp.where(keep, wf, -1e30)
    m_prev = m_sc[...]
    m_new = jnp.maximum(m_prev, jnp.max(wf_for_max, axis=1, keepdims=True))
    p = jnp.where(keep, jnp.exp(wf - m_new), 0.0)
    l_sc[...] = l_sc[...] * jnp.exp(m_prev - m_new) + \
        jnp.sum(p, axis=1, keepdims=True)
    m_sc[...] = m_new

    @pl.when(c_idx == pl.num_programs(0) - 1)
    def _():
        cos_t = cos_sc[...]
        cos_c = jnp.clip(cos_t, -1.0, 1.0)           # guard sqrt against |cos|>1
        sin_t = jnp.sqrt(1.0 - cos_c * cos_c)
        ctm = cos_t * cos_m - sin_t * sin_m
        ctm = jnp.where(cos_t > th, ctm, cos_t - mm)
        # total LSE with the target column replaced by ctm
        m_fin = jnp.maximum(m_sc[...], ctm)
        l_fin = l_sc[...] * jnp.exp(m_sc[...] - m_fin) + jnp.exp(ctm - m_fin)
        lse = m_fin + jnp.log(l_fin)
        loss_ref[0, 0] = jnp.mean(lse - ctm)


def angular_penalty_loss(feat, w_ang, labels, m=4):
    cos_m = math.cos(m)
    sin_m = math.sin(m)
    th = math.cos(math.pi - m)
    mm = math.sin(math.pi - m) * m

    B, D = feat.shape
    C = w_ang.shape[0]

    # class-tile size: single tile for small C, 512-wide tiles for large C
    TC = _round_up(C, 8) if C <= 512 else 512
    C_pad = _round_up(C, TC)
    w_p = w_ang.astype(jnp.float32)
    if C_pad != C:
        w_p = jnp.pad(w_p, ((0, C_pad - C), (0, 0)))

    labels2 = labels.reshape(B, 1).astype(jnp.int32)

    loss = pl.pallas_call(
        functools.partial(_angular_kernel, cos_m=cos_m, sin_m=sin_m,
                          th=th, mm=mm, num_classes=C, tc=TC),
        out_shape=jax.ShapeDtypeStruct((1, 1), jnp.float32),
        grid_spec=pltpu.PrefetchScalarGridSpec(
            num_scalar_prefetch=0,
            grid=(C_pad // TC,),
            in_specs=[
                pl.BlockSpec((B, D), lambda c: (0, 0)),
                pl.BlockSpec((TC, D), lambda c: (c, 0)),
                pl.BlockSpec((B, 1), lambda c: (0, 0)),
            ],
            out_specs=pl.BlockSpec(memory_space=pltpu.MemorySpace.SMEM),
            scratch_shapes=[
                pltpu.VMEM((B, 1), jnp.float32),   # running max
                pltpu.VMEM((B, 1), jnp.float32),   # running sum
                pltpu.VMEM((B, 1), jnp.float32),   # target cos accumulator
            ],
        ),
        compiler_params=pltpu.CompilerParams(
            dimension_semantics=("arbitrary",),
        ),
    )(feat.astype(jnp.float32), w_p, labels2)
    return loss[0, 0]


# ----------------------------------------------------------------------------
# SphereCNN forward
# ----------------------------------------------------------------------------
def sphere_cnn_forward(params, x_nchw, y=None, feature=False):
    x = jnp.transpose(x_nchw, (0, 2, 3, 1)).astype(jnp.bfloat16)  # NCHW -> NHWC
    x = conv3x3_s2_relu(x, params["conv1_w"], params["conv1_b"])
    x = conv3x3_s2_relu(x, params["conv2_w"], params["conv2_b"])
    x = conv3x3_s2_relu(x, params["conv3_w"], params["conv3_b"])
    x = conv3x3_s2_relu(x, params["conv4_w"], params["conv4_b"])

    # flatten in NHWC order; fc5_w is stored in matching (H, W, C)-row order,
    # already transposed to (in_features, out_features), so no activation
    # transpose is needed here.
    B = x.shape[0]
    flat = x.reshape(B, -1)                                       # (B, 6*6*512)
    feat = matmul_bias_act(flat, params["fc5_w"], params["fc5_b"],
                           apply_relu=False, out_dtype=jnp.float32)  # (B, 512)

    if feature or y is None:
        return feat
    loss = angular_penalty_loss(feat, params["ang_w"], y, m=4)
    return feat, loss


def init_params(key, class_num):
    ks = jax.random.split(key, 8)

    def conv_init(k, cout, cin):
        scale = 1.0 / math.sqrt(cin * 9)
        return jax.random.normal(k, (cout, cin, 3, 3), jnp.float32) * scale

    fc5_in = 512 * 6 * 6
    params = {
        "conv1_w": conv_init(ks[0], 64, 3),
        "conv1_b": jnp.zeros((64,), jnp.float32),
        "conv2_w": conv_init(ks[1], 128, 64),
        "conv2_b": jnp.zeros((128,), jnp.float32),
        "conv3_w": conv_init(ks[2], 256, 128),
        "conv3_b": jnp.zeros((256,), jnp.float32),
        "conv4_w": conv_init(ks[3], 512, 256),
        "conv4_b": jnp.zeros((512,), jnp.float32),
        # stored as (in_features, out_features) with rows in NHWC flatten
        # order (equivalent to torch's fc5 up to a fixed row permutation).
        "fc5_w": jax.random.normal(ks[4], (fc5_in, 512), jnp.float32)
                 * (1.0 / math.sqrt(fc5_in)),
        "fc5_b": jnp.zeros((512,), jnp.float32),
        "ang_w": jax.random.normal(ks[5], (class_num, 512), jnp.float32)
                 * (1.0 / math.sqrt(512)),
    }
    return params


if __name__ == "__main__":
    class_num = 10
    key = jax.random.PRNGKey(0)
    kp, kx, ky = jax.random.split(key, 3)

    params = init_params(kp, class_num)

    # fc5 requires a 6x6 conv4 output -> 96x96 input (96 -> 48 -> 24 -> 12 -> 6)
    x = jax.random.normal(kx, (2, 3, 96, 96), jnp.float32)
    y = jax.random.randint(ky, (2,), 0, class_num, jnp.int32)

    fwd = jax.jit(sphere_cnn_forward)
    feat, loss = fwd(params, x, y)
    feat = jax.block_until_ready(feat)
    loss = jax.block_until_ready(loss)

    assert feat.shape == (2, 512)
    assert loss.shape == ()
    assert bool(jnp.isfinite(loss))
    print("KERNEL_OK")
</pallas_src>

<mosaic_0001>
module attributes {stable_mosaic.version = 11 : i64} {
  func.func @_mm_bias_act_kernel(%arg0: i32, %arg1: i32, %arg2: i32, %arg3: memref<128x128xbf16, #tpu.memory_space<vmem>>, %arg4: memref<128x128xbf16, #tpu.memory_space<vmem>>, %arg5: memref<1x128xf32, #tpu.memory_space<vmem>>, %arg6: memref<128x128xbf16, #tpu.memory_space<vmem>>, %arg7: memref<128x128xf32, #tpu.memory_space<vmem>>) attributes {dimension_semantics = [#tpu.dimension_semantics<parallel>, #tpu.dimension_semantics<parallel>, #tpu.dimension_semantics<arbitrary>], iteration_bounds = array<i64: 36, 1, 1>, scalar_prefetch = 0 : i64, scratch_operands = 1 : i64, tpu.core_type = #tpu.core_type<tc>, window_params = [{transform_indices = @transform_0, window_bounds = array<i64: 128, 128>}, {transform_indices = @transform_1, window_bounds = array<i64: 128, 128>}, {transform_indices = @transform_2, window_bounds = array<i64: 1, 128>}, {transform_indices = @transform_3, window_bounds = array<i64: 128, 128>}]} {
    %c0_i32 = arith.constant 0 : i32
    %0 = arith.cmpi eq, %arg2, %c0_i32 : i32
    %1 = arith.extui %0 : i1 to i32
    %c0_i32_0 = arith.constant 0 : i32
    %2 = arith.cmpi ne, %1, %c0_i32_0 : i32
    scf.if %2 {
      %cst_10 = arith.constant 0.000000e+00 : f32
      %12 = vector.broadcast %cst_10 : f32 to vector<128x128xf32>
      %c0_11 = arith.constant 0 : index
      %c0_12 = arith.constant 0 : index
      %13 = vector.load %arg7[%c0_11, %c0_12] : memref<128x128xf32, #tpu.memory_space<vmem>>, vector<128x128xf32>
      tpu.vector_store %arg7[%c0_11, %c0_12], %12 {strides = array<i32>} : memref<128x128xf32, #tpu.memory_space<vmem>>, vector<128x128xf32>,
    } else {
    }
    %c0 = arith.constant 0 : index
    %c0_1 = arith.constant 0 : index
    %3 = vector.load %arg7[%c0, %c0_1] : memref<128x128xf32, #tpu.memory_space<vmem>>, vector<128x128xf32>
    %c0_2 = arith.constant 0 : index
    %c0_3 = arith.constant 0 : index
    %4 = vector.load %arg3[%c0_2, %c0_3] : memref<128x128xbf16, #tpu.memory_space<vmem>>, vector<128x128xbf16>
    %c0_4 = arith.constant 0 : index
    %c0_5 = arith.constant 0 : index
    %5 = vector.load %arg4[%c0_4, %c0_5] : memref<128x128xbf16, #tpu.memory_space<vmem>>, vector<128x128xbf16>
    %cst = arith.constant dense<0.000000e+00> : vector<128x128xf32>
    %6 = tpu.matmul %4, %5, %cst {dimension_numbers = #tpu.dot_dimension_numbers<[1], [0], [0], [1], [0, 0, 1, 1], [], []>} : vector<128x128xbf16>, vector<128x128xbf16>, vector<128x128xf32> -> vector<128x128xf32>
    %7 = arith.addf %3, %6 : vector<128x128xf32>
    %c0_6 = arith.constant 0 : index
    %c0_7 = arith.constant 0 : index
    %8 = vector.load %arg7[%c0_6, %c0_7] : memref<128x128xf32, #tpu.memory_space<vmem>>, vector<128x128xf32>
    tpu.vector_store %arg7[%c0_6, %c0_7], %7 {strides = array<i32>} : memref<128x128xf32, #tpu.memory_space<vmem>>, vector<128x128xf32>,
    %c0_i32_8 = arith.constant 0 : i32
    %9 = arith.cmpi eq, %arg2, %c0_i32_8 : i32
    %10 = arith.extui %9 : i1 to i32
    %c0_i32_9 = arith.constant 0 : i32
    %11 = arith.cmpi ne, %10, %c0_i32_9 : i32
    scf.if %11 {
      %c0_10 = arith.constant 0 : index
      %c0_11 = arith.constant 0 : index
      %12 = vector.load %arg7[%c0_10, %c0_11] : memref<128x128xf32, #tpu.memory_space<vmem>>, vector<128x128xf32>
      %c0_12 = arith.constant 0 : index
      %c0_13 = arith.constant 0 : index
      %13 = vector.load %arg5[%c0_12, %c0_13] : memref<1x128xf32, #tpu.memory_space<vmem>>, vector<1x128xf32>
      %14 = vector.broadcast %13 : vector<1x128xf32> to vector<128x128xf32>
      %15 = arith.addf %12, %14 : vector<128x128xf32>
      %cst_14 = arith.constant 0.000000e+00 : f32
      %16 = vector.broadcast %cst_14 : f32 to vector<128x128xf32>
      %17 = arith.maximumf %15, %16 : vector<128x128xf32>
      %18 = arith.truncf %17 : vector<128x128xf32> to vector<128x128xbf16>
      %c0_15 = arith.constant 0 : index
      %c0_16 = arith.constant 0 : index
      %19 = vector.load %arg6[%c0_15, %c0_16] : memref<128x128xbf16, #tpu.memory_space<vmem>>, vector<128x128xbf16>
      tpu.vector_store %arg6[%c0_15, %c0_16], %18 {strides = array<i32>} : memref<128x128xbf16, #tpu.memory_space<vmem>>, vector<128x128xbf16>,
    } else {
    }
    return
  }
  func.func @transform_0(%arg0: i32, %arg1: i32, %arg2: i32) -> (i32, i32) {
    %c0_i32 = arith.constant 0 : i32
    return %arg0, %arg2 : i32, i32
  }
  func.func @transform_1(%arg0: i32, %arg1: i32, %arg2: i32) -> (i32, i32) {
    %c0_i32 = arith.constant 0 : i32
    return %arg2, %arg1 : i32, i32
  }
  func.func @transform_2(%arg0: i32, %arg1: i32, %arg2: i32) -> (i32, i32) {
    %c0_i32 = arith.constant 0 : i32
    %c0_i32_0 = arith.constant 0 : i32
    return %c0_i32, %arg1 : i32, i32
  }
  func.func @transform_3(%arg0: i32, %arg1: i32, %arg2: i32) -> (i32, i32) {
    %c0_i32 = arith.constant 0 : i32
    return %arg0, %arg1 : i32, i32
  }
}

module attributes {stable_mosaic.version = 11 : i64} {
  func.func @_mm_bias_act_kernel(%arg0: i32, %arg1: i32, %arg2: i32, %arg3: memref<128x640xbf16, #tpu.memory_space<vmem>>, %arg4: memref<640x128xbf16, #tpu.memory_space<vmem>>, %arg5: memref<1x128xf32, #tpu.memory_space<vmem>>, %arg6: memref<128x128xbf16, #tpu.memory_space<vmem>>, %arg7: memref<128x128xf32, #tpu.memory_space<vmem>>) attributes {dimension_semantics = [#tpu.dimension_semantics<parallel>, #tpu.dimension_semantics<parallel>, #tpu.dimension_semantics<arbitrary>], iteration_bounds = array<i64: 9, 1, 1>, scalar_prefetch = 0 : i64, scratch_operands = 1 : i64, tpu.core_type = #tpu.core_type<tc>, window_params = [{transform_indices = @transform_0, window_bounds = array<i64: 128, 640>}, {transform_indices = @transform_1, window_bounds = array<i64: 640, 128>}, {transform_indices = @transform_2, window_bounds = array<i64: 1, 128>}, {transform_indices = @transform_3, window_bounds = array<i64: 128, 128>}]} {
    %c0_i32 = arith.constant 0 : i32
    %0 = arith.cmpi eq, %arg2, %c0_i32 : i32
    %1 = arith.extui %0 : i1 to i32
    %c0_i32_0 = arith.constant 0 : i32
    %2 = arith.cmpi ne, %1, %c0_i32_0 : i32
    scf.if %2 {
      %cst_10 = arith.constant 0.000000e+00 : f32
      %12 = vector.broadcast %cst_10 : f32 to vector<128x128xf32>
      %c0_11 = arith.constant 0 : index
      %c0_12 = arith.constant 0 : index
      %13 = vector.load %arg7[%c0_11, %c0_12] : memref<128x128xf32, #tpu.memory_space<vmem>>, vector<128x128xf32>
      tpu.vector_store %arg7[%c0_11, %c0_12], %12 {strides = array<i32>} : memref<128x128xf32, #tpu.memory_space<vmem>>, vector<128x128xf32>,
    } else {
    }
    %c0 = arith.constant 0 : index
    %c0_1 = arith.constant 0 : index
    %3 = vector.load %arg7[%c0, %c0_1] : memref<128x128xf32, #tpu.memory_space<vmem>>, vector<128x128xf32>
    %c0_2 = arith.constant 0 : index
    %c0_3 = arith.constant 0 : index
    %4 = vector.load %arg3[%c0_2, %c0_3] : memref<128x640xbf16, #tpu.memory_space<vmem>>, vector<128x640xbf16>
    %c0_4 = arith.constant 0 : index
    %c0_5 = arith.constant 0 : index
    %5 = vector.load %arg4[%c0_4, %c0_5] : memref<640x128xbf16, #tpu.memory_space<vmem>>, vector<640x128xbf16>
    %cst = arith.constant dense<0.000000e+00> : vector<128x128xf32>
    %6 = tpu.matmul %4, %5, %cst {dimension_numbers = #tpu.dot_dimension_numbers<[1], [0], [0], [1], [0, 0, 1, 1], [], []>} : vector<128x640xbf16>, vector<640x128xbf16>, vector<128x128xf32> -> vector<128x128xf32>
    %7 = arith.addf %3, %6 : vector<128x128xf32>
    %c0_6 = arith.constant 0 : index
    %c0_7 = arith.constant 0 : index
    %8 = vector.load %arg7[%c0_6, %c0_7] : memref<128x128xf32, #tpu.memory_space<vmem>>, vector<128x128xf32>
    tpu.vector_store %arg7[%c0_6, %c0_7], %7 {strides = array<i32>} : memref<128x128xf32, #tpu.memory_space<vmem>>, vector<128x128xf32>,
    %c0_i32_8 = arith.constant 0 : i32
    %9 = arith.cmpi eq, %arg2, %c0_i32_8 : i32
    %10 = arith.extui %9 : i1 to i32
    %c0_i32_9 = arith.constant 0 : i32
    %11 = arith.cmpi ne, %10, %c0_i32_9 : i32
    scf.if %11 {
      %c0_10 = arith.constant 0 : index
      %c0_11 = arith.constant 0 : index
      %12 = vector.load %arg7[%c0_10, %c0_11] : memref<128x128xf32, #tpu.memory_space<vmem>>, vector<128x128xf32>
      %c0_12 = arith.constant 0 : index
      %c0_13 = arith.constant 0 : index
      %13 = vector.load %arg5[%c0_12, %c0_13] : memref<1x128xf32, #tpu.memory_space<vmem>>, vector<1x128xf32>
      %14 = vector.broadcast %13 : vector<1x128xf32> to vector<128x128xf32>
      %15 = arith.addf %12, %14 : vector<128x128xf32>
      %cst_14 = arith.constant 0.000000e+00 : f32
      %16 = vector.broadcast %cst_14 : f32 to vector<128x128xf32>
      %17 = arith.maximumf %15, %16 : vector<128x128xf32>
      %18 = arith.truncf %17 : vector<128x128xf32> to vector<128x128xbf16>
      %c0_15 = arith.constant 0 : index
      %c0_16 = arith.constant 0 : index
      %19 = vector.load %arg6[%c0_15, %c0_16] : memref<128x128xbf16, #tpu.memory_space<vmem>>, vector<128x128xbf16>
      tpu.vector_store %arg6[%c0_15, %c0_16], %18 {strides = array<i32>} : memref<128x128xbf16, #tpu.memory_space<vmem>>, vector<128x128xbf16>,
    } else {
    }
    return
  }
  func.func @transform_0(%arg0: i32, %arg1: i32, %arg2: i32) -> (i32, i32) {
    %c0_i32 = arith.constant 0 : i32
    return %arg0, %arg2 : i32, i32
  }
  func.func @transform_1(%arg0: i32, %arg1: i32, %arg2: i32) -> (i32, i32) {
    %c0_i32 = arith.constant 0 : i32
    return %arg2, %arg1 : i32, i32
  }
  func.func @transform_2(%arg0: i32, %arg1: i32, %arg2: i32) -> (i32, i32) {
    %c0_i32 = arith.constant 0 : i32
    %c0_i32_0 = arith.constant 0 : i32
    return %c0_i32, %arg1 : i32, i32
  }
  func.func @transform_3(%arg0: i32, %arg1: i32, %arg2: i32) -> (i32, i32) {
    %c0_i32 = arith.constant 0 : i32
    return %arg0, %arg1 : i32, i32
  }
}

module attributes {stable_mosaic.version = 11 : i64} {
  func.func @_mm_bias_act_kernel(%arg0: i32, %arg1: i32, %arg2: i32, %arg3: memref<96x1152xbf16, #tpu.memory_space<vmem>>, %arg4: memref<1152x256xbf16, #tpu.memory_space<vmem>>, %arg5: memref<1x256xf32, #tpu.memory_space<vmem>>, %arg6: memref<96x256xbf16, #tpu.memory_space<vmem>>, %arg7: memref<96x256xf32, #tpu.memory_space<vmem>>) attributes {dimension_semantics = [#tpu.dimension_semantics<parallel>, #tpu.dimension_semantics<parallel>, #tpu.dimension_semantics<arbitrary>], iteration_bounds = array<i64: 3, 1, 1>, scalar_prefetch = 0 : i64, scratch_operands = 1 : i64, tpu.core_type = #tpu.core_type<tc>, window_params = [{transform_indices = @transform_0, window_bounds = array<i64: 96, 1152>}, {transform_indices = @transform_1, window_bounds = array<i64: 1152, 256>}, {transform_indices = @transform_2, window_bounds = array<i64: 1, 256>}, {transform_indices = @transform_3, window_bounds = array<i64: 96, 256>}]} {
    %c0_i32 = arith.constant 0 : i32
    %0 = arith.cmpi eq, %arg2, %c0_i32 : i32
    %1 = arith.extui %0 : i1 to i32
    %c0_i32_0 = arith.constant 0 : i32
    %2 = arith.cmpi ne, %1, %c0_i32_0 : i32
    scf.if %2 {
      %cst_10 = arith.constant 0.000000e+00 : f32
      %12 = vector.broadcast %cst_10 : f32 to vector<96x256xf32>
      %c0_11 = arith.constant 0 : index
      %c0_12 = arith.constant 0 : index
      %13 = vector.load %arg7[%c0_11, %c0_12] : memref<96x256xf32, #tpu.memory_space<vmem>>, vector<96x256xf32>
      tpu.vector_store %arg7[%c0_11, %c0_12], %12 {strides = array<i32>} : memref<96x256xf32, #tpu.memory_space<vmem>>, vector<96x256xf32>,
    } else {
    }
    %c0 = arith.constant 0 : index
    %c0_1 = arith.constant 0 : index
    %3 = vector.load %arg7[%c0, %c0_1] : memref<96x256xf32, #tpu.memory_space<vmem>>, vector<96x256xf32>
    %c0_2 = arith.constant 0 : index
    %c0_3 = arith.constant 0 : index
    %4 = vector.load %arg3[%c0_2, %c0_3] : memref<96x1152xbf16, #tpu.memory_space<vmem>>, vector<96x1152xbf16>
    %c0_4 = arith.constant 0 : index
    %c0_5 = arith.constant 0 : index
    %5 = vector.load %arg4[%c0_4, %c0_5] : memref<1152x256xbf16, #tpu.memory_space<vmem>>, vector<1152x256xbf16>
    %cst = arith.constant dense<0.000000e+00> : vector<96x256xf32>
    %6 = tpu.matmul %4, %5, %cst {dimension_numbers = #tpu.dot_dimension_numbers<[1], [0], [0], [1], [0, 0, 1, 1], [], []>} : vector<96x1152xbf16>, vector<1152x256xbf16>, vector<96x256xf32> -> vector<96x256xf32>
    %7 = arith.addf %3, %6 : vector<96x256xf32>
    %c0_6 = arith.constant 0 : index
    %c0_7 = arith.constant 0 : index
    %8 = vector.load %arg7[%c0_6, %c0_7] : memref<96x256xf32, #tpu.memory_space<vmem>>, vector<96x256xf32>
    tpu.vector_store %arg7[%c0_6, %c0_7], %7 {strides = array<i32>} : memref<96x256xf32, #tpu.memory_space<vmem>>, vector<96x256xf32>,
    %c0_i32_8 = arith.constant 0 : i32
    %9 = arith.cmpi eq, %arg2, %c0_i32_8 : i32
    %10 = arith.extui %9 : i1 to i32
    %c0_i32_9 = arith.constant 0 : i32
    %11 = arith.cmpi ne, %10, %c0_i32_9 : i32
    scf.if %11 {
      %c0_10 = arith.constant 0 : index
      %c0_11 = arith.constant 0 : index
      %12 = vector.load %arg7[%c0_10, %c0_11] : memref<96x256xf32, #tpu.memory_space<vmem>>, vector<96x256xf32>
      %c0_12 = arith.constant 0 : index
      %c0_13 = arith.constant 0 : index
      %13 = vector.load %arg5[%c0_12, %c0_13] : memref<1x256xf32, #tpu.memory_space<vmem>>, vector<1x256xf32>
      %14 = vector.broadcast %13 : vector<1x256xf32> to vector<96x256xf32>
      %15 = arith.addf %12, %14 : vector<96x256xf32>
      %cst_14 = arith.constant 0.000000e+00 : f32
      %16 = vector.broadcast %cst_14 : f32 to vector<96x256xf32>
      %17 = arith.maximumf %15, %16 : vector<96x256xf32>
      %18 = arith.truncf %17 : vector<96x256xf32> to vector<96x256xbf16>
      %c0_15 = arith.constant 0 : index
      %c0_16 = arith.constant 0 : index
      %19 = vector.load %arg6[%c0_15, %c0_16] : memref<96x256xbf16, #tpu.memory_space<vmem>>, vector<96x256xbf16>
      tpu.vector_store %arg6[%c0_15, %c0_16], %18 {strides = array<i32>} : memref<96x256xbf16, #tpu.memory_space<vmem>>, vector<96x256xbf16>,
    } else {
    }
    return
  }
  func.func @transform_0(%arg0: i32, %arg1: i32, %arg2: i32) -> (i32, i32) {
    %c0_i32 = arith.constant 0 : i32
    return %arg0, %arg2 : i32, i32
  }
  func.func @transform_1(%arg0: i32, %arg1: i32, %arg2: i32) -> (i32, i32) {
    %c0_i32 = arith.constant 0 : i32
    return %arg2, %arg1 : i32, i32
  }
  func.func @transform_2(%arg0: i32, %arg1: i32, %arg2: i32) -> (i32, i32) {
    %c0_i32 = arith.constant 0 : i32
    %c0_i32_0 = arith.constant 0 : i32
    return %c0_i32, %arg1 : i32, i32
  }
  func.func @transform_3(%arg0: i32, %arg1: i32, %arg2: i32) -> (i32, i32) {
    %c0_i32 = arith.constant 0 : i32
    return %arg0, %arg1 : i32, i32
  }
}

module attributes {stable_mosaic.version = 11 : i64} {
  func.func @_mm_bias_act_kernel(%arg0: i32, %arg1: i32, %arg2: i32, %arg3: memref<72x2304xbf16, #tpu.memory_space<vmem>>, %arg4: memref<2304x256xbf16, #tpu.memory_space<vmem>>, %arg5: memref<1x256xf32, #tpu.memory_space<vmem>>, %arg6: memref<72x256xbf16, #tpu.memory_space<vmem>>, %arg7: memref<72x256xf32, #tpu.memory_space<vmem>>) attributes {dimension_semantics = [#tpu.dimension_semantics<parallel>, #tpu.dimension_semantics<parallel>, #tpu.dimension_semantics<arbitrary>], iteration_bounds = array<i64: 1, 2, 1>, scalar_prefetch = 0 : i64, scratch_operands = 1 : i64, tpu.core_type = #tpu.core_type<tc>, window_params = [{transform_indices = @transform_0, window_bounds = array<i64: 72, 2304>}, {transform_indices = @transform_1, window_bounds = array<i64: 2304, 256>}, {transform_indices = @transform_2, window_bounds = array<i64: 1, 256>}, {transform_indices = @transform_3, window_bounds = array<i64: 72, 256>}]} {
    %c0_i32 = arith.constant 0 : i32
    %0 = arith.cmpi eq, %arg2, %c0_i32 : i32
    %1 = arith.extui %0 : i1 to i32
    %c0_i32_0 = arith.constant 0 : i32
    %2 = arith.cmpi ne, %1, %c0_i32_0 : i32
    scf.if %2 {
      %cst_10 = arith.constant 0.000000e+00 : f32
      %12 = vector.broadcast %cst_10 : f32 to vector<72x256xf32>
      %c0_11 = arith.constant 0 : index
      %c0_12 = arith.constant 0 : index
      %13 = vector.load %arg7[%c0_11, %c0_12] : memref<72x256xf32, #tpu.memory_space<vmem>>, vector<72x256xf32>
      tpu.vector_store %arg7[%c0_11, %c0_12], %12 {strides = array<i32>} : memref<72x256xf32, #tpu.memory_space<vmem>>, vector<72x256xf32>,
    } else {
    }
    %c0 = arith.constant 0 : index
    %c0_1 = arith.constant 0 : index
    %3 = vector.load %arg7[%c0, %c0_1] : memref<72x256xf32, #tpu.memory_space<vmem>>, vector<72x256xf32>
    %c0_2 = arith.constant 0 : index
    %c0_3 = arith.constant 0 : index
    %4 = vector.load %arg3[%c0_2, %c0_3] : memref<72x2304xbf16, #tpu.memory_space<vmem>>, vector<72x2304xbf16>
    %c0_4 = arith.constant 0 : index
    %c0_5 = arith.constant 0 : index
    %5 = vector.load %arg4[%c0_4, %c0_5] : memref<2304x256xbf16, #tpu.memory_space<vmem>>, vector<2304x256xbf16>
    %cst = arith.constant dense<0.000000e+00> : vector<72x256xf32>
    %6 = tpu.matmul %4, %5, %cst {dimension_numbers = #tpu.dot_dimension_numbers<[1], [0], [0], [1], [0, 0, 1, 1], [], []>} : vector<72x2304xbf16>, vector<2304x256xbf16>, vector<72x256xf32> -> vector<72x256xf32>
    %7 = arith.addf %3, %6 : vector<72x256xf32>
    %c0_6 = arith.constant 0 : index
    %c0_7 = arith.constant 0 : index
    %8 = vector.load %arg7[%c0_6, %c0_7] : memref<72x256xf32, #tpu.memory_space<vmem>>, vector<72x256xf32>
    tpu.vector_store %arg7[%c0_6, %c0_7], %7 {strides = array<i32>} : memref<72x256xf32, #tpu.memory_space<vmem>>, vector<72x256xf32>,
    %c0_i32_8 = arith.constant 0 : i32
    %9 = arith.cmpi eq, %arg2, %c0_i32_8 : i32
    %10 = arith.extui %9 : i1 to i32
    %c0_i32_9 = arith.constant 0 : i32
    %11 = arith.cmpi ne, %10, %c0_i32_9 : i32
    scf.if %11 {
      %c0_10 = arith.constant 0 : index
      %c0_11 = arith.constant 0 : index
      %12 = vector.load %arg7[%c0_10, %c0_11] : memref<72x256xf32, #tpu.memory_space<vmem>>, vector<72x256xf32>
      %c0_12 = arith.constant 0 : index
      %c0_13 = arith.constant 0 : index
      %13 = vector.load %arg5[%c0_12, %c0_13] : memref<1x256xf32, #tpu.memory_space<vmem>>, vector<1x256xf32>
      %14 = vector.broadcast %13 : vector<1x256xf32> to vector<72x256xf32>
      %15 = arith.addf %12, %14 : vector<72x256xf32>
      %cst_14 = arith.constant 0.000000e+00 : f32
      %16 = vector.broadcast %cst_14 : f32 to vector<72x256xf32>
      %17 = arith.maximumf %15, %16 : vector<72x256xf32>
      %18 = arith.truncf %17 : vector<72x256xf32> to vector<72x256xbf16>
      %c0_15 = arith.constant 0 : index
      %c0_16 = arith.constant 0 : index
      %19 = vector.load %arg6[%c0_15, %c0_16] : memref<72x256xbf16, #tpu.memory_space<vmem>>, vector<72x256xbf16>
      tpu.vector_store %arg6[%c0_15, %c0_16], %18 {strides = array<i32>} : memref<72x256xbf16, #tpu.memory_space<vmem>>, vector<72x256xbf16>,
    } else {
    }
    return
  }
  func.func @transform_0(%arg0: i32, %arg1: i32, %arg2: i32) -> (i32, i32) {
    %c0_i32 = arith.constant 0 : i32
    return %arg0, %arg2 : i32, i32
  }
  func.func @transform_1(%arg0: i32, %arg1: i32, %arg2: i32) -> (i32, i32) {
    %c0_i32 = arith.constant 0 : i32
    return %arg2, %arg1 : i32, i32
  }
  func.func @transform_2(%arg0: i32, %arg1: i32, %arg2: i32) -> (i32, i32) {
    %c0_i32 = arith.constant 0 : i32
    %c0_i32_0 = arith.constant 0 : i32
    return %c0_i32, %arg1 : i32, i32
  }
  func.func @transform_3(%arg0: i32, %arg1: i32, %arg2: i32) -> (i32, i32) {
    %c0_i32 = arith.constant 0 : i32
    return %arg0, %arg1 : i32, i32
  }
}

module attributes {stable_mosaic.version = 11 : i64} {
  func.func @_mm_bias_act_kernel(%arg0: i32, %arg1: i32, %arg2: i32, %arg3: memref<2x2048xbf16, #tpu.memory_space<vmem>>, %arg4: memref<2048x256xbf16, #tpu.memory_space<vmem>>, %arg5: memref<1x256xf32, #tpu.memory_space<vmem>>, %arg6: memref<2x256xf32, #tpu.memory_space<vmem>>, %arg7: memref<2x256xf32, #tpu.memory_space<vmem>>) attributes {dimension_semantics = [#tpu.dimension_semantics<parallel>, #tpu.dimension_semantics<parallel>, #tpu.dimension_semantics<arbitrary>], iteration_bounds = array<i64: 1, 2, 9>, scalar_prefetch = 0 : i64, scratch_operands = 1 : i64, tpu.core_type = #tpu.core_type<tc>, window_params = [{transform_indices = @transform_0, window_bounds = array<i64: 2, 2048>}, {transform_indices = @transform_1, window_bounds = array<i64: 2048, 256>}, {transform_indices = @transform_2, window_bounds = array<i64: 1, 256>}, {transform_indices = @transform_3, window_bounds = array<i64: 2, 256>}]} {
    %c0_i32 = arith.constant 0 : i32
    %0 = arith.cmpi eq, %arg2, %c0_i32 : i32
    %1 = arith.extui %0 : i1 to i32
    %c0_i32_0 = arith.constant 0 : i32
    %2 = arith.cmpi ne, %1, %c0_i32_0 : i32
    scf.if %2 {
      %cst_9 = arith.constant 0.000000e+00 : f32
      %12 = vector.broadcast %cst_9 : f32 to vector<2x256xf32>
      %c0_10 = arith.constant 0 : index
      %c0_11 = arith.constant 0 : index
      %13 = vector.load %arg7[%c0_10, %c0_11] : memref<2x256xf32, #tpu.memory_space<vmem>>, vector<2x256xf32>
      tpu.vector_store %arg7[%c0_10, %c0_11], %12 {strides = array<i32>} : memref<2x256xf32, #tpu.memory_space<vmem>>, vector<2x256xf32>,
    } else {
    }
    %c0 = arith.constant 0 : index
    %c0_1 = arith.constant 0 : index
    %3 = vector.load %arg7[%c0, %c0_1] : memref<2x256xf32, #tpu.memory_space<vmem>>, vector<2x256xf32>
    %c0_2 = arith.constant 0 : index
    %c0_3 = arith.constant 0 : index
    %4 = vector.load %arg3[%c0_2, %c0_3] : memref<2x2048xbf16, #tpu.memory_space<vmem>>, vector<2x2048xbf16>
    %c0_4 = arith.constant 0 : index
    %c0_5 = arith.constant 0 : index
    %5 = vector.load %arg4[%c0_4, %c0_5] : memref<2048x256xbf16, #tpu.memory_space<vmem>>, vector<2048x256xbf16>
    %cst = arith.constant dense<0.000000e+00> : vector<2x256xf32>
    %6 = tpu.matmul %4, %5, %cst {dimension_numbers = #tpu.dot_dimension_numbers<[1], [0], [0], [1], [0, 0, 1, 1], [], []>} : vector<2x2048xbf16>, vector<2048x256xbf16>, vector<2x256xf32> -> vector<2x256xf32>
    %7 = arith.addf %3, %6 : vector<2x256xf32>
    %c0_6 = arith.constant 0 : index
    %c0_7 = arith.constant 0 : index
    %8 = vector.load %arg7[%c0_6, %c0_7] : memref<2x256xf32, #tpu.memory_space<vmem>>, vector<2x256xf32>
    tpu.vector_store %arg7[%c0_6, %c0_7], %7 {strides = array<i32>} : memref<2x256xf32, #tpu.memory_space<vmem>>, vector<2x256xf32>,
    %c8_i32 = arith.constant 8 : i32
    %9 = arith.cmpi eq, %arg2, %c8_i32 : i32
    %10 = arith.extui %9 : i1 to i32
    %c0_i32_8 = arith.constant 0 : i32
    %11 = arith.cmpi ne, %10, %c0_i32_8 : i32
    scf.if %11 {
      %c0_9 = arith.constant 0 : index
      %c0_10 = arith.constant 0 : index
      %12 = vector.load %arg7[%c0_9, %c0_10] : memref<2x256xf32, #tpu.memory_space<vmem>>, vector<2x256xf32>
      %c0_11 = arith.constant 0 : index
      %c0_12 = arith.constant 0 : index
      %13 = vector.load %arg5[%c0_11, %c0_12] : memref<1x256xf32, #tpu.memory_space<vmem>>, vector<1x256xf32>
      %14 = vector.broadcast %13 : vector<1x256xf32> to vector<2x256xf32>
      %15 = arith.addf %12, %14 : vector<2x256xf32>
      %c0_13 = arith.constant 0 : index
      %c0_14 = arith.constant 0 : index
      %16 = vector.load %arg6[%c0_13, %c0_14] : memref<2x256xf32, #tpu.memory_space<vmem>>, vector<2x256xf32>
      tpu.vector_store %arg6[%c0_13, %c0_14], %15 {strides = array<i32>} : memref<2x256xf32, #tpu.memory_space<vmem>>, vector<2x256xf32>,
    } else {
    }
    return
  }
  func.func @transform_0(%arg0: i32, %arg1: i32, %arg2: i32) -> (i32, i32) {
    %c0_i32 = arith.constant 0 : i32
    return %arg0, %arg2 : i32, i32
  }
  func.func @transform_1(%arg0: i32, %arg1: i32, %arg2: i32) -> (i32, i32) {
    %c0_i32 = arith.constant 0 : i32
    return %arg2, %arg1 : i32, i32
  }
  func.func @transform_2(%arg0: i32, %arg1: i32, %arg2: i32) -> (i32, i32) {
    %c0_i32 = arith.constant 0 : i32
    %c0_i32_0 = arith.constant 0 : i32
    return %c0_i32, %arg1 : i32, i32
  }
  func.func @transform_3(%arg0: i32, %arg1: i32, %arg2: i32) -> (i32, i32) {
    %c0_i32 = arith.constant 0 : i32
    return %arg0, %arg1 : i32, i32
  }
}

module attributes {stable_mosaic.version = 11 : i64} {
  func.func @_angular_kernel(%arg0: i32, %arg1: memref<2x512xf32, #tpu.memory_space<vmem>>, %arg2: memref<16x512xf32, #tpu.memory_space<vmem>>, %arg3: memref<2x1xi32, #tpu.memory_space<vmem>>, %arg4: memref<1x1xf32, #tpu.memory_space<smem>>, %arg5: memref<2x1xf32, #tpu.memory_space<vmem>>, %arg6: memref<2x1xf32, #tpu.memory_space<vmem>>, %arg7: memref<2x1xf32, #tpu.memory_space<vmem>>) attributes {dimension_semantics = [#tpu.dimension_semantics<arbitrary>], iteration_bounds = array<i64: 1>, scalar_prefetch = 0 : i64, scratch_operands = 3 : i64, tpu.core_type = #tpu.core_type<tc>, window_params = [{pipeline_mode = #tpu.pipeline_mode<synchronous>, transform_indices = @transform_0, window_bounds = array<i64: 2, 512>}, {transform_indices = @transform_1, window_bounds = array<i64: 16, 512>}, {pipeline_mode = #tpu.pipeline_mode<synchronous>, transform_indices = @transform_2, window_bounds = array<i64: 2, 1>}, {transform_indices = @transform_3, window_bounds = array<i64: 1, 1>}]} {
    %c0_i32 = arith.constant 0 : i32
    %0 = arith.cmpi eq, %arg0, %c0_i32 : i32
    %1 = arith.extui %0 : i1 to i32
    %c0_i32_0 = arith.constant 0 : i32
    %2 = arith.cmpi ne, %1, %c0_i32_0 : i32
    scf.if %2 {
      %cst_32 = arith.constant -1.000000e+30 : f32
      %65 = vector.broadcast %cst_32 : f32 to vector<2x1xf32>
      %c0_33 = arith.constant 0 : index
      %c0_34 = arith.constant 0 : index
      %66 = vector.load %arg5[%c0_33, %c0_34] : memref<2x1xf32, #tpu.memory_space<vmem>>, vector<2x1xf32>
      tpu.vector_store %arg5[%c0_33, %c0_34], %65 {strides = array<i32>} : memref<2x1xf32, #tpu.memory_space<vmem>>, vector<2x1xf32>,
      %cst_35 = arith.constant 0.000000e+00 : f32
      %67 = vector.broadcast %cst_35 : f32 to vector<2x1xf32>
      %c0_36 = arith.constant 0 : index
      %c0_37 = arith.constant 0 : index
      %68 = vector.load %arg6[%c0_36, %c0_37] : memref<2x1xf32, #tpu.memory_space<vmem>>, vector<2x1xf32>
      tpu.vector_store %arg6[%c0_36, %c0_37], %67 {strides = array<i32>} : memref<2x1xf32, #tpu.memory_space<vmem>>, vector<2x1xf32>,
      %cst_38 = arith.constant 0.000000e+00 : f32
      %69 = vector.broadcast %cst_38 : f32 to vector<2x1xf32>
      %c0_39 = arith.constant 0 : index
      %c0_40 = arith.constant 0 : index
      %70 = vector.load %arg7[%c0_39, %c0_40] : memref<2x1xf32, #tpu.memory_space<vmem>>, vector<2x1xf32>
      tpu.vector_store %arg7[%c0_39, %c0_40], %69 {strides = array<i32>} : memref<2x1xf32, #tpu.memory_space<vmem>>, vector<2x1xf32>,
    } else {
    }
    %c0 = arith.constant 0 : index
    %c0_1 = arith.constant 0 : index
    %3 = vector.load %arg1[%c0, %c0_1] : memref<2x512xf32, #tpu.memory_space<vmem>>, vector<2x512xf32>
    %4 = arith.mulf %3, %3 : vector<2x512xf32>
    %cst = arith.constant dense<0.000000e+00> : vector<2xf32>
    %5 = vector.multi_reduction <add>, %4, %cst [1] : vector<2x512xf32> to vector<2xf32>
    %6 = vector.shape_cast %5 : vector<2xf32> to vector<2x1xf32>
    %cst_2 = arith.constant 1.000000e-24 : f32
    %7 = vector.broadcast %cst_2 : f32 to vector<2x1xf32>
    %8 = arith.maximumf %6, %7 : vector<2x1xf32>
    %9 = math.rsqrt %8 : vector<2x1xf32>
    %10 = vector.broadcast %9 : vector<2x1xf32> to vector<2x512xf32>
    %11 = arith.mulf %3, %10 : vector<2x512xf32>
    %c0_3 = arith.constant 0 : index
    %c0_4 = arith.constant 0 : index
    %12 = vector.load %arg2[%c0_3, %c0_4] : memref<16x512xf32, #tpu.memory_space<vmem>>, vector<16x512xf32>
    %13 = arith.mulf %12, %12 : vector<16x512xf32>
    %cst_5 = arith.constant dense<0.000000e+00> : vector<16xf32>
    %14 = vector.multi_reduction <add>, %13, %cst_5 [1] : vector<16x512xf32> to vector<16xf32>
    %15 = vector.shape_cast %14 : vector<16xf32> to vector<16x1xf32>
    %cst_6 = arith.constant 1.000000e-30 : f32
    %16 = vector.broadcast %cst_6 : f32 to vector<16x1xf32>
    %17 = arith.maximumf %15, %16 : vector<16x1xf32>
    %18 = math.rsqrt %17 : vector<16x1xf32>
    %19 = vector.broadcast %18 : vector<16x1xf32> to vector<16x512xf32>
    %20 = arith.mulf %12, %19 : vector<16x512xf32>
    %cst_7 = arith.constant dense<0.000000e+00> : vector<2x16xf32>
    %21 = tpu.matmul %11, %20, %cst_7 {dimension_numbers = #tpu.dot_dimension_numbers<[1], [1], [0], [0], [0, 0, 1, 0], [], []>} : vector<2x512xf32>, vector<16x512xf32>, vector<2x16xf32> -> vector<2x16xf32>
    %c0_8 = arith.constant 0 : index
    %c0_9 = arith.constant 0 : index
    %22 = vector.load %arg3[%c0_8, %c0_9] : memref<2x1xi32, #tpu.memory_space<vmem>>, vector<2x1xi32>
    %23 = tpu.iota {dimensions = array<i32: 1>} : vector<2x16xi32>
    %c16_i32 = arith.constant 16 : i32
    %24 = arith.muli %arg0, %c16_i32 : i32
    %25 = vector.broadcast %24 : i32 to vector<2x16xi32>
    %26 = arith.addi %23, %25 : vector<2x16xi32>
    %27 = vector.broadcast %22 : vector<2x1xi32> to vector<2x16xi32>
    %28 = arith.cmpi eq, %26, %27 : vector<2x16xi32>
    %c10_i32 = arith.constant 10 : i32
    %29 = vector.broadcast %c10_i32 : i32 to vector<2x16xi32>
    %30 = arith.cmpi slt, %26, %29 : vector<2x16xi32>
    %cst_10 = arith.constant 1.000000e+00 : f32
    %cst_11 = arith.constant 0.000000e+00 : f32
    %31 = vector.broadcast %cst_10 : f32 to vector<2x16xf32>
    %32 = vector.broadcast %cst_11 : f32 to vector<2x16xf32>
    %33 = arith.select %28, %31, %32 : vector<2x16xi1>, vector<2x16xf32>
    %c0_12 = arith.constant 0 : index
    %c0_13 = arith.constant 0 : index
    %34 = vector.load %arg7[%c0_12, %c0_13] : memref<2x1xf32, #tpu.memory_space<vmem>>, vector<2x1xf32>
    %35 = arith.mulf %33, %21 : vector<2x16xf32>
    %cst_14 = arith.constant dense<0.000000e+00> : vector<2xf32>
    %36 = vector.multi_reduction <add>, %35, %cst_14 [1] : vector<2x16xf32> to vector<2xf32>
    %37 = vector.shape_cast %36 : vector<2xf32> to vector<2x1xf32>
    %38 = arith.addf %34, %37 : vector<2x1xf32>
    %c0_15 = arith.constant 0 : index
    %c0_16 = arith.constant 0 : index
    %39 = vector.load %arg7[%c0_15, %c0_16] : memref<2x1xf32, #tpu.memory_space<vmem>>, vector<2x1xf32>
    tpu.vector_store %arg7[%c0_15, %c0_16], %38 {strides = array<i32>} : memref<2x1xf32, #tpu.memory_space<vmem>>, vector<2x1xf32>,
    %cst_17 = arith.constant dense<true> : vector<2x16xi1>
    %40 = arith.xori %28, %cst_17 : vector<2x16xi1>
    %41 = arith.andi %30, %40 : vector<2x16xi1>
    %cst_18 = arith.constant -1.000000e+30 : f32
    %42 = vector.broadcast %cst_18 : f32 to vector<2x16xf32>
    %43 = arith.select %41, %21, %42 : vector<2x16xi1>, vector<2x16xf32>
    %c0_19 = arith.constant 0 : index
    %c0_20 = arith.constant 0 : index
    %44 = vector.load %arg5[%c0_19, %c0_20] : memref<2x1xf32, #tpu.memory_space<vmem>>, vector<2x1xf32>
    %cst_21 = arith.constant dense<0xFF800000> : vector<2xf32>
    %45 = vector.multi_reduction <maximumf>, %43, %cst_21 [1] : vector<2x16xf32> to vector<2xf32>
    %46 = vector.shape_cast %45 : vector<2xf32> to vector<2x1xf32>
    %47 = arith.maximumf %44, %46 : vector<2x1xf32>
    %48 = vector.broadcast %47 : vector<2x1xf32> to vector<2x16xf32>
    %49 = arith.subf %21, %48 : vector<2x16xf32>
    %50 = math.exp %49 : vector<2x16xf32>
    %cst_22 = arith.constant 0.000000e+00 : f32
    %51 = vector.broadcast %cst_22 : f32 to vector<2x16xf32>
    %52 = arith.select %41, %50, %51 : vector<2x16xi1>, vector<2x16xf32>
    %c0_23 = arith.constant 0 : index
    %c0_24 = arith.constant 0 : index
    %53 = vector.load %arg6[%c0_23, %c0_24] : memref<2x1xf32, #tpu.memory_space<vmem>>, vector<2x1xf32>
    %54 = arith.subf %44, %47 : vector<2x1xf32>
    %55 = math.exp %54 : vector<2x1xf32>
    %56 = arith.mulf %53, %55 : vector<2x1xf32>
    %cst_25 = arith.constant dense<0.000000e+00> : vector<2xf32>
    %57 = vector.multi_reduction <add>, %52, %cst_25 [1] : vector<2x16xf32> to vector<2xf32>
    %58 = vector.shape_cast %57 : vector<2xf32> to vector<2x1xf32>
    %59 = arith.addf %56, %58 : vector<2x1xf32>
    %c0_26 = arith.constant 0 : index
    %c0_27 = arith.constant 0 : index
    %60 = vector.load %arg6[%c0_26, %c0_27] : memref<2x1xf32, #tpu.memory_space<vmem>>, vector<2x1xf32>
    tpu.vector_store %arg6[%c0_26, %c0_27], %59 {strides = array<i32>} : memref<2x1xf32, #tpu.memory_space<vmem>>, vector<2x1xf32>,
    %c0_28 = arith.constant 0 : index
    %c0_29 = arith.constant 0 : index
    %61 = vector.load %arg5[%c0_28, %c0_29] : memref<2x1xf32, #tpu.memory_space<vmem>>, vector<2x1xf32>
    tpu.vector_store %arg5[%c0_28, %c0_29], %47 {strides = array<i32>} : memref<2x1xf32, #tpu.memory_space<vmem>>, vector<2x1xf32>,
    %c0_i32_30 = arith.constant 0 : i32
    %62 = arith.cmpi eq, %arg0, %c0_i32_30 : i32
    %63 = arith.extui %62 : i1 to i32
    %c0_i32_31 = arith.constant 0 : i32
    %64 = arith.cmpi ne, %63, %c0_i32_31 : i32
    scf.if %64 {
      %c0_32 = arith.constant 0 : index
      %c0_33 = arith.constant 0 : index
      %65 = vector.load %arg7[%c0_32, %c0_33] : memref<2x1xf32, #tpu.memory_space<vmem>>, vector<2x1xf32>
      %cst_34 = arith.constant -1.000000e+00 : f32
      %cst_35 = arith.constant 1.000000e+00 : f32
      %66 = vector.broadcast %cst_34 : f32 to vector<2x1xf32>
      %67 = arith.maximumf %66, %65 : vector<2x1xf32>
      %68 = vector.broadcast %cst_35 : f32 to vector<2x1xf32>
      %69 = arith.minimumf %68, %67 : vector<2x1xf32>
      %70 = arith.mulf %69, %69 : vector<2x1xf32>
      %cst_36 = arith.constant 1.000000e+00 : f32
      %71 = vector.broadcast %cst_36 : f32 to vector<2x1xf32>
      %72 = arith.subf %71, %70 : vector<2x1xf32>
      %73 = math.sqrt %72 : vector<2x1xf32>
      %cst_37 = arith.constant -0.653643608 : f32
      %74 = vector.broadcast %cst_37 : f32 to vector<2x1xf32>
      %75 = arith.mulf %65, %74 : vector<2x1xf32>
      %cst_38 = arith.constant -0.756802499 : f32
      %76 = vector.broadcast %cst_38 : f32 to vector<2x1xf32>
      %77 = arith.mulf %73, %76 : vector<2x1xf32>
      %78 = arith.subf %75, %77 : vector<2x1xf32>
      %cst_39 = arith.constant 0.653643608 : f32
      %79 = vector.broadcast %cst_39 : f32 to vector<2x1xf32>
      %80 = arith.cmpf ogt, %65, %79 : vector<2x1xf32>
      %cst_40 = arith.constant -3.027210e+00 : f32
      %81 = vector.broadcast %cst_40 : f32 to vector<2x1xf32>
      %82 = arith.subf %65, %81 : vector<2x1xf32>
      %83 = arith.select %80, %78, %82 : vector<2x1xi1>, vector<2x1xf32>
      %c0_41 = arith.constant 0 : index
      %c0_42 = arith.constant 0 : index
      %84 = vector.load %arg5[%c0_41, %c0_42] : memref<2x1xf32, #tpu.memory_space<vmem>>, vector<2x1xf32>
      %85 = arith.maximumf %84, %83 : vector<2x1xf32>
      %c0_43 = arith.constant 0 : index
      %c0_44 = arith.constant 0 : index
      %86 = vector.load %arg6[%c0_43, %c0_44] : memref<2x1xf32, #tpu.memory_space<vmem>>, vector<2x1xf32>
      %c0_45 = arith.constant 0 : index
      %c0_46 = arith.constant 0 : index
      %87 = vector.load %arg5[%c0_45, %c0_46] : memref<2x1xf32, #tpu.memory_space<vmem>>, vector<2x1xf32>
      %88 = arith.subf %87, %85 : vector<2x1xf32>
      %89 = math.exp %88 : vector<2x1xf32>
      %90 = arith.mulf %86, %89 : vector<2x1xf32>
      %91 = arith.subf %83, %85 : vector<2x1xf32>
      %92 = math.exp %91 : vector<2x1xf32>
      %93 = arith.addf %90, %92 : vector<2x1xf32>
      %94 = math.log %93 : vector<2x1xf32>
      %95 = arith.addf %85, %94 : vector<2x1xf32>
      %96 = arith.subf %95, %83 : vector<2x1xf32>
      %97 = vector.shape_cast %96 : vector<2x1xf32> to vector<1x2x1xf32>
      %cst_47 = arith.constant dense<0.000000e+00> : vector<1xf32>
      %98 = vector.multi_reduction <add>, %97, %cst_47 [1, 2] : vector<1x2x1xf32> to vector<1xf32>
      %99 = vector.shape_cast %98 : vector<1xf32> to vector<1x1x1xf32>
      %100 = vector.extract %99[0, 0, 0] : f32 from vector<1x1x1xf32>
      %cst_48 = arith.constant 2.000000e+00 : f32
      %101 = arith.divf %100, %cst_48 : f32
      %c0_49 = arith.constant 0 : index
      %c0_50 = arith.constant 0 : index
      %102 = memref.load %arg4[%c0_49, %c0_50] : memref<1x1xf32, #tpu.memory_space<smem>>
      memref.store %101, %arg4[%c0_49, %c0_50] : memref<1x1xf32, #tpu.memory_space<smem>>
    } else {
    }
    return
  }
  func.func @transform_0(%arg0: i32) -> (i32, i32) {
    %c0_i32 = arith.constant 0 : i32
    %c0_i32_0 = arith.constant 0 : i32
    %c0_i32_1 = arith.constant 0 : i32
    return %c0_i32, %c0_i32_0 : i32, i32
  }
  func.func @transform_1(%arg0: i32) -> (i32, i32) {
    %c0_i32 = arith.constant 0 : i32
    %c0_i32_0 = arith.constant 0 : i32
    return %arg0, %c0_i32 : i32, i32
  }
  func.func @transform_2(%arg0: i32) -> (i32, i32) {
    %c0_i32 = arith.constant 0 : i32
    %c0_i32_0 = arith.constant 0 : i32
    %c0_i32_1 = arith.constant 0 : i32
    return %c0_i32, %c0_i32_0 : i32, i32
  }
  func.func @transform_3(%arg0: i32) -> (i32, i32) {
    %c0_i32 = arith.constant 0 : i32
    %c0_i32_0 = arith.constant 0 : i32
    %c0_i32_1 = arith.constant 0 : i32
    return %c0_i32, %c0_i32_0 : i32, i32
  }
}

</mosaic_0001>

<bundles_post_ra>
// kernel: sphere_cnn_forward.6
= control target key start
LH: loop header
LB: loop body
LE: loop exit
PB: predicated region body
PF: predicated region fallthrough
CT: control target
= control target key end

     0   :  { %s1059_s12 = smov 0   ;;  %s1061_s13 = smov 0   ;;  %s1146_s0 = inlined_call_operand.vmem [shape: bf16[4608,128], index: 0, kind: input, shape index: {}]   ;;  %s1147_s1 = inlined_call_operand.vmem [shape: bf16[128,128], index: 1, kind: input, shape index: {}]   ;;  %s1148_s2 = inlined_call_operand.vmem [shape: f32[1,128], index: 2, kind: input, shape index: {}]   ;;  %s1149_s3 = inlined_call_operand.vmem [shape: bf16[4608,128], index: 3, kind: output, shape index: {}]  }
   0x1   :  { %s1063_s14 = smov 0  }
   0x2 LB: > { %s32_s15 = sadd.s32 1, %s1033_s13  ;;  %p808_p0 = scmp.ge.s32.totalorder %s1037_s14, 1  ;;  %s1037_s14 = sphi %s1063_s14, %s13_s14   ;;  %s1033_s13 = sphi %s1061_s13, %s1151_s13   ;;  %s1029_s12 = sphi %s1059_s12, %s1150_s12  }
   0x3   : > { %p34_p1 = scmp.ge.s32.totalorder %s32_s15, 36  ;;  %p188_p2 = scmp.lt.s32.totalorder %s1037_s14, 37 }
   0x5   : > { %s1153_s15 = smov (%p34_p1, %s32_s15), 0  ;;  %p189_p3 = pnand %p808_p0, %p188_p2 }
   0x6   : > { %v999_v0 = vld [vmem:[%s1147_s1] sm:$0xff] (!%p189_p3)   ;;  %s809_s18 = sshll.u32 (!%p189_p3), %s1029_s12, 4  ;;  %v1000_v1 = vld [vmem:[%s1147_s1 + $0x8] sm:$0xff] (!%p189_p3)   ;;  %v1001_v2 = vld [vmem:[%s1147_s1 + $0x10] sm:$0xff] (!%p189_p3)  }
   0x7   : > { %192 = sbr.rel (%p189_p3) target bundleno = 269 (0x10d), region = 32  ;;  %p230_p4 = scmp.lt.s32.totalorder (!%p189_p3), %s809_s18, 575  ;;  %927 = vmatprep.subr.bf16.mxu0 (!%p189_p3), %v999_v0  ;;  %959 = vmatprep.subr.bf16.mxu1 (!%p189_p3), %v999_v0  ;;  %v1002_v3 = vld [vmem:[%s1147_s1 + $0x18] sm:$0xff] (!%p189_p3)   ;;  %v1003_v6 = vld [vmem:[%s1147_s1 + $0x20] sm:$0xff] (!%p189_p3)   ;;  %v1004_v7 = vld [vmem:[%s1147_s1 + $0x28] sm:$0xff] (!%p189_p3)  }
   0x8   : > { %928 = vmatpush3.bf16.msra.mxu0 (!%p189_p3), %v999_v0  ;;  %967 = vmatpush3.bf16.msra.mxu1 (!%p189_p3), %v999_v0  ;;  %v1005_v8 = vld [vmem:[%s1147_s1 + $0x30] sm:$0xff] (!%p189_p3)   ;;  %v1006_v9 = vld [vmem:[%s1147_s1 + $0x38] sm:$0xff] (!%p189_p3)   ;;  %v829_v16 = vld [vmem:[%s1148_s2] ss:$0 sm:$0xff] (!%p189_p3) }
   0x9   : > { %929 = vmatprep.subr.bf16.mxu0 (!%p189_p3), %v1000_v1  ;;  %960 = vmatprep.subr.bf16.mxu1 (!%p189_p3), %v1000_v1 }
   0xc   : > { %930 = vmatpush3.bf16.msra.mxu0 (!%p189_p3), %v1000_v1  ;;  %968 = vmatpush3.bf16.msra.mxu1 (!%p189_p3), %v1000_v1 }
   0xd   : > { %931 = vmatprep.subr.bf16.mxu0 (!%p189_p3), %v1001_v2  ;;  %961 = vmatprep.subr.bf16.mxu1 (!%p189_p3), %v1001_v2 }
   0xe   : > { %s1155_s18 = smov (!%p230_p4, %s809_s18), 575 }
   0xf   : > { %s810_s23 = sshll.u32 %s1155_s18, 2 }
  0x10   : > { %s1094_s26 = scalar_lea.vmem %s1146_s0, %s810_s23  ;;  %932 = vmatpush3.bf16.msra.mxu0 %v1001_v2  ;;  %969 = vmatpush3.bf16.msra.mxu1 %v1001_v2  ;;  %s1127_s17 = scalar_lea.vmem %s1149_s3, %s810_s23 }
  0x11   : > { %v1007_v4 = vld [vmem:[%s1094_s26] sm:$0xff]   ;;  %933 = vmatprep.subr.bf16.mxu0 %v1002_v3  ;;  %962 = vmatprep.subr.bf16.mxu1 %v1002_v3  ;;  %v1009_v10 = vld [vmem:[%s1094_s26 + $0x8] sm:$0xff]   ;;  %v1011_v12 = vld [vmem:[%s1094_s26 + $0x10] sm:$0xff]  }
  0x12   : > { %v1008_v5 = vld [vmem:[%s1094_s26 + $0x20] sm:$0xff]   ;;  %943 = vmatprep.mubr.bf16.mxu0 %v1007_v4  ;;  %v1010_v11 = vld [vmem:[%s1094_s26 + $0x28] sm:$0xff]   ;;  %v1012_v13 = vld [vmem:[%s1094_s26 + $0x30] sm:$0xff]  }
  0x13   : > { %951 = vmatprep.mubr.bf16.mxu1 %v1008_v5  ;;  %v1013_v14 = vld [vmem:[%s1094_s26 + $0x18] sm:$0xff]  }
  0x14   : > { %934 = vmatpush3.bf16.msra.mxu0 %v1002_v3  ;;  %970 = vmatpush3.bf16.msra.mxu1 %v1002_v3  ;;  %v1014_v15 = vld [vmem:[%s1094_s26 + $0x38] sm:$0xff]  }
  0x15   : > { %935 = vmatprep.subr.bf16.mxu0 %v1003_v6  ;;  %963 = vmatprep.subr.bf16.mxu1 %v1003_v6 }
  0x18   : > { %936 = vmatpush3.bf16.msra.mxu0 %v1003_v6  ;;  %971 = vmatpush3.bf16.msra.mxu1 %v1003_v6 }
  0x19   : > { %937 = vmatprep.subr.bf16.mxu0 %v1004_v7  ;;  %964 = vmatprep.subr.bf16.mxu1 %v1004_v7 }
  0x1c   : > { %938 = vmatpush3.bf16.msra.mxu0 %v1004_v7  ;;  %972 = vmatpush3.bf16.msra.mxu1 %v1004_v7 }
  0x1d   : > { %939 = vmatprep.subr.bf16.mxu0 %v1005_v8  ;;  %965 = vmatprep.subr.bf16.mxu1 %v1005_v8 }
  0x20   : > { %940 = vmatpush3.bf16.msra.mxu0 %v1005_v8  ;;  %973 = vmatpush3.bf16.msra.mxu1 %v1005_v8 }
  0x21   : > { %941 = vmatprep.subr.bf16.mxu0 %v1006_v9  ;;  %966 = vmatprep.subr.bf16.mxu1 %v1006_v9 }
  0x24   : > { %942 = vmatpush3.bf16.msra.mxu0 %v1006_v9  ;;  %974 = vmatpush3.bf16.msra.mxu1 %v1006_v9 }
  0x27   : > { %944 = vmatmul.mubr.bf16.vlgmr.msra.gmra.mrb[0].mxu0 %v1009_v10  ;;  %952 = vmatmul.mubr.bf16.vlgmr.msra.gmra.mrb[0].mxu1 %v1010_v11 }
  0x28   : > { %947 = vmatprep.mubr.bf16.mxu0 %v1011_v12  ;;  %955 = vmatprep.mubr.bf16.mxu1 %v1012_v13 }
  0x2f   : > { %948 = vmatmul.mubr.bf16.gmra.mrb[4].mxu0 %v1013_v14  ;;  %956 = vmatmul.mubr.bf16.gmra.mrb[4].mxu1 %v1014_v15 }
  0xfa   : > { %v945_v17 = vpop.f32.mrb[0].mxu0  ;;  %v953_v18 = vpop.f32.mrb[0].mxu1 }
  0xfb   : > { %v581_v19 = vadd.f32 %v945_v17, %v829_v16  ;;  %v589_v20 = vadd.f32 %v953_v18, %v829_v16  ;;  %v458_v21 = vpop.f32.mrb[1].mxu0  ;;  %v490_v22 = vpop.f32.mrb[1].mxu1 }
  0xfc   : > { %v579_v23 = vadd.f32 %v829_v16, %v458_v21  ;;  %v587_v24 = vadd.f32 %v829_v16, %v490_v22  ;;  %v946_v25 = vpop.f32.mrb[2].mxu0  ;;  %v954_v26 = vpop.f32.mrb[2].mxu1 }
  0xfd   : > { %v582_v27 = vadd.f32 %v946_v25, %v829_v16  ;;  %v590_v28 = vadd.f32 %v954_v26, %v829_v16  ;;  %v461_v29 = vpop.f32.mrb[3].mxu0  ;;  %v493_v30 = vpop.f32.mrb[3].mxu1  ;;  %v597_v33 = vmax.f32 %v581_v19, 0.0  ;;  %v605_v34 = vmax.f32 %v589_v20, 0.0 }
  0xfe   : > { %v580_v31 = vadd.f32 %v829_v16, %v461_v29  ;;  %v588_v32 = vadd.f32 %v829_v16, %v493_v30  ;;  %v595_v37 = vmax.f32 %v579_v23, 0.0  ;;  %v603_v38 = vmax.f32 %v587_v24, 0.0 }
  0xff   : > { %v598_v35 = vmax.f32 %v582_v27, 0.0  ;;  %v606_v36 = vmax.f32 %v590_v28, 0.0 }
 0x100   : > { %v596_v39 = vmax.f32 %v580_v31, 0.0  ;;  %v604_v40 = vmax.f32 %v588_v32, 0.0 }
 0x101   : > { %v872_v41 = vpack.c.bf16 %v598_v35, %v597_v33  ;;  %v892_v42 = vpack.c.bf16 %v606_v36, %v605_v34 }
 0x102   : > { %v867_v43 = vpack.c.bf16 %v596_v39, %v595_v37  ;;  %v887_v44 = vpack.c.bf16 %v604_v40, %v603_v38  ;;  %v949_v45 = vpop.f32.mrb[4].mxu0  ;;  %v957_v46 = vpop.f32.mrb[4].mxu1 }
 0x103   : > { %904 = vst [vmem:[%s1127_s17 + $0x8] sm:$0xff] %v872_v41   ;;  %908 = vst [vmem:[%s1127_s17 + $0x28] sm:$0xff] %v892_v42   ;;  %v585_v47 = vadd.f32 %v949_v45, %v829_v16  ;;  %v593_v48 = vadd.f32 %v957_v46, %v829_v16  ;;  %v474_v49 = vpop.f32.mrb[5].mxu0  ;;  %v506_v50 = vpop.f32.mrb[5].mxu1 }
 0x104   : > { %868 = vst [vmem:[%s1127_s17] sm:$0xff] %v867_v43   ;;  %907 = vst [vmem:[%s1127_s17 + $0x20] sm:$0xff] %v887_v44   ;;  %v583_v51 = vadd.f32 %v829_v16, %v474_v49  ;;  %v591_v52 = vadd.f32 %v829_v16, %v506_v50  ;;  %v950_v53 = vpop.f32.mrb[6].mxu0  ;;  %v958_v54 = vpop.f32.mrb[6].mxu1 }
 0x105   : > { %v586_v55 = vadd.f32 %v950_v53, %v829_v16  ;;  %v594_v56 = vadd.f32 %v958_v54, %v829_v16  ;;  %v477_v57 = vpop.f32.mrb[7].mxu0  ;;  %v509_v58 = vpop.f32.mrb[7].mxu1  ;;  %v601_v61 = vmax.f32 %v585_v47, 0.0  ;;  %v609_v62 = vmax.f32 %v593_v48, 0.0 }
 0x106   : > { %v584_v59 = vadd.f32 %v829_v16, %v477_v57  ;;  %v592_v60 = vadd.f32 %v829_v16, %v509_v58  ;;  %v599_v1 = vmax.f32 %v583_v51, 0.0  ;;  %v607_v2 = vmax.f32 %v591_v52, 0.0 }
 0x107   : > { %v602_v63 = vmax.f32 %v586_v55, 0.0  ;;  %v610_v0 = vmax.f32 %v594_v56, 0.0 }
 0x108   : > { %v600_v3 = vmax.f32 %v584_v59, 0.0  ;;  %v608_v4 = vmax.f32 %v592_v60, 0.0 }
 0x109   : > { %v882_v5 = vpack.c.bf16 %v602_v63, %v601_v61  ;;  %v902_v6 = vpack.c.bf16 %v610_v0, %v609_v62 }
 0x10a   : > { %v877_v7 = vpack.c.bf16 %v600_v3, %v599_v1  ;;  %v897_v8 = vpack.c.bf16 %v608_v4, %v607_v2 }
 0x10b   : > { %906 = vst [vmem:[%s1127_s17 + $0x18] sm:$0xff] %v882_v5   ;;  %910 = vst [vmem:[%s1127_s17 + $0x38] sm:$0xff] %v902_v6  }
 0x10c   : > { %905 = vst [vmem:[%s1127_s17 + $0x10] sm:$0xff] %v877_v7   ;;  %909 = vst [vmem:[%s1127_s17 + $0x30] sm:$0xff] %v897_v8  }
 0x10d PF: > { %s13_s14 = sadd.s32 1, %s1037_s14   ;;  %s1150_s12 = smov %s1033_s13 }
 0x10e   : > { %p10_p5 = scmp.ge.s32.totalorder %s13_s14, 38   ;;  %s1151_s13 = smov %s1153_s15 }
 0x110   :  { %12 = sbr.rel (!%p10_p5) target bundleno = 2 (0x2), region = 76 }

// kernel: sphere_cnn_forward.7
= control target key start
LH: loop header
LB: loop body
LE: loop exit
PB: predicated region body
PF: predicated region fallthrough
CT: control target
= control target key end

     0   :  { %s1985_s12 = smov 0   ;;  %s1987_s13 = smov 0   ;;  %s2251_s0 = inlined_call_operand.vmem [shape: bf16[1152,640], index: 0, kind: input, shape index: {}]   ;;  %s2252_s1 = inlined_call_operand.vmem [shape: bf16[640,128], index: 1, kind: input, shape index: {}]   ;;  %s2253_s2 = inlined_call_operand.vmem [shape: f32[1,128], index: 2, kind: input, shape index: {}]   ;;  %s2254_s3 = inlined_call_operand.vmem [shape: bf16[1152,128], index: 3, kind: output, shape index: {}]  }
   0x1   :  { %s1989_s14 = smov 0  }
   0x2 LB: > { %s32_s15 = sadd.s32 1, %s1959_s13  ;;  %p1461_p0 = scmp.ge.s32.totalorder %s1963_s14, 1  ;;  %s1963_s14 = sphi %s1989_s14, %s13_s14   ;;  %s1959_s13 = sphi %s1987_s13, %s2256_s13   ;;  %s1955_s12 = sphi %s1985_s12, %s2255_s12  }
   0x3   : > { %p34_p1 = scmp.ge.s32.totalorder %s32_s15, 9  ;;  %p191_p2 = scmp.lt.s32.totalorder %s1963_s14, 10 }
   0x5   : > { %s2258_s15 = smov (%p34_p1, %s32_s15), 0  ;;  %p192_p3 = pnand %p1461_p0, %p191_p2 }
   0x6   : > { %v1845_v0 = vld [vmem:[%s2252_s1 + $0x40] sm:$0xff] (!%p192_p3)   ;;  %v1849_v4 = vld [vmem:[%s2252_s1 + $0x48] sm:$0xff] (!%p192_p3)   ;;  %v1853_v8 = vld [vmem:[%s2252_s1 + $0x50] sm:$0xff] (!%p192_p3)   ;;  %s1462_s23 = sshll.u32 (!%p192_p3), %s1955_s12, 4 }
   0x7   : > { %195 = sbr.rel (%p192_p3) target bundleno = 337 (0x151), region = 32  ;;  %v1846_v1 = vld [vmem:[%s2252_s1 + $0xc0] sm:$0xff] (!%p192_p3)   ;;  %1628 = vmatprep.subr.bf16.mxu0 (!%p192_p3), %v1845_v0  ;;  %v1850_v5 = vld [vmem:[%s2252_s1 + $0xc8] sm:$0xff] (!%p192_p3)   ;;  %v1854_v9 = vld [vmem:[%s2252_s1 + $0xd0] sm:$0xff] (!%p192_p3)   ;;  %p236_p4 = scmp.lt.s32.totalorder (!%p192_p3), %s1462_s23, 143 }
   0x8   : > { %v1847_v2 = vld [vmem:[%s2252_s1] sm:$0xff] (!%p192_p3)   ;;  %1692 = vmatprep.subr.bf16.mxu1 (!%p192_p3), %v1846_v1  ;;  %v1851_v6 = vld [vmem:[%s2252_s1 + $0x8] sm:$0xff] (!%p192_p3)   ;;  %v1855_v10 = vld [vmem:[%s2252_s1 + $0x10] sm:$0xff] (!%p192_p3)  }
   0x9   : > { %v1848_v3 = vld [vmem:[%s2252_s1 + $0x80] sm:$0xff] (!%p192_p3)   ;;  %1629 = vmatpush3.bf16.msra.mxu0 (!%p192_p3), %v1847_v2  ;;  %v1852_v7 = vld [vmem:[%s2252_s1 + $0x88] sm:$0xff] (!%p192_p3)   ;;  %v1856_v11 = vld [vmem:[%s2252_s1 + $0x90] sm:$0xff] (!%p192_p3)  }
   0xa   : > { %1693 = vmatpush3.bf16.msra.mxu1 (!%p192_p3), %v1848_v3  ;;  %1630 = vmatprep.subr.bf16.mxu0 (!%p192_p3), %v1849_v4  ;;  %v1857_v12 = vld [vmem:[%s2252_s1 + $0x58] sm:$0xff] (!%p192_p3)   ;;  %v1861_v16 = vld [vmem:[%s2252_s1 + $0x60] sm:$0xff] (!%p192_p3)   ;;  %v1865_v20 = vld [vmem:[%s2252_s1 + $0x68] sm:$0xff] (!%p192_p3)  }
   0xb   : > { %1694 = vmatprep.subr.bf16.mxu1 (!%p192_p3), %v1850_v5  ;;  %v1858_v13 = vld [vmem:[%s2252_s1 + $0xd8] sm:$0xff] (!%p192_p3)   ;;  %v1862_v17 = vld [vmem:[%s2252_s1 + $0xe0] sm:$0xff] (!%p192_p3)   ;;  %v1866_v21 = vld [vmem:[%s2252_s1 + $0xe8] sm:$0xff] (!%p192_p3)  }
   0xc   : > { %v1859_v14 = vld [vmem:[%s2252_s1 + $0x18] sm:$0xff] (!%p192_p3)   ;;  %v1863_v18 = vld [vmem:[%s2252_s1 + $0x20] sm:$0xff] (!%p192_p3)   ;;  %v1867_v22 = vld [vmem:[%s2252_s1 + $0x28] sm:$0xff] (!%p192_p3)  }
   0xd   : > { %1631 = vmatpush3.bf16.msra.mxu0 (!%p192_p3), %v1851_v6  ;;  %v1860_v15 = vld [vmem:[%s2252_s1 + $0x98] sm:$0xff] (!%p192_p3)   ;;  %v1864_v19 = vld [vmem:[%s2252_s1 + $0xa0] sm:$0xff] (!%p192_p3)   ;;  %v1868_v23 = vld [vmem:[%s2252_s1 + $0xa8] sm:$0xff] (!%p192_p3)  }
   0xe   : > { %1695 = vmatpush3.bf16.msra.mxu1 %v1852_v7  ;;  %1632 = vmatprep.subr.bf16.mxu0 %v1853_v8  ;;  %s2260_s23 = smov (!%p236_p4, %s1462_s23), 143  ;;  %v1869_v24 = vld [vmem:[%s2252_s1 + $0x70] sm:$0xff]   ;;  %v1873_v28 = vld [vmem:[%s2252_s1 + $0x78] sm:$0xff]   ;;  %v1883_v36 = vld [vmem:[%s2252_s1 + $0x100] sm:$0xff]  }
   0xf   : > { %1696 = vmatprep.subr.bf16.mxu1 %v1854_v9  ;;  %v1870_v25 = vld [vmem:[%s2252_s1 + $0xf0] sm:$0xff]   ;;  %s1820_s22 = smul.u32 20, %s2260_s23  ;;  %v1874_v29 = vld [vmem:[%s2252_s1 + $0xf8] sm:$0xff]   ;;  %v1890_v39 = vld [vmem:[%s2252_s1 + $0x108] sm:$0xff]  }
  0x10   : > { %v1871_v26 = vld [vmem:[%s2252_s1 + $0x30] sm:$0xff]   ;;  %v1875_v30 = vld [vmem:[%s2252_s1 + $0x38] sm:$0xff]   ;;  %v1911_v50 = vld [vmem:[%s2252_s1 + $0x120] sm:$0xff]  }
  0x11   : > { %1633 = vmatpush3.bf16.msra.mxu0 %v1855_v10  ;;  %v1872_v27 = vld [vmem:[%s2252_s1 + $0xb0] sm:$0xff]   ;;  %s2102_s6 = scalar_lea.vmem %s2251_s0, %s1820_s22  ;;  %v1876_v31 = vld [vmem:[%s2252_s1 + $0xb8] sm:$0xff]   ;;  %v1918_v51 = vld [vmem:[%s2252_s1 + $0x128] sm:$0xff]  }
  0x12   : > { %1697 = vmatpush3.bf16.msra.mxu1 %v1856_v11  ;;  %1634 = vmatprep.subr.bf16.mxu0 %v1857_v12  ;;  %v1877_v32 = vld [vmem:[%s2102_s6] ss:$20 sps:$4 sm:$0xff]   ;;  %v1879_v33 = vld [vmem:[%s2102_s6 + $0x4] ss:$20 sps:$4 sm:$0xff]   ;;  %v1880_v34 = vld [vmem:[%s2102_s6 + $0x8] ss:$20 sps:$4 sm:$0xff]  }
  0x13   : > { %1698 = vmatprep.subr.bf16.mxu1 %v1858_v13  ;;  %v1882_v35 = vld [vmem:[%s2102_s6 + $0xc] ss:$20 sps:$4 sm:$0xff]   ;;  %912 = vmatprep.mubr.bf16.mxu0 %v1879_v33  ;;  %v1886_v38 = vld [vmem:[%s2102_s6 + $0x34] ss:$20 sps:$4 sm:$0xff]   ;;  %v1889_v41 = vld [vmem:[%s2102_s6 + $0x30] ss:$20 sps:$4 sm:$0xff]  }
  0x14   : > { %1009 = vmatprep.mubr.bf16.mxu1 %v1882_v35  ;;  %v1884_v37 = vld [vmem:[%s2102_s6 + $0x2c] ss:$20 sps:$4 sm:$0xff]   ;;  %v1888_v40 = vld [vmem:[%s2102_s6 + $0x28] ss:$20 sps:$4 sm:$0xff]   ;;  %v1897_v44 = vld [vmem:[%s2252_s1 + $0x110] sm:$0xff]  }
  0x15   : > { %1635 = vmatpush3.bf16.msra.mxu0 %v1859_v14  ;;  %v1891_v42 = vld [vmem:[%s2102_s6 + $0x54] ss:$20 sps:$4 sm:$0xff]   ;;  %v1893_v43 = vld [vmem:[%s2102_s6 + $0x5c] ss:$20 sps:$4 sm:$0xff]   ;;  %v1896_v47 = vld [vmem:[%s2102_s6 + $0x58] ss:$20 sps:$4 sm:$0xff]  }
  0x16   : > { %1699 = vmatpush3.bf16.msra.mxu1 %v1860_v15  ;;  %1636 = vmatprep.subr.bf16.mxu0 %v1861_v16  ;;  %v1904_v45 = vld [vmem:[%s2252_s1 + $0x118] sm:$0xff]   ;;  %v1895_v46 = vld [vmem:[%s2102_s6 + $0x50] ss:$20 sps:$4 sm:$0xff]   ;;  %v1903_v53 = vld [vmem:[%s2102_s6 + $0x80] ss:$20 sps:$4 sm:$0xff]  }
  0x17   : > { %1700 = vmatprep.subr.bf16.mxu1 %v1862_v17  ;;  %v1898_v48 = vld [vmem:[%s2102_s6 + $0x7c] ss:$20 sps:$4 sm:$0xff]   ;;  %v1900_v49 = vld [vmem:[%s2102_s6 + $0x84] ss:$20 sps:$4 sm:$0xff]   ;;  %v1907_v56 = vld [vmem:[%s2102_s6 + $0xac] ss:$20 sps:$4 sm:$0xff]  }
  0x18   : > { %v1902_v52 = vld [vmem:[%s2102_s6 + $0x78] ss:$20 sps:$4 sm:$0xff]   ;;  %v1925_v55 = vld [vmem:[%s2252_s1 + $0x130] sm:$0xff]   ;;  %v1910_v59 = vld [vmem:[%s2102_s6 + $0xa8] ss:$20 sps:$4 sm:$0xff]  }
  0x19   : > { %1637 = vmatpush3.bf16.msra.mxu0 %v1863_v18  ;;  %v1905_v54 = vld [vmem:[%s2102_s6 + $0xa4] ss:$20 sps:$4 sm:$0xff]   ;;  %v1909_v58 = vld [vmem:[%s2102_s6 + $0xa0] ss:$20 sps:$4 sm:$0xff]   ;;  %v1916_v62 = vld [vmem:[%s2102_s6 + $0xc8] ss:$20 sps:$4 sm:$0xff]  }
  0x1a   : > { %1701 = vmatpush3.bf16.msra.mxu1 %v1864_v19  ;;  %1638 = vmatprep.subr.bf16.mxu0 %v1865_v20  ;;  %v1932_v57 = vld [vmem:[%s2252_s1 + $0x138] sm:$0xff]   ;;  %v1912_v60 = vld [vmem:[%s2102_s6 + $0xcc] ss:$20 sps:$4 sm:$0xff]   ;;  %v1914_v61 = vld [vmem:[%s2102_s6 + $0xd4] ss:$20 sps:$4 sm:$0xff]  }
  0x1b   : > { %1702 = vmatprep.subr.bf16.mxu1 %v1866_v21  ;;  %v1917_v63 = vld [vmem:[%s2102_s6 + $0xd0] ss:$20 sps:$4 sm:$0xff]   ;;  %v1919_v0 = vld [vmem:[%s2102_s6 + $0xf4] ss:$20 sps:$4 sm:$0xff]   ;;  %v1924_v3 = vld [vmem:[%s2102_s6 + $0xf8] ss:$20 sps:$4 sm:$0xff]  }
  0x1c   : > { %v1921_v1 = vld [vmem:[%s2102_s6 + $0xfc] ss:$20 sps:$4 sm:$0xff]   ;;  %v1928_v5 = vld [vmem:[%s2102_s6 + $0x124] ss:$20 sps:$4 sm:$0xff]   ;;  %v1931_v7 = vld [vmem:[%s2102_s6 + $0x120] ss:$20 sps:$4 sm:$0xff]  }
  0x1d   : > { %1639 = vmatpush3.bf16.msra.mxu0 %v1867_v22  ;;  %v1923_v2 = vld [vmem:[%s2102_s6 + $0xf0] ss:$20 sps:$4 sm:$0xff]   ;;  %v1930_v6 = vld [vmem:[%s2102_s6 + $0x118] ss:$20 sps:$4 sm:$0xff]   ;;  %v1937_v12 = vld [vmem:[%s2102_s6 + $0x60] ss:$20 sps:$4 sm:$0xff]  }
  0x1e   : > { %1703 = vmatpush3.bf16.msra.mxu1 %v1868_v23  ;;  %1640 = vmatprep.subr.bf16.mxu0 %v1869_v24  ;;  %v1926_v4 = vld [vmem:[%s2102_s6 + $0x11c] ss:$20 sps:$4 sm:$0xff]   ;;  %v1935_v10 = vld [vmem:[%s2102_s6 + $0x38] ss:$20 sps:$4 sm:$0xff]   ;;  %v1938_v13 = vld [vmem:[%s2102_s6 + $0x100] ss:$20 sps:$4 sm:$0xff]  }
  0x1f   : > { %1704 = vmatprep.subr.bf16.mxu1 %v1870_v25  ;;  %v1933_v8 = vld [vmem:[%s2102_s6 + $0x10] ss:$20 sps:$4 sm:$0xff]   ;;  %v1936_v11 = vld [vmem:[%s2102_s6 + $0xd8] ss:$20 sps:$4 sm:$0xff]   ;;  %v1939_v14 = vld [vmem:[%s2102_s6 + $0x88] ss:$20 sps:$4 sm:$0xff]  }
  0x20   : > { %v1934_v9 = vld [vmem:[%s2102_s6 + $0xb0] ss:$20 sps:$4 sm:$0xff]   ;;  %v1940_v15 = vld [vmem:[%s2102_s6 + $0x128] ss:$20 sps:$4 sm:$0xff]   ;;  %s1465_s6 = sshll.u32 %s2260_s23, 2 }
  0x21   : > { %1641 = vmatpush3.bf16.msra.mxu0 %v1871_v26  ;;  %s2218_s9 = scalar_lea.vmem %s2254_s3, %s1465_s6 }
  0x22   : > { %1705 = vmatpush3.bf16.msra.mxu1 %v1872_v27  ;;  %1642 = vmatprep.subr.bf16.mxu0 %v1873_v28 }
  0x23   : > { %1706 = vmatprep.subr.bf16.mxu1 %v1874_v29 }
  0x25   : > { %1643 = vmatpush3.bf16.msra.mxu0 %v1875_v30 }
  0x26   : > { %1707 = vmatpush3.bf16.msra.mxu1 %v1876_v31  ;;  %1772 = vmatprep.subr.bf16.mxu0 %v1883_v36 }
  0x27   : > { %1804 = vmatprep.subr.bf16.mxu1 %v1883_v36 }
  0x28   : > { %913 = vmatmul.mubr.bf16.vlgmr.msra.gmra.mrb[0].mxu0 %v1877_v32 }
  0x29   : > { %1010 = vmatmul.mubr.bf16.vlgmr.msra.gmra.mrb[0].mxu1 %v1880_v34  ;;  %1773 = vmatpush3.bf16.msra.mxu0 %v1883_v36 }
  0x2a   : > { %1812 = vmatpush3.bf16.msra.mxu1 %v1883_v36  ;;  %920 = vmatprep.mubr.bf16.mxu0 %v1884_v37 }
  0x2b   : > { %1017 = vmatprep.mubr.bf16.mxu1 %v1886_v38  ;;  %1774 = vmatprep.subr.bf16.mxu0 %v1890_v39 }
  0x2c   : > { %1805 = vmatprep.subr.bf16.mxu1 %v1890_v39 }
  0x2d   : > { %1775 = vmatpush3.bf16.msra.mxu0 %v1890_v39 }
  0x2e   : > { %1813 = vmatpush3.bf16.msra.mxu1 %v1890_v39  ;;  %1776 = vmatprep.subr.bf16.mxu0 %v1897_v44 }
  0x2f   : > { %1806 = vmatprep.subr.bf16.mxu1 %v1897_v44 }
  0x30   : > { %921 = vmatmul.mubr.bf16.gmra.mrb[4].mxu0 %v1888_v40 }
  0x31   : > { %1018 = vmatmul.mubr.bf16.gmra.mrb[4].mxu1 %v1889_v41  ;;  %928 = vmatprep.mubr.bf16.mxu0 %v1891_v42 }
  0x32   : > { %1025 = vmatprep.mubr.bf16.mxu1 %v1893_v43  ;;  %1777 = vmatpush3.bf16.msra.mxu0 %v1897_v44 }
  0x33   : > { %1814 = vmatpush3.bf16.msra.mxu1 %v1897_v44  ;;  %1778 = vmatprep.subr.bf16.mxu0 %v1904_v45 }
  0x34   : > { %1807 = vmatprep.subr.bf16.mxu1 %v1904_v45 }
  0x36   : > { %1779 = vmatpush3.bf16.msra.mxu0 %v1904_v45 }
  0x37   : > { %1815 = vmatpush3.bf16.msra.mxu1 %v1904_v45  ;;  %1780 = vmatprep.subr.bf16.mxu0 %v1911_v50 }
  0x38   : > { %929 = vmatmul.mubr.bf16.gmra.mrb[8].mxu0 %v1895_v46  ;;  %1808 = vmatprep.subr.bf16.mxu1 %v1911_v50 }
  0x39   : > { %1026 = vmatmul.mubr.bf16.gmra.mrb[8].mxu1 %v1896_v47  ;;  %936 = vmatprep.mubr.bf16.mxu0 %v1898_v48 }
  0x3a   : > { %1033 = vmatprep.mubr.bf16.mxu1 %v1900_v49  ;;  %1781 = vmatpush3.bf16.msra.mxu0 %v1911_v50 }
  0x3b   : > { %1816 = vmatpush3.bf16.msra.mxu1 %v1911_v50  ;;  %1782 = vmatprep.subr.bf16.mxu0 %v1918_v51 }
  0x3c   : > { %1809 = vmatprep.subr.bf16.mxu1 %v1918_v51 }
  0x3e   : > { %1783 = vmatpush3.bf16.msra.mxu0 %v1918_v51 }
  0x3f   : > { %1817 = vmatpush3.bf16.msra.mxu1 %v1918_v51  ;;  %1784 = vmatprep.subr.bf16.mxu0 %v1925_v55 }
  0x40   : > { %937 = vmatmul.mubr.bf16.gmra.mrb[12].mxu0 %v1902_v52  ;;  %1810 = vmatprep.subr.bf16.mxu1 %v1925_v55 }
  0x41   : > { %1034 = vmatmul.mubr.bf16.gmra.mrb[12].mxu1 %v1903_v53  ;;  %944 = vmatprep.mubr.bf16.mxu0 %v1905_v54 }
  0x42   : > { %1041 = vmatprep.mubr.bf16.mxu1 %v1907_v56  ;;  %1785 = vmatpush3.bf16.msra.mxu0 %v1925_v55 }
  0x43   : > { %1818 = vmatpush3.bf16.msra.mxu1 %v1925_v55  ;;  %1786 = vmatprep.subr.bf16.mxu0 %v1932_v57 }
  0x44   : > { %1811 = vmatprep.subr.bf16.mxu1 %v1932_v57 }
  0x46   : > { %1787 = vmatpush3.bf16.msra.mxu0 %v1932_v57 }
  0x47   : > { %1819 = vmatpush3.bf16.msra.mxu1 %v1932_v57 }
  0x48   : > { %945 = vmatmul.mubr.bf16.gmra.mrb[16].mxu0 %v1909_v58 }
  0x49   : > { %1042 = vmatmul.mubr.bf16.gmra.mrb[16].mxu1 %v1910_v59  ;;  %952 = vmatprep.mubr.bf16.mxu0 %v1912_v60 }
  0x4a   : > { %1049 = vmatprep.mubr.bf16.mxu1 %v1914_v61 }
  0x50   : > { %953 = vmatmul.mubr.bf16.gmra.mrb[20].mxu0 %v1916_v62 }
  0x51   : > { %1050 = vmatmul.mubr.bf16.gmra.mrb[20].mxu1 %v1917_v63  ;;  %960 = vmatprep.mubr.bf16.mxu0 %v1919_v0 }
  0x52   : > { %1057 = vmatprep.mubr.bf16.mxu1 %v1921_v1 }
  0x58   : > { %961 = vmatmul.mubr.bf16.gmra.mrb[24].mxu0 %v1923_v2 }
  0x59   : > { %1058 = vmatmul.mubr.bf16.gmra.mrb[24].mxu1 %v1924_v3  ;;  %968 = vmatprep.mubr.bf16.mxu0 %v1926_v4 }
  0x5a   : > { %1065 = vmatprep.mubr.bf16.mxu1 %v1928_v5 }
  0x60   : > { %969 = vmatmul.mubr.bf16.gmra.mrb[28].mxu0 %v1930_v6 }
  0x61   : > { %1066 = vmatmul.mubr.bf16.gmra.mrb[28].mxu1 %v1931_v7  ;;  %1788 = vmatprep.mubr.bf16.mxu0 %v1933_v8 }
  0x62   : > { %1796 = vmatprep.mubr.bf16.mxu1 %v1934_v9 }
  0x68   : > { %1789 = vmatmul.mubr.bf16.vlgmr.msra.gmra.mrb[32].mxu0 %v1935_v10 }
  0x69   : > { %1797 = vmatmul.mubr.bf16.vlgmr.msra.gmra.mrb[32].mxu1 %v1936_v11  ;;  %1792 = vmatprep.mubr.bf16.mxu0 %v1937_v12 }
  0x6a   : > { %1800 = vmatprep.mubr.bf16.mxu1 %v1938_v13 }
  0x70   : > { %1793 = vmatmul.mubr.bf16.gmra.mrb[36].mxu0 %v1939_v14 }
  0x71   : > { %1801 = vmatmul.mubr.bf16.gmra.mrb[36].mxu1 %v1940_v15 }
  0xfb   : > { %v1644_v16 = vpop.f32.mrb[0].mxu0 }
  0xfc   : > { %v1708_v17 = vpop.f32.mrb[0].mxu1  ;;  %v1645_v18 = vpop.f32.mrb[1].mxu0 }
  0xfd   : > { %v1646_v19 = vadd.f32 %v1645_v18, %v1644_v16  ;;  %v1709_v20 = vpop.f32.mrb[1].mxu1  ;;  %v1647_v21 = vpop.f32.mrb[2].mxu0 }
  0xfe   : > { %v1710_v22 = vadd.f32 %v1709_v20, %v1708_v17  ;;  %v1711_v23 = vpop.f32.mrb[2].mxu1  ;;  %v1648_v24 = vpop.f32.mrb[3].mxu0 }
  0xff   : > { %v1649_v25 = vadd.f32 %v1648_v24, %v1647_v21  ;;  %v1712_v26 = vpop.f32.mrb[3].mxu1 }
 0x100   : > { %v1713_v27 = vadd.f32 %v1712_v26, %v1711_v23  ;;  %v2174_v28 = vadd.f32 %v1710_v22, %v1646_v19 }
 0x102   : > { %v2176_v29 = vadd.f32 %v1713_v27, %v1649_v25 }
 0x103   : > { %v1650_v30 = vpop.f32.mrb[4].mxu0 }
 0x104   : > { %v1714_v31 = vpop.f32.mrb[4].mxu1  ;;  %v1651_v32 = vpop.f32.mrb[5].mxu0 }
 0x105   : > { %v1652_v33 = vadd.f32 %v1651_v32, %v1650_v30  ;;  %v1715_v34 = vpop.f32.mrb[5].mxu1  ;;  %v1653_v35 = vpop.f32.mrb[6].mxu0 }
 0x106   : > { %v1716_v36 = vadd.f32 %v1715_v34, %v1714_v31  ;;  %v1717_v37 = vpop.f32.mrb[6].mxu1  ;;  %v1654_v38 = vpop.f32.mrb[7].mxu0 }
 0x107   : > { %v1655_v39 = vadd.f32 %v1654_v38, %v1653_v35  ;;  %v1718_v40 = vpop.f32.mrb[7].mxu1 }
 0x108   : > { %v1719_v41 = vadd.f32 %v1718_v40, %v1717_v37  ;;  %v2178_v42 = vadd.f32 %v1716_v36, %v1652_v33 }
 0x10a   : > { %v2180_v43 = vadd.f32 %v1719_v41, %v1655_v39 }
 0x10b   : > { %v1656_v44 = vpop.f32.mrb[8].mxu0 }
 0x10c   : > { %v1720_v45 = vpop.f32.mrb[8].mxu1  ;;  %v1657_v46 = vpop.f32.mrb[9].mxu0 }
 0x10d   : > { %v1658_v47 = vadd.f32 %v1657_v46, %v1656_v44  ;;  %v1721_v48 = vpop.f32.mrb[9].mxu1  ;;  %v1659_v49 = vpop.f32.mrb[10].mxu0 }
 0x10e   : > { %v1722_v50 = vadd.f32 %v1721_v48, %v1720_v45  ;;  %v1723_v51 = vpop.f32.mrb[10].mxu1  ;;  %v1660_v52 = vpop.f32.mrb[11].mxu0 }
 0x10f   : > { %v1661_v53 = vadd.f32 %v1660_v52, %v1659_v49  ;;  %v1724_v54 = vpop.f32.mrb[11].mxu1 }
 0x110   : > { %v1725_v55 = vadd.f32 %v1724_v54, %v1723_v51  ;;  %v2182_v56 = vadd.f32 %v1722_v50, %v1658_v47 }
 0x112   : > { %v2184_v57 = vadd.f32 %v1725_v55, %v1661_v53 }
 0x113   : > { %v1662_v58 = vpop.f32.mrb[12].mxu0 }
 0x114   : > { %v1726_v59 = vpop.f32.mrb[12].mxu1  ;;  %v1663_v60 = vpop.f32.mrb[13].mxu0 }
 0x115   : > { %v1664_v61 = vadd.f32 %v1663_v60, %v1662_v58  ;;  %v1727_v62 = vpop.f32.mrb[13].mxu1  ;;  %v1665_v63 = vpop.f32.mrb[14].mxu0 }
 0x116   : > { %v1728_v0 = vadd.f32 %v1727_v62, %v1726_v59  ;;  %v1729_v1 = vpop.f32.mrb[14].mxu1  ;;  %v1666_v2 = vpop.f32.mrb[15].mxu0 }
 0x117   : > { %v1667_v3 = vadd.f32 %v1666_v2, %v1665_v63  ;;  %v1730_v4 = vpop.f32.mrb[15].mxu1 }
 0x118   : > { %v1731_v5 = vadd.f32 %v1730_v4, %v1729_v1  ;;  %v2186_v6 = vadd.f32 %v1728_v0, %v1664_v61 }
 0x11a   : > { %v2188_v7 = vadd.f32 %v1731_v5, %v1667_v3 }
 0x11b   : > { %v1668_v8 = vpop.f32.mrb[16].mxu0 }
 0x11c   : > { %v1732_v9 = vpop.f32.mrb[16].mxu1  ;;  %v1669_v10 = vpop.f32.mrb[17].mxu0 }
 0x11d   : > { %v1670_v11 = vadd.f32 %v1669_v10, %v1668_v8  ;;  %v1733_v12 = vpop.f32.mrb[17].mxu1  ;;  %v1671_v13 = vpop.f32.mrb[18].mxu0 }
 0x11e   : > { %v1734_v14 = vadd.f32 %v1733_v12, %v1732_v9  ;;  %v1735_v15 = vpop.f32.mrb[18].mxu1  ;;  %v1672_v16 = vpop.f32.mrb[19].mxu0  ;;  %v2199_v9 = vld [vmem:[%s2253_s2] ss:$0 sm:$0xff] }
 0x11f   : > { %v1673_v17 = vadd.f32 %v1672_v16, %v1671_v13  ;;  %v1736_v18 = vpop.f32.mrb[19].mxu1 }
 0x120   : > { %v1737_v19 = vadd.f32 %v1736_v18, %v1735_v15  ;;  %v1044_v20 = vadd.f32 %v1734_v14, %v1670_v11 }
 0x122   : > { %v2190_v21 = vadd.f32 %v1737_v19, %v1673_v17 }
 0x123   : > { %v1674_v22 = vpop.f32.mrb[20].mxu0 }
 0x124   : > { %v1738_v23 = vpop.f32.mrb[20].mxu1  ;;  %v1675_v24 = vpop.f32.mrb[21].mxu0 }
 0x125   : > { %v1676_v25 = vadd.f32 %v1675_v24, %v1674_v22  ;;  %v1739_v26 = vpop.f32.mrb[21].mxu1  ;;  %v1677_v27 = vpop.f32.mrb[22].mxu0 }
 0x126   : > { %v1740_v30 = vadd.f32 %v1739_v26, %v1738_v23  ;;  %v1741_v31 = vpop.f32.mrb[22].mxu1  ;;  %v1678_v32 = vpop.f32.mrb[23].mxu0 }
 0x127   : > { %v1679_v33 = vadd.f32 %v1678_v32, %v1677_v27  ;;  %v1742_v34 = vpop.f32.mrb[23].mxu1 }
 0x128   : > { %v1743_v35 = vadd.f32 %v1742_v34, %v1741_v31  ;;  %v1052_v36 = vadd.f32 %v1740_v30, %v1676_v25 }
 0x12a   : > { %v1055_v37 = vadd.f32 %v1743_v35, %v1679_v33 }
 0x12b   : > { %v1680_v38 = vpop.f32.mrb[24].mxu0 }
 0x12c   : > { %v1744_v39 = vpop.f32.mrb[24].mxu1  ;;  %v1681_v40 = vpop.f32.mrb[25].mxu0 }
 0x12d   : > { %v1682_v41 = vadd.f32 %v1681_v40, %v1680_v38  ;;  %v1745_v44 = vpop.f32.mrb[25].mxu1  ;;  %v1683_v45 = vpop.f32.mrb[26].mxu0 }
 0x12e   : > { %v1746_v46 = vadd.f32 %v1745_v44, %v1744_v39  ;;  %v1747_v47 = vpop.f32.mrb[26].mxu1  ;;  %v1684_v48 = vpop.f32.mrb[27].mxu0 }
 0x12f   : > { %v1685_v49 = vadd.f32 %v1684_v48, %v1683_v45  ;;  %v1748_v50 = vpop.f32.mrb[27].mxu1 }
 0x130   : > { %v1749_v51 = vadd.f32 %v1748_v50, %v1747_v47  ;;  %v2192_v52 = vadd.f32 %v1746_v46, %v1682_v41 }
 0x132   : > { %v2194_v53 = vadd.f32 %v1749_v51, %v1685_v49 }
 0x133   : > { %v1686_v54 = vpop.f32.mrb[28].mxu0 }
 0x134   : > { %v1750_v55 = vpop.f32.mrb[28].mxu1  ;;  %v1687_v58 = vpop.f32.mrb[29].mxu0 }
 0x135   : > { %v1688_v59 = vadd.f32 %v1687_v58, %v1686_v54  ;;  %v1751_v60 = vpop.f32.mrb[29].mxu1  ;;  %v1689_v61 = vpop.f32.mrb[30].mxu0 }
 0x136   : > { %v1752_v62 = vadd.f32 %v1751_v60, %v1750_v55  ;;  %v1753_v63 = vpop.f32.mrb[30].mxu1  ;;  %v1690_v0 = vpop.f32.mrb[31].mxu0 }
 0x137   : > { %v1691_v1 = vadd.f32 %v1690_v0, %v1689_v61  ;;  %v1754_v2 = vpop.f32.mrb[31].mxu1 }
 0x138   : > { %v1755_v3 = vadd.f32 %v1754_v2, %v1753_v63  ;;  %v1068_v4 = vadd.f32 %v1752_v62, %v1688_v59 }
 0x13a   : > { %v1071_v5 = vadd.f32 %v1755_v3, %v1691_v1 }
 0x13b   : > { %v1790_v8 = vpop.f32.mrb[32].mxu0 }
 0x13c   : > { %v1117_v10 = vadd.f32 %v1790_v8, %v2178_v42  ;;  %v1798_v11 = vpop.f32.mrb[32].mxu1  ;;  %v1108_v12 = vpop.f32.mrb[33].mxu0 }
 0x13d   : > { %v1149_v13 = vadd.f32 %v1798_v11, %v1052_v36  ;;  %v1109_v14 = vadd.f32 %v1108_v12, %v2174_v28  ;;  %v1140_v15 = vpop.f32.mrb[33].mxu1  ;;  %v1791_v16 = vpop.f32.mrb[34].mxu0 }
 0x13e   : > { %v1231_v17 = vadd.f32 %v2199_v9, %v1117_v10  ;;  %v1141_v18 = vadd.f32 %v1140_v15, %v1044_v20  ;;  %v1120_v19 = vadd.f32 %v1791_v16, %v2180_v43  ;;  %v1799_v22 = vpop.f32.mrb[34].mxu1  ;;  %v1111_v23 = vpop.f32.mrb[35].mxu0 }
 0x13f   : > { %v1239_v24 = vadd.f32 %v2199_v9, %v1149_v13  ;;  %v1229_v25 = vadd.f32 %v2199_v9, %v1109_v14  ;;  %v1152_v42 = vadd.f32 %v1799_v22, %v1055_v37  ;;  %v1112_v26 = vadd.f32 %v1111_v23, %v2176_v29  ;;  %v1143_v27 = vpop.f32.mrb[35].mxu1 }
 0x140   : > { %v1237_v30 = vadd.f32 %v2199_v9, %v1141_v18  ;;  %v1232_v28 = vadd.f32 %v2199_v9, %v1120_v19  ;;  %v1144_v31 = vadd.f32 %v1143_v27, %v2190_v21  ;;  %v1247_v32 = vmax.f32 %v1231_v17, 0.0 }
 0x141   : > { %v1240_v20 = vadd.f32 %v2199_v9, %v1152_v42  ;;  %v1230_v43 = vadd.f32 %v2199_v9, %v1112_v26  ;;  %v1255_v35 = vmax.f32 %v1239_v24, 0.0  ;;  %v1245_v36 = vmax.f32 %v1229_v25, 0.0 }
 0x142   : > { %v1248_v33 = vmax.f32 %v1232_v28, 0.0  ;;  %v1238_v34 = vadd.f32 %v2199_v9, %v1144_v31  ;;  %v1253_v21 = vmax.f32 %v1237_v30, 0.0 }
 0x143   : > { %v1256_v29 = vmax.f32 %v1240_v20, 0.0  ;;  %v1246_v37 = vmax.f32 %v1230_v43, 0.0  ;;  %v1794_v38 = vpop.f32.mrb[36].mxu0 }
 0x144   : > { %v1589_v39 = vpack.c.bf16 %v1248_v33, %v1247_v32  ;;  %v1254_v40 = vmax.f32 %v1238_v34, 0.0  ;;  %v1133_v41 = vadd.f32 %v1794_v38, %v2186_v6  ;;  %v1802_v44 = vpop.f32.mrb[36].mxu1  ;;  %v1124_v45 = vpop.f32.mrb[37].mxu0 }
 0x145   : > { %v1609_v46 = vpack.c.bf16 %v1256_v29, %v1255_v35  ;;  %v1584_v47 = vpack.c.bf16 %v1246_v37, %v1245_v36  ;;  %v1165_v48 = vadd.f32 %v1802_v44, %v1068_v4  ;;  %v1125_v49 = vadd.f32 %v1124_v45, %v2182_v56  ;;  %v1156_v50 = vpop.f32.mrb[37].mxu1  ;;  %v1795_v51 = vpop.f32.mrb[38].mxu0 }
 0x146   : > { %1621 = vst [vmem:[%s2218_s9 + $0x8] sm:$0xff] %v1589_v39   ;;  %v1604_v54 = vpack.c.bf16 %v1254_v40, %v1253_v21  ;;  %v1235_v55 = vadd.f32 %v2199_v9, %v1133_v41  ;;  %v1157_v58 = vadd.f32 %v1156_v50, %v2192_v52  ;;  %v1136_v6 = vadd.f32 %v1795_v51, %v2188_v7  ;;  %v1803_v59 = vpop.f32.mrb[38].mxu1  ;;  %v1127_v60 = vpop.f32.mrb[39].mxu0 }
 0x147   : > { %1625 = vst [vmem:[%s2218_s9 + $0x28] sm:$0xff] %v1609_v46   ;;  %1585 = vst [vmem:[%s2218_s9] sm:$0xff] %v1584_v47   ;;  %v1243_v61 = vadd.f32 %v2199_v9, %v1165_v48  ;;  %v1233_v62 = vadd.f32 %v2199_v9, %v1125_v49  ;;  %v1168_v56 = vadd.f32 %v1803_v59, %v1071_v5  ;;  %v1159_v0 = vpop.f32.mrb[39].mxu1 }
 0x148   : > { %v1128_v63 = vadd.f32 %v1127_v60, %v2184_v57  ;;  %1624 = vst [vmem:[%s2218_s9 + $0x20] sm:$0xff] %v1604_v54   ;;  %v1241_v1 = vadd.f32 %v2199_v9, %v1157_v58  ;;  %v1236_v2 = vadd.f32 %v2199_v9, %v1136_v6  ;;  %v1160_v7 = vadd.f32 %v1159_v0, %v2194_v53 }
 0x149   : > { %v1244_v52 = vadd.f32 %v2199_v9, %v1168_v56  ;;  %v1251_v4 = vmax.f32 %v1235_v55, 0.0  ;;  %v1259_v8 = vmax.f32 %v1243_v61, 0.0  ;;  %v1249_v10 = vmax.f32 %v1233_v62, 0.0 }
 0x14a   : > { %v1234_v3 = vadd.f32 %v2199_v9, %v1128_v63  ;;  %v1252_v5 = vmax.f32 %v1236_v2, 0.0  ;;  %v1242_v57 = vadd.f32 %v2199_v9, %v1160_v7  ;;  %v1257_v13 = vmax.f32 %v1241_v1, 0.0 }
 0x14b   : > { %v1260_v11 = vmax.f32 %v1244_v52, 0.0 }
 0x14c   : > { %v1250_v12 = vmax.f32 %v1234_v3, 0.0  ;;  %v1599_v14 = vpack.c.bf16 %v1252_v5, %v1251_v4  ;;  %v1258_v15 = vmax.f32 %v1242_v57, 0.0 }
 0x14d   : > { %v1619_v16 = vpack.c.bf16 %v1260_v11, %v1259_v8 }
 0x14e   : > { %v1594_v53 = vpack.c.bf16 %v1250_v12, %v1249_v10  ;;  %1623 = vst [vmem:[%s2218_s9 + $0x18] sm:$0xff] %v1599_v14   ;;  %v1614_v17 = vpack.c.bf16 %v1258_v15, %v1257_v13 }
 0x14f   : > { %1627 = vst [vmem:[%s2218_s9 + $0x38] sm:$0xff] %v1619_v16  }
 0x150   : > { %1622 = vst [vmem:[%s2218_s9 + $0x10] sm:$0xff] %v1594_v53   ;;  %1626 = vst [vmem:[%s2218_s9 + $0x30] sm:$0xff] %v1614_v17  }
 0x151 PF: > { %s13_s14 = sadd.s32 1, %s1963_s14   ;;  %s2255_s12 = smov %s1959_s13 }
 0x152   : > { %p10_p5 = scmp.ge.s32.totalorder %s13_s14, 11   ;;  %s2256_s13 = smov %s2258_s15 }
 0x154   :  { %12 = sbr.rel (!%p10_p5) target bundleno = 2 (0x2), region = 76 }

// kernel: sphere_cnn_forward.8
= control target key start
LH: loop header
LB: loop body
LE: loop exit
PB: predicated region body
PF: predicated region fallthrough
CT: control target
= control target key end

     0   :  { %s3060_s12 = smov 0   ;;  %s3062_s13 = smov 0   ;;  %s3687_s0 = inlined_call_operand.vmem [shape: bf16[288,1152], index: 0, kind: input, shape index: {}]   ;;  %s3688_s1 = inlined_call_operand.vmem [shape: bf16[1152,256], index: 1, kind: input, shape index: {}]   ;;  %s3689_s2 = inlined_call_operand.vmem [shape: f32[1,256], index: 2, kind: input, shape index: {}]   ;;  %s3690_s3 = inlined_call_operand.vmem [shape: bf16[288,256], index: 3, kind: output, shape index: {}]  }
   0x1   :  { %s3064_s14 = smov 0  }
   0x2 LB: > { %s32_s15 = sadd.s32 1, %s3033_s13  ;;  %p2354_p0 = scmp.ge.s32.totalorder %s3037_s14, 1  ;;  %s3037_s14 = sphi %s3064_s14, %s13_s14   ;;  %s3033_s13 = sphi %s3062_s13, %s3692_s13   ;;  %s3029_s12 = sphi %s3060_s12, %s3691_s12  }
   0x3   : > { %p34_p1 = scmp.ge.s32.totalorder %s32_s15, 3  ;;  %p196_p2 = scmp.lt.s32.totalorder %s3037_s14, 4 }
   0x5   : > { %s3694_s15 = smov (%p34_p1, %s32_s15), 0  ;;  %p197_p3 = pnand %p2354_p0, %p196_p2 }
   0x6   : > { %v2721_v0 = vld [vmem:[%s3688_s1 + $0x4] ss:$8 sps:$4 sm:$0xff] (!%p197_p3)   ;;  %v2725_v2 = vld [vmem:[%s3688_s1] ss:$8 sps:$4 sm:$0xff] (!%p197_p3)   ;;  %v2727_v4 = vld [vmem:[%s3688_s1 + $0x14] ss:$8 sps:$4 sm:$0xff] (!%p197_p3)  }
   0x7   : > { %200 = sbr.rel (%p197_p3) target bundleno = 424 (0x1a8), region = 32  ;;  %v2723_v1 = vld [vmem:[%s3688_s1 + $0x204] ss:$8 sps:$4 sm:$0xff] (!%p197_p3)   ;;  %1538 = vmatprep.subr.bf16.mxu1 (!%p197_p3), %v2721_v0  ;;  %v2726_v3 = vld [vmem:[%s3688_s1 + $0x200] ss:$8 sps:$4 sm:$0xff] (!%p197_p3)  }
   0x8   : > { %1724 = vmatprep.subr.bf16.mxu0 (!%p197_p3), %v2723_v1  ;;  %1539 = vmatpush1.bf16.msra.mxu1 (!%p197_p3), %v2725_v2  ;;  %v2729_v5 = vld [vmem:[%s3688_s1 + $0x214] ss:$8 sps:$4 sm:$0xff] (!%p197_p3)   ;;  %v2731_v6 = vld [vmem:[%s3688_s1 + $0x10] ss:$8 sps:$4 sm:$0xff] (!%p197_p3)   ;;  %v2733_v8 = vld [vmem:[%s3688_s1 + $0x24] ss:$8 sps:$4 sm:$0xff] (!%p197_p3)  }
   0x9   : > { %1725 = vmatpush1.bf16.msra.mxu0 (!%p197_p3), %v2726_v3  ;;  %1540 = vmatprep.subr.bf16.mxu1 (!%p197_p3), %v2727_v4  ;;  %v2732_v7 = vld [vmem:[%s3688_s1 + $0x210] ss:$8 sps:$4 sm:$0xff] (!%p197_p3)   ;;  %v2735_v9 = vld [vmem:[%s3688_s1 + $0x224] ss:$8 sps:$4 sm:$0xff] (!%p197_p3)   ;;  %v2737_v10 = vld [vmem:[%s3688_s1 + $0x20] ss:$8 sps:$4 sm:$0xff] (!%p197_p3)  }
   0xa   : > { %1726 = vmatprep.subr.bf16.mxu0 (!%p197_p3), %v2729_v5  ;;  %v2738_v11 = vld [vmem:[%s3688_s1 + $0x220] ss:$8 sps:$4 sm:$0xff] (!%p197_p3)   ;;  %v2739_v12 = vld [vmem:[%s3688_s1 + $0x34] ss:$8 sps:$4 sm:$0xff] (!%p197_p3)   ;;  %v2743_v14 = vld [vmem:[%s3688_s1 + $0x30] ss:$8 sps:$4 sm:$0xff] (!%p197_p3)  }
   0xb   : > { %v2741_v13 = vld [vmem:[%s3688_s1 + $0x234] ss:$8 sps:$4 sm:$0xff] (!%p197_p3)   ;;  %v2744_v15 = vld [vmem:[%s3688_s1 + $0x230] ss:$8 sps:$4 sm:$0xff] (!%p197_p3)   ;;  %v2745_v16 = vld [vmem:[%s3688_s1 + $0x44] ss:$8 sps:$4 sm:$0xff] (!%p197_p3)  }
   0xc   : > { %1541 = vmatpush1.bf16.msra.mxu1 (!%p197_p3), %v2731_v6  ;;  %v2747_v17 = vld [vmem:[%s3688_s1 + $0x244] ss:$8 sps:$4 sm:$0xff] (!%p197_p3)   ;;  %v2749_v18 = vld [vmem:[%s3688_s1 + $0x40] ss:$8 sps:$4 sm:$0xff] (!%p197_p3)   ;;  %v2751_v20 = vld [vmem:[%s3688_s1 + $0x54] ss:$8 sps:$4 sm:$0xff] (!%p197_p3)  }
   0xd   : > { %1727 = vmatpush1.bf16.msra.mxu0 (!%p197_p3), %v2732_v7  ;;  %1542 = vmatprep.subr.bf16.mxu1 (!%p197_p3), %v2733_v8  ;;  %v2750_v19 = vld [vmem:[%s3688_s1 + $0x240] ss:$8 sps:$4 sm:$0xff] (!%p197_p3)   ;;  %v2753_v21 = vld [vmem:[%s3688_s1 + $0x254] ss:$8 sps:$4 sm:$0xff] (!%p197_p3)   ;;  %v2755_v22 = vld [vmem:[%s3688_s1 + $0x50] ss:$8 sps:$4 sm:$0xff] (!%p197_p3)  }
   0xe   : > { %1728 = vmatprep.subr.bf16.mxu0 %v2735_v9  ;;  %v2756_v23 = vld [vmem:[%s3688_s1 + $0x250] ss:$8 sps:$4 sm:$0xff]   ;;  %v2757_v24 = vld [vmem:[%s3688_s1 + $0x64] ss:$8 sps:$4 sm:$0xff]   ;;  %v2761_v26 = vld [vmem:[%s3688_s1 + $0x60] ss:$8 sps:$4 sm:$0xff]  }
   0xf   : > { %v2759_v25 = vld [vmem:[%s3688_s1 + $0x264] ss:$8 sps:$4 sm:$0xff]   ;;  %v2762_v27 = vld [vmem:[%s3688_s1 + $0x260] ss:$8 sps:$4 sm:$0xff]   ;;  %v2763_v28 = vld [vmem:[%s3688_s1 + $0x74] ss:$8 sps:$4 sm:$0xff]  }
  0x10   : > { %1543 = vmatpush1.bf16.msra.mxu1 %v2737_v10  ;;  %s244_s28 = smul.u32 12, %s3029_s12  ;;  %v2765_v29 = vld [vmem:[%s3688_s1 + $0x274] ss:$8 sps:$4 sm:$0xff]   ;;  %v2767_v30 = vld [vmem:[%s3688_s1 + $0x70] ss:$8 sps:$4 sm:$0xff]  }
  0x11   : > { %1729 = vmatpush1.bf16.msra.mxu0 %v2738_v11  ;;  %1544 = vmatprep.subr.bf16.mxu1 %v2739_v12  ;;  %v2768_v31 = vld [vmem:[%s3688_s1 + $0x270] ss:$8 sps:$4 sm:$0xff]   ;;  %v2769_v32 = vld [vmem:[%s3688_s1 + $0x84] ss:$8 sps:$4 sm:$0xff]   ;;  %v2773_v34 = vld [vmem:[%s3688_s1 + $0x80] ss:$8 sps:$4 sm:$0xff]  }
  0x12   : > { %1730 = vmatprep.subr.bf16.mxu0 %v2741_v13  ;;  %p246_p4 = scmp.lt.s32.totalorder %s244_s28, 35  ;;  %v2771_v33 = vld [vmem:[%s3688_s1 + $0x284] ss:$8 sps:$4 sm:$0xff]   ;;  %v2774_v35 = vld [vmem:[%s3688_s1 + $0x280] ss:$8 sps:$4 sm:$0xff]  }
  0x13   : > { %v2775_v36 = vld [vmem:[%s3688_s1 + $0x94] ss:$8 sps:$4 sm:$0xff]   ;;  %v2779_v38 = vld [vmem:[%s3688_s1 + $0x90] ss:$8 sps:$4 sm:$0xff]   ;;  %v2781_v40 = vld [vmem:[%s3688_s1 + $0xa4] ss:$8 sps:$4 sm:$0xff]  }
  0x14   : > { %1545 = vmatpush1.bf16.msra.mxu1 %v2743_v14  ;;  %s3696_s28 = smov (!%p246_p4, %s244_s28), 35  ;;  %v2777_v37 = vld [vmem:[%s3688_s1 + $0x294] ss:$8 sps:$4 sm:$0xff]   ;;  %v2780_v39 = vld [vmem:[%s3688_s1 + $0x290] ss:$8 sps:$4 sm:$0xff]  }
  0x15   : > { %1731 = vmatpush1.bf16.msra.mxu0 %v2744_v15  ;;  %1546 = vmatprep.subr.bf16.mxu1 %v2745_v16  ;;  %s2695_s30 = smul.u32 36, %s3696_s28  ;;  %v2783_v41 = vld [vmem:[%s3688_s1 + $0x2a4] ss:$8 sps:$4 sm:$0xff]   ;;  %v2785_v42 = vld [vmem:[%s3688_s1 + $0xa0] ss:$8 sps:$4 sm:$0xff]   ;;  %s2570_s19 = sshll.u32 %s3696_s28, 3 }
  0x16   : > { %1732 = vmatprep.subr.bf16.mxu0 %v2747_v17  ;;  %v2786_v43 = vld [vmem:[%s3688_s1 + $0x2a0] ss:$8 sps:$4 sm:$0xff]   ;;  %v2787_v44 = vld [vmem:[%s3688_s1 + $0xb4] ss:$8 sps:$4 sm:$0xff]   ;;  %v2791_v46 = vld [vmem:[%s3688_s1 + $0xb0] ss:$8 sps:$4 sm:$0xff]   ;;  %s3632_s21 = scalar_lea.vmem %s3690_s3, %s2570_s19 }
  0x17   : > { %s3222_s17 = scalar_lea.vmem %s3687_s0, %s2695_s30  ;;  %v2789_v45 = vld [vmem:[%s3688_s1 + $0x2b4] ss:$8 sps:$4 sm:$0xff]   ;;  %v2792_v47 = vld [vmem:[%s3688_s1 + $0x2b0] ss:$8 sps:$4 sm:$0xff]   ;;  %v2793_v49 = vld [vmem:[%s3688_s1 + $0xc4] ss:$8 sps:$4 sm:$0xff]  }
  0x18   : > { %1547 = vmatpush1.bf16.msra.mxu1 %v2749_v18  ;;  %v2819_v48 = vld [vmem:[%s3222_s17 + $0x4] ss:$36 sps:$4 sm:$0xff]   ;;  %v2825_v51 = vld [vmem:[%s3222_s17 + $0x14] ss:$36 sps:$4 sm:$0xff]   ;;  %v2859_v10 = vld [vmem:[%s3222_s17 + $0x4c] ss:$36 sps:$4 sm:$0xff]  }
  0x19   : > { %1733 = vmatpush1.bf16.msra.mxu0 %v2750_v19  ;;  %1548 = vmatprep.subr.bf16.mxu1 %v2751_v20  ;;  %v2795_v50 = vld [vmem:[%s3688_s1 + $0x2c4] ss:$8 sps:$4 sm:$0xff]   ;;  %v2797_v52 = vld [vmem:[%s3688_s1 + $0xc0] ss:$8 sps:$4 sm:$0xff]   ;;  %v2799_v54 = vld [vmem:[%s3688_s1 + $0xd4] ss:$8 sps:$4 sm:$0xff]  }
  0x1a   : > { %1734 = vmatprep.subr.bf16.mxu0 %v2753_v21  ;;  %1570 = vmatprep.mubr.bf16.mxu1 %v2819_v48  ;;  %v2798_v53 = vld [vmem:[%s3688_s1 + $0x2c0] ss:$8 sps:$4 sm:$0xff]   ;;  %v2801_v55 = vld [vmem:[%s3688_s1 + $0x2d4] ss:$8 sps:$4 sm:$0xff]   ;;  %v2803_v56 = vld [vmem:[%s3688_s1 + $0xd0] ss:$8 sps:$4 sm:$0xff]  }
  0x1b   : > { %1756 = vmatprep.mubr.bf16.mxu0 %v2825_v51  ;;  %v2804_v57 = vld [vmem:[%s3688_s1 + $0x2d0] ss:$8 sps:$4 sm:$0xff]   ;;  %v2805_v58 = vld [vmem:[%s3688_s1 + $0xe4] ss:$8 sps:$4 sm:$0xff]   ;;  %v2809_v60 = vld [vmem:[%s3688_s1 + $0xe0] ss:$8 sps:$4 sm:$0xff]  }
  0x1c   : > { %1549 = vmatpush1.bf16.msra.mxu1 %v2755_v22  ;;  %v2807_v59 = vld [vmem:[%s3688_s1 + $0x2e4] ss:$8 sps:$4 sm:$0xff]   ;;  %v2810_v61 = vld [vmem:[%s3688_s1 + $0x2e0] ss:$8 sps:$4 sm:$0xff]   ;;  %v2811_v62 = vld [vmem:[%s3688_s1 + $0xf4] ss:$8 sps:$4 sm:$0xff]  }
  0x1d   : > { %1735 = vmatpush1.bf16.msra.mxu0 %v2756_v23  ;;  %1550 = vmatprep.subr.bf16.mxu1 %v2757_v24  ;;  %v2813_v63 = vld [vmem:[%s3688_s1 + $0x2f4] ss:$8 sps:$4 sm:$0xff]   ;;  %v2815_v0 = vld [vmem:[%s3688_s1 + $0xf0] ss:$8 sps:$4 sm:$0xff]   ;;  %v2822_v2 = vld [vmem:[%s3688_s1 + $0x104] ss:$8 sps:$4 sm:$0xff]  }
  0x1e   : > { %1736 = vmatprep.subr.bf16.mxu0 %v2759_v25  ;;  %v2816_v1 = vld [vmem:[%s3688_s1 + $0x2f0] ss:$8 sps:$4 sm:$0xff]   ;;  %v2828_v3 = vld [vmem:[%s3688_s1 + $0x304] ss:$8 sps:$4 sm:$0xff]   ;;  %v2820_v5 = vld [vmem:[%s3688_s1 + $0x100] ss:$8 sps:$4 sm:$0xff]  }
  0x1f   : > { %v2817_v4 = vld [vmem:[%s3222_s17] ss:$36 sps:$4 sm:$0xff]   ;;  %v2823_v6 = vld [vmem:[%s3222_s17 + $0x10] ss:$36 sps:$4 sm:$0xff]   ;;  %v2863_v17 = vld [vmem:[%s3222_s17 + $0x48] ss:$36 sps:$4 sm:$0xff]  }
  0x20   : > { %1551 = vmatpush1.bf16.msra.mxu1 %v2761_v26  ;;  %v2826_v7 = vld [vmem:[%s3688_s1 + $0x300] ss:$8 sps:$4 sm:$0xff]   ;;  %v2831_v8 = vld [vmem:[%s3688_s1 + $0x114] ss:$8 sps:$4 sm:$0xff]   ;;  %v2829_v12 = vld [vmem:[%s3688_s1 + $0x110] ss:$8 sps:$4 sm:$0xff]  }
  0x21   : > { %1737 = vmatpush1.bf16.msra.mxu0 %v2762_v27  ;;  %1552 = vmatprep.subr.bf16.mxu1 %v2763_v28  ;;  %v2834_v9 = vld [vmem:[%s3688_s1 + $0x314] ss:$8 sps:$4 sm:$0xff]   ;;  %v2832_v13 = vld [vmem:[%s3688_s1 + $0x310] ss:$8 sps:$4 sm:$0xff]   ;;  %v2837_v14 = vld [vmem:[%s3688_s1 + $0x124] ss:$8 sps:$4 sm:$0xff]  }
  0x22   : > { %1738 = vmatprep.subr.bf16.mxu0 %v2765_v29  ;;  %v2861_v11 = vld [vmem:[%s3222_s17 + $0x5c] ss:$36 sps:$4 sm:$0xff]   ;;  %v2840_v15 = vld [vmem:[%s3688_s1 + $0x324] ss:$8 sps:$4 sm:$0xff]   ;;  %v2877_v22 = vld [vmem:[%s3222_s17 + $0x94] ss:$36 sps:$4 sm:$0xff]  }
  0x23   : > { %v2835_v16 = vld [vmem:[%s3688_s1 + $0x120] ss:$8 sps:$4 sm:$0xff]   ;;  %v2867_v18 = vld [vmem:[%s3222_s17 + $0x58] ss:$36 sps:$4 sm:$0xff]   ;;  %v2849_v26 = vld [vmem:[%s3688_s1 + $0x144] ss:$8 sps:$4 sm:$0xff]  }
  0x24   : > { %1553 = vmatpush1.bf16.msra.mxu1 %v2767_v30  ;;  %v2838_v19 = vld [vmem:[%s3688_s1 + $0x320] ss:$8 sps:$4 sm:$0xff]   ;;  %v2843_v20 = vld [vmem:[%s3688_s1 + $0x134] ss:$8 sps:$4 sm:$0xff]   ;;  %v2841_v24 = vld [vmem:[%s3688_s1 + $0x130] ss:$8 sps:$4 sm:$0xff]  }
  0x25   : > { %1739 = vmatpush1.bf16.msra.mxu0 %v2768_v31  ;;  %1554 = vmatprep.subr.bf16.mxu1 %v2769_v32  ;;  %v2846_v21 = vld [vmem:[%s3688_s1 + $0x334] ss:$8 sps:$4 sm:$0xff]   ;;  %v2879_v23 = vld [vmem:[%s3222_s17 + $0xa4] ss:$36 sps:$4 sm:$0xff]   ;;  %v2844_v25 = vld [vmem:[%s3688_s1 + $0x330] ss:$8 sps:$4 sm:$0xff]  }
  0x26   : > { %1740 = vmatprep.subr.bf16.mxu0 %v2771_v33  ;;  %v2852_v27 = vld [vmem:[%s3688_s1 + $0x344] ss:$8 sps:$4 sm:$0xff]   ;;  %v2847_v28 = vld [vmem:[%s3688_s1 + $0x140] ss:$8 sps:$4 sm:$0xff]   ;;  %v2881_v29 = vld [vmem:[%s3222_s17 + $0x90] ss:$36 sps:$4 sm:$0xff]  }
  0x27   : > { %v2885_v30 = vld [vmem:[%s3222_s17 + $0xa0] ss:$36 sps:$4 sm:$0xff]   ;;  %v2855_v32 = vld [vmem:[%s3688_s1 + $0x154] ss:$8 sps:$4 sm:$0xff]   ;;  %v2871_v48 = vld [vmem:[%s3688_s1 + $0x170] ss:$8 sps:$4 sm:$0xff]  }
  0x28   : > { %1555 = vmatpush1.bf16.msra.mxu1 %v2773_v34  ;;  %v2850_v31 = vld [vmem:[%s3688_s1 + $0x340] ss:$8 sps:$4 sm:$0xff]   ;;  %v2858_v33 = vld [vmem:[%s3688_s1 + $0x354] ss:$8 sps:$4 sm:$0xff]   ;;  %v2888_v51 = vld [vmem:[%s3688_s1 + $0x384] ss:$8 sps:$4 sm:$0xff]  }
  0x29   : > { %1741 = vmatpush1.bf16.msra.mxu0 %v2774_v35  ;;  %1556 = vmatprep.subr.bf16.mxu1 %v2775_v36  ;;  %v2895_v34 = vld [vmem:[%s3222_s17 + $0xdc] ss:$36 sps:$4 sm:$0xff]   ;;  %v2897_v35 = vld [vmem:[%s3222_s17 + $0xec] ss:$36 sps:$4 sm:$0xff]  }
  0x2a   : > { %1742 = vmatprep.subr.bf16.mxu0 %v2777_v37  ;;  %v2853_v36 = vld [vmem:[%s3688_s1 + $0x150] ss:$8 sps:$4 sm:$0xff]  }
  0x2b   : > { %v2856_v37 = vld [vmem:[%s3688_s1 + $0x350] ss:$8 sps:$4 sm:$0xff]  }
  0x2c   : > { %1557 = vmatpush1.bf16.msra.mxu1 %v2779_v38  ;;  %v2866_v38 = vld [vmem:[%s3688_s1 + $0x164] ss:$8 sps:$4 sm:$0xff]  }
  0x2d   : > { %1743 = vmatpush1.bf16.msra.mxu0 %v2780_v39  ;;  %1558 = vmatprep.subr.bf16.mxu1 %v2781_v40  ;;  %v2870_v39 = vld [vmem:[%s3688_s1 + $0x364] ss:$8 sps:$4 sm:$0xff]   ;;  %v2864_v40 = vld [vmem:[%s3688_s1 + $0x160] ss:$8 sps:$4 sm:$0xff]  }
  0x2e   : > { %1744 = vmatprep.subr.bf16.mxu0 %v2783_v41  ;;  %v2899_v41 = vld [vmem:[%s3222_s17 + $0xd8] ss:$36 sps:$4 sm:$0xff]  }
  0x30   : > { %1559 = vmatpush1.bf16.msra.mxu1 %v2785_v42  ;;  %v2903_v42 = vld [vmem:[%s3222_s17 + $0xe8] ss:$36 sps:$4 sm:$0xff]  }
  0x31   : > { %1745 = vmatpush1.bf16.msra.mxu0 %v2786_v43  ;;  %1560 = vmatprep.subr.bf16.mxu1 %v2787_v44  ;;  %v2868_v43 = vld [vmem:[%s3688_s1 + $0x360] ss:$8 sps:$4 sm:$0xff]   ;;  %v2873_v44 = vld [vmem:[%s3688_s1 + $0x174] ss:$8 sps:$4 sm:$0xff]  }
  0x32   : > { %1746 = vmatprep.subr.bf16.mxu0 %v2789_v45  ;;  %v2876_v45 = vld [vmem:[%s3688_s1 + $0x374] ss:$8 sps:$4 sm:$0xff]  }
  0x34   : > { %1561 = vmatpush1.bf16.msra.mxu1 %v2791_v46  ;;  %v2913_v46 = vld [vmem:[%s3222_s17 + $0x124] ss:$36 sps:$4 sm:$0xff]  }
  0x35   : > { %1747 = vmatpush1.bf16.msra.mxu0 %v2792_v47  ;;  %1562 = vmatprep.subr.bf16.mxu1 %v2793_v49  ;;  %v2915_v47 = vld [vmem:[%s3222_s17 + $0x134] ss:$36 sps:$4 sm:$0xff]  }
  0x36   : > { %1748 = vmatprep.subr.bf16.mxu0 %v2795_v50  ;;  %v2874_v49 = vld [vmem:[%s3688_s1 + $0x370] ss:$8 sps:$4 sm:$0xff]   ;;  %v2884_v50 = vld [vmem:[%s3688_s1 + $0x184] ss:$8 sps:$4 sm:$0xff]  }
  0x38   : > { %1563 = vmatpush1.bf16.msra.mxu1 %v2797_v52  ;;  %v2882_v52 = vld [vmem:[%s3688_s1 + $0x180] ss:$8 sps:$4 sm:$0xff]  }
  0x39   : > { %1749 = vmatpush1.bf16.msra.mxu0 %v2798_v53  ;;  %1564 = vmatprep.subr.bf16.mxu1 %v2799_v54  ;;  %v2917_v53 = vld [vmem:[%s3222_s17 + $0x120] ss:$36 sps:$4 sm:$0xff]   ;;  %v2921_v54 = vld [vmem:[%s3222_s17 + $0x130] ss:$36 sps:$4 sm:$0xff]  }
  0x3a   : > { %1750 = vmatprep.subr.bf16.mxu0 %v2801_v55  ;;  %v2886_v55 = vld [vmem:[%s3688_s1 + $0x380] ss:$8 sps:$4 sm:$0xff]  }
  0x3c   : > { %1565 = vmatpush1.bf16.msra.mxu1 %v2803_v56  ;;  %v2891_v56 = vld [vmem:[%s3688_s1 + $0x194] ss:$8 sps:$4 sm:$0xff]  }
  0x3d   : > { %1751 = vmatpush1.bf16.msra.mxu0 %v2804_v57  ;;  %1566 = vmatprep.subr.bf16.mxu1 %v2805_v58  ;;  %v2894_v57 = vld [vmem:[%s3688_s1 + $0x394] ss:$8 sps:$4 sm:$0xff]   ;;  %v2931_v58 = vld [vmem:[%s3222_s17 + $0x16c] ss:$36 sps:$4 sm:$0xff]  }
  0x3e   : > { %1752 = vmatprep.subr.bf16.mxu0 %v2807_v59  ;;  %v2933_v59 = vld [vmem:[%s3222_s17 + $0x17c] ss:$36 sps:$4 sm:$0xff]  }
  0x40   : > { %1567 = vmatpush1.bf16.msra.mxu1 %v2809_v60  ;;  %v2889_v60 = vld [vmem:[%s3688_s1 + $0x190] ss:$8 sps:$4 sm:$0xff]  }
  0x41   : > { %1753 = vmatpush1.bf16.msra.mxu0 %v2810_v61  ;;  %1568 = vmatprep.subr.bf16.mxu1 %v2811_v62  ;;  %v2892_v61 = vld [vmem:[%s3688_s1 + $0x390] ss:$8 sps:$4 sm:$0xff]   ;;  %v2902_v62 = vld [vmem:[%s3688_s1 + $0x1a4] ss:$8 sps:$4 sm:$0xff]  }
  0x42   : > { %1754 = vmatprep.subr.bf16.mxu0 %v2813_v63  ;;  %v2906_v63 = vld [vmem:[%s3688_s1 + $0x3a4] ss:$8 sps:$4 sm:$0xff]  }
  0x44   : > { %1569 = vmatpush1.bf16.msra.mxu1 %v2815_v0  ;;  %v2900_v0 = vld [vmem:[%s3688_s1 + $0x1a0] ss:$8 sps:$4 sm:$0xff]  }
  0x45   : > { %1755 = vmatpush1.bf16.msra.mxu0 %v2816_v1  ;;  %1631 = vmatprep.subr.bf16.mxu1 %v2822_v2  ;;  %v2904_v1 = vld [vmem:[%s3688_s1 + $0x3a0] ss:$8 sps:$4 sm:$0xff]  }
  0x46   : > { %1817 = vmatprep.subr.bf16.mxu0 %v2828_v3  ;;  %v2935_v2 = vld [vmem:[%s3222_s17 + $0x168] ss:$36 sps:$4 sm:$0xff]   ;;  %v2939_v3 = vld [vmem:[%s3222_s17 + $0x178] ss:$36 sps:$4 sm:$0xff]  }
  0x47   : > { %1571 = vmatmul.mubr.bf16.vlgmr.msra.gmra.mrb[0].mxu1 %v2817_v4  ;;  %v2909_v4 = vld [vmem:[%s3688_s1 + $0x1b4] ss:$8 sps:$4 sm:$0xff]  }
  0x48   : > { %1757 = vmatmul.mubr.bf16.vlgmr.msra.gmra.mrb[0].mxu0 %v2823_v6  ;;  %1632 = vmatpush1.bf16.msra.mxu1 %v2820_v5  ;;  %v2912_v5 = vld [vmem:[%s3688_s1 + $0x3b4] ss:$8 sps:$4 sm:$0xff]   ;;  %v2951_v6 = vld [vmem:[%s3222_s17 + $0xc] ss:$36 sps:$4 sm:$0xff]  }
  0x49   : > { %1818 = vmatpush1.bf16.msra.mxu0 %v2826_v7  ;;  %1633 = vmatprep.subr.bf16.mxu1 %v2831_v8  ;;  %v2954_v7 = vld [vmem:[%s3222_s17 + $0x1c] ss:$36 sps:$4 sm:$0xff]   ;;  %v2907_v8 = vld [vmem:[%s3688_s1 + $0x1b0] ss:$8 sps:$4 sm:$0xff]  }
  0x4a   : > { %1819 = vmatprep.subr.bf16.mxu0 %v2834_v9  ;;  %1580 = vmatprep.mubr.bf16.mxu1 %v2859_v10  ;;  %v2910_v9 = vld [vmem:[%s3688_s1 + $0x3b0] ss:$8 sps:$4 sm:$0xff]   ;;  %v2920_v10 = vld [vmem:[%s3688_s1 + $0x1c4] ss:$8 sps:$4 sm:$0xff]  }
  0x4b   : > { %1766 = vmatprep.mubr.bf16.mxu0 %v2861_v11  ;;  %v2924_v11 = vld [vmem:[%s3688_s1 + $0x3c4] ss:$8 sps:$4 sm:$0xff]  }
  0x4c   : > { %1634 = vmatpush1.bf16.msra.mxu1 %v2829_v12  ;;  %v2918_v12 = vld [vmem:[%s3688_s1 + $0x1c0] ss:$8 sps:$4 sm:$0xff]  }
  0x4d   : > { %1820 = vmatpush1.bf16.msra.mxu0 %v2832_v13  ;;  %1635 = vmatprep.subr.bf16.mxu1 %v2837_v14  ;;  %v2922_v13 = vld [vmem:[%s3688_s1 + $0x3c0] ss:$8 sps:$4 sm:$0xff]   ;;  %v2927_v14 = vld [vmem:[%s3688_s1 + $0x1d4] ss:$8 sps:$4 sm:$0xff]  }
  0x4e   : > { %1821 = vmatprep.subr.bf16.mxu0 %v2840_v15  ;;  %v2930_v15 = vld [vmem:[%s3688_s1 + $0x3d4] ss:$8 sps:$4 sm:$0xff]  }
  0x4f   : > { %1581 = vmatmul.mubr.bf16.gmra.mrb[4].mxu1 %v2863_v17  ;;  %v2928_v17 = vld [vmem:[%s3688_s1 + $0x3d0] ss:$8 sps:$4 sm:$0xff]  }
  0x50   : > { %1767 = vmatmul.mubr.bf16.gmra.mrb[4].mxu0 %v2867_v18  ;;  %1636 = vmatpush1.bf16.msra.mxu1 %v2835_v16  ;;  %v2925_v16 = vld [vmem:[%s3688_s1 + $0x1d0] ss:$8 sps:$4 sm:$0xff]   ;;  %v2938_v18 = vld [vmem:[%s3688_s1 + $0x1e4] ss:$8 sps:$4 sm:$0xff]  }
  0x51   : > { %1822 = vmatpush1.bf16.msra.mxu0 %v2838_v19  ;;  %1637 = vmatprep.subr.bf16.mxu1 %v2843_v20  ;;  %v2942_v19 = vld [vmem:[%s3688_s1 + $0x3e4] ss:$8 sps:$4 sm:$0xff]   ;;  %v2936_v20 = vld [vmem:[%s3688_s1 + $0x1e0] ss:$8 sps:$4 sm:$0xff]  }
  0x52   : > { %1823 = vmatprep.subr.bf16.mxu0 %v2846_v21  ;;  %1590 = vmatprep.mubr.bf16.mxu1 %v2877_v22  ;;  %v2940_v21 = vld [vmem:[%s3688_s1 + $0x3e0] ss:$8 sps:$4 sm:$0xff]   ;;  %v2945_v22 = vld [vmem:[%s3688_s1 + $0x1f4] ss:$8 sps:$4 sm:$0xff]  }
  0x53   : > { %1776 = vmatprep.mubr.bf16.mxu0 %v2879_v23  ;;  %v2948_v23 = vld [vmem:[%s3688_s1 + $0x3f4] ss:$8 sps:$4 sm:$0xff]  }
  0x54   : > { %1638 = vmatpush1.bf16.msra.mxu1 %v2841_v24  ;;  %v2943_v24 = vld [vmem:[%s3688_s1 + $0x1f0] ss:$8 sps:$4 sm:$0xff]  }
  0x55   : > { %1824 = vmatpush1.bf16.msra.mxu0 %v2844_v25  ;;  %1639 = vmatprep.subr.bf16.mxu1 %v2849_v26  ;;  %v2946_v25 = vld [vmem:[%s3688_s1 + $0x3f0] ss:$8 sps:$4 sm:$0xff]   ;;  %v2957_v26 = vld [vmem:[%s3688_s1 + $0x404] ss:$8 sps:$4 sm:$0xff]  }
  0x56   : > { %1825 = vmatprep.subr.bf16.mxu0 %v2852_v27  ;;  %v2949_v27 = vld [vmem:[%s3222_s17 + $0x8] ss:$36 sps:$4 sm:$0xff]  }
  0x57   : > { %1591 = vmatmul.mubr.bf16.gmra.mrb[8].mxu1 %v2881_v29  ;;  %v2955_v29 = vld [vmem:[%s3688_s1 + $0x400] ss:$8 sps:$4 sm:$0xff]  }
  0x58   : > { %1777 = vmatmul.mubr.bf16.gmra.mrb[8].mxu0 %v2885_v30  ;;  %1640 = vmatpush1.bf16.msra.mxu1 %v2847_v28  ;;  %v2952_v28 = vld [vmem:[%s3222_s17 + $0x18] ss:$36 sps:$4 sm:$0xff]  }
  0x59   : > { %1826 = vmatpush1.bf16.msra.mxu0 %v2850_v31  ;;  %1641 = vmatprep.subr.bf16.mxu1 %v2855_v32  ;;  %v2960_v30 = vld [vmem:[%s3688_s1 + $0x414] ss:$8 sps:$4 sm:$0xff]   ;;  %v2963_v32 = vld [vmem:[%s3222_s17 + $0x64] ss:$36 sps:$4 sm:$0xff]  }
  0x5a   : > { %1827 = vmatprep.subr.bf16.mxu0 %v2858_v33  ;;  %1600 = vmatprep.mubr.bf16.mxu1 %v2895_v34  ;;  %v2961_v31 = vld [vmem:[%s3222_s17 + $0x54] ss:$36 sps:$4 sm:$0xff]   ;;  %v2969_v34 = vld [vmem:[%s3688_s1 + $0x424] ss:$8 sps:$4 sm:$0xff]  }
  0x5b   : > { %1786 = vmatprep.mubr.bf16.mxu0 %v2897_v35  ;;  %v2958_v33 = vld [vmem:[%s3688_s1 + $0x410] ss:$8 sps:$4 sm:$0xff]  }
  0x5c   : > { %1642 = vmatpush1.bf16.msra.mxu1 %v2853_v36  ;;  %v2965_v35 = vld [vmem:[%s3222_s17 + $0x50] ss:$36 sps:$4 sm:$0xff]   ;;  %v2966_v36 = vld [vmem:[%s3222_s17 + $0x60] ss:$36 sps:$4 sm:$0xff]  }
  0x5d   : > { %1828 = vmatpush1.bf16.msra.mxu0 %v2856_v37  ;;  %1643 = vmatprep.subr.bf16.mxu1 %v2866_v38  ;;  %v2967_v37 = vld [vmem:[%s3688_s1 + $0x420] ss:$8 sps:$4 sm:$0xff]  }
  0x5e   : > { %1829 = vmatprep.subr.bf16.mxu0 %v2870_v39  ;;  %v2970_v38 = vld [vmem:[%s3222_s17 + $0x9c] ss:$36 sps:$4 sm:$0xff]   ;;  %v2972_v39 = vld [vmem:[%s3222_s17 + $0xac] ss:$36 sps:$4 sm:$0xff]  }
  0x5f   : > { %1601 = vmatmul.mubr.bf16.gmra.mrb[12].mxu1 %v2899_v41  ;;  %v2976_v41 = vld [vmem:[%s3688_s1 + $0x430] ss:$8 sps:$4 sm:$0xff]  }
  0x60   : > { %1787 = vmatmul.mubr.bf16.gmra.mrb[12].mxu0 %v2903_v42  ;;  %1644 = vmatpush1.bf16.msra.mxu1 %v2864_v40  ;;  %v2978_v40 = vld [vmem:[%s3688_s1 + $0x434] ss:$8 sps:$4 sm:$0xff]   ;;  %v2987_v42 = vld [vmem:[%s3688_s1 + $0x444] ss:$8 sps:$4 sm:$0xff]  }
  0x61   : > { %1830 = vmatpush1.bf16.msra.mxu0 %v2868_v43  ;;  %1645 = vmatprep.subr.bf16.mxu1 %v2873_v44  ;;  %v2974_v43 = vld [vmem:[%s3222_s17 + $0x98] ss:$36 sps:$4 sm:$0xff]   ;;  %v2975_v44 = vld [vmem:[%s3222_s17 + $0xa8] ss:$36 sps:$4 sm:$0xff]  }
  0x62   : > { %1831 = vmatprep.subr.bf16.mxu0 %v2876_v45  ;;  %1610 = vmatprep.mubr.bf16.mxu1 %v2913_v46  ;;  %v2979_v45 = vld [vmem:[%s3222_s17 + $0xe4] ss:$36 sps:$4 sm:$0xff]   ;;  %v2981_v46 = vld [vmem:[%s3222_s17 + $0xf4] ss:$36 sps:$4 sm:$0xff]  }
  0x63   : > { %1796 = vmatprep.mubr.bf16.mxu0 %v2915_v47  ;;  %v2985_v47 = vld [vmem:[%s3688_s1 + $0x440] ss:$8 sps:$4 sm:$0xff]  }
  0x64   : > { %1646 = vmatpush1.bf16.msra.mxu1 %v2871_v48  ;;  %v2990_v48 = vld [vmem:[%s3688_s1 + $0x454] ss:$8 sps:$4 sm:$0xff]  }
  0x65   : > { %1832 = vmatpush1.bf16.msra.mxu0 %v2874_v49  ;;  %1647 = vmatprep.subr.bf16.mxu1 %v2884_v50  ;;  %v2988_v49 = vld [vmem:[%s3688_s1 + $0x450] ss:$8 sps:$4 sm:$0xff]   ;;  %v2999_v50 = vld [vmem:[%s3688_s1 + $0x464] ss:$8 sps:$4 sm:$0xff]  }
  0x66   : > { %1833 = vmatprep.subr.bf16.mxu0 %v2888_v51  ;;  %v2983_v51 = vld [vmem:[%s3222_s17 + $0xe0] ss:$36 sps:$4 sm:$0xff]  }
  0x67   : > { %1611 = vmatmul.mubr.bf16.gmra.mrb[16].mxu1 %v2917_v53  ;;  %v2991_v53 = vld [vmem:[%s3222_s17 + $0x12c] ss:$36 sps:$4 sm:$0xff]  }
  0x68   : > { %1797 = vmatmul.mubr.bf16.gmra.mrb[16].mxu0 %v2921_v54  ;;  %1648 = vmatpush1.bf16.msra.mxu1 %v2882_v52  ;;  %v2984_v52 = vld [vmem:[%s3222_s17 + $0xf0] ss:$36 sps:$4 sm:$0xff]   ;;  %v2993_v54 = vld [vmem:[%s3222_s17 + $0x13c] ss:$36 sps:$4 sm:$0xff]  }
  0x69   : > { %1834 = vmatpush1.bf16.msra.mxu0 %v2886_v55  ;;  %1649 = vmatprep.subr.bf16.mxu1 %v2891_v56  ;;  %v2997_v55 = vld [vmem:[%s3688_s1 + $0x460] ss:$8 sps:$4 sm:$0xff]   ;;  %v3008_v56 = vld [vmem:[%s3688_s1 + $0x474] ss:$8 sps:$4 sm:$0xff]  }
  0x6a   : > { %1835 = vmatprep.subr.bf16.mxu0 %v2894_v57  ;;  %1620 = vmatprep.mubr.bf16.mxu1 %v2931_v58  ;;  %v3006_v57 = vld [vmem:[%s3688_s1 + $0x470] ss:$8 sps:$4 sm:$0xff]   ;;  %v2995_v58 = vld [vmem:[%s3222_s17 + $0x128] ss:$36 sps:$4 sm:$0xff]  }
  0x6b   : > { %1806 = vmatprep.mubr.bf16.mxu0 %v2933_v59  ;;  %v2996_v59 = vld [vmem:[%s3222_s17 + $0x138] ss:$36 sps:$4 sm:$0xff]  }
  0x6c   : > { %1650 = vmatpush1.bf16.msra.mxu1 %v2889_v60  ;;  %v3000_v60 = vld [vmem:[%s3222_s17 + $0x174] ss:$36 sps:$4 sm:$0xff]  }
  0x6d   : > { %1836 = vmatpush1.bf16.msra.mxu0 %v2892_v61  ;;  %1651 = vmatprep.subr.bf16.mxu1 %v2902_v62  ;;  %v3002_v61 = vld [vmem:[%s3222_s17 + $0x184] ss:$36 sps:$4 sm:$0xff]   ;;  %v3004_v62 = vld [vmem:[%s3222_s17 + $0x170] ss:$36 sps:$4 sm:$0xff]  }
  0x6e   : > { %1837 = vmatprep.subr.bf16.mxu0 %v2906_v63  ;;  %v3005_v63 = vld [vmem:[%s3222_s17 + $0x180] ss:$36 sps:$4 sm:$0xff]  }
  0x6f   : > { %1621 = vmatmul.mubr.bf16.gmra.mrb[20].mxu1 %v2935_v2  ;;  %v3010_v2 = vld [vmem:[%s3222_s17 + $0xf8] ss:$36 sps:$4 sm:$0xff]  }
  0x70   : > { %1807 = vmatmul.mubr.bf16.gmra.mrb[20].mxu0 %v2939_v3  ;;  %1652 = vmatpush1.bf16.msra.mxu1 %v2900_v0  ;;  %v3039_v0 = vmov 0   ;;  %v3011_v3 = vld [vmem:[%s3222_s17 + $0x68] ss:$36 sps:$4 sm:$0xff]  }
  0x71   : > { %1838 = vmatpush1.bf16.msra.mxu0 %v2904_v1  ;;  %1653 = vmatprep.subr.bf16.mxu1 %v2909_v4  ;;  %v3009_v1 = vld [vmem:[%s3222_s17 + $0x20] ss:$36 sps:$4 sm:$0xff]  }
  0x72   : > { %1839 = vmatprep.subr.bf16.mxu0 %v2912_v5  ;;  %1663 = vmatprep.mubr.bf16.mxu1 %v2951_v6  ;;  %v3012_v4 = vld [vmem:[%s3222_s17 + $0x140] ss:$36 sps:$4 sm:$0xff]   ;;  %v3013_v5 = vld [vmem:[%s3222_s17 + $0xb0] ss:$36 sps:$4 sm:$0xff]   ;;  %v3014_v6 = vld [vmem:[%s3222_s17 + $0x188] ss:$36 sps:$4 sm:$0xff]  }
  0x73   : > { %1849 = vmatprep.mubr.bf16.mxu0 %v2954_v7 }
  0x74   : > { %1654 = vmatpush1.bf16.msra.mxu1 %v2907_v8 }
  0x75   : > { %1840 = vmatpush1.bf16.msra.mxu0 %v2910_v9  ;;  %1655 = vmatprep.subr.bf16.mxu1 %v2920_v10 }
  0x76   : > { %1841 = vmatprep.subr.bf16.mxu0 %v2924_v11 }
  0x78   : > { %1656 = vmatpush1.bf16.msra.mxu1 %v2918_v12 }
  0x79   : > { %1842 = vmatpush1.bf16.msra.mxu0 %v2922_v13  ;;  %1657 = vmatprep.subr.bf16.mxu1 %v2927_v14 }
  0x7a   : > { %1843 = vmatprep.subr.bf16.mxu0 %v2930_v15 }
  0x7c   : > { %1658 = vmatpush1.bf16.msra.mxu1 %v2925_v16 }
  0x7d   : > { %1844 = vmatpush1.bf16.msra.mxu0 %v2928_v17  ;;  %1659 = vmatprep.subr.bf16.mxu1 %v2938_v18 }
  0x7e   : > { %1845 = vmatprep.subr.bf16.mxu0 %v2942_v19 }
  0x80   : > { %1660 = vmatpush1.bf16.msra.mxu1 %v2936_v20 }
  0x81   : > { %1846 = vmatpush1.bf16.msra.mxu0 %v2940_v21  ;;  %1661 = vmatprep.subr.bf16.mxu1 %v2945_v22 }
  0x82   : > { %1847 = vmatprep.subr.bf16.mxu0 %v2948_v23 }
  0x84   : > { %1662 = vmatpush1.bf16.msra.mxu1 %v2943_v24 }
  0x85   : > { %1848 = vmatpush1.bf16.msra.mxu0 %v2946_v25  ;;  %2583 = vmatprep.subr.bf16.mxu1 %v2957_v26 }
  0x86   : > { %1910 = vmatprep.subr.bf16.mxu0 %v2957_v26 }
  0x87   : > { %1664 = vmatmul.mubr.bf16.vlgmr.msra.gmra.mrb[0].mxu1 %v2949_v27 }
  0x88   : > { %1850 = vmatmul.mubr.bf16.vlgmr.msra.gmra.mrb[0].mxu0 %v2952_v28  ;;  %2591 = vmatpush1.bf16.msra.mxu1 %v2955_v29 }
  0x89   : > { %1911 = vmatpush1.bf16.msra.mxu0 %v2955_v29  ;;  %2584 = vmatprep.subr.bf16.mxu1 %v2960_v30 }
  0x8a   : > { %1912 = vmatprep.subr.bf16.mxu0 %v2960_v30  ;;  %1673 = vmatprep.mubr.bf16.mxu1 %v2961_v31 }
  0x8b   : > { %1859 = vmatprep.mubr.bf16.mxu0 %v2963_v32 }
  0x8c   : > { %2592 = vmatpush1.bf16.msra.mxu1 %v2958_v33 }
  0x8d   : > { %1913 = vmatpush1.bf16.msra.mxu0 %v2958_v33  ;;  %2585 = vmatprep.subr.bf16.mxu1 %v2969_v34 }
  0x8e   : > { %1914 = vmatprep.subr.bf16.mxu0 %v2969_v34 }
  0x8f   : > { %1674 = vmatmul.mubr.bf16.gmra.mrb[4].mxu1 %v2965_v35 }
  0x90   : > { %1860 = vmatmul.mubr.bf16.gmra.mrb[4].mxu0 %v2966_v36  ;;  %2593 = vmatpush1.bf16.msra.mxu1 %v2967_v37 }
  0x91   : > { %1915 = vmatpush1.bf16.msra.mxu0 %v2967_v37  ;;  %1683 = vmatprep.mubr.bf16.mxu1 %v2970_v38 }
  0x92   : > { %1869 = vmatprep.mubr.bf16.mxu0 %v2972_v39  ;;  %1916 = vmatprep.subr.bf16.mxu0 %v2978_v40 }
  0x93   : > { %2586 = vmatprep.subr.bf16.mxu1 %v2978_v40 }
  0x94   : > { %2594 = vmatpush1.bf16.msra.mxu1 %v2976_v41 }
  0x95   : > { %1917 = vmatpush1.bf16.msra.mxu0 %v2976_v41  ;;  %2587 = vmatprep.subr.bf16.mxu1 %v2987_v42 }
  0x96   : > { %1918 = vmatprep.subr.bf16.mxu0 %v2987_v42  ;;  %v2080_v42 = vlaneseq }
  0x97   : > { %1684 = vmatmul.mubr.bf16.gmra.mrb[8].mxu1 %v2974_v43 }
  0x98   : > { %1870 = vmatmul.mubr.bf16.gmra.mrb[8].mxu0 %v2975_v44  ;;  %1693 = vmatprep.mubr.bf16.mxu1 %v2979_v45  ;;  %v2081_v44 = vshrl.u32 %v2080_v42, 7 }
  0x99   : > { %1879 = vmatprep.mubr.bf16.mxu0 %v2981_v46  ;;  %1919 = vmatpush1.bf16.msra.mxu0 %v2985_v47 }
  0x9a   : > { %2595 = vmatpush1.bf16.msra.mxu1 %v2985_v47  ;;  %1920 = vmatprep.subr.bf16.mxu0 %v2990_v48 }
  0x9b   : > { %2588 = vmatprep.subr.bf16.mxu1 %v2990_v48 }
  0x9d   : > { %1921 = vmatpush1.bf16.msra.mxu0 %v2988_v49 }
  0x9e   : > { %2596 = vmatpush1.bf16.msra.mxu1 %v2988_v49  ;;  %1922 = vmatprep.subr.bf16.mxu0 %v2999_v50 }
  0x9f   : > { %2589 = vmatprep.subr.bf16.mxu1 %v2999_v50  ;;  %1694 = vmatmul.mubr.bf16.gmra.mrb[12].mxu1 %v2983_v51 }
  0xa0   : > { %1880 = vmatmul.mubr.bf16.gmra.mrb[12].mxu0 %v2984_v52  ;;  %1703 = vmatprep.mubr.bf16.mxu1 %v2991_v53 }
  0xa1   : > { %1889 = vmatprep.mubr.bf16.mxu0 %v2993_v54  ;;  %1923 = vmatpush1.bf16.msra.mxu0 %v2997_v55 }
  0xa2   : > { %2597 = vmatpush1.bf16.msra.mxu1 %v2997_v55  ;;  %1924 = vmatprep.subr.bf16.mxu0 %v3008_v56 }
  0xa3   : > { %2590 = vmatprep.subr.bf16.mxu1 %v3008_v56  ;;  %v2082_v56 = vsub.s32 0, %v2081_v44 }
  0xa5   : > { %1925 = vmatpush1.bf16.msra.mxu0 %v3006_v57 }
  0xa6   : > { %2598 = vmatpush1.bf16.msra.mxu1 %v3006_v57 }
  0xa7   : > { %1704 = vmatmul.mubr.bf16.gmra.mrb[16].mxu1 %v2995_v58  ;;  %v2078_v58 = vld [vmem:[%s3689_s2] sm:$0x3] }
  0xa8   : > { %1890 = vmatmul.mubr.bf16.gmra.mrb[16].mxu0 %v2996_v59  ;;  %1713 = vmatprep.mubr.bf16.mxu1 %v3000_v60  ;;  %v2086_v59 = vsub.s32 1, %v2081_v44  ;;  %v3614_v60 = vrot.slane %v2078_v58, %v2082_v56 }
  0xa9   : > { %1899 = vmatprep.mubr.bf16.mxu0 %v3002_v61 }
  0xaf   : > { %1714 = vmatmul.mubr.bf16.gmra.mrb[20].mxu1 %v3004_v62 }
  0xb0   : > { %1900 = vmatmul.mubr.bf16.gmra.mrb[20].mxu0 %v3005_v63  ;;  %1972 = vmatprep.mubr.bf16.mxu1 %v3039_v0  ;;  %v3616_v63 = vrot.slane %v2078_v58, %v2086_v59 }
  0xb1   : > { %1942 = vmatprep.mubr.bf16.mxu0 %v3039_v0 }
  0xb7   : > { %1973 = vmatmul.mubr.bf16.vlgmr.msra.gmra.mrb[24].mxu1 %v3010_v2 }
  0xb8   : > { %1943 = vmatmul.mubr.bf16.vlgmr.msra.gmra.mrb[0].mxu0 %v3009_v1  ;;  %1982 = vmatprep.mubr.bf16.mxu1 %v3039_v0 }
  0xb9   : > { %1952 = vmatprep.mubr.bf16.mxu0 %v3039_v0 }
  0xbf   : > { %1983 = vmatmul.mubr.bf16.gmra.mrb[28].mxu1 %v3012_v4 }
  0xc0   : > { %1953 = vmatmul.mubr.bf16.gmra.mrb[4].mxu0 %v3011_v3  ;;  %1992 = vmatprep.mubr.bf16.mxu1 %v3039_v0 }
  0xc1   : > { %1962 = vmatprep.mubr.bf16.mxu0 %v3039_v0 }
  0xc7   : > { %1993 = vmatmul.mubr.bf16.gmra.mrb[32].mxu1 %v3014_v6 }
  0xc8   : > { %1963 = vmatmul.mubr.bf16.gmra.mrb[8].mxu0 %v3013_v5 }
 0x15a   : > { %v1665_v7 = vpop.f32.mrb[0].mxu1 }
 0x15b   : > { %v1667_v8 = vpop.f32.mrb[1].mxu1 }
 0x15c   : > { %v3575_v9 = vpop.f32.mrb[2].mxu1 }
 0x15d   : > { %v3577_v10 = vpop.f32.mrb[3].mxu1 }
 0x162   : > { %v3579_v11 = vpop.f32.mrb[4].mxu1 }
 0x163   : > { %v3581_v12 = vpop.f32.mrb[5].mxu1 }
 0x164   : > { %v3583_v13 = vpop.f32.mrb[6].mxu1 }
 0x165   : > { %v3585_v14 = vpop.f32.mrb[7].mxu1 }
 0x16a   : > { %v3587_v15 = vpop.f32.mrb[8].mxu1 }
 0x16b   : > { %v3589_v16 = vpop.f32.mrb[9].mxu1 }
 0x16c   : > { %v3591_v17 = vpop.f32.mrb[10].mxu1 }
 0x16d   : > { %v3593_v18 = vpop.f32.mrb[11].mxu1 }
 0x172   : > { %v1695_v19 = vpop.f32.mrb[12].mxu1 }
 0x173   : > { %v1881_v20 = vpop.f32.mrb[12].mxu0  ;;  %v1697_v22 = vpop.f32.mrb[13].mxu1 }
 0x174   : > { %v2611_v21 = vadd.f32 %v1881_v20, %v1695_v19  ;;  %v1883_v23 = vpop.f32.mrb[13].mxu0  ;;  %v1699_v25 = vpop.f32.mrb[14].mxu1 }
 0x175   : > { %v2613_v24 = vadd.f32 %v1883_v23, %v1697_v22  ;;  %v1885_v26 = vpop.f32.mrb[14].mxu0  ;;  %v1701_v28 = vpop.f32.mrb[15].mxu1 }
 0x176   : > { %v2615_v27 = vadd.f32 %v1885_v26, %v1699_v25  ;;  %v1887_v29 = vpop.f32.mrb[15].mxu0 }
 0x177   : > { %v2617_v30 = vadd.f32 %v1887_v29, %v1701_v28 }
 0x17a   : > { %v1705_v31 = vpop.f32.mrb[16].mxu1 }
 0x17b   : > { %v1891_v32 = vpop.f32.mrb[16].mxu0  ;;  %v1707_v34 = vpop.f32.mrb[17].mxu1 }
 0x17c   : > { %v3595_v33 = vadd.f32 %v1891_v32, %v1705_v31  ;;  %v1893_v35 = vpop.f32.mrb[17].mxu0  ;;  %v1709_v37 = vpop.f32.mrb[18].mxu1 }
 0x17d   : > { %v3597_v36 = vadd.f32 %v1893_v35, %v1707_v34  ;;  %v1895_v38 = vpop.f32.mrb[18].mxu0  ;;  %v1711_v40 = vpop.f32.mrb[19].mxu1 }
 0x17e   : > { %v3599_v39 = vadd.f32 %v1895_v38, %v1709_v37  ;;  %v1897_v41 = vpop.f32.mrb[19].mxu0 }
 0x17f   : > { %v3601_v43 = vadd.f32 %v1897_v41, %v1711_v40 }
 0x182   : > { %v1715_v45 = vpop.f32.mrb[20].mxu1 }
 0x183   : > { %v1901_v46 = vpop.f32.mrb[20].mxu0  ;;  %v1717_v48 = vpop.f32.mrb[21].mxu1 }
 0x184   : > { %v3603_v47 = vadd.f32 %v1901_v46, %v1715_v45  ;;  %v1903_v49 = vpop.f32.mrb[21].mxu0  ;;  %v1719_v51 = vpop.f32.mrb[22].mxu1 }
 0x185   : > { %v3605_v50 = vadd.f32 %v1903_v49, %v1717_v48  ;;  %v1905_v52 = vpop.f32.mrb[22].mxu0  ;;  %v1721_v54 = vpop.f32.mrb[23].mxu1 }
 0x186   : > { %v3607_v53 = vadd.f32 %v1905_v52, %v1719_v51  ;;  %v1907_v55 = vpop.f32.mrb[23].mxu0 }
 0x187   : > { %v3609_v57 = vadd.f32 %v1907_v55, %v1721_v54 }
 0x18a   : > { %v1974_v62 = vpop.f32.mrb[24].mxu1 }
 0x18b   : > { %v1944_v61 = vpop.f32.mrb[0].mxu0  ;;  %v2612_v1 = vadd.f32 %v2611_v21, %v1974_v62  ;;  %v1976_v3 = vpop.f32.mrb[25].mxu1 }
 0x18c   : > { %v2599_v0 = vadd.f32 %v1944_v61, %v1665_v7  ;;  %v1946_v2 = vpop.f32.mrb[1].mxu0  ;;  %v2614_v5 = vadd.f32 %v2613_v24, %v1976_v3  ;;  %v1978_v19 = vpop.f32.mrb[26].mxu1 }
 0x18d   : > { %v2600_v4 = vadd.f32 %v1946_v2, %v1667_v8  ;;  %v1948_v6 = vpop.f32.mrb[2].mxu0  ;;  %v2102_v22 = vadd.f32 %v2612_v1, %v3614_v60  ;;  %v2616_v25 = vadd.f32 %v2615_v27, %v1978_v19  ;;  %v1980_v28 = vpop.f32.mrb[27].mxu1 }
 0x18e   : > { %v2090_v20 = vadd.f32 %v2599_v0, %v3614_v60  ;;  %v2601_v23 = vadd.f32 %v1948_v6, %v3575_v9  ;;  %v1950_v26 = vpop.f32.mrb[3].mxu0  ;;  %v2103_v7 = vadd.f32 %v2614_v5, %v3616_v63  ;;  %v2618_v8 = vadd.f32 %v2617_v30, %v1980_v28 }
 0x18f   : > { %v2091_v29 = vadd.f32 %v2600_v4, %v3616_v63  ;;  %v2602_v21 = vadd.f32 %v1950_v26, %v3577_v10  ;;  %v2126_v31 = vmax.f32 %v2102_v22, 0.0  ;;  %v2104_v34 = vadd.f32 %v2616_v25, %v3614_v60 }
 0x190   : > { %v2114_v24 = vmax.f32 %v2090_v20, 0.0  ;;  %v2092_v32 = vadd.f32 %v2601_v23, %v3614_v60  ;;  %v2127_v37 = vmax.f32 %v2103_v7, 0.0  ;;  %v2105_v27 = vadd.f32 %v2618_v8, %v3616_v63 }
 0x191   : > { %v2115_v35 = vmax.f32 %v2091_v29, 0.0  ;;  %v2093_v9 = vadd.f32 %v2602_v21, %v3616_v63  ;;  %v2128_v30 = vmax.f32 %v2104_v34, 0.0 }
 0x192   : > { %v2116_v10 = vmax.f32 %v2092_v32, 0.0  ;;  %v2577_v40 = vpack.c.bf16 %v2127_v37, %v2126_v31  ;;  %v2129_v42 = vmax.f32 %v2105_v27, 0.0  ;;  %v1984_v45 = vpop.f32.mrb[28].mxu1 }
 0x193   : > { %v2571_v38 = vpack.c.bf16 %v2115_v35, %v2114_v24  ;;  %v2117_v41 = vmax.f32 %v2093_v9, 0.0  ;;  %v1954_v44 = vpop.f32.mrb[4].mxu0  ;;  %v2620_v48 = vadd.f32 %v3595_v33, %v1984_v45  ;;  %v1986_v51 = vpop.f32.mrb[29].mxu1 }
 0x194   : > { %v2603_v46 = vadd.f32 %v1954_v44, %v3579_v11  ;;  %v1956_v49 = vpop.f32.mrb[5].mxu0  ;;  %2216 = vst [vmem:[%s3632_s21 + $0x30] sm:$0xff] %v2577_v40  ;;  %v2578_v54 = vpack.c.bf16 %v2129_v42, %v2128_v30  ;;  %v2622_v56 = vadd.f32 %v3597_v36, %v1986_v51  ;;  %v1988_v59 = vpop.f32.mrb[30].mxu1 }
 0x195   : > { %2210 = vst [vmem:[%s3632_s21] sm:$0xff] %v2571_v38  ;;  %v2572_v52 = vpack.c.bf16 %v2117_v41, %v2116_v10  ;;  %v2604_v55 = vadd.f32 %v1956_v49, %v3581_v12  ;;  %v1958_v58 = vpop.f32.mrb[6].mxu0  ;;  %v2106_v11 = vadd.f32 %v2620_v48, %v3614_v60  ;;  %v2624_v62 = vadd.f32 %v3599_v39, %v1988_v59  ;;  %v1990_v1 = vpop.f32.mrb[31].mxu1 }
 0x196   : > { %v2094_v61 = vadd.f32 %v2603_v46, %v3614_v60  ;;  %v2605_v33 = vadd.f32 %v1958_v58, %v3583_v13  ;;  %v1960_v0 = vpop.f32.mrb[7].mxu0  ;;  %2217 = vst [vmem:[%s3632_s21 + $0x38] sm:$0xff] %v2578_v54  ;;  %v2107_v12 = vadd.f32 %v2622_v56, %v3616_v63  ;;  %v2626_v3 = vadd.f32 %v3601_v43, %v1990_v1 }
 0x197   : > { %2211 = vst [vmem:[%s3632_s21 + $0x8] sm:$0xff] %v2572_v52  ;;  %v2095_v2 = vadd.f32 %v2604_v55, %v3616_v63  ;;  %v2606_v36 = vadd.f32 %v1960_v0, %v3585_v14  ;;  %v2130_v5 = vmax.f32 %v2106_v11, 0.0  ;;  %v2108_v13 = vadd.f32 %v2624_v62, %v3614_v60 }
 0x198   : > { %v2118_v4 = vmax.f32 %v2094_v61, 0.0  ;;  %v2096_v6 = vadd.f32 %v2605_v33, %v3614_v60  ;;  %v2131_v39 = vmax.f32 %v2107_v12, 0.0  ;;  %v2109_v22 = vadd.f32 %v2626_v3, %v3616_v63 }
 0x199   : > { %v2119_v19 = vmax.f32 %v2095_v2, 0.0  ;;  %v2097_v20 = vadd.f32 %v2606_v36, %v3616_v63  ;;  %v2132_v25 = vmax.f32 %v2108_v13, 0.0 }
 0x19a   : > { %v2120_v23 = vmax.f32 %v2096_v6, 0.0  ;;  %v2579_v14 = vpack.c.bf16 %v2131_v39, %v2130_v5  ;;  %v2133_v43 = vmax.f32 %v2109_v22, 0.0  ;;  %v1994_v7 = vpop.f32.mrb[32].mxu1 }
 0x19b   : > { %v2573_v26 = vpack.c.bf16 %v2119_v19, %v2118_v4  ;;  %v2121_v28 = vmax.f32 %v2097_v20, 0.0  ;;  %v1964_v29 = vpop.f32.mrb[8].mxu0  ;;  %v2628_v8 = vadd.f32 %v3603_v47, %v1994_v7  ;;  %v1996_v31 = vpop.f32.mrb[33].mxu1 }
 0x19c   : > { %v2607_v21 = vadd.f32 %v1964_v29, %v3587_v15  ;;  %v1966_v24 = vpop.f32.mrb[9].mxu0  ;;  %2218 = vst [vmem:[%s3632_s21 + $0x40] sm:$0xff] %v2579_v14  ;;  %v2580_v34 = vpack.c.bf16 %v2133_v43, %v2132_v25  ;;  %v2630_v37 = vadd.f32 %v3605_v50, %v1996_v31  ;;  %v1998_v27 = vpop.f32.mrb[34].mxu1 }
 0x19d   : > { %2212 = vst [vmem:[%s3632_s21 + $0x10] sm:$0xff] %v2573_v26  ;;  %v2574_v32 = vpack.c.bf16 %v2121_v28, %v2120_v23  ;;  %v2608_v35 = vadd.f32 %v1966_v24, %v3589_v16  ;;  %v1968_v9 = vpop.f32.mrb[10].mxu0  ;;  %v2110_v15 = vadd.f32 %v2628_v8, %v3614_v60  ;;  %v2632_v30 = vadd.f32 %v3607_v53, %v1998_v27  ;;  %v2000_v40 = vpop.f32.mrb[35].mxu1 }
 0x19e   : > { %v2098_v10 = vadd.f32 %v2607_v21, %v3614_v60  ;;  %v2609_v47 = vadd.f32 %v1968_v9, %v3591_v17  ;;  %v1970_v38 = vpop.f32.mrb[11].mxu0  ;;  %2219 = vst [vmem:[%s3632_s21 + $0x48] sm:$0xff] %v2580_v34  ;;  %v2111_v16 = vadd.f32 %v2630_v37, %v3616_v63  ;;  %v2634_v42 = vadd.f32 %v3609_v57, %v2000_v40 }
 0x19f   : > { %2213 = vst [vmem:[%s3632_s21 + $0x18] sm:$0xff] %v2574_v32  ;;  %v2099_v41 = vadd.f32 %v2608_v35, %v3616_v63  ;;  %v2610_v50 = vadd.f32 %v1970_v38, %v3593_v18  ;;  %v2134_v45 = vmax.f32 %v2110_v15, 0.0  ;;  %v2112_v53 = vadd.f32 %v2632_v30, %v3614_v60 }
 0x1a0   : > { %v2122_v44 = vmax.f32 %v2098_v10, 0.0  ;;  %v2100_v17 = vadd.f32 %v2609_v47, %v3614_v60  ;;  %v2135_v48 = vmax.f32 %v2111_v16, 0.0  ;;  %v2113_v51 = vadd.f32 %v2634_v42, %v3616_v63 }
 0x1a1   : > { %v2123_v46 = vmax.f32 %v2099_v41, 0.0  ;;  %v2101_v49 = vadd.f32 %v2610_v50, %v3616_v63  ;;  %v2136_v18 = vmax.f32 %v2112_v53, 0.0 }
 0x1a2   : > { %v2124_v52 = vmax.f32 %v2100_v17, 0.0  ;;  %v2581_v55 = vpack.c.bf16 %v2135_v48, %v2134_v45  ;;  %v2137_v56 = vmax.f32 %v2113_v51, 0.0 }
 0x1a3   : > { %v2575_v54 = vpack.c.bf16 %v2123_v46, %v2122_v44  ;;  %v2125_v57 = vmax.f32 %v2101_v49, 0.0 }
 0x1a4   : > { %2220 = vst [vmem:[%s3632_s21 + $0x50] sm:$0xff] %v2581_v55  ;;  %v2582_v59 = vpack.c.bf16 %v2137_v56, %v2136_v18 }
 0x1a5   : > { %2214 = vst [vmem:[%s3632_s21 + $0x20] sm:$0xff] %v2575_v54  ;;  %v2576_v58 = vpack.c.bf16 %v2125_v57, %v2124_v52 }
 0x1a6   : > { %2221 = vst [vmem:[%s3632_s21 + $0x58] sm:$0xff] %v2582_v59 }
 0x1a7   : > { %2215 = vst [vmem:[%s3632_s21 + $0x28] sm:$0xff] %v2576_v58 }
 0x1a8 PF: > { %s13_s14 = sadd.s32 1, %s3037_s14   ;;  %s3691_s12 = smov %s3033_s13 }
 0x1a9   : > { %p10_p5 = scmp.ge.s32.totalorder %s13_s14, 5   ;;  %s3692_s13 = smov %s3694_s15 }
 0x1ab   :  { %12 = sbr.rel (!%p10_p5) target bundleno = 2 (0x2), region = 76 }

// kernel: sphere_cnn_forward.9
= control target key start
LH: loop header
LB: loop body
LE: loop exit
PB: predicated region body
PF: predicated region fallthrough
CT: control target
= control target key end

     0   :  { %s6022_s12 = smov 0   ;;  %s6024_s13 = smov 0   ;;  %s7293_s0 = inlined_call_operand.vmem [shape: bf16[72,2304], index: 0, kind: input, shape index: {}]   ;;  %s7294_s1 = inlined_call_operand.vmem [shape: bf16[2304,512], index: 1, kind: input, shape index: {}]   ;;  %s7295_s2 = inlined_call_operand.vmem [shape: f32[1,512], index: 2, kind: input, shape index: {}]   ;;  %s7296_s3 = inlined_call_operand.vmem [shape: bf16[72,512], index: 3, kind: output, shape index: {}]  }
   0x1   :  { %s6026_s14 = smov 0   ;;  %s6028_s15 = smov 0  }
   0x2   :  { %s6030_s16 = smov 0  }
   0x3 LB: > { %s28_s17 = sadd.s32 1, %s5996_s15  ;;  %s4790_s18 = sadd.s32 4294967295, %s6000_s16   ;;  %s6000_s16 = sphi %s6030_s16, %s13_s16   ;;  %s5996_s15 = sphi %s6028_s15, %s7301_s15   ;;  %s5992_s14 = sphi %s6026_s14, %s7300_s14   ;;  %s5988_s13 = sphi %s6024_s13, %s7299_s13   ;;  %s5984_s12 = sphi %s6022_s12, %s7298_s12  }
   0x4   : > { %p30_p0 = scmp.ge.s32.totalorder %s28_s17, 2  ;;  %p76_p1 = scmp.ne.s32.totalorder %s5988_s13, %s5984_s12 }
   0x5   : > { %p77_p2 = scmp.eq.s32.totalorder %s6000_s16, 0  ;;  %p134_p4 = scmp.eq.s32.totalorder %s4790_s18, 1 }
   0x6   : > { %s7303_s17 = smov (%p30_p0, %s28_s17), 0  ;;  %s69_s20 = sadd.s32 1, %s5988_s13 }
   0x7   : > { %p78_p3 = por %p77_p2, %p76_p1  ;;  %s65_s19 = ssub.s32 %s5996_s15, %s7303_s17 }
   0x8   : > { %p67_p5 = scmp.eq.s32.totalorder %s65_s19, 0  ;;  %p6057_p6 = por %p134_p4, %p76_p1 }
   0x9   : > { %p4794_p7 = scmp.ge.s32.totalorder %s6000_s16, 2 }
   0xa   : > { %s6062_s22 = scalar_select %p67_p5, %s5988_s13, %s69_s20  }
   0xb   : > { %171 = sbr.rel (%p4794_p7) target bundleno = 166 (0xa6), region = 20 }
  0x12   : > { %174 = sbr.rel (!%p78_p3) target bundleno = 166 (0xa6), region = 24  ;;  %s176_s23 = sand.u32 (%p78_p3), 1, %s5988_s13  }
  0x13   : > { %s5190_s24 = sshll.u32 (%p78_p3), %s5996_s15, 3  ;;  %s5361_s25 = smul.u32 (%p78_p3), 2304, %s176_s23 }
  0x14   : > { %s6070_s28 = scalar_lea.vmem (%p78_p3), %s7294_s1, %s5190_s24 }
  0x15   : > { %v786_v0 = vld [vmem:[%s6070_s28] sm:$0xff] (%p78_p3)  ;;  %v788_v1 = vld [vmem:[%s6070_s28 + $0x10] sm:$0xff] (%p78_p3)  ;;  %s6078_s29 = scalar_lea.vmem (%p78_p3), [#allocation3], %s5361_s25 }
  0x16   : > { %v790_v2 = vld [vmem:[%s6070_s28 + $0x20] sm:$0xff] (%p78_p3)  ;;  %v792_v3 = vld [vmem:[%s6070_s28 + $0x30] sm:$0xff] (%p78_p3)  ;;  %787 = vst [vmem:[%s6078_s29] sm:$0xff] (%p78_p3), %v786_v0  ;;  %789 = vst [vmem:[%s6078_s29 + $0x8] sm:$0xff] (%p78_p3), %v788_v1 }
  0x17   : > { %v794_v4 = vld [vmem:[%s6070_s28 + $0x40] sm:$0xff] (%p78_p3)  ;;  %v796_v5 = vld [vmem:[%s6070_s28 + $0x50] sm:$0xff] (%p78_p3)  ;;  %791 = vst [vmem:[%s6078_s29 + $0x10] sm:$0xff] (%p78_p3), %v790_v2  ;;  %793 = vst [vmem:[%s6078_s29 + $0x18] sm:$0xff] (%p78_p3), %v792_v3 }
  0x18   : > { %795 = vst [vmem:[%s6078_s29 + $0x20] sm:$0xff] (%p78_p3), %v794_v4  ;;  %797 = vst [vmem:[%s6078_s29 + $0x28] sm:$0xff] (%p78_p3), %v796_v5  ;;  %v798_v6 = vld [vmem:[%s6070_s28 + $0x60] sm:$0xff] (%p78_p3)  ;;  %v800_v7 = vld [vmem:[%s6070_s28 + $0x70] sm:$0xff] (%p78_p3) }
  0x19   : > { %v802_v8 = vld [vmem:[%s6070_s28 + $0x80] sm:$0xff]  ;;  %799 = vst [vmem:[%s6078_s29 + $0x30] sm:$0xff] %v798_v6  ;;  %801 = vst [vmem:[%s6078_s29 + $0x38] sm:$0xff] %v800_v7  ;;  %v804_v9 = vld [vmem:[%s6070_s28 + $0x90] sm:$0xff] }
  0x1a   : > { %803 = vst [vmem:[%s6078_s29 + $0x40] sm:$0xff] %v802_v8  ;;  %v806_v10 = vld [vmem:[%s6070_s28 + $0xa0] sm:$0xff]  ;;  %v808_v11 = vld [vmem:[%s6070_s28 + $0xb0] sm:$0xff]  ;;  %805 = vst [vmem:[%s6078_s29 + $0x48] sm:$0xff] %v804_v9 }
  0x1b   : > { %807 = vst [vmem:[%s6078_s29 + $0x50] sm:$0xff] %v806_v10  ;;  %809 = vst [vmem:[%s6078_s29 + $0x58] sm:$0xff] %v808_v11  ;;  %v810_v12 = vld [vmem:[%s6070_s28 + $0xc0] sm:$0xff]  ;;  %v812_v13 = vld [vmem:[%s6070_s28 + $0xd0] sm:$0xff] }
  0x1c   : > { %v814_v14 = vld [vmem:[%s6070_s28 + $0xe0] sm:$0xff]  ;;  %811 = vst [vmem:[%s6078_s29 + $0x60] sm:$0xff] %v810_v12  ;;  %813 = vst [vmem:[%s6078_s29 + $0x68] sm:$0xff] %v812_v13  ;;  %v816_v15 = vld [vmem:[%s6070_s28 + $0xf0] sm:$0xff] }
  0x1d   : > { %815 = vst [vmem:[%s6078_s29 + $0x70] sm:$0xff] %v814_v14  ;;  %v818_v16 = vld [vmem:[%s6070_s28 + $0x100] sm:$0xff]  ;;  %v820_v17 = vld [vmem:[%s6070_s28 + $0x110] sm:$0xff]  ;;  %817 = vst [vmem:[%s6078_s29 + $0x78] sm:$0xff] %v816_v15 }
  0x1e   : > { %819 = vst [vmem:[%s6078_s29 + $0x80] sm:$0xff] %v818_v16  ;;  %821 = vst [vmem:[%s6078_s29 + $0x88] sm:$0xff] %v820_v17  ;;  %v822_v18 = vld [vmem:[%s6070_s28 + $0x120] sm:$0xff]  ;;  %v824_v19 = vld [vmem:[%s6070_s28 + $0x130] sm:$0xff] }
  0x1f   : > { %v826_v20 = vld [vmem:[%s6070_s28 + $0x140] sm:$0xff]  ;;  %823 = vst [vmem:[%s6078_s29 + $0x90] sm:$0xff] %v822_v18  ;;  %825 = vst [vmem:[%s6078_s29 + $0x98] sm:$0xff] %v824_v19  ;;  %v828_v21 = vld [vmem:[%s6070_s28 + $0x150] sm:$0xff] }
  0x20   : > { %827 = vst [vmem:[%s6078_s29 + $0xa0] sm:$0xff] %v826_v20  ;;  %v830_v22 = vld [vmem:[%s6070_s28 + $0x160] sm:$0xff]  ;;  %v832_v23 = vld [vmem:[%s6070_s28 + $0x170] sm:$0xff]  ;;  %829 = vst [vmem:[%s6078_s29 + $0xa8] sm:$0xff] %v828_v21 }
  0x21   : > { %831 = vst [vmem:[%s6078_s29 + $0xb0] sm:$0xff] %v830_v22  ;;  %833 = vst [vmem:[%s6078_s29 + $0xb8] sm:$0xff] %v832_v23  ;;  %v834_v24 = vld [vmem:[%s6070_s28 + $0x180] sm:$0xff]  ;;  %v836_v25 = vld [vmem:[%s6070_s28 + $0x190] sm:$0xff] }
  0x22   : > { %v838_v26 = vld [vmem:[%s6070_s28 + $0x1a0] sm:$0xff]  ;;  %835 = vst [vmem:[%s6078_s29 + $0xc0] sm:$0xff] %v834_v24  ;;  %837 = vst [vmem:[%s6078_s29 + $0xc8] sm:$0xff] %v836_v25  ;;  %v840_v27 = vld [vmem:[%s6070_s28 + $0x1b0] sm:$0xff] }
  0x23   : > { %839 = vst [vmem:[%s6078_s29 + $0xd0] sm:$0xff] %v838_v26  ;;  %v842_v28 = vld [vmem:[%s6070_s28 + $0x1c0] sm:$0xff]  ;;  %v844_v29 = vld [vmem:[%s6070_s28 + $0x1d0] sm:$0xff]  ;;  %841 = vst [vmem:[%s6078_s29 + $0xd8] sm:$0xff] %v840_v27 }
  0x24   : > { %843 = vst [vmem:[%s6078_s29 + $0xe0] sm:$0xff] %v842_v28  ;;  %845 = vst [vmem:[%s6078_s29 + $0xe8] sm:$0xff] %v844_v29  ;;  %v846_v30 = vld [vmem:[%s6070_s28 + $0x1e0] sm:$0xff]  ;;  %v848_v31 = vld [vmem:[%s6070_s28 + $0x1f0] sm:$0xff] }
  0x25   : > { %v850_v32 = vld [vmem:[%s6070_s28 + $0x200] sm:$0xff]  ;;  %847 = vst [vmem:[%s6078_s29 + $0xf0] sm:$0xff] %v846_v30  ;;  %849 = vst [vmem:[%s6078_s29 + $0xf8] sm:$0xff] %v848_v31  ;;  %v852_v33 = vld [vmem:[%s6070_s28 + $0x210] sm:$0xff] }
  0x26   : > { %851 = vst [vmem:[%s6078_s29 + $0x100] sm:$0xff] %v850_v32  ;;  %v854_v34 = vld [vmem:[%s6070_s28 + $0x220] sm:$0xff]  ;;  %v856_v35 = vld [vmem:[%s6070_s28 + $0x230] sm:$0xff]  ;;  %853 = vst [vmem:[%s6078_s29 + $0x108] sm:$0xff] %v852_v33 }
  0x27   : > { %855 = vst [vmem:[%s6078_s29 + $0x110] sm:$0xff] %v854_v34  ;;  %857 = vst [vmem:[%s6078_s29 + $0x118] sm:$0xff] %v856_v35  ;;  %v858_v36 = vld [vmem:[%s6070_s28 + $0x240] sm:$0xff]  ;;  %v860_v37 = vld [vmem:[%s6070_s28 + $0x250] sm:$0xff] }
  0x28   : > { %v862_v38 = vld [vmem:[%s6070_s28 + $0x260] sm:$0xff]  ;;  %859 = vst [vmem:[%s6078_s29 + $0x120] sm:$0xff] %v858_v36  ;;  %861 = vst [vmem:[%s6078_s29 + $0x128] sm:$0xff] %v860_v37  ;;  %v864_v39 = vld [vmem:[%s6070_s28 + $0x270] sm:$0xff] }
  0x29   : > { %863 = vst [vmem:[%s6078_s29 + $0x130] sm:$0xff] %v862_v38  ;;  %v866_v40 = vld [vmem:[%s6070_s28 + $0x280] sm:$0xff]  ;;  %v868_v41 = vld [vmem:[%s6070_s28 + $0x290] sm:$0xff]  ;;  %865 = vst [vmem:[%s6078_s29 + $0x138] sm:$0xff] %v864_v39 }
  0x2a   : > { %867 = vst [vmem:[%s6078_s29 + $0x140] sm:$0xff] %v866_v40  ;;  %869 = vst [vmem:[%s6078_s29 + $0x148] sm:$0xff] %v868_v41  ;;  %v870_v42 = vld [vmem:[%s6070_s28 + $0x2a0] sm:$0xff]  ;;  %v872_v43 = vld [vmem:[%s6070_s28 + $0x2b0] sm:$0xff] }
  0x2b   : > { %v874_v44 = vld [vmem:[%s6070_s28 + $0x2c0] sm:$0xff]  ;;  %871 = vst [vmem:[%s6078_s29 + $0x150] sm:$0xff] %v870_v42  ;;  %873 = vst [vmem:[%s6078_s29 + $0x158] sm:$0xff] %v872_v43  ;;  %v876_v45 = vld [vmem:[%s6070_s28 + $0x2d0] sm:$0xff] }
  0x2c   : > { %875 = vst [vmem:[%s6078_s29 + $0x160] sm:$0xff] %v874_v44  ;;  %v878_v46 = vld [vmem:[%s6070_s28 + $0x2e0] sm:$0xff]  ;;  %v880_v47 = vld [vmem:[%s6070_s28 + $0x2f0] sm:$0xff]  ;;  %877 = vst [vmem:[%s6078_s29 + $0x168] sm:$0xff] %v876_v45 }
  0x2d   : > { %879 = vst [vmem:[%s6078_s29 + $0x170] sm:$0xff] %v878_v46  ;;  %881 = vst [vmem:[%s6078_s29 + $0x178] sm:$0xff] %v880_v47  ;;  %v882_v48 = vld [vmem:[%s6070_s28 + $0x300] sm:$0xff]  ;;  %v884_v49 = vld [vmem:[%s6070_s28 + $0x310] sm:$0xff] }
  0x2e   : > { %v886_v50 = vld [vmem:[%s6070_s28 + $0x320] sm:$0xff]  ;;  %883 = vst [vmem:[%s6078_s29 + $0x180] sm:$0xff] %v882_v48  ;;  %885 = vst [vmem:[%s6078_s29 + $0x188] sm:$0xff] %v884_v49  ;;  %v888_v51 = vld [vmem:[%s6070_s28 + $0x330] sm:$0xff] }
  0x2f   : > { %887 = vst [vmem:[%s6078_s29 + $0x190] sm:$0xff] %v886_v50  ;;  %v890_v52 = vld [vmem:[%s6070_s28 + $0x340] sm:$0xff]  ;;  %v892_v53 = vld [vmem:[%s6070_s28 + $0x350] sm:$0xff]  ;;  %889 = vst [vmem:[%s6078_s29 + $0x198] sm:$0xff] %v888_v51 }
  0x30   : > { %891 = vst [vmem:[%s6078_s29 + $0x1a0] sm:$0xff] %v890_v52  ;;  %893 = vst [vmem:[%s6078_s29 + $0x1a8] sm:$0xff] %v892_v53  ;;  %v894_v54 = vld [vmem:[%s6070_s28 + $0x360] sm:$0xff]  ;;  %v896_v55 = vld [vmem:[%s6070_s28 + $0x370] sm:$0xff] }
  0x31   : > { %v898_v56 = vld [vmem:[%s6070_s28 + $0x380] sm:$0xff]  ;;  %895 = vst [vmem:[%s6078_s29 + $0x1b0] sm:$0xff] %v894_v54  ;;  %897 = vst [vmem:[%s6078_s29 + $0x1b8] sm:$0xff] %v896_v55  ;;  %v900_v57 = vld [vmem:[%s6070_s28 + $0x390] sm:$0xff] }
  0x32   : > { %899 = vst [vmem:[%s6078_s29 + $0x1c0] sm:$0xff] %v898_v56  ;;  %v902_v58 = vld [vmem:[%s6070_s28 + $0x3a0] sm:$0xff]  ;;  %v904_v59 = vld [vmem:[%s6070_s28 + $0x3b0] sm:$0xff]  ;;  %901 = vst [vmem:[%s6078_s29 + $0x1c8] sm:$0xff] %v900_v57 }
  0x33   : > { %903 = vst [vmem:[%s6078_s29 + $0x1d0] sm:$0xff] %v902_v58  ;;  %905 = vst [vmem:[%s6078_s29 + $0x1d8] sm:$0xff] %v904_v59  ;;  %v906_v60 = vld [vmem:[%s6070_s28 + $0x3c0] sm:$0xff]  ;;  %v908_v61 = vld [vmem:[%s6070_s28 + $0x3d0] sm:$0xff] }
  0x34   : > { %v910_v62 = vld [vmem:[%s6070_s28 + $0x3e0] sm:$0xff]  ;;  %907 = vst [vmem:[%s6078_s29 + $0x1e0] sm:$0xff] %v906_v60  ;;  %909 = vst [vmem:[%s6078_s29 + $0x1e8] sm:$0xff] %v908_v61  ;;  %v912_v63 = vld [vmem:[%s6070_s28 + $0x3f0] sm:$0xff] }
  0x35   : > { %911 = vst [vmem:[%s6078_s29 + $0x1f0] sm:$0xff] %v910_v62  ;;  %v914_v0 = vld [vmem:[%s6070_s28 + $0x400] sm:$0xff]  ;;  %v916_v1 = vld [vmem:[%s6070_s28 + $0x410] sm:$0xff]  ;;  %913 = vst [vmem:[%s6078_s29 + $0x1f8] sm:$0xff] %v912_v63 }
  0x36   : > { %915 = vst [vmem:[%s6078_s29 + $0x200] sm:$0xff] %v914_v0  ;;  %917 = vst [vmem:[%s6078_s29 + $0x208] sm:$0xff] %v916_v1  ;;  %v918_v2 = vld [vmem:[%s6070_s28 + $0x420] sm:$0xff]  ;;  %v920_v3 = vld [vmem:[%s6070_s28 + $0x430] sm:$0xff] }
  0x37   : > { %v922_v4 = vld [vmem:[%s6070_s28 + $0x440] sm:$0xff]  ;;  %919 = vst [vmem:[%s6078_s29 + $0x210] sm:$0xff] %v918_v2  ;;  %921 = vst [vmem:[%s6078_s29 + $0x218] sm:$0xff] %v920_v3  ;;  %v924_v5 = vld [vmem:[%s6070_s28 + $0x450] sm:$0xff] }
  0x38   : > { %923 = vst [vmem:[%s6078_s29 + $0x220] sm:$0xff] %v922_v4  ;;  %v926_v6 = vld [vmem:[%s6070_s28 + $0x460] sm:$0xff]  ;;  %v928_v7 = vld [vmem:[%s6070_s28 + $0x470] sm:$0xff]  ;;  %925 = vst [vmem:[%s6078_s29 + $0x228] sm:$0xff] %v924_v5 }
  0x39   : > { %927 = vst [vmem:[%s6078_s29 + $0x230] sm:$0xff] %v926_v6  ;;  %929 = vst [vmem:[%s6078_s29 + $0x238] sm:$0xff] %v928_v7  ;;  %v930_v8 = vld [vmem:[%s6070_s28 + $0x480] sm:$0xff]  ;;  %v932_v9 = vld [vmem:[%s6070_s28 + $0x490] sm:$0xff] }
  0x3a   : > { %v934_v10 = vld [vmem:[%s6070_s28 + $0x4a0] sm:$0xff]  ;;  %931 = vst [vmem:[%s6078_s29 + $0x240] sm:$0xff] %v930_v8  ;;  %933 = vst [vmem:[%s6078_s29 + $0x248] sm:$0xff] %v932_v9  ;;  %v936_v11 = vld [vmem:[%s6070_s28 + $0x4b0] sm:$0xff] }
  0x3b   : > { %935 = vst [vmem:[%s6078_s29 + $0x250] sm:$0xff] %v934_v10  ;;  %v938_v12 = vld [vmem:[%s6070_s28 + $0x4c0] sm:$0xff]  ;;  %v940_v13 = vld [vmem:[%s6070_s28 + $0x4d0] sm:$0xff]  ;;  %937 = vst [vmem:[%s6078_s29 + $0x258] sm:$0xff] %v936_v11 }
  0x3c   : > { %939 = vst [vmem:[%s6078_s29 + $0x260] sm:$0xff] %v938_v12  ;;  %941 = vst [vmem:[%s6078_s29 + $0x268] sm:$0xff] %v940_v13  ;;  %v942_v14 = vld [vmem:[%s6070_s28 + $0x4e0] sm:$0xff]  ;;  %v944_v15 = vld [vmem:[%s6070_s28 + $0x4f0] sm:$0xff] }
  0x3d   : > { %v946_v16 = vld [vmem:[%s6070_s28 + $0x500] sm:$0xff]  ;;  %943 = vst [vmem:[%s6078_s29 + $0x270] sm:$0xff] %v942_v14  ;;  %945 = vst [vmem:[%s6078_s29 + $0x278] sm:$0xff] %v944_v15  ;;  %v948_v17 = vld [vmem:[%s6070_s28 + $0x510] sm:$0xff] }
  0x3e   : > { %947 = vst [vmem:[%s6078_s29 + $0x280] sm:$0xff] %v946_v16  ;;  %v950_v18 = vld [vmem:[%s6070_s28 + $0x520] sm:$0xff]  ;;  %v952_v19 = vld [vmem:[%s6070_s28 + $0x530] sm:$0xff]  ;;  %949 = vst [vmem:[%s6078_s29 + $0x288] sm:$0xff] %v948_v17 }
  0x3f   : > { %951 = vst [vmem:[%s6078_s29 + $0x290] sm:$0xff] %v950_v18  ;;  %953 = vst [vmem:[%s6078_s29 + $0x298] sm:$0xff] %v952_v19  ;;  %v954_v20 = vld [vmem:[%s6070_s28 + $0x540] sm:$0xff]  ;;  %v956_v21 = vld [vmem:[%s6070_s28 + $0x550] sm:$0xff] }
  0x40   : > { %v958_v22 = vld [vmem:[%s6070_s28 + $0x560] sm:$0xff]  ;;  %955 = vst [vmem:[%s6078_s29 + $0x2a0] sm:$0xff] %v954_v20  ;;  %957 = vst [vmem:[%s6078_s29 + $0x2a8] sm:$0xff] %v956_v21  ;;  %v960_v23 = vld [vmem:[%s6070_s28 + $0x570] sm:$0xff] }
  0x41   : > { %959 = vst [vmem:[%s6078_s29 + $0x2b0] sm:$0xff] %v958_v22  ;;  %v962_v24 = vld [vmem:[%s6070_s28 + $0x580] sm:$0xff]  ;;  %v964_v25 = vld [vmem:[%s6070_s28 + $0x590] sm:$0xff]  ;;  %961 = vst [vmem:[%s6078_s29 + $0x2b8] sm:$0xff] %v960_v23 }
  0x42   : > { %963 = vst [vmem:[%s6078_s29 + $0x2c0] sm:$0xff] %v962_v24  ;;  %965 = vst [vmem:[%s6078_s29 + $0x2c8] sm:$0xff] %v964_v25  ;;  %v966_v26 = vld [vmem:[%s6070_s28 + $0x5a0] sm:$0xff]  ;;  %v968_v27 = vld [vmem:[%s6070_s28 + $0x5b0] sm:$0xff] }
  0x43   : > { %v970_v28 = vld [vmem:[%s6070_s28 + $0x5c0] sm:$0xff]  ;;  %967 = vst [vmem:[%s6078_s29 + $0x2d0] sm:$0xff] %v966_v26  ;;  %969 = vst [vmem:[%s6078_s29 + $0x2d8] sm:$0xff] %v968_v27  ;;  %v972_v29 = vld [vmem:[%s6070_s28 + $0x5d0] sm:$0xff] }
  0x44   : > { %971 = vst [vmem:[%s6078_s29 + $0x2e0] sm:$0xff] %v970_v28  ;;  %v974_v30 = vld [vmem:[%s6070_s28 + $0x5e0] sm:$0xff]  ;;  %v976_v31 = vld [vmem:[%s6070_s28 + $0x5f0] sm:$0xff]  ;;  %973 = vst [vmem:[%s6078_s29 + $0x2e8] sm:$0xff] %v972_v29 }
  0x45   : > { %975 = vst [vmem:[%s6078_s29 + $0x2f0] sm:$0xff] %v974_v30  ;;  %977 = vst [vmem:[%s6078_s29 + $0x2f8] sm:$0xff] %v976_v31  ;;  %v978_v32 = vld [vmem:[%s6070_s28 + $0x600] sm:$0xff]  ;;  %v980_v33 = vld [vmem:[%s6070_s28 + $0x610] sm:$0xff] }
  0x46   : > { %v982_v34 = vld [vmem:[%s6070_s28 + $0x620] sm:$0xff]  ;;  %979 = vst [vmem:[%s6078_s29 + $0x300] sm:$0xff] %v978_v32  ;;  %981 = vst [vmem:[%s6078_s29 + $0x308] sm:$0xff] %v980_v33  ;;  %v984_v35 = vld [vmem:[%s6070_s28 + $0x630] sm:$0xff] }
  0x47   : > { %983 = vst [vmem:[%s6078_s29 + $0x310] sm:$0xff] %v982_v34  ;;  %v986_v36 = vld [vmem:[%s6070_s28 + $0x640] sm:$0xff]  ;;  %v988_v37 = vld [vmem:[%s6070_s28 + $0x650] sm:$0xff]  ;;  %985 = vst [vmem:[%s6078_s29 + $0x318] sm:$0xff] %v984_v35 }
  0x48   : > { %987 = vst [vmem:[%s6078_s29 + $0x320] sm:$0xff] %v986_v36  ;;  %989 = vst [vmem:[%s6078_s29 + $0x328] sm:$0xff] %v988_v37  ;;  %v990_v38 = vld [vmem:[%s6070_s28 + $0x660] sm:$0xff]  ;;  %v992_v39 = vld [vmem:[%s6070_s28 + $0x670] sm:$0xff] }
  0x49   : > { %v994_v40 = vld [vmem:[%s6070_s28 + $0x680] sm:$0xff]  ;;  %991 = vst [vmem:[%s6078_s29 + $0x330] sm:$0xff] %v990_v38  ;;  %993 = vst [vmem:[%s6078_s29 + $0x338] sm:$0xff] %v992_v39  ;;  %v996_v41 = vld [vmem:[%s6070_s28 + $0x690] sm:$0xff] }
  0x4a   : > { %995 = vst [vmem:[%s6078_s29 + $0x340] sm:$0xff] %v994_v40  ;;  %v998_v42 = vld [vmem:[%s6070_s28 + $0x6a0] sm:$0xff]  ;;  %v1000_v43 = vld [vmem:[%s6070_s28 + $0x6b0] sm:$0xff]  ;;  %997 = vst [vmem:[%s6078_s29 + $0x348] sm:$0xff] %v996_v41 }
  0x4b   : > { %999 = vst [vmem:[%s6078_s29 + $0x350] sm:$0xff] %v998_v42  ;;  %1001 = vst [vmem:[%s6078_s29 + $0x358] sm:$0xff] %v1000_v43  ;;  %v1002_v44 = vld [vmem:[%s6070_s28 + $0x6c0] sm:$0xff]  ;;  %v1004_v45 = vld [vmem:[%s6070_s28 + $0x6d0] sm:$0xff] }
  0x4c   : > { %v1006_v46 = vld [vmem:[%s6070_s28 + $0x6e0] sm:$0xff]  ;;  %1003 = vst [vmem:[%s6078_s29 + $0x360] sm:$0xff] %v1002_v44  ;;  %1005 = vst [vmem:[%s6078_s29 + $0x368] sm:$0xff] %v1004_v45  ;;  %v1008_v47 = vld [vmem:[%s6070_s28 + $0x6f0] sm:$0xff] }
  0x4d   : > { %1007 = vst [vmem:[%s6078_s29 + $0x370] sm:$0xff] %v1006_v46  ;;  %v1010_v48 = vld [vmem:[%s6070_s28 + $0x700] sm:$0xff]  ;;  %v1012_v49 = vld [vmem:[%s6070_s28 + $0x710] sm:$0xff]  ;;  %1009 = vst [vmem:[%s6078_s29 + $0x378] sm:$0xff] %v1008_v47 }
  0x4e   : > { %1011 = vst [vmem:[%s6078_s29 + $0x380] sm:$0xff] %v1010_v48  ;;  %1013 = vst [vmem:[%s6078_s29 + $0x388] sm:$0xff] %v1012_v49  ;;  %v1014_v50 = vld [vmem:[%s6070_s28 + $0x720] sm:$0xff]  ;;  %v1016_v51 = vld [vmem:[%s6070_s28 + $0x730] sm:$0xff] }
  0x4f   : > { %v1018_v52 = vld [vmem:[%s6070_s28 + $0x740] sm:$0xff]  ;;  %1015 = vst [vmem:[%s6078_s29 + $0x390] sm:$0xff] %v1014_v50  ;;  %1017 = vst [vmem:[%s6078_s29 + $0x398] sm:$0xff] %v1016_v51  ;;  %v1020_v53 = vld [vmem:[%s6070_s28 + $0x750] sm:$0xff] }
  0x50   : > { %1019 = vst [vmem:[%s6078_s29 + $0x3a0] sm:$0xff] %v1018_v52  ;;  %v1022_v54 = vld [vmem:[%s6070_s28 + $0x760] sm:$0xff]  ;;  %v1024_v55 = vld [vmem:[%s6070_s28 + $0x770] sm:$0xff]  ;;  %1021 = vst [vmem:[%s6078_s29 + $0x3a8] sm:$0xff] %v1020_v53 }
  0x51   : > { %1023 = vst [vmem:[%s6078_s29 + $0x3b0] sm:$0xff] %v1022_v54  ;;  %1025 = vst [vmem:[%s6078_s29 + $0x3b8] sm:$0xff] %v1024_v55  ;;  %v1026_v56 = vld [vmem:[%s6070_s28 + $0x780] sm:$0xff]  ;;  %v1028_v57 = vld [vmem:[%s6070_s28 + $0x790] sm:$0xff] }
  0x52   : > { %v1030_v58 = vld [vmem:[%s6070_s28 + $0x7a0] sm:$0xff]  ;;  %1027 = vst [vmem:[%s6078_s29 + $0x3c0] sm:$0xff] %v1026_v56  ;;  %1029 = vst [vmem:[%s6078_s29 + $0x3c8] sm:$0xff] %v1028_v57  ;;  %v1032_v59 = vld [vmem:[%s6070_s28 + $0x7b0] sm:$0xff] }
  0x53   : > { %1031 = vst [vmem:[%s6078_s29 + $0x3d0] sm:$0xff] %v1030_v58  ;;  %v1034_v60 = vld [vmem:[%s6070_s28 + $0x7c0] sm:$0xff]  ;;  %v1036_v61 = vld [vmem:[%s6070_s28 + $0x7d0] sm:$0xff]  ;;  %1033 = vst [vmem:[%s6078_s29 + $0x3d8] sm:$0xff] %v1032_v59 }
  0x54   : > { %1035 = vst [vmem:[%s6078_s29 + $0x3e0] sm:$0xff] %v1034_v60  ;;  %1037 = vst [vmem:[%s6078_s29 + $0x3e8] sm:$0xff] %v1036_v61  ;;  %v1038_v62 = vld [vmem:[%s6070_s28 + $0x7e0] sm:$0xff]  ;;  %v1040_v63 = vld [vmem:[%s6070_s28 + $0x7f0] sm:$0xff] }
  0x55   : > { %v1042_v0 = vld [vmem:[%s6070_s28 + $0x800] sm:$0xff]  ;;  %1039 = vst [vmem:[%s6078_s29 + $0x3f0] sm:$0xff] %v1038_v62  ;;  %1041 = vst [vmem:[%s6078_s29 + $0x3f8] sm:$0xff] %v1040_v63  ;;  %v1044_v1 = vld [vmem:[%s6070_s28 + $0x810] sm:$0xff] }
  0x56   : > { %1043 = vst [vmem:[%s6078_s29 + $0x400] sm:$0xff] %v1042_v0  ;;  %v1046_v2 = vld [vmem:[%s6070_s28 + $0x820] sm:$0xff]  ;;  %v1048_v3 = vld [vmem:[%s6070_s28 + $0x830] sm:$0xff]  ;;  %1045 = vst [vmem:[%s6078_s29 + $0x408] sm:$0xff] %v1044_v1 }
  0x57   : > { %1047 = vst [vmem:[%s6078_s29 + $0x410] sm:$0xff] %v1046_v2  ;;  %1049 = vst [vmem:[%s6078_s29 + $0x418] sm:$0xff] %v1048_v3  ;;  %v1050_v4 = vld [vmem:[%s6070_s28 + $0x840] sm:$0xff]  ;;  %v1052_v5 = vld [vmem:[%s6070_s28 + $0x850] sm:$0xff] }
  0x58   : > { %v1054_v6 = vld [vmem:[%s6070_s28 + $0x860] sm:$0xff]  ;;  %1051 = vst [vmem:[%s6078_s29 + $0x420] sm:$0xff] %v1050_v4  ;;  %1053 = vst [vmem:[%s6078_s29 + $0x428] sm:$0xff] %v1052_v5  ;;  %v1056_v7 = vld [vmem:[%s6070_s28 + $0x870] sm:$0xff] }
  0x59   : > { %1055 = vst [vmem:[%s6078_s29 + $0x430] sm:$0xff] %v1054_v6  ;;  %v1058_v8 = vld [vmem:[%s6070_s28 + $0x880] sm:$0xff]  ;;  %v1060_v9 = vld [vmem:[%s6070_s28 + $0x890] sm:$0xff]  ;;  %1057 = vst [vmem:[%s6078_s29 + $0x438] sm:$0xff] %v1056_v7 }
  0x5a   : > { %1059 = vst [vmem:[%s6078_s29 + $0x440] sm:$0xff] %v1058_v8  ;;  %1061 = vst [vmem:[%s6078_s29 + $0x448] sm:$0xff] %v1060_v9  ;;  %v1062_v10 = vld [vmem:[%s6070_s28 + $0x8a0] sm:$0xff]  ;;  %v1064_v11 = vld [vmem:[%s6070_s28 + $0x8b0] sm:$0xff] }
  0x5b   : > { %v1066_v12 = vld [vmem:[%s6070_s28 + $0x8c0] sm:$0xff]  ;;  %1063 = vst [vmem:[%s6078_s29 + $0x450] sm:$0xff] %v1062_v10  ;;  %1065 = vst [vmem:[%s6078_s29 + $0x458] sm:$0xff] %v1064_v11  ;;  %v1068_v13 = vld [vmem:[%s6070_s28 + $0x8d0] sm:$0xff] }
  0x5c   : > { %1067 = vst [vmem:[%s6078_s29 + $0x460] sm:$0xff] %v1066_v12  ;;  %v1070_v14 = vld [vmem:[%s6070_s28 + $0x8e0] sm:$0xff]  ;;  %v1072_v15 = vld [vmem:[%s6070_s28 + $0x8f0] sm:$0xff]  ;;  %1069 = vst [vmem:[%s6078_s29 + $0x468] sm:$0xff] %v1068_v13 }
  0x5d   : > { %1071 = vst [vmem:[%s6078_s29 + $0x470] sm:$0xff] %v1070_v14  ;;  %1073 = vst [vmem:[%s6078_s29 + $0x478] sm:$0xff] %v1072_v15  ;;  %v1074_v16 = vld [vmem:[%s6070_s28 + $0x900] sm:$0xff]  ;;  %v1076_v17 = vld [vmem:[%s6070_s28 + $0x910] sm:$0xff] }
  0x5e   : > { %v1078_v18 = vld [vmem:[%s6070_s28 + $0x920] sm:$0xff]  ;;  %1075 = vst [vmem:[%s6078_s29 + $0x480] sm:$0xff] %v1074_v16  ;;  %1077 = vst [vmem:[%s6078_s29 + $0x488] sm:$0xff] %v1076_v17  ;;  %v1080_v19 = vld [vmem:[%s6070_s28 + $0x930] sm:$0xff] }
  0x5f   : > { %1079 = vst [vmem:[%s6078_s29 + $0x490] sm:$0xff] %v1078_v18  ;;  %v1082_v20 = vld [vmem:[%s6070_s28 + $0x940] sm:$0xff]  ;;  %v1084_v21 = vld [vmem:[%s6070_s28 + $0x950] sm:$0xff]  ;;  %1081 = vst [vmem:[%s6078_s29 + $0x498] sm:$0xff] %v1080_v19 }
  0x60   : > { %1083 = vst [vmem:[%s6078_s29 + $0x4a0] sm:$0xff] %v1082_v20  ;;  %1085 = vst [vmem:[%s6078_s29 + $0x4a8] sm:$0xff] %v1084_v21  ;;  %v1086_v22 = vld [vmem:[%s6070_s28 + $0x960] sm:$0xff]  ;;  %v1088_v23 = vld [vmem:[%s6070_s28 + $0x970] sm:$0xff] }
  0x61   : > { %v1090_v24 = vld [vmem:[%s6070_s28 + $0x980] sm:$0xff]  ;;  %1087 = vst [vmem:[%s6078_s29 + $0x4b0] sm:$0xff] %v1086_v22  ;;  %1089 = vst [vmem:[%s6078_s29 + $0x4b8] sm:$0xff] %v1088_v23  ;;  %v1092_v25 = vld [vmem:[%s6070_s28 + $0x990] sm:$0xff] }
  0x62   : > { %1091 = vst [vmem:[%s6078_s29 + $0x4c0] sm:$0xff] %v1090_v24  ;;  %v1094_v26 = vld [vmem:[%s6070_s28 + $0x9a0] sm:$0xff]  ;;  %v1096_v27 = vld [vmem:[%s6070_s28 + $0x9b0] sm:$0xff]  ;;  %1093 = vst [vmem:[%s6078_s29 + $0x4c8] sm:$0xff] %v1092_v25 }
  0x63   : > { %1095 = vst [vmem:[%s6078_s29 + $0x4d0] sm:$0xff] %v1094_v26  ;;  %1097 = vst [vmem:[%s6078_s29 + $0x4d8] sm:$0xff] %v1096_v27  ;;  %v1098_v28 = vld [vmem:[%s6070_s28 + $0x9c0] sm:$0xff]  ;;  %v1100_v29 = vld [vmem:[%s6070_s28 + $0x9d0] sm:$0xff] }
  0x64   : > { %v1102_v30 = vld [vmem:[%s6070_s28 + $0x9e0] sm:$0xff]  ;;  %1099 = vst [vmem:[%s6078_s29 + $0x4e0] sm:$0xff] %v1098_v28  ;;  %1101 = vst [vmem:[%s6078_s29 + $0x4e8] sm:$0xff] %v1100_v29  ;;  %v1104_v31 = vld [vmem:[%s6070_s28 + $0x9f0] sm:$0xff] }
  0x65   : > { %1103 = vst [vmem:[%s6078_s29 + $0x4f0] sm:$0xff] %v1102_v30  ;;  %v1106_v32 = vld [vmem:[%s6070_s28 + $0xa00] sm:$0xff]  ;;  %v1108_v33 = vld [vmem:[%s6070_s28 + $0xa10] sm:$0xff]  ;;  %1105 = vst [vmem:[%s6078_s29 + $0x4f8] sm:$0xff] %v1104_v31 }
  0x66   : > { %1107 = vst [vmem:[%s6078_s29 + $0x500] sm:$0xff] %v1106_v32  ;;  %1109 = vst [vmem:[%s6078_s29 + $0x508] sm:$0xff] %v1108_v33  ;;  %v1110_v34 = vld [vmem:[%s6070_s28 + $0xa20] sm:$0xff]  ;;  %v1112_v35 = vld [vmem:[%s6070_s28 + $0xa30] sm:$0xff] }
  0x67   : > { %v1114_v36 = vld [vmem:[%s6070_s28 + $0xa40] sm:$0xff]  ;;  %1111 = vst [vmem:[%s6078_s29 + $0x510] sm:$0xff] %v1110_v34  ;;  %1113 = vst [vmem:[%s6078_s29 + $0x518] sm:$0xff] %v1112_v35  ;;  %v1116_v37 = vld [vmem:[%s6070_s28 + $0xa50] sm:$0xff] }
  0x68   : > { %1115 = vst [vmem:[%s6078_s29 + $0x520] sm:$0xff] %v1114_v36  ;;  %v1118_v38 = vld [vmem:[%s6070_s28 + $0xa60] sm:$0xff]  ;;  %v1120_v39 = vld [vmem:[%s6070_s28 + $0xa70] sm:$0xff]  ;;  %1117 = vst [vmem:[%s6078_s29 + $0x528] sm:$0xff] %v1116_v37 }
  0x69   : > { %1119 = vst [vmem:[%s6078_s29 + $0x530] sm:$0xff] %v1118_v38  ;;  %1121 = vst [vmem:[%s6078_s29 + $0x538] sm:$0xff] %v1120_v39  ;;  %v1122_v40 = vld [vmem:[%s6070_s28 + $0xa80] sm:$0xff]  ;;  %v1124_v41 = vld [vmem:[%s6070_s28 + $0xa90] sm:$0xff] }
  0x6a   : > { %v1126_v42 = vld [vmem:[%s6070_s28 + $0xaa0] sm:$0xff]  ;;  %1123 = vst [vmem:[%s6078_s29 + $0x540] sm:$0xff] %v1122_v40  ;;  %1125 = vst [vmem:[%s6078_s29 + $0x548] sm:$0xff] %v1124_v41  ;;  %v1128_v43 = vld [vmem:[%s6070_s28 + $0xab0] sm:$0xff] }
  0x6b   : > { %1127 = vst [vmem:[%s6078_s29 + $0x550] sm:$0xff] %v1126_v42  ;;  %v1130_v44 = vld [vmem:[%s6070_s28 + $0xac0] sm:$0xff]  ;;  %v1132_v45 = vld [vmem:[%s6070_s28 + $0xad0] sm:$0xff]  ;;  %1129 = vst [vmem:[%s6078_s29 + $0x558] sm:$0xff] %v1128_v43 }
  0x6c   : > { %1131 = vst [vmem:[%s6078_s29 + $0x560] sm:$0xff] %v1130_v44  ;;  %1133 = vst [vmem:[%s6078_s29 + $0x568] sm:$0xff] %v1132_v45  ;;  %v1134_v46 = vld [vmem:[%s6070_s28 + $0xae0] sm:$0xff]  ;;  %v1136_v47 = vld [vmem:[%s6070_s28 + $0xaf0] sm:$0xff] }
  0x6d   : > { %v1138_v48 = vld [vmem:[%s6070_s28 + $0xb00] sm:$0xff]  ;;  %1135 = vst [vmem:[%s6078_s29 + $0x570] sm:$0xff] %v1134_v46  ;;  %1137 = vst [vmem:[%s6078_s29 + $0x578] sm:$0xff] %v1136_v47  ;;  %v1140_v49 = vld [vmem:[%s6070_s28 + $0xb10] sm:$0xff] }
  0x6e   : > { %1139 = vst [vmem:[%s6078_s29 + $0x580] sm:$0xff] %v1138_v48  ;;  %v1142_v50 = vld [vmem:[%s6070_s28 + $0xb20] sm:$0xff]  ;;  %v1144_v51 = vld [vmem:[%s6070_s28 + $0xb30] sm:$0xff]  ;;  %1141 = vst [vmem:[%s6078_s29 + $0x588] sm:$0xff] %v1140_v49 }
  0x6f   : > { %1143 = vst [vmem:[%s6078_s29 + $0x590] sm:$0xff] %v1142_v50  ;;  %1145 = vst [vmem:[%s6078_s29 + $0x598] sm:$0xff] %v1144_v51  ;;  %v1146_v52 = vld [vmem:[%s6070_s28 + $0xb40] sm:$0xff]  ;;  %v1148_v53 = vld [vmem:[%s6070_s28 + $0xb50] sm:$0xff] }
  0x70   : > { %v1150_v54 = vld [vmem:[%s6070_s28 + $0xb60] sm:$0xff]  ;;  %1147 = vst [vmem:[%s6078_s29 + $0x5a0] sm:$0xff] %v1146_v52  ;;  %1149 = vst [vmem:[%s6078_s29 + $0x5a8] sm:$0xff] %v1148_v53  ;;  %v1152_v55 = vld [vmem:[%s6070_s28 + $0xb70] sm:$0xff] }
  0x71   : > { %1151 = vst [vmem:[%s6078_s29 + $0x5b0] sm:$0xff] %v1150_v54  ;;  %v1154_v56 = vld [vmem:[%s6070_s28 + $0xb80] sm:$0xff]  ;;  %v1156_v57 = vld [vmem:[%s6070_s28 + $0xb90] sm:$0xff]  ;;  %1153 = vst [vmem:[%s6078_s29 + $0x5b8] sm:$0xff] %v1152_v55 }
  0x72   : > { %1155 = vst [vmem:[%s6078_s29 + $0x5c0] sm:$0xff] %v1154_v56  ;;  %1157 = vst [vmem:[%s6078_s29 + $0x5c8] sm:$0xff] %v1156_v57  ;;  %v1158_v58 = vld [vmem:[%s6070_s28 + $0xba0] sm:$0xff]  ;;  %v1160_v59 = vld [vmem:[%s6070_s28 + $0xbb0] sm:$0xff] }
  0x73   : > { %v1162_v60 = vld [vmem:[%s6070_s28 + $0xbc0] sm:$0xff]  ;;  %1159 = vst [vmem:[%s6078_s29 + $0x5d0] sm:$0xff] %v1158_v58  ;;  %1161 = vst [vmem:[%s6078_s29 + $0x5d8] sm:$0xff] %v1160_v59  ;;  %v1164_v61 = vld [vmem:[%s6070_s28 + $0xbd0] sm:$0xff] }
  0x74   : > { %1163 = vst [vmem:[%s6078_s29 + $0x5e0] sm:$0xff] %v1162_v60  ;;  %v1166_v62 = vld [vmem:[%s6070_s28 + $0xbe0] sm:$0xff]  ;;  %v1168_v63 = vld [vmem:[%s6070_s28 + $0xbf0] sm:$0xff]  ;;  %1165 = vst [vmem:[%s6078_s29 + $0x5e8] sm:$0xff] %v1164_v61 }
  0x75   : > { %1167 = vst [vmem:[%s6078_s29 + $0x5f0] sm:$0xff] %v1166_v62  ;;  %1169 = vst [vmem:[%s6078_s29 + $0x5f8] sm:$0xff] %v1168_v63  ;;  %v1170_v0 = vld [vmem:[%s6070_s28 + $0xc00] sm:$0xff]  ;;  %v1172_v1 = vld [vmem:[%s6070_s28 + $0xc10] sm:$0xff] }
  0x76   : > { %v1174_v2 = vld [vmem:[%s6070_s28 + $0xc20] sm:$0xff]  ;;  %1171 = vst [vmem:[%s6078_s29 + $0x600] sm:$0xff] %v1170_v0  ;;  %1173 = vst [vmem:[%s6078_s29 + $0x608] sm:$0xff] %v1172_v1  ;;  %v1176_v3 = vld [vmem:[%s6070_s28 + $0xc30] sm:$0xff] }
  0x77   : > { %1175 = vst [vmem:[%s6078_s29 + $0x610] sm:$0xff] %v1174_v2  ;;  %v1178_v4 = vld [vmem:[%s6070_s28 + $0xc40] sm:$0xff]  ;;  %v1180_v5 = vld [vmem:[%s6070_s28 + $0xc50] sm:$0xff]  ;;  %1177 = vst [vmem:[%s6078_s29 + $0x618] sm:$0xff] %v1176_v3 }
  0x78   : > { %1179 = vst [vmem:[%s6078_s29 + $0x620] sm:$0xff] %v1178_v4  ;;  %1181 = vst [vmem:[%s6078_s29 + $0x628] sm:$0xff] %v1180_v5  ;;  %v1182_v6 = vld [vmem:[%s6070_s28 + $0xc60] sm:$0xff]  ;;  %v1184_v7 = vld [vmem:[%s6070_s28 + $0xc70] sm:$0xff] }
  0x79   : > { %v1186_v8 = vld [vmem:[%s6070_s28 + $0xc80] sm:$0xff]  ;;  %1183 = vst [vmem:[%s6078_s29 + $0x630] sm:$0xff] %v1182_v6  ;;  %1185 = vst [vmem:[%s6078_s29 + $0x638] sm:$0xff] %v1184_v7  ;;  %v1188_v9 = vld [vmem:[%s6070_s28 + $0xc90] sm:$0xff] }
  0x7a   : > { %1187 = vst [vmem:[%s6078_s29 + $0x640] sm:$0xff] %v1186_v8  ;;  %v1190_v10 = vld [vmem:[%s6070_s28 + $0xca0] sm:$0xff]  ;;  %v1192_v11 = vld [vmem:[%s6070_s28 + $0xcb0] sm:$0xff]  ;;  %1189 = vst [vmem:[%s6078_s29 + $0x648] sm:$0xff] %v1188_v9 }
  0x7b   : > { %1191 = vst [vmem:[%s6078_s29 + $0x650] sm:$0xff] %v1190_v10  ;;  %1193 = vst [vmem:[%s6078_s29 + $0x658] sm:$0xff] %v1192_v11  ;;  %v1194_v12 = vld [vmem:[%s6070_s28 + $0xcc0] sm:$0xff]  ;;  %v1196_v13 = vld [vmem:[%s6070_s28 + $0xcd0] sm:$0xff] }
  0x7c   : > { %v1198_v14 = vld [vmem:[%s6070_s28 + $0xce0] sm:$0xff]  ;;  %1195 = vst [vmem:[%s6078_s29 + $0x660] sm:$0xff] %v1194_v12  ;;  %1197 = vst [vmem:[%s6078_s29 + $0x668] sm:$0xff] %v1196_v13  ;;  %v1200_v15 = vld [vmem:[%s6070_s28 + $0xcf0] sm:$0xff] }
  0x7d   : > { %1199 = vst [vmem:[%s6078_s29 + $0x670] sm:$0xff] %v1198_v14  ;;  %v1202_v16 = vld [vmem:[%s6070_s28 + $0xd00] sm:$0xff]  ;;  %v1204_v17 = vld [vmem:[%s6070_s28 + $0xd10] sm:$0xff]  ;;  %1201 = vst [vmem:[%s6078_s29 + $0x678] sm:$0xff] %v1200_v15 }
  0x7e   : > { %1203 = vst [vmem:[%s6078_s29 + $0x680] sm:$0xff] %v1202_v16  ;;  %1205 = vst [vmem:[%s6078_s29 + $0x688] sm:$0xff] %v1204_v17  ;;  %v1206_v18 = vld [vmem:[%s6070_s28 + $0xd20] sm:$0xff]  ;;  %v1208_v19 = vld [vmem:[%s6070_s28 + $0xd30] sm:$0xff] }
  0x7f   : > { %v1210_v20 = vld [vmem:[%s6070_s28 + $0xd40] sm:$0xff]  ;;  %1207 = vst [vmem:[%s6078_s29 + $0x690] sm:$0xff] %v1206_v18  ;;  %1209 = vst [vmem:[%s6078_s29 + $0x698] sm:$0xff] %v1208_v19  ;;  %v1212_v21 = vld [vmem:[%s6070_s28 + $0xd50] sm:$0xff] }
  0x80   : > { %1211 = vst [vmem:[%s6078_s29 + $0x6a0] sm:$0xff] %v1210_v20  ;;  %v1214_v22 = vld [vmem:[%s6070_s28 + $0xd60] sm:$0xff]  ;;  %v1216_v23 = vld [vmem:[%s6070_s28 + $0xd70] sm:$0xff]  ;;  %1213 = vst [vmem:[%s6078_s29 + $0x6a8] sm:$0xff] %v1212_v21 }
  0x81   : > { %1215 = vst [vmem:[%s6078_s29 + $0x6b0] sm:$0xff] %v1214_v22  ;;  %1217 = vst [vmem:[%s6078_s29 + $0x6b8] sm:$0xff] %v1216_v23  ;;  %v1218_v24 = vld [vmem:[%s6070_s28 + $0xd80] sm:$0xff]  ;;  %v1220_v25 = vld [vmem:[%s6070_s28 + $0xd90] sm:$0xff] }
  0x82   : > { %v1222_v26 = vld [vmem:[%s6070_s28 + $0xda0] sm:$0xff]  ;;  %1219 = vst [vmem:[%s6078_s29 + $0x6c0] sm:$0xff] %v1218_v24  ;;  %1221 = vst [vmem:[%s6078_s29 + $0x6c8] sm:$0xff] %v1220_v25  ;;  %v1224_v27 = vld [vmem:[%s6070_s28 + $0xdb0] sm:$0xff] }
  0x83   : > { %1223 = vst [vmem:[%s6078_s29 + $0x6d0] sm:$0xff] %v1222_v26  ;;  %v1226_v28 = vld [vmem:[%s6070_s28 + $0xdc0] sm:$0xff]  ;;  %v1228_v29 = vld [vmem:[%s6070_s28 + $0xdd0] sm:$0xff]  ;;  %1225 = vst [vmem:[%s6078_s29 + $0x6d8] sm:$0xff] %v1224_v27 }
  0x84   : > { %1227 = vst [vmem:[%s6078_s29 + $0x6e0] sm:$0xff] %v1226_v28  ;;  %1229 = vst [vmem:[%s6078_s29 + $0x6e8] sm:$0xff] %v1228_v29  ;;  %v1230_v30 = vld [vmem:[%s6070_s28 + $0xde0] sm:$0xff]  ;;  %v1232_v31 = vld [vmem:[%s6070_s28 + $0xdf0] sm:$0xff] }
  0x85   : > { %v1234_v32 = vld [vmem:[%s6070_s28 + $0xe00] sm:$0xff]  ;;  %1231 = vst [vmem:[%s6078_s29 + $0x6f0] sm:$0xff] %v1230_v30  ;;  %1233 = vst [vmem:[%s6078_s29 + $0x6f8] sm:$0xff] %v1232_v31  ;;  %v1236_v33 = vld [vmem:[%s6070_s28 + $0xe10] sm:$0xff] }
  0x86   : > { %1235 = vst [vmem:[%s6078_s29 + $0x700] sm:$0xff] %v1234_v32  ;;  %v1238_v34 = vld [vmem:[%s6070_s28 + $0xe20] sm:$0xff]  ;;  %v1240_v35 = vld [vmem:[%s6070_s28 + $0xe30] sm:$0xff]  ;;  %1237 = vst [vmem:[%s6078_s29 + $0x708] sm:$0xff] %v1236_v33 }
  0x87   : > { %1239 = vst [vmem:[%s6078_s29 + $0x710] sm:$0xff] %v1238_v34  ;;  %1241 = vst [vmem:[%s6078_s29 + $0x718] sm:$0xff] %v1240_v35  ;;  %v1242_v36 = vld [vmem:[%s6070_s28 + $0xe40] sm:$0xff]  ;;  %v1244_v37 = vld [vmem:[%s6070_s28 + $0xe50] sm:$0xff] }
  0x88   : > { %v1246_v38 = vld [vmem:[%s6070_s28 + $0xe60] sm:$0xff]  ;;  %1243 = vst [vmem:[%s6078_s29 + $0x720] sm:$0xff] %v1242_v36  ;;  %1245 = vst [vmem:[%s6078_s29 + $0x728] sm:$0xff] %v1244_v37  ;;  %v1248_v39 = vld [vmem:[%s6070_s28 + $0xe70] sm:$0xff] }
  0x89   : > { %1247 = vst [vmem:[%s6078_s29 + $0x730] sm:$0xff] %v1246_v38  ;;  %v1250_v40 = vld [vmem:[%s6070_s28 + $0xe80] sm:$0xff]  ;;  %v1252_v41 = vld [vmem:[%s6070_s28 + $0xe90] sm:$0xff]  ;;  %1249 = vst [vmem:[%s6078_s29 + $0x738] sm:$0xff] %v1248_v39 }
  0x8a   : > { %1251 = vst [vmem:[%s6078_s29 + $0x740] sm:$0xff] %v1250_v40  ;;  %1253 = vst [vmem:[%s6078_s29 + $0x748] sm:$0xff] %v1252_v41  ;;  %v1254_v42 = vld [vmem:[%s6070_s28 + $0xea0] sm:$0xff]  ;;  %v1256_v43 = vld [vmem:[%s6070_s28 + $0xeb0] sm:$0xff] }
  0x8b   : > { %v1258_v44 = vld [vmem:[%s6070_s28 + $0xec0] sm:$0xff]  ;;  %1255 = vst [vmem:[%s6078_s29 + $0x750] sm:$0xff] %v1254_v42  ;;  %1257 = vst [vmem:[%s6078_s29 + $0x758] sm:$0xff] %v1256_v43  ;;  %v1260_v45 = vld [vmem:[%s6070_s28 + $0xed0] sm:$0xff] }
  0x8c   : > { %1259 = vst [vmem:[%s6078_s29 + $0x760] sm:$0xff] %v1258_v44  ;;  %v1262_v46 = vld [vmem:[%s6070_s28 + $0xee0] sm:$0xff]  ;;  %v1264_v47 = vld [vmem:[%s6070_s28 + $0xef0] sm:$0xff]  ;;  %1261 = vst [vmem:[%s6078_s29 + $0x768] sm:$0xff] %v1260_v45 }
  0x8d   : > { %1263 = vst [vmem:[%s6078_s29 + $0x770] sm:$0xff] %v1262_v46  ;;  %1265 = vst [vmem:[%s6078_s29 + $0x778] sm:$0xff] %v1264_v47  ;;  %v1266_v48 = vld [vmem:[%s6070_s28 + $0xf00] sm:$0xff]  ;;  %v1268_v49 = vld [vmem:[%s6070_s28 + $0xf10] sm:$0xff] }
  0x8e   : > { %v1270_v50 = vld [vmem:[%s6070_s28 + $0xf20] sm:$0xff]  ;;  %1267 = vst [vmem:[%s6078_s29 + $0x780] sm:$0xff] %v1266_v48  ;;  %1269 = vst [vmem:[%s6078_s29 + $0x788] sm:$0xff] %v1268_v49  ;;  %v1272_v51 = vld [vmem:[%s6070_s28 + $0xf30] sm:$0xff] }
  0x8f   : > { %1271 = vst [vmem:[%s6078_s29 + $0x790] sm:$0xff] %v1270_v50  ;;  %v1274_v52 = vld [vmem:[%s6070_s28 + $0xf40] sm:$0xff]  ;;  %v1276_v53 = vld [vmem:[%s6070_s28 + $0xf50] sm:$0xff]  ;;  %1273 = vst [vmem:[%s6078_s29 + $0x798] sm:$0xff] %v1272_v51 }
  0x90   : > { %1275 = vst [vmem:[%s6078_s29 + $0x7a0] sm:$0xff] %v1274_v52  ;;  %1277 = vst [vmem:[%s6078_s29 + $0x7a8] sm:$0xff] %v1276_v53  ;;  %v1278_v54 = vld [vmem:[%s6070_s28 + $0xf60] sm:$0xff]  ;;  %v1280_v55 = vld [vmem:[%s6070_s28 + $0xf70] sm:$0xff] }
  0x91   : > { %v1282_v56 = vld [vmem:[%s6070_s28 + $0xf80] sm:$0xff]  ;;  %1279 = vst [vmem:[%s6078_s29 + $0x7b0] sm:$0xff] %v1278_v54  ;;  %1281 = vst [vmem:[%s6078_s29 + $0x7b8] sm:$0xff] %v1280_v55  ;;  %v1284_v57 = vld [vmem:[%s6070_s28 + $0xf90] sm:$0xff] }
  0x92   : > { %1283 = vst [vmem:[%s6078_s29 + $0x7c0] sm:$0xff] %v1282_v56  ;;  %v1286_v58 = vld [vmem:[%s6070_s28 + $0xfa0] sm:$0xff]  ;;  %v1288_v59 = vld [vmem:[%s6070_s28 + $0xfb0] sm:$0xff]  ;;  %1285 = vst [vmem:[%s6078_s29 + $0x7c8] sm:$0xff] %v1284_v57 }
  0x93   : > { %1287 = vst [vmem:[%s6078_s29 + $0x7d0] sm:$0xff] %v1286_v58  ;;  %1289 = vst [vmem:[%s6078_s29 + $0x7d8] sm:$0xff] %v1288_v59  ;;  %v1290_v60 = vld [vmem:[%s6070_s28 + $0xfc0] sm:$0xff]  ;;  %v1292_v61 = vld [vmem:[%s6070_s28 + $0xfd0] sm:$0xff] }
  0x94   : > { %v1294_v62 = vld [vmem:[%s6070_s28 + $0xfe0] sm:$0xff]  ;;  %1291 = vst [vmem:[%s6078_s29 + $0x7e0] sm:$0xff] %v1290_v60  ;;  %1293 = vst [vmem:[%s6078_s29 + $0x7e8] sm:$0xff] %v1292_v61  ;;  %v1296_v63 = vld [vmem:[%s6070_s28 + $0xff0] sm:$0xff] }
  0x95   : > { %1295 = vst [vmem:[%s6078_s29 + $0x7f0] sm:$0xff] %v1294_v62  ;;  %v1298_v0 = vld [vmem:[%s6070_s28 + $0x1000] sm:$0xff]  ;;  %v1300_v1 = vld [vmem:[%s6070_s28 + $0x1010] sm:$0xff]  ;;  %1297 = vst [vmem:[%s6078_s29 + $0x7f8] sm:$0xff] %v1296_v63 }
  0x96   : > { %1299 = vst [vmem:[%s6078_s29 + $0x800] sm:$0xff] %v1298_v0  ;;  %1301 = vst [vmem:[%s6078_s29 + $0x808] sm:$0xff] %v1300_v1  ;;  %v1302_v2 = vld [vmem:[%s6070_s28 + $0x1020] sm:$0xff]  ;;  %v1304_v3 = vld [vmem:[%s6070_s28 + $0x1030] sm:$0xff] }
  0x97   : > { %v1306_v4 = vld [vmem:[%s6070_s28 + $0x1040] sm:$0xff]  ;;  %1303 = vst [vmem:[%s6078_s29 + $0x810] sm:$0xff] %v1302_v2  ;;  %1305 = vst [vmem:[%s6078_s29 + $0x818] sm:$0xff] %v1304_v3  ;;  %v1308_v5 = vld [vmem:[%s6070_s28 + $0x1050] sm:$0xff] }
  0x98   : > { %1307 = vst [vmem:[%s6078_s29 + $0x820] sm:$0xff] %v1306_v4  ;;  %v1310_v6 = vld [vmem:[%s6070_s28 + $0x1060] sm:$0xff]  ;;  %v1312_v7 = vld [vmem:[%s6070_s28 + $0x1070] sm:$0xff]  ;;  %1309 = vst [vmem:[%s6078_s29 + $0x828] sm:$0xff] %v1308_v5 }
  0x99   : > { %1311 = vst [vmem:[%s6078_s29 + $0x830] sm:$0xff] %v1310_v6  ;;  %1313 = vst [vmem:[%s6078_s29 + $0x838] sm:$0xff] %v1312_v7  ;;  %v1314_v8 = vld [vmem:[%s6070_s28 + $0x1080] sm:$0xff]  ;;  %v1316_v9 = vld [vmem:[%s6070_s28 + $0x1090] sm:$0xff] }
  0x9a   : > { %v1318_v10 = vld [vmem:[%s6070_s28 + $0x10a0] sm:$0xff]  ;;  %1315 = vst [vmem:[%s6078_s29 + $0x840] sm:$0xff] %v1314_v8  ;;  %1317 = vst [vmem:[%s6078_s29 + $0x848] sm:$0xff] %v1316_v9  ;;  %v1320_v11 = vld [vmem:[%s6070_s28 + $0x10b0] sm:$0xff] }
  0x9b   : > { %1319 = vst [vmem:[%s6078_s29 + $0x850] sm:$0xff] %v1318_v10  ;;  %v1322_v12 = vld [vmem:[%s6070_s28 + $0x10c0] sm:$0xff]  ;;  %v1324_v13 = vld [vmem:[%s6070_s28 + $0x10d0] sm:$0xff]  ;;  %1321 = vst [vmem:[%s6078_s29 + $0x858] sm:$0xff] %v1320_v11 }
  0x9c   : > { %1323 = vst [vmem:[%s6078_s29 + $0x860] sm:$0xff] %v1322_v12  ;;  %1325 = vst [vmem:[%s6078_s29 + $0x868] sm:$0xff] %v1324_v13  ;;  %v1326_v14 = vld [vmem:[%s6070_s28 + $0x10e0] sm:$0xff]  ;;  %v1328_v15 = vld [vmem:[%s6070_s28 + $0x10f0] sm:$0xff] }
  0x9d   : > { %v1330_v16 = vld [vmem:[%s6070_s28 + $0x1100] sm:$0xff]  ;;  %1327 = vst [vmem:[%s6078_s29 + $0x870] sm:$0xff] %v1326_v14  ;;  %1329 = vst [vmem:[%s6078_s29 + $0x878] sm:$0xff] %v1328_v15  ;;  %v1332_v17 = vld [vmem:[%s6070_s28 + $0x1110] sm:$0xff] }
  0x9e   : > { %1331 = vst [vmem:[%s6078_s29 + $0x880] sm:$0xff] %v1330_v16  ;;  %v1334_v18 = vld [vmem:[%s6070_s28 + $0x1120] sm:$0xff]  ;;  %v1336_v19 = vld [vmem:[%s6070_s28 + $0x1130] sm:$0xff]  ;;  %1333 = vst [vmem:[%s6078_s29 + $0x888] sm:$0xff] %v1332_v17 }
  0x9f   : > { %1335 = vst [vmem:[%s6078_s29 + $0x890] sm:$0xff] %v1334_v18  ;;  %1337 = vst [vmem:[%s6078_s29 + $0x898] sm:$0xff] %v1336_v19  ;;  %v1338_v20 = vld [vmem:[%s6070_s28 + $0x1140] sm:$0xff]  ;;  %v1340_v21 = vld [vmem:[%s6070_s28 + $0x1150] sm:$0xff] }
  0xa0   : > { %v1342_v22 = vld [vmem:[%s6070_s28 + $0x1160] sm:$0xff]  ;;  %1339 = vst [vmem:[%s6078_s29 + $0x8a0] sm:$0xff] %v1338_v20  ;;  %1341 = vst [vmem:[%s6078_s29 + $0x8a8] sm:$0xff] %v1340_v21  ;;  %v1344_v23 = vld [vmem:[%s6070_s28 + $0x1170] sm:$0xff] }
  0xa1   : > { %1343 = vst [vmem:[%s6078_s29 + $0x8b0] sm:$0xff] %v1342_v22  ;;  %v1346_v24 = vld [vmem:[%s6070_s28 + $0x1180] sm:$0xff]  ;;  %v1348_v25 = vld [vmem:[%s6070_s28 + $0x1190] sm:$0xff]  ;;  %1345 = vst [vmem:[%s6078_s29 + $0x8b8] sm:$0xff] %v1344_v23 }
  0xa2   : > { %1347 = vst [vmem:[%s6078_s29 + $0x8c0] sm:$0xff] %v1346_v24  ;;  %1349 = vst [vmem:[%s6078_s29 + $0x8c8] sm:$0xff] %v1348_v25  ;;  %v1350_v26 = vld [vmem:[%s6070_s28 + $0x11a0] sm:$0xff]  ;;  %v1352_v27 = vld [vmem:[%s6070_s28 + $0x11b0] sm:$0xff] }
  0xa3   : > { %v1354_v28 = vld [vmem:[%s6070_s28 + $0x11c0] sm:$0xff]  ;;  %1351 = vst [vmem:[%s6078_s29 + $0x8d0] sm:$0xff] %v1350_v26  ;;  %1353 = vst [vmem:[%s6078_s29 + $0x8d8] sm:$0xff] %v1352_v27  ;;  %v1356_v29 = vld [vmem:[%s6070_s28 + $0x11d0] sm:$0xff] }
  0xa4   : > { %1355 = vst [vmem:[%s6078_s29 + $0x8e0] sm:$0xff] %v1354_v28  ;;  %v1358_v30 = vld [vmem:[%s6070_s28 + $0x11e0] sm:$0xff]  ;;  %v1360_v31 = vld [vmem:[%s6070_s28 + $0x11f0] sm:$0xff]  ;;  %1357 = vst [vmem:[%s6078_s29 + $0x8e8] sm:$0xff] %v1356_v29 }
  0xa5   : > { %1359 = vst [vmem:[%s6078_s29 + $0x8f0] sm:$0xff] %v1358_v30  ;;  %1361 = vst [vmem:[%s6078_s29 + $0x8f8] sm:$0xff] %v1360_v31 }
  0xa6 PF: > { %p4797_p8 = scmp.ge.s32.totalorder %s6000_s16, 1  ;;  %p1374_p9 = scmp.lt.s32.totalorder %s6000_s16, 3 }
  0xa8   : > { %p1375_p10 = pnand %p4797_p8, %p1374_p9 }
  0xa9   : > { %s1381_s30 = sand.u32 (!%p1375_p10), 1, %s5984_s12   ;;  %v5502_v32 = vld [vmem:[%s7293_s0 + $0x4] ss:$72 sps:$4 sm:$0xff] (!%p1375_p10)   ;;  %s4798_s20 = sshll.u32 (!%p1375_p10), %s5992_s14, 1 }
  0xaa   : > { %1378 = sbr.rel (%p1375_p10) target bundleno = 744 (0x2e8), region = 66  ;;  %v5508_v33 = vld [vmem:[%s7293_s0 + $0x24] ss:$72 sps:$4 sm:$0xff] (!%p1375_p10)   ;;  %3742 = vmatprep.mubr.bf16.mxu1 (!%p1375_p10), %v5502_v32  ;;  %p1432_p11 = scmp.lt.s32.totalorder (!%p1375_p10), %s4798_s20, 3 }
  0xab   : > { %s5362_s4 = smul.u32 (!%p1375_p10), 2304, %s1381_s30  ;;  %4066 = vmatprep.mubr.bf16.mxu0 (!%p1375_p10), %v5508_v33 }
  0xac   : > { %s5363_s26 = smul.u32 (!%p1375_p10), 72, %s1381_s30 }
  0xad   : > { %s6661_s9 = scalar_lea.vmem (!%p1375_p10), [#allocation3], %s5362_s4 }
  0xae   : > { %v5404_v34 = vld [vmem:[%s6661_s9 + $0x4] ss:$8 sps:$4 sm:$0xff] (!%p1375_p10)   ;;  %v5408_v36 = vld [vmem:[%s6661_s9] ss:$8 sps:$4 sm:$0xff] (!%p1375_p10)   ;;  %v5410_v38 = vld [vmem:[%s6661_s9 + $0x14] ss:$8 sps:$4 sm:$0xff] (!%p1375_p10)  }
  0xaf   : > { %v5406_v35 = vld [vmem:[%s6661_s9 + $0x404] ss:$8 sps:$4 sm:$0xff] (!%p1375_p10)   ;;  %3710 = vmatprep.subr.bf16.mxu1 (!%p1375_p10), %v5404_v34  ;;  %v5409_v37 = vld [vmem:[%s6661_s9 + $0x400] ss:$8 sps:$4 sm:$0xff] (!%p1375_p10)   ;;  %v5412_v39 = vld [vmem:[%s6661_s9 + $0x414] ss:$8 sps:$4 sm:$0xff] (!%p1375_p10)  }
  0xb0   : > { %4034 = vmatprep.subr.bf16.mxu0 (!%p1375_p10), %v5406_v35  ;;  %3711 = vmatpush1.bf16.msra.mxu1 (!%p1375_p10), %v5408_v36  ;;  %v5414_v40 = vld [vmem:[%s6661_s9 + $0x10] ss:$8 sps:$4 sm:$0xff] (!%p1375_p10)   ;;  %v5416_v42 = vld [vmem:[%s6661_s9 + $0x24] ss:$8 sps:$4 sm:$0xff] (!%p1375_p10)   ;;  %v5420_v44 = vld [vmem:[%s6661_s9 + $0x20] ss:$8 sps:$4 sm:$0xff] (!%p1375_p10)  }
  0xb1   : > { %4035 = vmatpush1.bf16.msra.mxu0 %v5409_v37  ;;  %3712 = vmatprep.subr.bf16.mxu1 %v5410_v38  ;;  %v5415_v41 = vld [vmem:[%s6661_s9 + $0x410] ss:$8 sps:$4 sm:$0xff]   ;;  %v5418_v43 = vld [vmem:[%s6661_s9 + $0x424] ss:$8 sps:$4 sm:$0xff]   ;;  %v5421_v45 = vld [vmem:[%s6661_s9 + $0x420] ss:$8 sps:$4 sm:$0xff]  }
  0xb2   : > { %4036 = vmatprep.subr.bf16.mxu0 %v5412_v39  ;;  %v5422_v46 = vld [vmem:[%s6661_s9 + $0x34] ss:$8 sps:$4 sm:$0xff]   ;;  %v5426_v48 = vld [vmem:[%s6661_s9 + $0x30] ss:$8 sps:$4 sm:$0xff]   ;;  %v5428_v50 = vld [vmem:[%s6661_s9 + $0x44] ss:$8 sps:$4 sm:$0xff]  }
  0xb3   : > { %v5424_v47 = vld [vmem:[%s6661_s9 + $0x434] ss:$8 sps:$4 sm:$0xff]   ;;  %v5427_v49 = vld [vmem:[%s6661_s9 + $0x430] ss:$8 sps:$4 sm:$0xff]   ;;  %v5430_v51 = vld [vmem:[%s6661_s9 + $0x444] ss:$8 sps:$4 sm:$0xff]  }
  0xb4   : > { %3713 = vmatpush1.bf16.msra.mxu1 %v5414_v40  ;;  %v5432_v52 = vld [vmem:[%s6661_s9 + $0x40] ss:$8 sps:$4 sm:$0xff]   ;;  %v5434_v54 = vld [vmem:[%s6661_s9 + $0x54] ss:$8 sps:$4 sm:$0xff]   ;;  %v5438_v56 = vld [vmem:[%s6661_s9 + $0x50] ss:$8 sps:$4 sm:$0xff]  }
  0xb5   : > { %4037 = vmatpush1.bf16.msra.mxu0 %v5415_v41  ;;  %3714 = vmatprep.subr.bf16.mxu1 %v5416_v42  ;;  %v5433_v53 = vld [vmem:[%s6661_s9 + $0x440] ss:$8 sps:$4 sm:$0xff]   ;;  %v5436_v55 = vld [vmem:[%s6661_s9 + $0x454] ss:$8 sps:$4 sm:$0xff]   ;;  %v5439_v57 = vld [vmem:[%s6661_s9 + $0x450] ss:$8 sps:$4 sm:$0xff]  }
  0xb6   : > { %4038 = vmatprep.subr.bf16.mxu0 %v5418_v43  ;;  %v5440_v58 = vld [vmem:[%s6661_s9 + $0x64] ss:$8 sps:$4 sm:$0xff]   ;;  %v5444_v60 = vld [vmem:[%s6661_s9 + $0x60] ss:$8 sps:$4 sm:$0xff]   ;;  %v5446_v62 = vld [vmem:[%s6661_s9 + $0x74] ss:$8 sps:$4 sm:$0xff]  }
  0xb7   : > { %v5442_v59 = vld [vmem:[%s6661_s9 + $0x464] ss:$8 sps:$4 sm:$0xff]   ;;  %v5445_v61 = vld [vmem:[%s6661_s9 + $0x460] ss:$8 sps:$4 sm:$0xff]   ;;  %v5448_v63 = vld [vmem:[%s6661_s9 + $0x474] ss:$8 sps:$4 sm:$0xff]  }
  0xb8   : > { %3715 = vmatpush1.bf16.msra.mxu1 %v5420_v44  ;;  %v5450_v0 = vld [vmem:[%s6661_s9 + $0x70] ss:$8 sps:$4 sm:$0xff]   ;;  %v5452_v2 = vld [vmem:[%s6661_s9 + $0x84] ss:$8 sps:$4 sm:$0xff]   ;;  %v5456_v4 = vld [vmem:[%s6661_s9 + $0x80] ss:$8 sps:$4 sm:$0xff]  }
  0xb9   : > { %4039 = vmatpush1.bf16.msra.mxu0 %v5421_v45  ;;  %3716 = vmatprep.subr.bf16.mxu1 %v5422_v46  ;;  %v5451_v1 = vld [vmem:[%s6661_s9 + $0x470] ss:$8 sps:$4 sm:$0xff]   ;;  %v5454_v3 = vld [vmem:[%s6661_s9 + $0x484] ss:$8 sps:$4 sm:$0xff]   ;;  %v5457_v5 = vld [vmem:[%s6661_s9 + $0x480] ss:$8 sps:$4 sm:$0xff]  }
  0xba   : > { %4040 = vmatprep.subr.bf16.mxu0 %v5424_v47  ;;  %v5458_v6 = vld [vmem:[%s6661_s9 + $0x94] ss:$8 sps:$4 sm:$0xff]   ;;  %v5462_v8 = vld [vmem:[%s6661_s9 + $0x90] ss:$8 sps:$4 sm:$0xff]   ;;  %v5464_v10 = vld [vmem:[%s6661_s9 + $0xa4] ss:$8 sps:$4 sm:$0xff]  }
  0xbb   : > { %v5460_v7 = vld [vmem:[%s6661_s9 + $0x494] ss:$8 sps:$4 sm:$0xff]   ;;  %v5463_v9 = vld [vmem:[%s6661_s9 + $0x490] ss:$8 sps:$4 sm:$0xff]   ;;  %v5466_v11 = vld [vmem:[%s6661_s9 + $0x4a4] ss:$8 sps:$4 sm:$0xff]  }
  0xbc   : > { %3717 = vmatpush1.bf16.msra.mxu1 %v5426_v48  ;;  %v5468_v12 = vld [vmem:[%s6661_s9 + $0xa0] ss:$8 sps:$4 sm:$0xff]   ;;  %v5470_v14 = vld [vmem:[%s6661_s9 + $0xb4] ss:$8 sps:$4 sm:$0xff]   ;;  %v5474_v16 = vld [vmem:[%s6661_s9 + $0xb0] ss:$8 sps:$4 sm:$0xff]  }
  0xbd   : > { %4041 = vmatpush1.bf16.msra.mxu0 %v5427_v49  ;;  %3718 = vmatprep.subr.bf16.mxu1 %v5428_v50  ;;  %v5469_v13 = vld [vmem:[%s6661_s9 + $0x4a0] ss:$8 sps:$4 sm:$0xff]   ;;  %v5472_v15 = vld [vmem:[%s6661_s9 + $0x4b4] ss:$8 sps:$4 sm:$0xff]   ;;  %v5475_v17 = vld [vmem:[%s6661_s9 + $0x4b0] ss:$8 sps:$4 sm:$0xff]  }
  0xbe   : > { %4042 = vmatprep.subr.bf16.mxu0 %v5430_v51  ;;  %v5476_v18 = vld [vmem:[%s6661_s9 + $0xc4] ss:$8 sps:$4 sm:$0xff]   ;;  %v5480_v20 = vld [vmem:[%s6661_s9 + $0xc0] ss:$8 sps:$4 sm:$0xff]   ;;  %v5482_v22 = vld [vmem:[%s6661_s9 + $0xd4] ss:$8 sps:$4 sm:$0xff]  }
  0xbf   : > { %v5478_v19 = vld [vmem:[%s6661_s9 + $0x4c4] ss:$8 sps:$4 sm:$0xff]   ;;  %v5481_v21 = vld [vmem:[%s6661_s9 + $0x4c0] ss:$8 sps:$4 sm:$0xff]   ;;  %v5484_v23 = vld [vmem:[%s6661_s9 + $0x4d4] ss:$8 sps:$4 sm:$0xff]  }
  0xc0   : > { %3719 = vmatpush1.bf16.msra.mxu1 %v5432_v52  ;;  %v5486_v24 = vld [vmem:[%s6661_s9 + $0xd0] ss:$8 sps:$4 sm:$0xff]   ;;  %v5488_v26 = vld [vmem:[%s6661_s9 + $0xe4] ss:$8 sps:$4 sm:$0xff]   ;;  %v5492_v28 = vld [vmem:[%s6661_s9 + $0xe0] ss:$8 sps:$4 sm:$0xff]  }
  0xc1   : > { %4043 = vmatpush1.bf16.msra.mxu0 %v5433_v53  ;;  %3720 = vmatprep.subr.bf16.mxu1 %v5434_v54  ;;  %v5487_v25 = vld [vmem:[%s6661_s9 + $0x4d0] ss:$8 sps:$4 sm:$0xff]   ;;  %v5490_v27 = vld [vmem:[%s6661_s9 + $0x4e4] ss:$8 sps:$4 sm:$0xff]   ;;  %v5493_v29 = vld [vmem:[%s6661_s9 + $0x4e0] ss:$8 sps:$4 sm:$0xff]  }
  0xc2   : > { %4044 = vmatprep.subr.bf16.mxu0 %v5436_v55  ;;  %v5494_v30 = vld [vmem:[%s6661_s9 + $0xf4] ss:$8 sps:$4 sm:$0xff]   ;;  %v5498_v32 = vld [vmem:[%s6661_s9 + $0xf0] ss:$8 sps:$4 sm:$0xff]   ;;  %v5505_v34 = vld [vmem:[%s6661_s9 + $0x104] ss:$8 sps:$4 sm:$0xff]  }
  0xc3   : > { %v5496_v31 = vld [vmem:[%s6661_s9 + $0x4f4] ss:$8 sps:$4 sm:$0xff]   ;;  %v5499_v33 = vld [vmem:[%s6661_s9 + $0x4f0] ss:$8 sps:$4 sm:$0xff]   ;;  %v5511_v35 = vld [vmem:[%s6661_s9 + $0x504] ss:$8 sps:$4 sm:$0xff]  }
  0xc4   : > { %3721 = vmatpush1.bf16.msra.mxu1 %v5438_v56  ;;  %v5500_v36 = vld [vmem:[%s7293_s0] ss:$72 sps:$4 sm:$0xff]   ;;  %v5514_v40 = vld [vmem:[%s6661_s9 + $0x114] ss:$8 sps:$4 sm:$0xff]   ;;  %v5512_v44 = vld [vmem:[%s6661_s9 + $0x110] ss:$8 sps:$4 sm:$0xff]  }
  0xc5   : > { %4045 = vmatpush1.bf16.msra.mxu0 %v5439_v57  ;;  %3722 = vmatprep.subr.bf16.mxu1 %v5440_v58  ;;  %v5506_v37 = vld [vmem:[%s7293_s0 + $0x20] ss:$72 sps:$4 sm:$0xff]   ;;  %v5517_v41 = vld [vmem:[%s6661_s9 + $0x514] ss:$8 sps:$4 sm:$0xff]   ;;  %v5515_v45 = vld [vmem:[%s6661_s9 + $0x510] ss:$8 sps:$4 sm:$0xff]  }
  0xc6   : > { %4046 = vmatprep.subr.bf16.mxu0 %v5442_v59  ;;  %v5503_v38 = vld [vmem:[%s6661_s9 + $0x100] ss:$8 sps:$4 sm:$0xff]   ;;  %v5554_v42 = vld [vmem:[%s7293_s0 + $0xb4] ss:$72 sps:$4 sm:$0xff]   ;;  %v5520_v46 = vld [vmem:[%s6661_s9 + $0x124] ss:$8 sps:$4 sm:$0xff]  }
  0xc7   : > { %v5509_v39 = vld [vmem:[%s6661_s9 + $0x500] ss:$8 sps:$4 sm:$0xff]   ;;  %v5557_v43 = vld [vmem:[%s7293_s0 + $0x94] ss:$72 sps:$4 sm:$0xff]   ;;  %v5523_v47 = vld [vmem:[%s6661_s9 + $0x524] ss:$8 sps:$4 sm:$0xff]  }
  0xc8   : > { %3723 = vmatpush1.bf16.msra.mxu1 %v5444_v60  ;;  %v5518_v48 = vld [vmem:[%s6661_s9 + $0x120] ss:$8 sps:$4 sm:$0xff]   ;;  %v5556_v49 = vld [vmem:[%s7293_s0 + $0xb0] ss:$72 sps:$4 sm:$0xff]   ;;  %v5526_v52 = vld [vmem:[%s6661_s9 + $0x134] ss:$8 sps:$4 sm:$0xff]  }
  0xc9   : > { %4047 = vmatpush1.bf16.msra.mxu0 %v5445_v61  ;;  %3724 = vmatprep.subr.bf16.mxu1 %v5446_v62  ;;  %v5521_v50 = vld [vmem:[%s6661_s9 + $0x520] ss:$8 sps:$4 sm:$0xff]   ;;  %v5559_v51 = vld [vmem:[%s7293_s0 + $0x90] ss:$72 sps:$4 sm:$0xff]   ;;  %v5529_v53 = vld [vmem:[%s6661_s9 + $0x534] ss:$8 sps:$4 sm:$0xff]  }
  0xca   : > { %4048 = vmatprep.subr.bf16.mxu0 %v5448_v63  ;;  %v5572_v54 = vld [vmem:[%s7293_s0 + $0x144] ss:$72 sps:$4 sm:$0xff]   ;;  %v5524_v56 = vld [vmem:[%s6661_s9 + $0x130] ss:$8 sps:$4 sm:$0xff]   ;;  %v5530_v60 = vld [vmem:[%s6661_s9 + $0x140] ss:$8 sps:$4 sm:$0xff]  }
  0xcb   : > { %v5575_v55 = vld [vmem:[%s7293_s0 + $0x124] ss:$72 sps:$4 sm:$0xff]   ;;  %v5527_v57 = vld [vmem:[%s6661_s9 + $0x530] ss:$8 sps:$4 sm:$0xff]   ;;  %v5533_v61 = vld [vmem:[%s6661_s9 + $0x540] ss:$8 sps:$4 sm:$0xff]  }
  0xcc   : > { %3725 = vmatpush1.bf16.msra.mxu1 %v5450_v0  ;;  %v5532_v58 = vld [vmem:[%s6661_s9 + $0x144] ss:$8 sps:$4 sm:$0xff]   ;;  %v5574_v62 = vld [vmem:[%s7293_s0 + $0x140] ss:$72 sps:$4 sm:$0xff]   ;;  %v5538_v0 = vld [vmem:[%s6661_s9 + $0x154] ss:$8 sps:$4 sm:$0xff]  }
  0xcd   : > { %4049 = vmatpush1.bf16.msra.mxu0 %v5451_v1  ;;  %3726 = vmatprep.subr.bf16.mxu1 %v5452_v2  ;;  %v5535_v59 = vld [vmem:[%s6661_s9 + $0x544] ss:$8 sps:$4 sm:$0xff]   ;;  %v5577_v63 = vld [vmem:[%s7293_s0 + $0x120] ss:$72 sps:$4 sm:$0xff]   ;;  %v5541_v1 = vld [vmem:[%s6661_s9 + $0x554] ss:$8 sps:$4 sm:$0xff]  }
  0xce   : > { %4050 = vmatprep.subr.bf16.mxu0 %v5454_v3  ;;  %v5590_v2 = vld [vmem:[%s7293_s0 + $0x1d4] ss:$72 sps:$4 sm:$0xff]   ;;  %s7305_s20 = smov (!%p1432_p11, %s4798_s20), 3  ;;  %s7235_s12 = scalar_lea.vmem [#allocation4], %s5363_s26 }
  0xcf   : > { %v5593_v3 = vld [vmem:[%s7293_s0 + $0x1b4] ss:$72 sps:$4 sm:$0xff]   ;;  %s1434_s25 = scalar_lea.vmem %s7295_s2, %s7305_s20  ;;  %s5200_s30 = sshll.u32 (%p6057_p6), %s5992_s14, 3 }
  0xd0   : > { %3727 = vmatpush1.bf16.msra.mxu1 %v5456_v4  ;;  %v5536_v4 = vld [vmem:[%s6661_s9 + $0x150] ss:$8 sps:$4 sm:$0xff]   ;;  %s4621_s29 = scalar_lea.vmem (%p6057_p6), %s7296_s3, %s5200_s30 }
  0xd1   : > { %4051 = vmatpush1.bf16.msra.mxu0 %v5457_v5  ;;  %3728 = vmatprep.subr.bf16.mxu1 %v5458_v6  ;;  %v5539_v5 = vld [vmem:[%s6661_s9 + $0x550] ss:$8 sps:$4 sm:$0xff]   ;;  %v5544_v6 = vld [vmem:[%s6661_s9 + $0x164] ss:$8 sps:$4 sm:$0xff]  }
  0xd2   : > { %4052 = vmatprep.subr.bf16.mxu0 %v5460_v7  ;;  %v5547_v7 = vld [vmem:[%s6661_s9 + $0x564] ss:$8 sps:$4 sm:$0xff]  }
  0xd4   : > { %3729 = vmatpush1.bf16.msra.mxu1 %v5462_v8  ;;  %v5592_v8 = vld [vmem:[%s7293_s0 + $0x1d0] ss:$72 sps:$4 sm:$0xff]  }
  0xd5   : > { %4053 = vmatpush1.bf16.msra.mxu0 %v5463_v9  ;;  %3730 = vmatprep.subr.bf16.mxu1 %v5464_v10  ;;  %v5595_v9 = vld [vmem:[%s7293_s0 + $0x1b0] ss:$72 sps:$4 sm:$0xff]   ;;  %v1554_v10 = vld [vmem:[%s7293_s0 + $0x260] sm:$0xff] }
  0xd6   : > { %4054 = vmatprep.subr.bf16.mxu0 %v5466_v11  ;;  %v1550_v11 = vld [vmem:[%s7293_s0 + $0x240] sm:$0xff] }
  0xd8   : > { %3731 = vmatpush1.bf16.msra.mxu1 %v5468_v12  ;;  %v5542_v12 = vld [vmem:[%s6661_s9 + $0x160] ss:$8 sps:$4 sm:$0xff]  }
  0xd9   : > { %4055 = vmatpush1.bf16.msra.mxu0 %v5469_v13  ;;  %3732 = vmatprep.subr.bf16.mxu1 %v5470_v14  ;;  %v5545_v13 = vld [vmem:[%s6661_s9 + $0x560] ss:$8 sps:$4 sm:$0xff]   ;;  %v5550_v14 = vld [vmem:[%s6661_s9 + $0x174] ss:$8 sps:$4 sm:$0xff]  }
  0xda   : > { %4056 = vmatprep.subr.bf16.mxu0 %v5472_v15  ;;  %v5553_v15 = vld [vmem:[%s6661_s9 + $0x574] ss:$8 sps:$4 sm:$0xff]  }
  0xdc   : > { %3733 = vmatpush1.bf16.msra.mxu1 %v5474_v16  ;;  %v4880_v16 = vcombine.high %v1554_v10, %v1554_v10 }
  0xdd   : > { %4057 = vmatpush1.bf16.msra.mxu0 %v5475_v17  ;;  %3734 = vmatprep.subr.bf16.mxu1 %v5476_v18  ;;  %v4872_v17 = vcombine.high %v1550_v11, %v1550_v11  ;;  %v5548_v18 = vld [vmem:[%s6661_s9 + $0x170] ss:$8 sps:$4 sm:$0xff]  }
  0xde   : > { %4058 = vmatprep.subr.bf16.mxu0 %v5478_v19  ;;  %v5551_v19 = vld [vmem:[%s6661_s9 + $0x570] ss:$8 sps:$4 sm:$0xff]  }
  0xe0   : > { %3735 = vmatpush1.bf16.msra.mxu1 %v5480_v20  ;;  %v5562_v20 = vld [vmem:[%s6661_s9 + $0x184] ss:$8 sps:$4 sm:$0xff]  }
  0xe1   : > { %4059 = vmatpush1.bf16.msra.mxu0 %v5481_v21  ;;  %3736 = vmatprep.subr.bf16.mxu1 %v5482_v22  ;;  %v5565_v21 = vld [vmem:[%s6661_s9 + $0x584] ss:$8 sps:$4 sm:$0xff]   ;;  %v5560_v22 = vld [vmem:[%s6661_s9 + $0x180] ss:$8 sps:$4 sm:$0xff]  }
  0xe2   : > { %4060 = vmatprep.subr.bf16.mxu0 %v5484_v23  ;;  %v4879_v23 = vcombine.low %v1554_v10, %v1554_v10  ;;  %v5653_v10 = vld [vmem:[%s6661_s9 + $0x234] ss:$8 sps:$4 sm:$0xff]  }
  0xe4   : > { %3737 = vmatpush1.bf16.msra.mxu1 %v5486_v24  ;;  %v4871_v24 = vcombine.low %v1550_v11, %v1550_v11  ;;  %v5656_v11 = vld [vmem:[%s6661_s9 + $0x634] ss:$8 sps:$4 sm:$0xff]  }
  0xe5   : > { %4061 = vmatpush1.bf16.msra.mxu0 %v5487_v25  ;;  %3738 = vmatprep.subr.bf16.mxu1 %v5488_v26  ;;  %v5563_v25 = vld [vmem:[%s6661_s9 + $0x580] ss:$8 sps:$4 sm:$0xff]   ;;  %v5568_v26 = vld [vmem:[%s6661_s9 + $0x194] ss:$8 sps:$4 sm:$0xff]  }
  0xe6   : > { %4062 = vmatprep.subr.bf16.mxu0 %v5490_v27  ;;  %v5571_v27 = vld [vmem:[%s6661_s9 + $0x594] ss:$8 sps:$4 sm:$0xff]  }
  0xe8   : > { %3739 = vmatpush1.bf16.msra.mxu1 %v5492_v28  ;;  %v5626_v28 = vld [vmem:[%s7293_s0 + $0xc] ss:$72 sps:$4 sm:$0xff]  }
  0xe9   : > { %4063 = vmatpush1.bf16.msra.mxu0 %v5493_v29  ;;  %3740 = vmatprep.subr.bf16.mxu1 %v5494_v30  ;;  %v5632_v29 = vld [vmem:[%s7293_s0 + $0x2c] ss:$72 sps:$4 sm:$0xff]   ;;  %v5566_v30 = vld [vmem:[%s6661_s9 + $0x190] ss:$8 sps:$4 sm:$0xff]  }
  0xea   : > { %4064 = vmatprep.subr.bf16.mxu0 %v5496_v31  ;;  %v5569_v31 = vld [vmem:[%s6661_s9 + $0x590] ss:$8 sps:$4 sm:$0xff]  }
  0xec   : > { %3741 = vmatpush1.bf16.msra.mxu1 %v5498_v32  ;;  %v5580_v32 = vld [vmem:[%s6661_s9 + $0x1a4] ss:$8 sps:$4 sm:$0xff]  }
  0xed   : > { %4065 = vmatpush1.bf16.msra.mxu0 %v5499_v33  ;;  %3791 = vmatprep.subr.bf16.mxu1 %v5505_v34  ;;  %v5583_v33 = vld [vmem:[%s6661_s9 + $0x5a4] ss:$8 sps:$4 sm:$0xff]   ;;  %v5578_v34 = vld [vmem:[%s6661_s9 + $0x1a0] ss:$8 sps:$4 sm:$0xff]  }
  0xee   : > { %4115 = vmatprep.subr.bf16.mxu0 %v5511_v35  ;;  %v5581_v35 = vld [vmem:[%s6661_s9 + $0x5a0] ss:$8 sps:$4 sm:$0xff]  }
  0xef   : > { %3743 = vmatmul.mubr.bf16.vlgmr.msra.gmra.mrb[0].mxu1 %v5500_v36  ;;  %v5586_v36 = vld [vmem:[%s6661_s9 + $0x1b4] ss:$8 sps:$4 sm:$0xff]  }
  0xf0   : > { %4067 = vmatmul.mubr.bf16.vlgmr.msra.gmra.mrb[0].mxu0 %v5506_v37  ;;  %3792 = vmatpush1.bf16.msra.mxu1 %v5503_v38  ;;  %v5589_v37 = vld [vmem:[%s6661_s9 + $0x5b4] ss:$8 sps:$4 sm:$0xff]   ;;  %v5584_v38 = vld [vmem:[%s6661_s9 + $0x1b0] ss:$8 sps:$4 sm:$0xff]  }
  0xf1   : > { %4116 = vmatpush1.bf16.msra.mxu0 %v5509_v39  ;;  %3793 = vmatprep.subr.bf16.mxu1 %v5514_v40  ;;  %v5587_v39 = vld [vmem:[%s6661_s9 + $0x5b0] ss:$8 sps:$4 sm:$0xff]   ;;  %v5598_v40 = vld [vmem:[%s6661_s9 + $0x1c4] ss:$8 sps:$4 sm:$0xff]  }
  0xf2   : > { %4117 = vmatprep.subr.bf16.mxu0 %v5517_v41  ;;  %4076 = vmatprep.mubr.bf16.mxu0 %v5554_v42  ;;  %v5601_v41 = vld [vmem:[%s6661_s9 + $0x5c4] ss:$8 sps:$4 sm:$0xff]   ;;  %v5596_v42 = vld [vmem:[%s6661_s9 + $0x1c0] ss:$8 sps:$4 sm:$0xff]  }
  0xf3   : > { %3752 = vmatprep.mubr.bf16.mxu1 %v5557_v43  ;;  %v5599_v43 = vld [vmem:[%s6661_s9 + $0x5c0] ss:$8 sps:$4 sm:$0xff]  }
  0xf4   : > { %3794 = vmatpush1.bf16.msra.mxu1 %v5512_v44  ;;  %v5604_v44 = vld [vmem:[%s6661_s9 + $0x1d4] ss:$8 sps:$4 sm:$0xff]  }
  0xf5   : > { %4118 = vmatpush1.bf16.msra.mxu0 %v5515_v45  ;;  %3795 = vmatprep.subr.bf16.mxu1 %v5520_v46  ;;  %v5607_v45 = vld [vmem:[%s6661_s9 + $0x5d4] ss:$8 sps:$4 sm:$0xff]   ;;  %v5602_v46 = vld [vmem:[%s6661_s9 + $0x1d0] ss:$8 sps:$4 sm:$0xff]  }
  0xf6   : > { %4119 = vmatprep.subr.bf16.mxu0 %v5523_v47  ;;  %v5605_v47 = vld [vmem:[%s6661_s9 + $0x5d0] ss:$8 sps:$4 sm:$0xff]  }
  0xf7   : > { %3753 = vmatmul.mubr.bf16.gmra.mrb[4].mxu1 %v5559_v51  ;;  %v5615_v51 = vld [vmem:[%s6661_s9 + $0x5e0] ss:$8 sps:$4 sm:$0xff]  }
  0xf8   : > { %4077 = vmatmul.mubr.bf16.gmra.mrb[4].mxu0 %v5556_v49  ;;  %3796 = vmatpush1.bf16.msra.mxu1 %v5518_v48  ;;  %v5614_v48 = vld [vmem:[%s6661_s9 + $0x1e4] ss:$8 sps:$4 sm:$0xff]  }
  0xf9   : > { %4120 = vmatpush1.bf16.msra.mxu0 %v5521_v50  ;;  %3797 = vmatprep.subr.bf16.mxu1 %v5526_v52  ;;  %v5617_v49 = vld [vmem:[%s6661_s9 + $0x5e4] ss:$8 sps:$4 sm:$0xff]   ;;  %v5612_v50 = vld [vmem:[%s6661_s9 + $0x1e0] ss:$8 sps:$4 sm:$0xff]   ;;  %v5620_v52 = vld [vmem:[%s6661_s9 + $0x1f4] ss:$8 sps:$4 sm:$0xff]  }
  0xfa   : > { %4121 = vmatprep.subr.bf16.mxu0 %v5529_v53  ;;  %4086 = vmatprep.mubr.bf16.mxu0 %v5572_v54  ;;  %v5623_v53 = vld [vmem:[%s6661_s9 + $0x5f4] ss:$8 sps:$4 sm:$0xff]   ;;  %v5618_v54 = vld [vmem:[%s6661_s9 + $0x1f0] ss:$8 sps:$4 sm:$0xff]  }
  0xfb   : > { %3762 = vmatprep.mubr.bf16.mxu1 %v5575_v55  ;;  %v5621_v55 = vld [vmem:[%s6661_s9 + $0x5f0] ss:$8 sps:$4 sm:$0xff]  }
  0xfc   : > { %3798 = vmatpush1.bf16.msra.mxu1 %v5524_v56  ;;  %v5629_v56 = vld [vmem:[%s6661_s9 + $0x204] ss:$8 sps:$4 sm:$0xff]  }
  0xfd   : > { %4122 = vmatpush1.bf16.msra.mxu0 %v5527_v57  ;;  %3799 = vmatprep.subr.bf16.mxu1 %v5532_v58  ;;  %v5624_v57 = vld [vmem:[%s7293_s0 + $0x8] ss:$72 sps:$4 sm:$0xff]   ;;  %v5635_v58 = vld [vmem:[%s6661_s9 + $0x604] ss:$8 sps:$4 sm:$0xff]  }
  0xfe   : > { %4123 = vmatprep.subr.bf16.mxu0 %v5535_v59  ;;  %v5627_v59 = vld [vmem:[%s6661_s9 + $0x200] ss:$8 sps:$4 sm:$0xff]  }
  0xff   : > { %3763 = vmatmul.mubr.bf16.gmra.mrb[8].mxu1 %v5577_v63  ;;  %v5641_v63 = vld [vmem:[%s6661_s9 + $0x614] ss:$8 sps:$4 sm:$0xff]  }
 0x100   : > { %4087 = vmatmul.mubr.bf16.gmra.mrb[8].mxu0 %v5574_v62  ;;  %3800 = vmatpush1.bf16.msra.mxu1 %v5530_v60  ;;  %v5630_v60 = vld [vmem:[%s7293_s0 + $0x28] ss:$72 sps:$4 sm:$0xff]   ;;  %v5638_v62 = vld [vmem:[%s6661_s9 + $0x214] ss:$8 sps:$4 sm:$0xff]  }
 0x101   : > { %4124 = vmatpush1.bf16.msra.mxu0 %v5533_v61  ;;  %3801 = vmatprep.subr.bf16.mxu1 %v5538_v0  ;;  %v5633_v61 = vld [vmem:[%s6661_s9 + $0x600] ss:$8 sps:$4 sm:$0xff]   ;;  %v5642_v0 = vld [vmem:[%s7293_s0 + $0x9c] ss:$72 sps:$4 sm:$0xff]  }
 0x102   : > { %4125 = vmatprep.subr.bf16.mxu0 %v5541_v1  ;;  %4096 = vmatprep.mubr.bf16.mxu0 %v5590_v2  ;;  %v5687_v1 = vld [vmem:[%s7293_s0 + $0xbc] ss:$72 sps:$4 sm:$0xff]   ;;  %v5636_v2 = vld [vmem:[%s6661_s9 + $0x210] ss:$8 sps:$4 sm:$0xff]  }
 0x103   : > { %3772 = vmatprep.mubr.bf16.mxu1 %v5593_v3  ;;  %v5639_v3 = vld [vmem:[%s6661_s9 + $0x610] ss:$8 sps:$4 sm:$0xff]  }
 0x104   : > { %3802 = vmatpush1.bf16.msra.mxu1 %v5536_v4  ;;  %v5647_v4 = vld [vmem:[%s6661_s9 + $0x224] ss:$8 sps:$4 sm:$0xff]  }
 0x105   : > { %4126 = vmatpush1.bf16.msra.mxu0 %v5539_v5  ;;  %3803 = vmatprep.subr.bf16.mxu1 %v5544_v6  ;;  %v5644_v5 = vld [vmem:[%s7293_s0 + $0x98] ss:$72 sps:$4 sm:$0xff]   ;;  %v5650_v6 = vld [vmem:[%s6661_s9 + $0x624] ss:$8 sps:$4 sm:$0xff]  }
 0x106   : > { %4127 = vmatprep.subr.bf16.mxu0 %v5547_v7  ;;  %v5645_v7 = vld [vmem:[%s6661_s9 + $0x220] ss:$8 sps:$4 sm:$0xff]  }
 0x107   : > { %3773 = vmatmul.mubr.bf16.gmra.mrb[12].mxu1 %v5595_v9  ;;  %v5689_v9 = vld [vmem:[%s7293_s0 + $0xb8] ss:$72 sps:$4 sm:$0xff]  }
 0x108   : > { %4097 = vmatmul.mubr.bf16.gmra.mrb[12].mxu0 %v5592_v8  ;;  %3804 = vmatpush1.bf16.msra.mxu1 %v5542_v12  ;;  %v5648_v8 = vld [vmem:[%s6661_s9 + $0x620] ss:$8 sps:$4 sm:$0xff]   ;;  %v5657_v12 = vld [vmem:[%s7293_s0 + $0x12c] ss:$72 sps:$4 sm:$0xff]  }
 0x109   : > { %4128 = vmatpush1.bf16.msra.mxu0 %v5545_v13  ;;  %3805 = vmatprep.subr.bf16.mxu1 %v5550_v14  ;;  %v5704_v13 = vld [vmem:[%s7293_s0 + $0x14c] ss:$72 sps:$4 sm:$0xff]   ;;  %v5651_v14 = vld [vmem:[%s6661_s9 + $0x230] ss:$8 sps:$4 sm:$0xff]  }
 0x10a   : > { %4129 = vmatprep.subr.bf16.mxu0 %v5553_v15  ;;  %4106 = vmatprep.mubr.bf16.mxu0 %v4880_v16  ;;  %v5654_v15 = vld [vmem:[%s6661_s9 + $0x630] ss:$8 sps:$4 sm:$0xff]   ;;  %v5662_v16 = vld [vmem:[%s6661_s9 + $0x244] ss:$8 sps:$4 sm:$0xff]  }
 0x10b   : > { %3782 = vmatprep.mubr.bf16.mxu1 %v4872_v17  ;;  %v5665_v17 = vld [vmem:[%s6661_s9 + $0x644] ss:$8 sps:$4 sm:$0xff]  }
 0x10c   : > { %3806 = vmatpush1.bf16.msra.mxu1 %v5548_v18  ;;  %v5659_v18 = vld [vmem:[%s7293_s0 + $0x128] ss:$72 sps:$4 sm:$0xff]  }
 0x10d   : > { %4130 = vmatpush1.bf16.msra.mxu0 %v5551_v19  ;;  %3807 = vmatprep.subr.bf16.mxu1 %v5562_v20  ;;  %v5660_v19 = vld [vmem:[%s6661_s9 + $0x240] ss:$8 sps:$4 sm:$0xff]  }
 0x10e   : > { %4131 = vmatprep.subr.bf16.mxu0 %v5565_v21  ;;  %v5663_v20 = vld [vmem:[%s6661_s9 + $0x640] ss:$8 sps:$4 sm:$0xff]  }
 0x10f   : > { %3783 = vmatmul.mubr.bf16.gmra.mrb[16].mxu1 %v4871_v24  ;;  %v5706_v21 = vld [vmem:[%s7293_s0 + $0x148] ss:$72 sps:$4 sm:$0xff]   ;;  %v5672_v24 = vld [vmem:[%s7293_s0 + $0x1bc] ss:$72 sps:$4 sm:$0xff]  }
 0x110   : > { %4107 = vmatmul.mubr.bf16.gmra.mrb[16].mxu0 %v4879_v23  ;;  %3808 = vmatpush1.bf16.msra.mxu1 %v5560_v22  ;;  %v5668_v22 = vld [vmem:[%s6661_s9 + $0x254] ss:$8 sps:$4 sm:$0xff]  }
 0x111   : > { %4132 = vmatpush1.bf16.msra.mxu0 %v5563_v25  ;;  %3809 = vmatprep.subr.bf16.mxu1 %v5568_v26  ;;  %v5671_v23 = vld [vmem:[%s6661_s9 + $0x654] ss:$8 sps:$4 sm:$0xff]   ;;  %v5666_v26 = vld [vmem:[%s6661_s9 + $0x250] ss:$8 sps:$4 sm:$0xff]  }
 0x112   : > { %4133 = vmatprep.subr.bf16.mxu0 %v5571_v27  ;;  %3823 = vmatprep.mubr.bf16.mxu1 %v5626_v28  ;;  %v5719_v25 = vld [vmem:[%s7293_s0 + $0x1dc] ss:$72 sps:$4 sm:$0xff]   ;;  %v5669_v27 = vld [vmem:[%s6661_s9 + $0x650] ss:$8 sps:$4 sm:$0xff]  }
 0x113   : > { %4147 = vmatprep.mubr.bf16.mxu0 %v5632_v29  ;;  %v5677_v28 = vld [vmem:[%s6661_s9 + $0x264] ss:$8 sps:$4 sm:$0xff]   ;;  %v5674_v29 = vld [vmem:[%s7293_s0 + $0x1b8] ss:$72 sps:$4 sm:$0xff]  }
 0x114   : > { %3810 = vmatpush1.bf16.msra.mxu1 %v5566_v30  ;;  %v5680_v30 = vld [vmem:[%s6661_s9 + $0x664] ss:$8 sps:$4 sm:$0xff]  }
 0x115   : > { %4134 = vmatpush1.bf16.msra.mxu0 %v5569_v31  ;;  %3811 = vmatprep.subr.bf16.mxu1 %v5580_v32  ;;  %v5675_v31 = vld [vmem:[%s6661_s9 + $0x260] ss:$8 sps:$4 sm:$0xff]  }
 0x116   : > { %4135 = vmatprep.subr.bf16.mxu0 %v5583_v33  ;;  %v5678_v32 = vld [vmem:[%s6661_s9 + $0x660] ss:$8 sps:$4 sm:$0xff]  }
 0x117   : > { %v1551_v33 = vld [vmem:[%s7293_s0 + $0x248] sm:$0xff] }
 0x118   : > { %3812 = vmatpush1.bf16.msra.mxu1 %v5578_v34  ;;  %v5721_v34 = vld [vmem:[%s7293_s0 + $0x1d8] ss:$72 sps:$4 sm:$0xff]  }
 0x119   : > { %4136 = vmatpush1.bf16.msra.mxu0 %v5581_v35  ;;  %3813 = vmatprep.subr.bf16.mxu1 %v5586_v36  ;;  %v1555_v35 = vld [vmem:[%s7293_s0 + $0x268] sm:$0xff]  ;;  %v5683_v36 = vld [vmem:[%s6661_s9 + $0x274] ss:$8 sps:$4 sm:$0xff]  }
 0x11a   : > { %4137 = vmatprep.subr.bf16.mxu0 %v5589_v37  ;;  %v5686_v37 = vld [vmem:[%s6661_s9 + $0x674] ss:$8 sps:$4 sm:$0xff]  }
 0x11c   : > { %3814 = vmatpush1.bf16.msra.mxu1 %v5584_v38  ;;  %v4874_v38 = vcombine.high %v1551_v33, %v1551_v33 }
 0x11d   : > { %4138 = vmatpush1.bf16.msra.mxu0 %v5587_v39  ;;  %3815 = vmatprep.subr.bf16.mxu1 %v5598_v40  ;;  %v4882_v39 = vcombine.high %v1555_v35, %v1555_v35  ;;  %v5681_v40 = vld [vmem:[%s6661_s9 + $0x270] ss:$8 sps:$4 sm:$0xff]  }
 0x11e   : > { %4139 = vmatprep.subr.bf16.mxu0 %v5601_v41  ;;  %v5684_v41 = vld [vmem:[%s6661_s9 + $0x670] ss:$8 sps:$4 sm:$0xff]  }
 0x120   : > { %3816 = vmatpush1.bf16.msra.mxu1 %v5596_v42  ;;  %v5694_v42 = vld [vmem:[%s6661_s9 + $0x284] ss:$8 sps:$4 sm:$0xff]  }
 0x121   : > { %4140 = vmatpush1.bf16.msra.mxu0 %v5599_v43  ;;  %3817 = vmatprep.subr.bf16.mxu1 %v5604_v44  ;;  %v5697_v43 = vld [vmem:[%s6661_s9 + $0x684] ss:$8 sps:$4 sm:$0xff]   ;;  %v4873_v44 = vcombine.low %v1551_v33, %v1551_v33  ;;  %v5780_v33 = vld [vmem:[%s6661_s9 + $0x734] ss:$8 sps:$4 sm:$0xff]  }
 0x122   : > { %4141 = vmatprep.subr.bf16.mxu0 %v5607_v45  ;;  %v5692_v45 = vld [vmem:[%s6661_s9 + $0x280] ss:$8 sps:$4 sm:$0xff]  }
 0x124   : > { %3818 = vmatpush1.bf16.msra.mxu1 %v5602_v46  ;;  %v5695_v46 = vld [vmem:[%s6661_s9 + $0x680] ss:$8 sps:$4 sm:$0xff]  }
 0x125   : > { %4142 = vmatpush1.bf16.msra.mxu0 %v5605_v47  ;;  %3819 = vmatprep.subr.bf16.mxu1 %v5614_v48  ;;  %v4881_v47 = vcombine.low %v1555_v35, %v1555_v35  ;;  %v5700_v48 = vld [vmem:[%s6661_s9 + $0x294] ss:$8 sps:$4 sm:$0xff]  }
 0x126   : > { %4143 = vmatprep.subr.bf16.mxu0 %v5617_v49  ;;  %v5703_v49 = vld [vmem:[%s6661_s9 + $0x694] ss:$8 sps:$4 sm:$0xff]  }
 0x127   : > { %v5828_v35 = vld [vmem:[%s7293_s0 + $0x154] ss:$72 sps:$4 sm:$0xff]  }
 0x128   : > { %3820 = vmatpush1.bf16.msra.mxu1 %v5612_v50  ;;  %v5750_v50 = vld [vmem:[%s7293_s0 + $0x14] ss:$72 sps:$4 sm:$0xff]  }
 0x129   : > { %4144 = vmatpush1.bf16.msra.mxu0 %v5615_v51  ;;  %3821 = vmatprep.subr.bf16.mxu1 %v5620_v52  ;;  %v5756_v51 = vld [vmem:[%s7293_s0 + $0x34] ss:$72 sps:$4 sm:$0xff]   ;;  %v5698_v52 = vld [vmem:[%s6661_s9 + $0x290] ss:$8 sps:$4 sm:$0xff]  }
 0x12a   : > { %4145 = vmatprep.subr.bf16.mxu0 %v5623_v53  ;;  %v5701_v53 = vld [vmem:[%s6661_s9 + $0x690] ss:$8 sps:$4 sm:$0xff]  }
 0x12c   : > { %3822 = vmatpush1.bf16.msra.mxu1 %v5618_v54  ;;  %v5709_v54 = vld [vmem:[%s6661_s9 + $0x2a4] ss:$8 sps:$4 sm:$0xff]  }
 0x12d   : > { %4146 = vmatpush1.bf16.msra.mxu0 %v5621_v55  ;;  %3872 = vmatprep.subr.bf16.mxu1 %v5629_v56  ;;  %v5712_v55 = vld [vmem:[%s6661_s9 + $0x6a4] ss:$8 sps:$4 sm:$0xff]   ;;  %v5707_v56 = vld [vmem:[%s6661_s9 + $0x2a0] ss:$8 sps:$4 sm:$0xff]  }
 0x12e   : > { %4196 = vmatprep.subr.bf16.mxu0 %v5635_v58  ;;  %v5715_v58 = vld [vmem:[%s6661_s9 + $0x2b4] ss:$8 sps:$4 sm:$0xff]  }
 0x12f   : > { %3824 = vmatmul.mubr.bf16.vlgmr.msra.gmra.mrb[0].mxu1 %v5624_v57  ;;  %v5710_v57 = vld [vmem:[%s6661_s9 + $0x6a0] ss:$8 sps:$4 sm:$0xff]  }
 0x130   : > { %4148 = vmatmul.mubr.bf16.vlgmr.msra.gmra.mrb[0].mxu0 %v5630_v60  ;;  %3873 = vmatpush1.bf16.msra.mxu1 %v5627_v59  ;;  %v5718_v59 = vld [vmem:[%s6661_s9 + $0x6b4] ss:$8 sps:$4 sm:$0xff]   ;;  %v5713_v60 = vld [vmem:[%s6661_s9 + $0x2b0] ss:$8 sps:$4 sm:$0xff]  }
 0x131   : > { %4197 = vmatpush1.bf16.msra.mxu0 %v5633_v61  ;;  %3874 = vmatprep.subr.bf16.mxu1 %v5638_v62  ;;  %v5716_v61 = vld [vmem:[%s6661_s9 + $0x6b0] ss:$8 sps:$4 sm:$0xff]   ;;  %v5724_v62 = vld [vmem:[%s6661_s9 + $0x2c4] ss:$8 sps:$4 sm:$0xff]  }
 0x132   : > { %4198 = vmatprep.subr.bf16.mxu0 %v5641_v63  ;;  %3833 = vmatprep.mubr.bf16.mxu1 %v5642_v0  ;;  %v5727_v63 = vld [vmem:[%s6661_s9 + $0x6c4] ss:$8 sps:$4 sm:$0xff]   ;;  %v5722_v0 = vld [vmem:[%s6661_s9 + $0x2c0] ss:$8 sps:$4 sm:$0xff]  }
 0x133   : > { %4157 = vmatprep.mubr.bf16.mxu0 %v5687_v1  ;;  %v5725_v1 = vld [vmem:[%s6661_s9 + $0x6c0] ss:$8 sps:$4 sm:$0xff]  }
 0x134   : > { %3875 = vmatpush1.bf16.msra.mxu1 %v5636_v2  ;;  %v5730_v2 = vld [vmem:[%s6661_s9 + $0x2d4] ss:$8 sps:$4 sm:$0xff]  }
 0x135   : > { %4199 = vmatpush1.bf16.msra.mxu0 %v5639_v3  ;;  %3876 = vmatprep.subr.bf16.mxu1 %v5647_v4  ;;  %v5733_v3 = vld [vmem:[%s6661_s9 + $0x6d4] ss:$8 sps:$4 sm:$0xff]   ;;  %v5728_v4 = vld [vmem:[%s6661_s9 + $0x2d0] ss:$8 sps:$4 sm:$0xff]  }
 0x136   : > { %4200 = vmatprep.subr.bf16.mxu0 %v5650_v6  ;;  %v5738_v6 = vld [vmem:[%s6661_s9 + $0x2e4] ss:$8 sps:$4 sm:$0xff]  }
 0x137   : > { %3834 = vmatmul.mubr.bf16.gmra.mrb[4].mxu1 %v5644_v5  ;;  %v5731_v5 = vld [vmem:[%s6661_s9 + $0x6d0] ss:$8 sps:$4 sm:$0xff]  }
 0x138   : > { %4158 = vmatmul.mubr.bf16.gmra.mrb[4].mxu0 %v5689_v9  ;;  %3877 = vmatpush1.bf16.msra.mxu1 %v5645_v7  ;;  %v5741_v7 = vld [vmem:[%s6661_s9 + $0x6e4] ss:$8 sps:$4 sm:$0xff]   ;;  %v5739_v9 = vld [vmem:[%s6661_s9 + $0x6e0] ss:$8 sps:$4 sm:$0xff]  }
 0x139   : > { %4201 = vmatpush1.bf16.msra.mxu0 %v5648_v8  ;;  %3878 = vmatprep.subr.bf16.mxu1 %v5653_v10  ;;  %v5736_v8 = vld [vmem:[%s6661_s9 + $0x2e0] ss:$8 sps:$4 sm:$0xff]   ;;  %v5744_v10 = vld [vmem:[%s6661_s9 + $0x2f4] ss:$8 sps:$4 sm:$0xff]  }
 0x13a   : > { %4202 = vmatprep.subr.bf16.mxu0 %v5656_v11  ;;  %3843 = vmatprep.mubr.bf16.mxu1 %v5657_v12  ;;  %v5747_v11 = vld [vmem:[%s6661_s9 + $0x6f4] ss:$8 sps:$4 sm:$0xff]   ;;  %v5742_v12 = vld [vmem:[%s6661_s9 + $0x2f0] ss:$8 sps:$4 sm:$0xff]  }
 0x13b   : > { %4167 = vmatprep.mubr.bf16.mxu0 %v5704_v13  ;;  %v5745_v13 = vld [vmem:[%s6661_s9 + $0x6f0] ss:$8 sps:$4 sm:$0xff]  }
 0x13c   : > { %3879 = vmatpush1.bf16.msra.mxu1 %v5651_v14  ;;  %v5753_v14 = vld [vmem:[%s6661_s9 + $0x304] ss:$8 sps:$4 sm:$0xff]  }
 0x13d   : > { %4203 = vmatpush1.bf16.msra.mxu0 %v5654_v15  ;;  %3880 = vmatprep.subr.bf16.mxu1 %v5662_v16  ;;  %v5759_v15 = vld [vmem:[%s6661_s9 + $0x704] ss:$8 sps:$4 sm:$0xff]   ;;  %v5748_v16 = vld [vmem:[%s7293_s0 + $0x10] ss:$72 sps:$4 sm:$0xff]  }
 0x13e   : > { %4204 = vmatprep.subr.bf16.mxu0 %v5665_v17  ;;  %v5751_v17 = vld [vmem:[%s6661_s9 + $0x300] ss:$8 sps:$4 sm:$0xff]  }
 0x13f   : > { %3844 = vmatmul.mubr.bf16.gmra.mrb[8].mxu1 %v5659_v18  ;;  %v5754_v18 = vld [vmem:[%s7293_s0 + $0x30] ss:$72 sps:$4 sm:$0xff]  }
 0x140   : > { %4168 = vmatmul.mubr.bf16.gmra.mrb[8].mxu0 %v5706_v21  ;;  %3881 = vmatpush1.bf16.msra.mxu1 %v5660_v19  ;;  %v5757_v19 = vld [vmem:[%s6661_s9 + $0x700] ss:$8 sps:$4 sm:$0xff]   ;;  %v5765_v21 = vld [vmem:[%s6661_s9 + $0x714] ss:$8 sps:$4 sm:$0xff]  }
 0x141   : > { %4205 = vmatpush1.bf16.msra.mxu0 %v5663_v20  ;;  %3882 = vmatprep.subr.bf16.mxu1 %v5668_v22  ;;  %v5762_v20 = vld [vmem:[%s6661_s9 + $0x314] ss:$8 sps:$4 sm:$0xff]   ;;  %v5766_v22 = vld [vmem:[%s7293_s0 + $0xa4] ss:$72 sps:$4 sm:$0xff]  }
 0x142   : > { %4206 = vmatprep.subr.bf16.mxu0 %v5671_v23  ;;  %3853 = vmatprep.mubr.bf16.mxu1 %v5672_v24  ;;  %v5811_v23 = vld [vmem:[%s7293_s0 + $0xc4] ss:$72 sps:$4 sm:$0xff]   ;;  %v5760_v24 = vld [vmem:[%s6661_s9 + $0x310] ss:$8 sps:$4 sm:$0xff]  }
 0x143   : > { %4177 = vmatprep.mubr.bf16.mxu0 %v5719_v25  ;;  %v5763_v25 = vld [vmem:[%s6661_s9 + $0x710] ss:$8 sps:$4 sm:$0xff]  }
 0x144   : > { %3883 = vmatpush1.bf16.msra.mxu1 %v5666_v26  ;;  %v5768_v26 = vld [vmem:[%s7293_s0 + $0xa0] ss:$72 sps:$4 sm:$0xff]  }
 0x145   : > { %4207 = vmatpush1.bf16.msra.mxu0 %v5669_v27  ;;  %3884 = vmatprep.subr.bf16.mxu1 %v5677_v28  ;;  %v5771_v27 = vld [vmem:[%s6661_s9 + $0x324] ss:$8 sps:$4 sm:$0xff]  }
 0x146   : > { %4208 = vmatprep.subr.bf16.mxu0 %v5680_v30  ;;  %v5774_v28 = vld [vmem:[%s6661_s9 + $0x724] ss:$8 sps:$4 sm:$0xff]   ;;  %v5813_v30 = vld [vmem:[%s7293_s0 + $0xc0] ss:$72 sps:$4 sm:$0xff]  }
 0x147   : > { %3854 = vmatmul.mubr.bf16.gmra.mrb[12].mxu1 %v5674_v29  ;;  %v5769_v29 = vld [vmem:[%s6661_s9 + $0x320] ss:$8 sps:$4 sm:$0xff]  }
 0x148   : > { %4178 = vmatmul.mubr.bf16.gmra.mrb[12].mxu0 %v5721_v34  ;;  %3885 = vmatpush1.bf16.msra.mxu1 %v5675_v31  ;;  %v5772_v31 = vld [vmem:[%s6661_s9 + $0x720] ss:$8 sps:$4 sm:$0xff]   ;;  %v5781_v34 = vld [vmem:[%s7293_s0 + $0x134] ss:$72 sps:$4 sm:$0xff]  }
 0x149   : > { %4209 = vmatpush1.bf16.msra.mxu0 %v5678_v32  ;;  %3886 = vmatprep.subr.bf16.mxu1 %v5683_v36  ;;  %v5777_v32 = vld [vmem:[%s6661_s9 + $0x334] ss:$8 sps:$4 sm:$0xff]   ;;  %v5775_v36 = vld [vmem:[%s6661_s9 + $0x330] ss:$8 sps:$4 sm:$0xff]  }
 0x14a   : > { %4210 = vmatprep.subr.bf16.mxu0 %v5686_v37  ;;  %3863 = vmatprep.mubr.bf16.mxu1 %v4874_v38  ;;  %v5778_v37 = vld [vmem:[%s6661_s9 + $0x730] ss:$8 sps:$4 sm:$0xff]  }
 0x14b   : > { %4187 = vmatprep.mubr.bf16.mxu0 %v4882_v39  ;;  %v5783_v38 = vld [vmem:[%s7293_s0 + $0x130] ss:$72 sps:$4 sm:$0xff]   ;;  %v5786_v39 = vld [vmem:[%s6661_s9 + $0x344] ss:$8 sps:$4 sm:$0xff]  }
 0x14c   : > { %3887 = vmatpush1.bf16.msra.mxu1 %v5681_v40  ;;  %v5789_v40 = vld [vmem:[%s6661_s9 + $0x744] ss:$8 sps:$4 sm:$0xff]  }
 0x14d   : > { %4211 = vmatpush1.bf16.msra.mxu0 %v5684_v41  ;;  %3888 = vmatprep.subr.bf16.mxu1 %v5694_v42  ;;  %v5784_v41 = vld [vmem:[%s6661_s9 + $0x340] ss:$8 sps:$4 sm:$0xff]   ;;  %v5830_v42 = vld [vmem:[%s7293_s0 + $0x150] ss:$72 sps:$4 sm:$0xff]  }
 0x14e   : > { %4212 = vmatprep.subr.bf16.mxu0 %v5697_v43  ;;  %v5787_v43 = vld [vmem:[%s6661_s9 + $0x740] ss:$8 sps:$4 sm:$0xff]  }
 0x14f   : > { %3864 = vmatmul.mubr.bf16.gmra.mrb[20].mxu1 %v4873_v44  ;;  %v5792_v44 = vld [vmem:[%s6661_s9 + $0x354] ss:$8 sps:$4 sm:$0xff]  }
 0x150   : > { %4188 = vmatmul.mubr.bf16.gmra.mrb[20].mxu0 %v4881_v47  ;;  %3889 = vmatpush1.bf16.msra.mxu1 %v5692_v45  ;;  %v5795_v45 = vld [vmem:[%s6661_s9 + $0x754] ss:$8 sps:$4 sm:$0xff]   ;;  %v5843_v47 = vld [vmem:[%s7293_s0 + $0x1e4] ss:$72 sps:$4 sm:$0xff]  }
 0x151   : > { %4213 = vmatpush1.bf16.msra.mxu0 %v5695_v46  ;;  %3890 = vmatprep.subr.bf16.mxu1 %v5700_v48  ;;  %v5796_v46 = vld [vmem:[%s7293_s0 + $0x1c4] ss:$72 sps:$4 sm:$0xff]   ;;  %v5790_v48 = vld [vmem:[%s6661_s9 + $0x350] ss:$8 sps:$4 sm:$0xff]  }
 0x152   : > { %4214 = vmatprep.subr.bf16.mxu0 %v5703_v49  ;;  %3904 = vmatprep.mubr.bf16.mxu1 %v5750_v50  ;;  %v5793_v49 = vld [vmem:[%s6661_s9 + $0x750] ss:$8 sps:$4 sm:$0xff]   ;;  %v5798_v50 = vld [vmem:[%s7293_s0 + $0x1c0] ss:$72 sps:$4 sm:$0xff]  }
 0x153   : > { %4228 = vmatprep.mubr.bf16.mxu0 %v5756_v51  ;;  %v5801_v51 = vld [vmem:[%s6661_s9 + $0x364] ss:$8 sps:$4 sm:$0xff]  }
 0x154   : > { %3891 = vmatpush1.bf16.msra.mxu1 %v5698_v52  ;;  %v5804_v52 = vld [vmem:[%s6661_s9 + $0x764] ss:$8 sps:$4 sm:$0xff]  }
 0x155   : > { %4215 = vmatpush1.bf16.msra.mxu0 %v5701_v53  ;;  %3892 = vmatprep.subr.bf16.mxu1 %v5709_v54  ;;  %v1552_v53 = vld [vmem:[%s7293_s0 + $0x250] sm:$0xff]  ;;  %v5799_v54 = vld [vmem:[%s6661_s9 + $0x360] ss:$8 sps:$4 sm:$0xff]  }
 0x156   : > { %4216 = vmatprep.subr.bf16.mxu0 %v5712_v55  ;;  %v5845_v55 = vld [vmem:[%s7293_s0 + $0x1e0] ss:$72 sps:$4 sm:$0xff]  }
 0x158   : > { %3893 = vmatpush1.bf16.msra.mxu1 %v5707_v56  ;;  %v1556_v56 = vld [vmem:[%s7293_s0 + $0x270] sm:$0xff] }
 0x159   : > { %4217 = vmatpush1.bf16.msra.mxu0 %v5710_v57  ;;  %3894 = vmatprep.subr.bf16.mxu1 %v5715_v58  ;;  %v5802_v57 = vld [vmem:[%s6661_s9 + $0x760] ss:$8 sps:$4 sm:$0xff]   ;;  %v5807_v58 = vld [vmem:[%s6661_s9 + $0x374] ss:$8 sps:$4 sm:$0xff]  }
 0x15a   : > { %4218 = vmatprep.subr.bf16.mxu0 %v5718_v59  ;;  %v5810_v59 = vld [vmem:[%s6661_s9 + $0x774] ss:$8 sps:$4 sm:$0xff]  }
 0x15c   : > { %3895 = vmatpush1.bf16.msra.mxu1 %v5713_v60  ;;  %v4876_v60 = vcombine.high %v1552_v53, %v1552_v53 }
 0x15d   : > { %4219 = vmatpush1.bf16.msra.mxu0 %v5716_v61  ;;  %3896 = vmatprep.subr.bf16.mxu1 %v5724_v62  ;;  %v4884_v61 = vcombine.high %v1556_v56, %v1556_v56  ;;  %v5805_v62 = vld [vmem:[%s6661_s9 + $0x370] ss:$8 sps:$4 sm:$0xff]  }
 0x15e   : > { %4220 = vmatprep.subr.bf16.mxu0 %v5727_v63  ;;  %v5808_v63 = vld [vmem:[%s6661_s9 + $0x770] ss:$8 sps:$4 sm:$0xff]  }
 0x160   : > { %3897 = vmatpush1.bf16.msra.mxu1 %v5722_v0  ;;  %v5818_v0 = vld [vmem:[%s6661_s9 + $0x384] ss:$8 sps:$4 sm:$0xff]  }
 0x161   : > { %4221 = vmatpush1.bf16.msra.mxu0 %v5725_v1  ;;  %3898 = vmatprep.subr.bf16.mxu1 %v5730_v2  ;;  %v5821_v1 = vld [vmem:[%s6661_s9 + $0x784] ss:$8 sps:$4 sm:$0xff]   ;;  %v4875_v2 = vcombine.low %v1552_v53, %v1552_v53  ;;  %v5900_v53 = vld [vmem:[%s7293_s0 + $0x138] ss:$72 sps:$4 sm:$0xff]  }
 0x162   : > { %4222 = vmatprep.subr.bf16.mxu0 %v5733_v3  ;;  %v5816_v3 = vld [vmem:[%s6661_s9 + $0x380] ss:$8 sps:$4 sm:$0xff]  }
 0x164   : > { %3899 = vmatpush1.bf16.msra.mxu1 %v5728_v4  ;;  %v4883_v4 = vcombine.low %v1556_v56, %v1556_v56  ;;  %v5907_v56 = vld [vmem:[%s6661_s9 + $0x854] ss:$8 sps:$4 sm:$0xff]  }
 0x165   : > { %4223 = vmatpush1.bf16.msra.mxu0 %v5731_v5  ;;  %3900 = vmatprep.subr.bf16.mxu1 %v5738_v6  ;;  %v5819_v5 = vld [vmem:[%s6661_s9 + $0x780] ss:$8 sps:$4 sm:$0xff]   ;;  %v5824_v6 = vld [vmem:[%s6661_s9 + $0x394] ss:$8 sps:$4 sm:$0xff]  }
 0x166   : > { %4224 = vmatprep.subr.bf16.mxu0 %v5741_v7  ;;  %v5827_v7 = vld [vmem:[%s6661_s9 + $0x794] ss:$8 sps:$4 sm:$0xff]  }
 0x168   : > { %3901 = vmatpush1.bf16.msra.mxu1 %v5736_v8  ;;  %v5874_v8 = vld [vmem:[%s7293_s0 + $0x1c] ss:$72 sps:$4 sm:$0xff]  }
 0x169   : > { %4225 = vmatpush1.bf16.msra.mxu0 %v5739_v9  ;;  %3902 = vmatprep.subr.bf16.mxu1 %v5744_v10  ;;  %v5877_v9 = vld [vmem:[%s7293_s0 + $0x3c] ss:$72 sps:$4 sm:$0xff]   ;;  %v5822_v10 = vld [vmem:[%s6661_s9 + $0x390] ss:$8 sps:$4 sm:$0xff]  }
 0x16a   : > { %4226 = vmatprep.subr.bf16.mxu0 %v5747_v11  ;;  %v5825_v11 = vld [vmem:[%s6661_s9 + $0x790] ss:$8 sps:$4 sm:$0xff]  }
 0x16c   : > { %3903 = vmatpush1.bf16.msra.mxu1 %v5742_v12  ;;  %v5833_v12 = vld [vmem:[%s6661_s9 + $0x3a4] ss:$8 sps:$4 sm:$0xff]  }
 0x16d   : > { %4227 = vmatpush1.bf16.msra.mxu0 %v5745_v13  ;;  %3953 = vmatprep.subr.bf16.mxu1 %v5753_v14  ;;  %v5836_v13 = vld [vmem:[%s6661_s9 + $0x7a4] ss:$8 sps:$4 sm:$0xff]   ;;  %v5831_v14 = vld [vmem:[%s6661_s9 + $0x3a0] ss:$8 sps:$4 sm:$0xff]  }
 0x16e   : > { %4277 = vmatprep.subr.bf16.mxu0 %v5759_v15  ;;  %v5834_v15 = vld [vmem:[%s6661_s9 + $0x7a0] ss:$8 sps:$4 sm:$0xff]  }
 0x16f   : > { %3905 = vmatmul.mubr.bf16.vlgmr.msra.gmra.mrb[0].mxu1 %v5748_v16  ;;  %v5839_v16 = vld [vmem:[%s6661_s9 + $0x3b4] ss:$8 sps:$4 sm:$0xff]  }
 0x170   : > { %4229 = vmatmul.mubr.bf16.vlgmr.msra.gmra.mrb[0].mxu0 %v5754_v18  ;;  %3954 = vmatpush1.bf16.msra.mxu1 %v5751_v17  ;;  %v5842_v17 = vld [vmem:[%s6661_s9 + $0x7b4] ss:$8 sps:$4 sm:$0xff]   ;;  %v5837_v18 = vld [vmem:[%s6661_s9 + $0x3b0] ss:$8 sps:$4 sm:$0xff]  }
 0x171   : > { %4278 = vmatpush1.bf16.msra.mxu0 %v5757_v19  ;;  %3955 = vmatprep.subr.bf16.mxu1 %v5762_v20  ;;  %v5840_v19 = vld [vmem:[%s6661_s9 + $0x7b0] ss:$8 sps:$4 sm:$0xff]   ;;  %v5848_v20 = vld [vmem:[%s6661_s9 + $0x3c4] ss:$8 sps:$4 sm:$0xff]  }
 0x172   : > { %4279 = vmatprep.subr.bf16.mxu0 %v5765_v21  ;;  %3914 = vmatprep.mubr.bf16.mxu1 %v5766_v22  ;;  %v5851_v21 = vld [vmem:[%s6661_s9 + $0x7c4] ss:$8 sps:$4 sm:$0xff]   ;;  %v5846_v22 = vld [vmem:[%s6661_s9 + $0x3c0] ss:$8 sps:$4 sm:$0xff]  }
 0x173   : > { %4238 = vmatprep.mubr.bf16.mxu0 %v5811_v23  ;;  %v5849_v23 = vld [vmem:[%s6661_s9 + $0x7c0] ss:$8 sps:$4 sm:$0xff]  }
 0x174   : > { %3956 = vmatpush1.bf16.msra.mxu1 %v5760_v24  ;;  %v5854_v24 = vld [vmem:[%s6661_s9 + $0x3d4] ss:$8 sps:$4 sm:$0xff]  }
 0x175   : > { %4280 = vmatpush1.bf16.msra.mxu0 %v5763_v25  ;;  %3957 = vmatprep.subr.bf16.mxu1 %v5771_v27  ;;  %v5857_v25 = vld [vmem:[%s6661_s9 + $0x7d4] ss:$8 sps:$4 sm:$0xff]   ;;  %v5855_v27 = vld [vmem:[%s6661_s9 + $0x7d0] ss:$8 sps:$4 sm:$0xff]  }
 0x176   : > { %4281 = vmatprep.subr.bf16.mxu0 %v5774_v28  ;;  %v5862_v28 = vld [vmem:[%s6661_s9 + $0x3e4] ss:$8 sps:$4 sm:$0xff]  }
 0x177   : > { %3915 = vmatmul.mubr.bf16.gmra.mrb[4].mxu1 %v5768_v26  ;;  %v5852_v26 = vld [vmem:[%s6661_s9 + $0x3d0] ss:$8 sps:$4 sm:$0xff]  }
 0x178   : > { %4239 = vmatmul.mubr.bf16.gmra.mrb[4].mxu0 %v5813_v30  ;;  %3958 = vmatpush1.bf16.msra.mxu1 %v5769_v29  ;;  %v5865_v29 = vld [vmem:[%s6661_s9 + $0x7e4] ss:$8 sps:$4 sm:$0xff]   ;;  %v5860_v30 = vld [vmem:[%s6661_s9 + $0x3e0] ss:$8 sps:$4 sm:$0xff]  }
 0x179   : > { %4282 = vmatpush1.bf16.msra.mxu0 %v5772_v31  ;;  %3959 = vmatprep.subr.bf16.mxu1 %v5777_v32  ;;  %v5863_v31 = vld [vmem:[%s6661_s9 + $0x7e0] ss:$8 sps:$4 sm:$0xff]   ;;  %v5868_v32 = vld [vmem:[%s6661_s9 + $0x3f4] ss:$8 sps:$4 sm:$0xff]  }
 0x17a   : > { %4283 = vmatprep.subr.bf16.mxu0 %v5780_v33  ;;  %3924 = vmatprep.mubr.bf16.mxu1 %v5781_v34  ;;  %v5871_v33 = vld [vmem:[%s6661_s9 + $0x7f4] ss:$8 sps:$4 sm:$0xff]   ;;  %v5866_v34 = vld [vmem:[%s6661_s9 + $0x3f0] ss:$8 sps:$4 sm:$0xff]  }
 0x17b   : > { %4248 = vmatprep.mubr.bf16.mxu0 %v5828_v35  ;;  %v5869_v35 = vld [vmem:[%s6661_s9 + $0x7f0] ss:$8 sps:$4 sm:$0xff]  }
 0x17c   : > { %3960 = vmatpush1.bf16.msra.mxu1 %v5775_v36  ;;  %v5880_v36 = vld [vmem:[%s6661_s9 + $0x804] ss:$8 sps:$4 sm:$0xff]  }
 0x17d   : > { %4284 = vmatpush1.bf16.msra.mxu0 %v5778_v37  ;;  %3961 = vmatprep.subr.bf16.mxu1 %v5786_v39  ;;  %v5872_v37 = vld [vmem:[%s7293_s0 + $0x18] ss:$72 sps:$4 sm:$0xff]  }
 0x17e   : > { %4285 = vmatprep.subr.bf16.mxu0 %v5789_v40  ;;  %v5878_v39 = vld [vmem:[%s6661_s9 + $0x800] ss:$8 sps:$4 sm:$0xff]   ;;  %v5883_v40 = vld [vmem:[%s6661_s9 + $0x814] ss:$8 sps:$4 sm:$0xff]  }
 0x17f   : > { %3925 = vmatmul.mubr.bf16.gmra.mrb[8].mxu1 %v5783_v38  ;;  %v5875_v38 = vld [vmem:[%s7293_s0 + $0x38] ss:$72 sps:$4 sm:$0xff]  }
 0x180   : > { %4249 = vmatmul.mubr.bf16.gmra.mrb[8].mxu0 %v5830_v42  ;;  %3962 = vmatpush1.bf16.msra.mxu1 %v5784_v41  ;;  %v5884_v41 = vld [vmem:[%s7293_s0 + $0xac] ss:$72 sps:$4 sm:$0xff]  }
 0x181   : > { %4286 = vmatpush1.bf16.msra.mxu0 %v5787_v43  ;;  %3963 = vmatprep.subr.bf16.mxu1 %v5792_v44  ;;  %v5886_v42 = vld [vmem:[%s7293_s0 + $0xcc] ss:$72 sps:$4 sm:$0xff]   ;;  %v5881_v43 = vld [vmem:[%s6661_s9 + $0x810] ss:$8 sps:$4 sm:$0xff]  }
 0x182   : > { %4287 = vmatprep.subr.bf16.mxu0 %v5795_v45  ;;  %3934 = vmatprep.mubr.bf16.mxu1 %v5796_v46  ;;  %v5892_v44 = vld [vmem:[%s6661_s9 + $0x824] ss:$8 sps:$4 sm:$0xff]   ;;  %v5888_v45 = vld [vmem:[%s7293_s0 + $0xa8] ss:$72 sps:$4 sm:$0xff]  }
 0x183   : > { %4258 = vmatprep.mubr.bf16.mxu0 %v5843_v47  ;;  %v5889_v46 = vld [vmem:[%s7293_s0 + $0xc8] ss:$72 sps:$4 sm:$0xff]  }
 0x184   : > { %3964 = vmatpush1.bf16.msra.mxu1 %v5790_v48  ;;  %v5890_v47 = vld [vmem:[%s6661_s9 + $0x820] ss:$8 sps:$4 sm:$0xff]   ;;  %v5895_v48 = vld [vmem:[%s6661_s9 + $0x834] ss:$8 sps:$4 sm:$0xff]  }
 0x185   : > { %4288 = vmatpush1.bf16.msra.mxu0 %v5793_v49  ;;  %3965 = vmatprep.subr.bf16.mxu1 %v5801_v51  ;;  %v5896_v49 = vld [vmem:[%s7293_s0 + $0x13c] ss:$72 sps:$4 sm:$0xff]   ;;  %v5893_v51 = vld [vmem:[%s6661_s9 + $0x830] ss:$8 sps:$4 sm:$0xff]  }
 0x186   : > { %4289 = vmatprep.subr.bf16.mxu0 %v5804_v52  ;;  %v5904_v52 = vld [vmem:[%s6661_s9 + $0x844] ss:$8 sps:$4 sm:$0xff]  }
 0x187   : > { %3935 = vmatmul.mubr.bf16.gmra.mrb[12].mxu1 %v5798_v50  ;;  %v5898_v50 = vld [vmem:[%s7293_s0 + $0x15c] ss:$72 sps:$4 sm:$0xff]  }
 0x188   : > { %4259 = vmatmul.mubr.bf16.gmra.mrb[12].mxu0 %v5845_v55  ;;  %3966 = vmatpush1.bf16.msra.mxu1 %v5799_v54  ;;  %v5901_v54 = vld [vmem:[%s7293_s0 + $0x158] ss:$72 sps:$4 sm:$0xff]  }
 0x189   : > { %4290 = vmatpush1.bf16.msra.mxu0 %v5802_v57  ;;  %3967 = vmatprep.subr.bf16.mxu1 %v5807_v58  ;;  %v5902_v55 = vld [vmem:[%s6661_s9 + $0x840] ss:$8 sps:$4 sm:$0xff]   ;;  %v5908_v57 = vld [vmem:[%s7293_s0 + $0x1cc] ss:$72 sps:$4 sm:$0xff]  }
 0x18a   : > { %4291 = vmatprep.subr.bf16.mxu0 %v5810_v59  ;;  %3944 = vmatprep.mubr.bf16.mxu1 %v4876_v60  ;;  %v5910_v58 = vld [vmem:[%s7293_s0 + $0x1ec] ss:$72 sps:$4 sm:$0xff]   ;;  %v5905_v59 = vld [vmem:[%s6661_s9 + $0x850] ss:$8 sps:$4 sm:$0xff]  }
 0x18b   : > { %4268 = vmatprep.mubr.bf16.mxu0 %v4884_v61  ;;  %v5916_v60 = vld [vmem:[%s6661_s9 + $0x864] ss:$8 sps:$4 sm:$0xff]   ;;  %v5912_v61 = vld [vmem:[%s7293_s0 + $0x1c8] ss:$72 sps:$4 sm:$0xff]  }
 0x18c   : > { %3968 = vmatpush1.bf16.msra.mxu1 %v5805_v62  ;;  %v5913_v62 = vld [vmem:[%s7293_s0 + $0x1e8] ss:$72 sps:$4 sm:$0xff]  }
 0x18d   : > { %4292 = vmatpush1.bf16.msra.mxu0 %v5808_v63  ;;  %3969 = vmatprep.subr.bf16.mxu1 %v5818_v0  ;;  %v1553_v63 = vld [vmem:[%s7293_s0 + $0x258] sm:$0xff] }
 0x18e   : > { %4293 = vmatprep.subr.bf16.mxu0 %v5821_v1  ;;  %v1557_v0 = vld [vmem:[%s7293_s0 + $0x278] sm:$0xff]  ;;  %v5914_v1 = vld [vmem:[%s6661_s9 + $0x860] ss:$8 sps:$4 sm:$0xff]  }
 0x18f   : > { %3945 = vmatmul.mubr.bf16.gmra.mrb[24].mxu1 %v4875_v2  ;;  %v5919_v2 = vld [vmem:[%s6661_s9 + $0x874] ss:$8 sps:$4 sm:$0xff]  }
 0x190   : > { %4269 = vmatmul.mubr.bf16.gmra.mrb[24].mxu0 %v4883_v4  ;;  %3970 = vmatpush1.bf16.msra.mxu1 %v5816_v3  ;;  %v4878_v3 = vcombine.high %v1553_v63, %v1553_v63  ;;  %v4886_v4 = vcombine.high %v1557_v0, %v1557_v0 }
 0x191   : > { %4294 = vmatpush1.bf16.msra.mxu0 %v5819_v5  ;;  %3971 = vmatprep.subr.bf16.mxu1 %v5824_v6  ;;  %v5917_v5 = vld [vmem:[%s6661_s9 + $0x870] ss:$8 sps:$4 sm:$0xff]   ;;  %v5924_v6 = vld [vmem:[%s6661_s9 + $0x884] ss:$8 sps:$4 sm:$0xff]  }
 0x192   : > { %4295 = vmatprep.subr.bf16.mxu0 %v5827_v7  ;;  %3985 = vmatprep.mubr.bf16.mxu1 %v5874_v8  ;;  %v4877_v7 = vcombine.low %v1553_v63, %v1553_v63  ;;  %v4885_v8 = vcombine.low %v1557_v0, %v1557_v0 }
 0x193   : > { %4309 = vmatprep.mubr.bf16.mxu0 %v5877_v9  ;;  %v5922_v9 = vld [vmem:[%s6661_s9 + $0x880] ss:$8 sps:$4 sm:$0xff]  }
 0x194   : > { %3972 = vmatpush1.bf16.msra.mxu1 %v5822_v10  ;;  %v5927_v10 = vld [vmem:[%s6661_s9 + $0x894] ss:$8 sps:$4 sm:$0xff]  }
 0x195   : > { %4296 = vmatpush1.bf16.msra.mxu0 %v5825_v11  ;;  %3973 = vmatprep.subr.bf16.mxu1 %v5833_v12  ;;  %v5950_v11 = vld [vmem:[%s7293_s0 + $0x44] ss:$72 sps:$4 sm:$0xff]   ;;  %v5953_v12 = vld [vmem:[%s7293_s0 + $0x1f4] ss:$72 sps:$4 sm:$0xff]  }
 0x196   : > { %4297 = vmatprep.subr.bf16.mxu0 %v5836_v13  ;;  %v5925_v13 = vld [vmem:[%s6661_s9 + $0x890] ss:$8 sps:$4 sm:$0xff]  }
 0x198   : > { %3974 = vmatpush1.bf16.msra.mxu1 %v5831_v14  ;;  %v5932_v14 = vld [vmem:[%s6661_s9 + $0x8a4] ss:$8 sps:$4 sm:$0xff]  }
 0x199   : > { %4298 = vmatpush1.bf16.msra.mxu0 %v5834_v15  ;;  %3975 = vmatprep.subr.bf16.mxu1 %v5839_v16  ;;  %v5930_v15 = vld [vmem:[%s6661_s9 + $0x8a0] ss:$8 sps:$4 sm:$0xff]   ;;  %v5935_v16 = vld [vmem:[%s6661_s9 + $0x8b4] ss:$8 sps:$4 sm:$0xff]  }
 0x19a   : > { %4299 = vmatprep.subr.bf16.mxu0 %v5842_v17  ;;  %v5933_v17 = vld [vmem:[%s6661_s9 + $0x8b0] ss:$8 sps:$4 sm:$0xff]  }
 0x19c   : > { %3976 = vmatpush1.bf16.msra.mxu1 %v5837_v18  ;;  %v5938_v18 = vld [vmem:[%s6661_s9 + $0x8c4] ss:$8 sps:$4 sm:$0xff]  }
 0x19d   : > { %4300 = vmatpush1.bf16.msra.mxu0 %v5840_v19  ;;  %3977 = vmatprep.subr.bf16.mxu1 %v5848_v20  ;;  %v5936_v19 = vld [vmem:[%s6661_s9 + $0x8c0] ss:$8 sps:$4 sm:$0xff]   ;;  %v5941_v20 = vld [vmem:[%s6661_s9 + $0x8d4] ss:$8 sps:$4 sm:$0xff]  }
 0x19e   : > { %4301 = vmatprep.subr.bf16.mxu0 %v5851_v21  ;;  %v5939_v21 = vld [vmem:[%s6661_s9 + $0x8d0] ss:$8 sps:$4 sm:$0xff]  }
 0x1a0   : > { %3978 = vmatpush1.bf16.msra.mxu1 %v5846_v22  ;;  %v5944_v22 = vld [vmem:[%s6661_s9 + $0x8e4] ss:$8 sps:$4 sm:$0xff]  }
 0x1a1   : > { %4302 = vmatpush1.bf16.msra.mxu0 %v5849_v23  ;;  %3979 = vmatprep.subr.bf16.mxu1 %v5854_v24 }
 0x1a2   : > { %4303 = vmatprep.subr.bf16.mxu0 %v5857_v25 }
 0x1a4   : > { %3980 = vmatpush1.bf16.msra.mxu1 %v5852_v26 }
 0x1a5   : > { %4304 = vmatpush1.bf16.msra.mxu0 %v5855_v27  ;;  %3981 = vmatprep.subr.bf16.mxu1 %v5862_v28  ;;  %v5942_v27 = vld [vmem:[%s6661_s9 + $0x8e0] ss:$8 sps:$4 sm:$0xff]  }
 0x1a6   : > { %4305 = vmatprep.subr.bf16.mxu0 %v5865_v29 }
 0x1a8   : > { %3982 = vmatpush1.bf16.msra.mxu1 %v5860_v30  ;;  %v5947_v30 = vld [vmem:[%s6661_s9 + $0x8f4] ss:$8 sps:$4 sm:$0xff]  }
 0x1a9   : > { %4306 = vmatpush1.bf16.msra.mxu0 %v5863_v31  ;;  %3983 = vmatprep.subr.bf16.mxu1 %v5868_v32 }
 0x1aa   : > { %4307 = vmatprep.subr.bf16.mxu0 %v5871_v33  ;;  %v5945_v33 = vld [vmem:[%s6661_s9 + $0x8f0] ss:$8 sps:$4 sm:$0xff]  }
 0x1ac   : > { %3984 = vmatpush1.bf16.msra.mxu1 %v5866_v34  ;;  %v1558_v34 = vld [vmem:[%s7293_s0 + $0x280] sm:$0xff] }
 0x1ad   : > { %4308 = vmatpush1.bf16.msra.mxu0 %v5869_v35  ;;  %5201 = vmatprep.subr.bf16.mxu1 %v5880_v36  ;;  %v5948_v35 = vld [vmem:[%s7293_s0 + $0x40] ss:$72 sps:$4 sm:$0xff]  }
 0x1ae   : > { %4358 = vmatprep.subr.bf16.mxu0 %v5880_v36  ;;  %v5951_v36 = vld [vmem:[%s7293_s0 + $0x1f0] ss:$72 sps:$4 sm:$0xff]  }
 0x1af   : > { %3986 = vmatmul.mubr.bf16.vlgmr.msra.gmra.mrb[0].mxu1 %v5872_v37  ;;  %v5954_v37 = vld [vmem:[%s7293_s0 + $0xd4] ss:$72 sps:$4 sm:$0xff]  }
 0x1b0   : > { %4310 = vmatmul.mubr.bf16.vlgmr.msra.gmra.mrb[0].mxu0 %v5875_v38  ;;  %5217 = vmatpush1.bf16.msra.mxu1 %v5878_v39  ;;  %v4888_v38 = vcombine.high %v1558_v34, %v1558_v34 }
 0x1b1   : > { %4359 = vmatpush1.bf16.msra.mxu0 %v5878_v39  ;;  %5202 = vmatprep.subr.bf16.mxu1 %v5883_v40  ;;  %v5957_v39 = vld [vmem:[%s7293_s0 + $0xd0] ss:$72 sps:$4 sm:$0xff]  }
 0x1b2   : > { %4360 = vmatprep.subr.bf16.mxu0 %v5883_v40  ;;  %3995 = vmatprep.mubr.bf16.mxu1 %v5884_v41  ;;  %v4887_v40 = vcombine.low %v1558_v34, %v1558_v34  ;;  %v5959_v41 = vld [vmem:[%s7293_s0 + $0x164] ss:$72 sps:$4 sm:$0xff]  }
 0x1b3   : > { %4319 = vmatprep.mubr.bf16.mxu0 %v5886_v42  ;;  %v5961_v42 = vld [vmem:[%s7293_s0 + $0x160] ss:$72 sps:$4 sm:$0xff]  }
 0x1b4   : > { %5218 = vmatpush1.bf16.msra.mxu1 %v5881_v43 }
 0x1b5   : > { %4361 = vmatpush1.bf16.msra.mxu0 %v5881_v43  ;;  %5203 = vmatprep.subr.bf16.mxu1 %v5892_v44 }
 0x1b6   : > { %4362 = vmatprep.subr.bf16.mxu0 %v5892_v44 }
 0x1b7   : > { %3996 = vmatmul.mubr.bf16.gmra.mrb[4].mxu1 %v5888_v45 }
 0x1b8   : > { %4320 = vmatmul.mubr.bf16.gmra.mrb[4].mxu0 %v5889_v46  ;;  %5219 = vmatpush1.bf16.msra.mxu1 %v5890_v47 }
 0x1b9   : > { %4363 = vmatpush1.bf16.msra.mxu0 %v5890_v47  ;;  %5204 = vmatprep.subr.bf16.mxu1 %v5895_v48 }
 0x1ba   : > { %4364 = vmatprep.subr.bf16.mxu0 %v5895_v48  ;;  %4005 = vmatprep.mubr.bf16.mxu1 %v5896_v49 }
 0x1bb   : > { %4329 = vmatprep.mubr.bf16.mxu0 %v5898_v50 }
 0x1bc   : > { %5220 = vmatpush1.bf16.msra.mxu1 %v5893_v51 }
 0x1bd   : > { %4365 = vmatpush1.bf16.msra.mxu0 %v5893_v51  ;;  %5205 = vmatprep.subr.bf16.mxu1 %v5904_v52 }
 0x1be   : > { %4366 = vmatprep.subr.bf16.mxu0 %v5904_v52 }
 0x1bf   : > { %4006 = vmatmul.mubr.bf16.gmra.mrb[8].mxu1 %v5900_v53 }
 0x1c0   : > { %4330 = vmatmul.mubr.bf16.gmra.mrb[8].mxu0 %v5901_v54  ;;  %5221 = vmatpush1.bf16.msra.mxu1 %v5902_v55 }
 0x1c1   : > { %4367 = vmatpush1.bf16.msra.mxu0 %v5902_v55  ;;  %5206 = vmatprep.subr.bf16.mxu1 %v5907_v56 }
 0x1c2   : > { %4368 = vmatprep.subr.bf16.mxu0 %v5907_v56  ;;  %4015 = vmatprep.mubr.bf16.mxu1 %v5908_v57 }
 0x1c3   : > { %4339 = vmatprep.mubr.bf16.mxu0 %v5910_v58 }
 0x1c4   : > { %5222 = vmatpush1.bf16.msra.mxu1 %v5905_v59 }
 0x1c5   : > { %4369 = vmatpush1.bf16.msra.mxu0 %v5905_v59  ;;  %5207 = vmatprep.subr.bf16.mxu1 %v5916_v60 }
 0x1c6   : > { %4370 = vmatprep.subr.bf16.mxu0 %v5916_v60 }
 0x1c7   : > { %4016 = vmatmul.mubr.bf16.gmra.mrb[12].mxu1 %v5912_v61 }
 0x1c8   : > { %4340 = vmatmul.mubr.bf16.gmra.mrb[12].mxu0 %v5913_v62  ;;  %5223 = vmatpush1.bf16.msra.mxu1 %v5914_v1 }
 0x1c9   : > { %4371 = vmatpush1.bf16.msra.mxu0 %v5914_v1  ;;  %5208 = vmatprep.subr.bf16.mxu1 %v5919_v2 }
 0x1ca   : > { %4372 = vmatprep.subr.bf16.mxu0 %v5919_v2  ;;  %4025 = vmatprep.mubr.bf16.mxu1 %v4878_v3 }
 0x1cb   : > { %4349 = vmatprep.mubr.bf16.mxu0 %v4886_v4 }
 0x1cc   : > { %5224 = vmatpush1.bf16.msra.mxu1 %v5917_v5 }
 0x1cd   : > { %4373 = vmatpush1.bf16.msra.mxu0 %v5917_v5  ;;  %5209 = vmatprep.subr.bf16.mxu1 %v5924_v6 }
 0x1ce   : > { %4374 = vmatprep.subr.bf16.mxu0 %v5924_v6 }
 0x1cf   : > { %4026 = vmatmul.mubr.bf16.gmra.mrb[28].mxu1 %v4877_v7 }
 0x1d0   : > { %4350 = vmatmul.mubr.bf16.gmra.mrb[28].mxu0 %v4885_v8  ;;  %5225 = vmatpush1.bf16.msra.mxu1 %v5922_v9 }
 0x1d1   : > { %4375 = vmatpush1.bf16.msra.mxu0 %v5922_v9  ;;  %5210 = vmatprep.subr.bf16.mxu1 %v5927_v10 }
 0x1d2   : > { %4376 = vmatprep.subr.bf16.mxu0 %v5927_v10  ;;  %4390 = vmatprep.mubr.bf16.mxu0 %v5950_v11 }
 0x1d3   : > { %4420 = vmatprep.mubr.bf16.mxu1 %v5953_v12 }
 0x1d4   : > { %5226 = vmatpush1.bf16.msra.mxu1 %v5925_v13 }
 0x1d5   : > { %4377 = vmatpush1.bf16.msra.mxu0 %v5925_v13  ;;  %5211 = vmatprep.subr.bf16.mxu1 %v5932_v14 }
 0x1d6   : > { %4378 = vmatprep.subr.bf16.mxu0 %v5932_v14 }
 0x1d8   : > { %5227 = vmatpush1.bf16.msra.mxu1 %v5930_v15 }
 0x1d9   : > { %4379 = vmatpush1.bf16.msra.mxu0 %v5930_v15  ;;  %5212 = vmatprep.subr.bf16.mxu1 %v5935_v16 }
 0x1da   : > { %4380 = vmatprep.subr.bf16.mxu0 %v5935_v16 }
 0x1dc   : > { %5228 = vmatpush1.bf16.msra.mxu1 %v5933_v17 }
 0x1dd   : > { %4381 = vmatpush1.bf16.msra.mxu0 %v5933_v17  ;;  %5213 = vmatprep.subr.bf16.mxu1 %v5938_v18 }
 0x1de   : > { %4382 = vmatprep.subr.bf16.mxu0 %v5938_v18 }
 0x1e0   : > { %5229 = vmatpush1.bf16.msra.mxu1 %v5936_v19 }
 0x1e1   : > { %4383 = vmatpush1.bf16.msra.mxu0 %v5936_v19  ;;  %5214 = vmatprep.subr.bf16.mxu1 %v5941_v20 }
 0x1e2   : > { %4384 = vmatprep.subr.bf16.mxu0 %v5941_v20  ;;  %v3784_v24 = vpop.f32.mrb[16].mxu1 }
 0x1e3   : > { %v7164_v23 = vpop.f32.mrb[16].mxu0  ;;  %v3786_v26 = vpop.f32.mrb[17].mxu1 }
 0x1e4   : > { %v7166_v25 = vpop.f32.mrb[17].mxu0  ;;  %5230 = vmatpush1.bf16.msra.mxu1 %v5939_v21  ;;  %v3788_v29 = vpop.f32.mrb[18].mxu1 }
 0x1e5   : > { %4385 = vmatpush1.bf16.msra.mxu0 %v5939_v21  ;;  %v4112_v28 = vpop.f32.mrb[18].mxu0  ;;  %5215 = vmatprep.subr.bf16.mxu1 %v5944_v22  ;;  %v3789_v32 = vpop.f32.mrb[19].mxu1 }
 0x1e6   : > { %4386 = vmatprep.subr.bf16.mxu0 %v5944_v22  ;;  %v4113_v31 = vpop.f32.mrb[19].mxu0 }
 0x1e8   : > { %5231 = vmatpush1.bf16.msra.mxu1 %v5942_v27 }
 0x1e9   : > { %4387 = vmatpush1.bf16.msra.mxu0 %v5942_v27  ;;  %5216 = vmatprep.subr.bf16.mxu1 %v5947_v30 }
 0x1ea   : > { %4388 = vmatprep.subr.bf16.mxu0 %v5947_v30 }
 0x1ec   : > { %5232 = vmatpush1.bf16.msra.mxu1 %v5945_v33 }
 0x1ed   : > { %4389 = vmatpush1.bf16.msra.mxu0 %v5945_v33 }
 0x1ef   : > { %4421 = vmatmul.mubr.bf16.vlgmr.msra.gmra.mrb[32].mxu1 %v5951_v36 }
 0x1f0   : > { %4391 = vmatmul.mubr.bf16.vlgmr.msra.gmra.mrb[0].mxu0 %v5948_v35  ;;  %4430 = vmatprep.mubr.bf16.mxu1 %v4888_v38 }
 0x1f1   : > { %4400 = vmatprep.mubr.bf16.mxu0 %v5954_v37 }
 0x1f7   : > { %4431 = vmatmul.mubr.bf16.gmra.mrb[36].mxu1 %v4887_v40 }
 0x1f8   : > { %4401 = vmatmul.mubr.bf16.gmra.mrb[4].mxu0 %v5957_v39 }
 0x1f9   : > { %4410 = vmatprep.mubr.bf16.mxu0 %v5959_v41 }
 0x200   : > { %4411 = vmatmul.mubr.bf16.gmra.mrb[8].mxu0 %v5961_v42 }
 0x222   : > { %v3865_v43 = vpop.f32.mrb[20].mxu1 }
 0x223   : > { %v4189_v44 = vpop.f32.mrb[20].mxu0  ;;  %v3866_v45 = vadd.f32 %v3865_v43, %v3784_v24  ;;  %v3867_v46 = vpop.f32.mrb[21].mxu1  ;;  %v4498_v43 = vlaneseq }
 0x224   : > { %v4191_v47 = vpop.f32.mrb[21].mxu0  ;;  %v3868_v48 = vadd.f32 %v3867_v46, %v3786_v26  ;;  %v3869_v50 = vpop.f32.mrb[22].mxu1  ;;  %v4496_v46 = vld [vmem:[%s1434_s25] sm:$0x3] }
 0x225   : > { %v4193_v49 = vpop.f32.mrb[22].mxu0  ;;  %v3870_v52 = vpop.f32.mrb[23].mxu1 }
 0x226   : > { %v4194_v51 = vpop.f32.mrb[23].mxu0 }
 0x262   : > { %v3946_v53 = vpop.f32.mrb[24].mxu1 }
 0x263   : > { %v4270_v54 = vpop.f32.mrb[24].mxu0  ;;  %v3947_v55 = vadd.f32 %v3946_v53, %v3866_v45  ;;  %v3948_v56 = vpop.f32.mrb[25].mxu1  ;;  %v4499_v45 = vshrl.u32 %v4498_v43, 7 }
 0x264   : > { %v4272_v57 = vpop.f32.mrb[25].mxu0  ;;  %v3949_v58 = vadd.f32 %v3948_v56, %v3868_v48  ;;  %v3950_v60 = vpop.f32.mrb[26].mxu1 }
 0x265   : > { %v4274_v59 = vpop.f32.mrb[26].mxu0  ;;  %v3951_v62 = vpop.f32.mrb[27].mxu1  ;;  %v4504_v48 = vsub.s32 1, %v4499_v45 }
 0x266   : > { %v4275_v61 = vpop.f32.mrb[27].mxu0 }
 0x267   : > { %v7220_v49 = vrot.slane %v4496_v46, %v4504_v48 }
 0x282   : > { %v3987_v63 = vpop.f32.mrb[0].mxu1 }
 0x283   : > { %v3989_v0 = vpop.f32.mrb[1].mxu1 }
 0x284   : > { %v7192_v1 = vpop.f32.mrb[2].mxu1 }
 0x285   : > { %v7194_v2 = vpop.f32.mrb[3].mxu1 }
 0x28a   : > { %v7196_v3 = vpop.f32.mrb[4].mxu1 }
 0x28b   : > { %v7198_v4 = vpop.f32.mrb[5].mxu1 }
 0x28c   : > { %v7200_v5 = vpop.f32.mrb[6].mxu1 }
 0x28d   : > { %v7202_v6 = vpop.f32.mrb[7].mxu1 }
 0x292   : > { %v7204_v7 = vpop.f32.mrb[8].mxu1 }
 0x293   : > { %v7206_v8 = vpop.f32.mrb[9].mxu1 }
 0x294   : > { %v7208_v9 = vpop.f32.mrb[10].mxu1 }
 0x295   : > { %v7210_v10 = vpop.f32.mrb[11].mxu1 }
 0x29a   : > { %v4017_v11 = vpop.f32.mrb[12].mxu1 }
 0x29b   : > { %v4341_v12 = vpop.f32.mrb[12].mxu0  ;;  %v4019_v14 = vpop.f32.mrb[13].mxu1 }
 0x29c   : > { %v5245_v13 = vadd.f32 %v4341_v12, %v4017_v11  ;;  %v4343_v15 = vpop.f32.mrb[13].mxu0  ;;  %v4021_v17 = vpop.f32.mrb[14].mxu1 }
 0x29d   : > { %v5247_v16 = vadd.f32 %v4343_v15, %v4019_v14  ;;  %v4345_v18 = vpop.f32.mrb[14].mxu0  ;;  %v4023_v20 = vpop.f32.mrb[15].mxu1 }
 0x29e   : > { %v5249_v19 = vadd.f32 %v4345_v18, %v4021_v17  ;;  %v4347_v21 = vpop.f32.mrb[15].mxu0 }
 0x29f   : > { %v5251_v22 = vadd.f32 %v4347_v21, %v4023_v20 }
 0x2a2   : > { %v4027_v24 = vpop.f32.mrb[28].mxu1 }
 0x2a3   : > { %v4351_v26 = vpop.f32.mrb[28].mxu0  ;;  %v4028_v27 = vadd.f32 %v4027_v24, %v3947_v55  ;;  %v4029_v28 = vpop.f32.mrb[29].mxu1 }
 0x2a4   : > { %v4353_v29 = vpop.f32.mrb[29].mxu0  ;;  %v4030_v30 = vadd.f32 %v4029_v28, %v3949_v58  ;;  %v4031_v32 = vpop.f32.mrb[30].mxu1 }
 0x2a5   : > { %v4355_v31 = vpop.f32.mrb[30].mxu0  ;;  %v4109_v33 = vadd.f32 %v7164_v23, %v4028_v27  ;;  %v4032_v35 = vpop.f32.mrb[31].mxu1  ;;  %v4500_v23 = vsub.s32 0, %v4499_v45 }
 0x2a6   : > { %v4356_v34 = vpop.f32.mrb[31].mxu0  ;;  %v4111_v36 = vadd.f32 %v7166_v25, %v4030_v30 }
 0x2a7   : > { %v4190_v37 = vadd.f32 %v4189_v44, %v4109_v33  ;;  %v7218_v25 = vrot.slane %v4496_v46, %v4500_v23 }
 0x2a8   : > { %v4192_v38 = vadd.f32 %v4191_v47, %v4111_v36 }
 0x2a9   : > { %v4271_v39 = vadd.f32 %v4270_v54, %v4190_v37 }
 0x2aa   : > { %v4273_v40 = vadd.f32 %v4272_v57, %v4192_v38 }
 0x2ab   : > { %v4352_v41 = vadd.f32 %v4351_v26, %v4271_v39 }
 0x2ac   : > { %v4354_v42 = vadd.f32 %v4353_v29, %v4273_v40 }
 0x2c2   : > { %v4422_v47 = vpop.f32.mrb[32].mxu1 }
 0x2c3   : > { %v4392_v44 = vpop.f32.mrb[0].mxu0  ;;  %v5246_v51 = vadd.f32 %v5245_v13, %v4422_v47  ;;  %v4424_v53 = vpop.f32.mrb[33].mxu1 }
 0x2c4   : > { %v5233_v50 = vadd.f32 %v4392_v44, %v3987_v63  ;;  %v4394_v52 = vpop.f32.mrb[1].mxu0  ;;  %v5248_v55 = vadd.f32 %v5247_v16, %v4424_v53  ;;  %v4426_v57 = vpop.f32.mrb[34].mxu1 }
 0x2c5   : > { %v5234_v54 = vadd.f32 %v4394_v52, %v3989_v0  ;;  %v4396_v56 = vpop.f32.mrb[2].mxu0  ;;  %v4520_v59 = vadd.f32 %v5246_v51, %v7218_v25  ;;  %v5250_v61 = vadd.f32 %v5249_v19, %v4426_v57  ;;  %v4428_v11 = vpop.f32.mrb[35].mxu1 }
 0x2c6   : > { %v4508_v58 = vadd.f32 %v5233_v50, %v7218_v25  ;;  %v5235_v60 = vadd.f32 %v4396_v56, %v7192_v1  ;;  %v4398_v62 = vpop.f32.mrb[3].mxu0  ;;  %v4521_v12 = vadd.f32 %v5248_v55, %v7220_v49  ;;  %v5252_v13 = vadd.f32 %v5251_v22, %v4428_v11 }
 0x2c7   : > { %v4509_v63 = vadd.f32 %v5234_v54, %v7220_v49  ;;  %v5236_v0 = vadd.f32 %v4398_v62, %v7194_v2  ;;  %v4538_v15 = vmax.f32 %v4520_v59, 0.0  ;;  %v4522_v17 = vadd.f32 %v5250_v61, %v7218_v25 }
 0x2c8   : > { %v4526_v14 = vmax.f32 %v4508_v58, 0.0  ;;  %v4510_v16 = vadd.f32 %v5235_v60, %v7218_v25  ;;  %v4539_v20 = vmax.f32 %v4521_v12, 0.0  ;;  %v4523_v19 = vadd.f32 %v5252_v13, %v7220_v49 }
 0x2c9   : > { %v4527_v18 = vmax.f32 %v4509_v63, 0.0  ;;  %v4511_v1 = vadd.f32 %v5236_v0, %v7220_v49  ;;  %v4540_v24 = vmax.f32 %v4522_v17, 0.0 }
 0x2ca   : > { %v4528_v21 = vmax.f32 %v4510_v16, 0.0  ;;  %v5197_v27 = vpack.c.bf16 %v4539_v20, %v4538_v15  ;;  %v4541_v29 = vmax.f32 %v4523_v19, 0.0  ;;  %v4432_v22 = vpop.f32.mrb[36].mxu1 }
 0x2cb   : > { %v5191_v26 = vpack.c.bf16 %v4527_v18, %v4526_v14  ;;  %v4529_v28 = vmax.f32 %v4511_v1, 0.0  ;;  %v4402_v2 = vpop.f32.mrb[4].mxu0  ;;  %v4433_v31 = vadd.f32 %v4432_v22, %v4352_v41  ;;  %v4434_v33 = vpop.f32.mrb[37].mxu1 }
 0x2cc   : > { %v5237_v30 = vadd.f32 %v4402_v2, %v7196_v3  ;;  %v4404_v32 = vpop.f32.mrb[5].mxu0  ;;  %4606 = vst [vmem:[%s7235_s12 + $0x30] sm:$0xff] %v5197_v27  ;;  %v5198_v35 = vpack.c.bf16 %v4541_v29, %v4540_v24  ;;  %v4435_v37 = vadd.f32 %v4434_v33, %v4354_v42  ;;  %v4436_v39 = vpop.f32.mrb[38].mxu1 }
 0x2cd   : > { %4600 = vst [vmem:[%s7235_s12] sm:$0xff] %v5191_v26  ;;  %v5192_v34 = vpack.c.bf16 %v4529_v28, %v4528_v21  ;;  %v5238_v36 = vadd.f32 %v4404_v32, %v7198_v4  ;;  %v4406_v38 = vpop.f32.mrb[6].mxu0  ;;  %v4524_v40 = vadd.f32 %v7218_v25, %v4433_v31  ;;  %v4437_v45 = vpop.f32.mrb[39].mxu1 }
 0x2ce   : > { %v4512_v3 = vadd.f32 %v5237_v30, %v7218_v25  ;;  %v5239_v41 = vadd.f32 %v4406_v38, %v7200_v5  ;;  %v4408_v43 = vpop.f32.mrb[7].mxu0  ;;  %4607 = vst [vmem:[%s7235_s12 + $0x38] sm:$0xff] %v5198_v35  ;;  %v4525_v46 = vadd.f32 %v7220_v49, %v4435_v37 }
 0x2cf   : > { %4601 = vst [vmem:[%s7235_s12 + $0x8] sm:$0xff] %v5192_v34  ;;  %v4513_v23 = vadd.f32 %v5238_v36, %v7220_v49  ;;  %v5240_v4 = vadd.f32 %v4408_v43, %v7202_v6  ;;  %v4542_v48 = vmax.f32 %v4524_v40, 0.0 }
 0x2d0   : > { %v4530_v42 = vmax.f32 %v4512_v3, 0.0  ;;  %v4514_v44 = vadd.f32 %v5239_v41, %v7218_v25  ;;  %v4543_v50 = vmax.f32 %v4525_v46, 0.0 }
 0x2d1   : > { %v4531_v47 = vmax.f32 %v4513_v23, 0.0  ;;  %v4515_v5 = vadd.f32 %v5240_v4, %v7220_v49 }
 0x2d2   : > { %v4532_v51 = vmax.f32 %v4514_v44, 0.0  ;;  %v5199_v53 = vpack.c.bf16 %v4543_v50, %v4542_v48 }
 0x2d3   : > { %v5193_v52 = vpack.c.bf16 %v4531_v47, %v4530_v42  ;;  %v4533_v54 = vmax.f32 %v4515_v5, 0.0  ;;  %v4412_v55 = vpop.f32.mrb[8].mxu0  ;;  %v4677_v20 = vld [vmem:[%s7235_s12 + $0x30] sm:$0xff] (%p6057_p6) }
 0x2d4   : > { %v5241_v56 = vadd.f32 %v4412_v55, %v7204_v7  ;;  %v4414_v57 = vpop.f32.mrb[9].mxu0  ;;  %4608 = vst [vmem:[%s7235_s12 + $0x40] sm:$0xff] %v5199_v53  ;;  %4678 = vst [vmem:[%s4621_s29 + $0x60] sm:$0xff] (%p6057_p6), %v4677_v20 }
 0x2d5   : > { %4602 = vst [vmem:[%s7235_s12 + $0x10] sm:$0xff] %v5193_v52  ;;  %v5194_v6 = vpack.c.bf16 %v4533_v54, %v4532_v51  ;;  %v5242_v58 = vadd.f32 %v4414_v57, %v7206_v8  ;;  %v4416_v59 = vpop.f32.mrb[10].mxu0  ;;  %v4679_v1 = vld [vmem:[%s7235_s12 + $0x38] sm:$0xff] (%p6057_p6) }
 0x2d6   : > { %v4516_v60 = vadd.f32 %v5241_v56, %v7218_v25  ;;  %v5243_v61 = vadd.f32 %v4416_v59, %v7208_v9  ;;  %v4418_v62 = vpop.f32.mrb[11].mxu0  ;;  %v4665_v9 = vld [vmem:[%s7235_s12] sm:$0xff] (%p6057_p6)  ;;  %4680 = vst [vmem:[%s4621_s29 + $0x70] sm:$0xff] (%p6057_p6), %v4679_v1 }
 0x2d7   : > { %4603 = vst [vmem:[%s7235_s12 + $0x18] sm:$0xff] %v5194_v6  ;;  %v4517_v11 = vadd.f32 %v5242_v58, %v7220_v49  ;;  %v5244_v63 = vadd.f32 %v4418_v62, %v7210_v10  ;;  %v4667_v10 = vld [vmem:[%s7235_s12 + $0x8] sm:$0xff] (%p6057_p6)  ;;  %4666 = vst [vmem:[%s4621_s29] sm:$0xff] (%p6057_p6), %v4665_v9 }
 0x2d8   : > { %v4534_v7 = vmax.f32 %v4516_v60, 0.0  ;;  %v4518_v12 = vadd.f32 %v5243_v61, %v7218_v25  ;;  %4668 = vst [vmem:[%s4621_s29 + $0x10] sm:$0xff] (%p6057_p6), %v4667_v10 }
 0x2d9   : > { %v4535_v0 = vmax.f32 %v4517_v11, 0.0  ;;  %v4519_v13 = vadd.f32 %v5244_v63, %v7220_v49  ;;  %4615 = sbr.rel (!%p6057_p6) target bundleno = 744 (0x2e8), region = 82 }
 0x2da   : > { %v4536_v14 = vmax.f32 %v4518_v12, 0.0 }
 0x2db   : > { %v5195_v8 = vpack.c.bf16 %v4535_v0, %v4534_v7  ;;  %v4537_v15 = vmax.f32 %v4519_v13, 0.0  ;;  %v4681_v19 = vld [vmem:[%s7235_s12 + $0x40] sm:$0xff] (%p6057_p6) }
 0x2dc   : > { %v4669_v25 = vld [vmem:[%s7235_s12 + $0x10] sm:$0xff] (%p6057_p6)  ;;  %4682 = vst [vmem:[%s4621_s29 + $0x80] sm:$0xff] (%p6057_p6), %v4681_v19 }
 0x2dd   : > { %4604 = vst [vmem:[%s7235_s12 + $0x20] sm:$0xff] %v5195_v8  ;;  %v5196_v16 = vpack.c.bf16 %v4537_v15, %v4536_v14  ;;  %4670 = vst [vmem:[%s4621_s29 + $0x20] sm:$0xff] (%p6057_p6), %v4669_v25 }
 0x2de   : > { %v4671_v49 = vld [vmem:[%s7235_s12 + $0x18] sm:$0xff] (%p6057_p6) }
 0x2df   : > { %4605 = vst [vmem:[%s7235_s12 + $0x28] sm:$0xff] %v5196_v16  ;;  %4672 = vst [vmem:[%s4621_s29 + $0x30] sm:$0xff] (%p6057_p6), %v4671_v49 }
 0x2e4   : > { %v4673_v17 = vld [vmem:[%s7235_s12 + $0x20] sm:$0xff] }
 0x2e5   : > { %4674 = vst [vmem:[%s4621_s29 + $0x40] sm:$0xff] %v4673_v17 }
 0x2e6   : > { %v4675_v18 = vld [vmem:[%s7235_s12 + $0x28] sm:$0xff] }
 0x2e7   : > { %4676 = vst [vmem:[%s4621_s29 + $0x50] sm:$0xff] %v4675_v18 }
 0x2e8 PF: > { %s13_s16 = sadd.s32 1, %s6000_s16   ;;  %s7298_s12 = smov %s5988_s13 }
 0x2e9   : > { %p10_p12 = scmp.ge.s32.totalorder %s13_s16, 4   ;;  %s7299_s13 = smov %s6062_s22 }
 0x2ea   : > { %s7300_s14 = smov %s5996_s15  ;;  %s7301_s15 = smov %s7303_s17 }
 0x2eb   :  { %12 = sbr.rel (!%p10_p12) target bundleno = 3 (0x3), region = 157 }

// kernel: sphere_cnn_forward.10
= control target key start
LH: loop header
LB: loop body
LE: loop exit
PB: predicated region body
PF: predicated region fallthrough
CT: control target
= control target key end

     0   :  { %s4288_s12 = smov 0   ;;  %s4290_s13 = smov 0   ;;  %s5230_s0 = inlined_call_operand.vmem [shape: bf16[2,18432], index: 0, kind: input, shape index: {}]   ;;  %s5231_s1 = inlined_call_operand.vmem [shape: bf16[18432,512], index: 1, kind: input, shape index: {}]   ;;  %s5232_s2 = inlined_call_operand.vmem [shape: f32[1,512], index: 2, kind: input, shape index: {}]   ;;  %s5233_s3 = inlined_call_operand.vmem [shape: f32[2,512], index: 3, kind: output, shape index: {}]  }
   0x1   :  { %s4292_s14 = smov 0   ;;  %s4294_s15 = smov 0  }
   0x2   :  { %s4296_s16 = smov 0   ;;  %s4298_s17 = smov 0  }
   0x3   :  { %s4300_s18 = smov 0  }
   0x4 LB: > { %s25_s19 = sadd.s32 1, %s4255_s16  ;;  %s28_s20 = sadd.s32 1, %s4259_s17  ;;  %s4263_s18 = sphi %s4300_s18, %s13_s18   ;;  %s4259_s17 = sphi %s4298_s17, %s5239_s17   ;;  %s4255_s16 = sphi %s4296_s16, %s5238_s16   ;;  %s4251_s15 = sphi %s4294_s15, %s5237_s15   ;;  %s4247_s14 = sphi %s4292_s14, %s5236_s14   ;;  %s4243_s13 = sphi %s4290_s13, %s5235_s13   ;;  %s4239_s12 = sphi %s4288_s12, %s5234_s12  }
   0x5   : > { %p26_p0 = scmp.ge.s32.totalorder %s25_s19, 9  ;;  %p76_p1 = scmp.ne.s32.totalorder %s4243_s13, %s4239_s12 }
   0x6   : > { %p77_p2 = scmp.eq.s32.totalorder %s4263_s18, 0  ;;  %s69_s24 = sadd.s32 1, %s4243_s13 }
   0x7   : > { %s5241_s19 = smov (%p26_p0, %s25_s19), 0  ;;  %s5243_s20 = smov (!%p26_p0, %s28_s20), %s4259_s17 }
   0x8   : > { %p78_p3 = por %p77_p2, %p76_p1  ;;  %p30_p4 = scmp.ge.s32.totalorder %s5243_s20, 2 }
   0x9   : > { %s64_s21 = ssub.s32 %s4255_s16, %s5241_s19  ;;  %p3465_p6 = scmp.ge.s32.totalorder %s4263_s18, 18 }
   0xa   : > { %s5245_s20 = smov (%p30_p4, %s5243_s20), 0 }
   0xb   : > { %s65_s22 = ssub.s32 %s4259_s17, %s5245_s20  ;;  %156 = sbr.rel (%p3465_p6) target bundleno = 153 (0x99), region = 16 }
   0xc   : > { %s66_s23 = sor.u32 %s65_s22, %s64_s21 }
   0xd   : > { %p67_p5 = scmp.eq.s32.totalorder %s66_s23, 0 }
   0xf   : > { %s4339_s25 = scalar_select %p67_p5, %s4243_s13, %s69_s24  }
  0x12   : > { %171 = sbr.rel (!%p78_p3) target bundleno = 153 (0x99), region = 24  ;;  %s173_s26 = sand.u32 (%p78_p3), 1, %s4243_s13  }
  0x13   : > { %s3468_s27 = sshll.u32 (%p78_p3), %s4259_s17, 1  ;;  %s3466_s28 = sshll.u32 (%p78_p3), %s173_s26, 11 }
  0x14   : > { %s3737_s29 = sshll.u32 (%p78_p3), %s4255_s16, 10  ;;  %s4353_s8 = scalar_lea.vmem (%p78_p3), [#allocation3], %s3466_s28 }
  0x15   : > { %s179_s30 = sadd.s32 (%p78_p3), %s3737_s29, %s3468_s27 }
  0x16   : > { %s3470_s4 = sshll.u32 (%p78_p3), %s179_s30, 2 }
  0x17   : > { %s4348_s7 = scalar_lea.vmem (%p78_p3), %s5231_s1, %s3470_s4 }
  0x18   : > { %v719_v0 = vld [vmem:[%s4348_s7] sm:$0xff] (%p78_p3)  ;;  %v721_v1 = vld [vmem:[%s4348_s7 + $0x10] sm:$0xff] (%p78_p3) }
  0x19   : > { %v723_v2 = vld [vmem:[%s4348_s7 + $0x20] sm:$0xff]  ;;  %720 = vst [vmem:[%s4353_s8] sm:$0xff] %v719_v0  ;;  %722 = vst [vmem:[%s4353_s8 + $0x8] sm:$0xff] %v721_v1  ;;  %v725_v3 = vld [vmem:[%s4348_s7 + $0x30] sm:$0xff] }
  0x1a   : > { %724 = vst [vmem:[%s4353_s8 + $0x10] sm:$0xff] %v723_v2  ;;  %v727_v4 = vld [vmem:[%s4348_s7 + $0x40] sm:$0xff]  ;;  %v729_v5 = vld [vmem:[%s4348_s7 + $0x50] sm:$0xff]  ;;  %726 = vst [vmem:[%s4353_s8 + $0x18] sm:$0xff] %v725_v3 }
  0x1b   : > { %728 = vst [vmem:[%s4353_s8 + $0x20] sm:$0xff] %v727_v4  ;;  %730 = vst [vmem:[%s4353_s8 + $0x28] sm:$0xff] %v729_v5  ;;  %v731_v6 = vld [vmem:[%s4348_s7 + $0x60] sm:$0xff]  ;;  %v733_v7 = vld [vmem:[%s4348_s7 + $0x70] sm:$0xff] }
  0x1c   : > { %v735_v8 = vld [vmem:[%s4348_s7 + $0x80] sm:$0xff]  ;;  %732 = vst [vmem:[%s4353_s8 + $0x30] sm:$0xff] %v731_v6  ;;  %734 = vst [vmem:[%s4353_s8 + $0x38] sm:$0xff] %v733_v7  ;;  %v737_v9 = vld [vmem:[%s4348_s7 + $0x90] sm:$0xff] }
  0x1d   : > { %736 = vst [vmem:[%s4353_s8 + $0x40] sm:$0xff] %v735_v8  ;;  %v739_v10 = vld [vmem:[%s4348_s7 + $0xa0] sm:$0xff]  ;;  %v741_v11 = vld [vmem:[%s4348_s7 + $0xb0] sm:$0xff]  ;;  %738 = vst [vmem:[%s4353_s8 + $0x48] sm:$0xff] %v737_v9 }
  0x1e   : > { %740 = vst [vmem:[%s4353_s8 + $0x50] sm:$0xff] %v739_v10  ;;  %742 = vst [vmem:[%s4353_s8 + $0x58] sm:$0xff] %v741_v11  ;;  %v743_v12 = vld [vmem:[%s4348_s7 + $0xc0] sm:$0xff]  ;;  %v745_v13 = vld [vmem:[%s4348_s7 + $0xd0] sm:$0xff] }
  0x1f   : > { %v747_v14 = vld [vmem:[%s4348_s7 + $0xe0] sm:$0xff]  ;;  %744 = vst [vmem:[%s4353_s8 + $0x60] sm:$0xff] %v743_v12  ;;  %746 = vst [vmem:[%s4353_s8 + $0x68] sm:$0xff] %v745_v13  ;;  %v749_v15 = vld [vmem:[%s4348_s7 + $0xf0] sm:$0xff] }
  0x20   : > { %748 = vst [vmem:[%s4353_s8 + $0x70] sm:$0xff] %v747_v14  ;;  %v751_v16 = vld [vmem:[%s4348_s7 + $0x100] sm:$0xff]  ;;  %v753_v17 = vld [vmem:[%s4348_s7 + $0x110] sm:$0xff]  ;;  %750 = vst [vmem:[%s4353_s8 + $0x78] sm:$0xff] %v749_v15 }
  0x21   : > { %752 = vst [vmem:[%s4353_s8 + $0x80] sm:$0xff] %v751_v16  ;;  %754 = vst [vmem:[%s4353_s8 + $0x88] sm:$0xff] %v753_v17  ;;  %v755_v18 = vld [vmem:[%s4348_s7 + $0x120] sm:$0xff]  ;;  %v757_v19 = vld [vmem:[%s4348_s7 + $0x130] sm:$0xff] }
  0x22   : > { %v759_v20 = vld [vmem:[%s4348_s7 + $0x140] sm:$0xff]  ;;  %756 = vst [vmem:[%s4353_s8 + $0x90] sm:$0xff] %v755_v18  ;;  %758 = vst [vmem:[%s4353_s8 + $0x98] sm:$0xff] %v757_v19  ;;  %v761_v21 = vld [vmem:[%s4348_s7 + $0x150] sm:$0xff] }
  0x23   : > { %760 = vst [vmem:[%s4353_s8 + $0xa0] sm:$0xff] %v759_v20  ;;  %v763_v22 = vld [vmem:[%s4348_s7 + $0x160] sm:$0xff]  ;;  %v765_v23 = vld [vmem:[%s4348_s7 + $0x170] sm:$0xff]  ;;  %762 = vst [vmem:[%s4353_s8 + $0xa8] sm:$0xff] %v761_v21 }
  0x24   : > { %764 = vst [vmem:[%s4353_s8 + $0xb0] sm:$0xff] %v763_v22  ;;  %766 = vst [vmem:[%s4353_s8 + $0xb8] sm:$0xff] %v765_v23  ;;  %v767_v24 = vld [vmem:[%s4348_s7 + $0x180] sm:$0xff]  ;;  %v769_v25 = vld [vmem:[%s4348_s7 + $0x190] sm:$0xff] }
  0x25   : > { %v771_v26 = vld [vmem:[%s4348_s7 + $0x1a0] sm:$0xff]  ;;  %768 = vst [vmem:[%s4353_s8 + $0xc0] sm:$0xff] %v767_v24  ;;  %770 = vst [vmem:[%s4353_s8 + $0xc8] sm:$0xff] %v769_v25  ;;  %v773_v27 = vld [vmem:[%s4348_s7 + $0x1b0] sm:$0xff] }
  0x26   : > { %772 = vst [vmem:[%s4353_s8 + $0xd0] sm:$0xff] %v771_v26  ;;  %v775_v28 = vld [vmem:[%s4348_s7 + $0x1c0] sm:$0xff]  ;;  %v777_v29 = vld [vmem:[%s4348_s7 + $0x1d0] sm:$0xff]  ;;  %774 = vst [vmem:[%s4353_s8 + $0xd8] sm:$0xff] %v773_v27 }
  0x27   : > { %776 = vst [vmem:[%s4353_s8 + $0xe0] sm:$0xff] %v775_v28  ;;  %778 = vst [vmem:[%s4353_s8 + $0xe8] sm:$0xff] %v777_v29  ;;  %v779_v30 = vld [vmem:[%s4348_s7 + $0x1e0] sm:$0xff]  ;;  %v781_v31 = vld [vmem:[%s4348_s7 + $0x1f0] sm:$0xff] }
  0x28   : > { %v783_v32 = vld [vmem:[%s4348_s7 + $0x200] sm:$0xff]  ;;  %780 = vst [vmem:[%s4353_s8 + $0xf0] sm:$0xff] %v779_v30  ;;  %782 = vst [vmem:[%s4353_s8 + $0xf8] sm:$0xff] %v781_v31  ;;  %v785_v33 = vld [vmem:[%s4348_s7 + $0x210] sm:$0xff] }
  0x29   : > { %784 = vst [vmem:[%s4353_s8 + $0x100] sm:$0xff] %v783_v32  ;;  %v787_v34 = vld [vmem:[%s4348_s7 + $0x220] sm:$0xff]  ;;  %v789_v35 = vld [vmem:[%s4348_s7 + $0x230] sm:$0xff]  ;;  %786 = vst [vmem:[%s4353_s8 + $0x108] sm:$0xff] %v785_v33 }
  0x2a   : > { %788 = vst [vmem:[%s4353_s8 + $0x110] sm:$0xff] %v787_v34  ;;  %790 = vst [vmem:[%s4353_s8 + $0x118] sm:$0xff] %v789_v35  ;;  %v791_v36 = vld [vmem:[%s4348_s7 + $0x240] sm:$0xff]  ;;  %v793_v37 = vld [vmem:[%s4348_s7 + $0x250] sm:$0xff] }
  0x2b   : > { %v795_v38 = vld [vmem:[%s4348_s7 + $0x260] sm:$0xff]  ;;  %792 = vst [vmem:[%s4353_s8 + $0x120] sm:$0xff] %v791_v36  ;;  %794 = vst [vmem:[%s4353_s8 + $0x128] sm:$0xff] %v793_v37  ;;  %v797_v39 = vld [vmem:[%s4348_s7 + $0x270] sm:$0xff] }
  0x2c   : > { %796 = vst [vmem:[%s4353_s8 + $0x130] sm:$0xff] %v795_v38  ;;  %v799_v40 = vld [vmem:[%s4348_s7 + $0x280] sm:$0xff]  ;;  %v801_v41 = vld [vmem:[%s4348_s7 + $0x290] sm:$0xff]  ;;  %798 = vst [vmem:[%s4353_s8 + $0x138] sm:$0xff] %v797_v39 }
  0x2d   : > { %800 = vst [vmem:[%s4353_s8 + $0x140] sm:$0xff] %v799_v40  ;;  %802 = vst [vmem:[%s4353_s8 + $0x148] sm:$0xff] %v801_v41  ;;  %v803_v42 = vld [vmem:[%s4348_s7 + $0x2a0] sm:$0xff]  ;;  %v805_v43 = vld [vmem:[%s4348_s7 + $0x2b0] sm:$0xff] }
  0x2e   : > { %v807_v44 = vld [vmem:[%s4348_s7 + $0x2c0] sm:$0xff]  ;;  %804 = vst [vmem:[%s4353_s8 + $0x150] sm:$0xff] %v803_v42  ;;  %806 = vst [vmem:[%s4353_s8 + $0x158] sm:$0xff] %v805_v43  ;;  %v809_v45 = vld [vmem:[%s4348_s7 + $0x2d0] sm:$0xff] }
  0x2f   : > { %808 = vst [vmem:[%s4353_s8 + $0x160] sm:$0xff] %v807_v44  ;;  %v811_v46 = vld [vmem:[%s4348_s7 + $0x2e0] sm:$0xff]  ;;  %v813_v47 = vld [vmem:[%s4348_s7 + $0x2f0] sm:$0xff]  ;;  %810 = vst [vmem:[%s4353_s8 + $0x168] sm:$0xff] %v809_v45 }
  0x30   : > { %812 = vst [vmem:[%s4353_s8 + $0x170] sm:$0xff] %v811_v46  ;;  %814 = vst [vmem:[%s4353_s8 + $0x178] sm:$0xff] %v813_v47  ;;  %v815_v48 = vld [vmem:[%s4348_s7 + $0x300] sm:$0xff]  ;;  %v817_v49 = vld [vmem:[%s4348_s7 + $0x310] sm:$0xff] }
  0x31   : > { %v819_v50 = vld [vmem:[%s4348_s7 + $0x320] sm:$0xff]  ;;  %816 = vst [vmem:[%s4353_s8 + $0x180] sm:$0xff] %v815_v48  ;;  %818 = vst [vmem:[%s4353_s8 + $0x188] sm:$0xff] %v817_v49  ;;  %v821_v51 = vld [vmem:[%s4348_s7 + $0x330] sm:$0xff] }
  0x32   : > { %820 = vst [vmem:[%s4353_s8 + $0x190] sm:$0xff] %v819_v50  ;;  %v823_v52 = vld [vmem:[%s4348_s7 + $0x340] sm:$0xff]  ;;  %v825_v53 = vld [vmem:[%s4348_s7 + $0x350] sm:$0xff]  ;;  %822 = vst [vmem:[%s4353_s8 + $0x198] sm:$0xff] %v821_v51 }
  0x33   : > { %824 = vst [vmem:[%s4353_s8 + $0x1a0] sm:$0xff] %v823_v52  ;;  %826 = vst [vmem:[%s4353_s8 + $0x1a8] sm:$0xff] %v825_v53  ;;  %v827_v54 = vld [vmem:[%s4348_s7 + $0x360] sm:$0xff]  ;;  %v829_v55 = vld [vmem:[%s4348_s7 + $0x370] sm:$0xff] }
  0x34   : > { %v831_v56 = vld [vmem:[%s4348_s7 + $0x380] sm:$0xff]  ;;  %828 = vst [vmem:[%s4353_s8 + $0x1b0] sm:$0xff] %v827_v54  ;;  %830 = vst [vmem:[%s4353_s8 + $0x1b8] sm:$0xff] %v829_v55  ;;  %v833_v57 = vld [vmem:[%s4348_s7 + $0x390] sm:$0xff] }
  0x35   : > { %832 = vst [vmem:[%s4353_s8 + $0x1c0] sm:$0xff] %v831_v56  ;;  %v835_v58 = vld [vmem:[%s4348_s7 + $0x3a0] sm:$0xff]  ;;  %v837_v59 = vld [vmem:[%s4348_s7 + $0x3b0] sm:$0xff]  ;;  %834 = vst [vmem:[%s4353_s8 + $0x1c8] sm:$0xff] %v833_v57 }
  0x36   : > { %836 = vst [vmem:[%s4353_s8 + $0x1d0] sm:$0xff] %v835_v58  ;;  %838 = vst [vmem:[%s4353_s8 + $0x1d8] sm:$0xff] %v837_v59  ;;  %v839_v60 = vld [vmem:[%s4348_s7 + $0x3c0] sm:$0xff]  ;;  %v841_v61 = vld [vmem:[%s4348_s7 + $0x3d0] sm:$0xff] }
  0x37   : > { %v843_v62 = vld [vmem:[%s4348_s7 + $0x3e0] sm:$0xff]  ;;  %840 = vst [vmem:[%s4353_s8 + $0x1e0] sm:$0xff] %v839_v60  ;;  %842 = vst [vmem:[%s4353_s8 + $0x1e8] sm:$0xff] %v841_v61  ;;  %v845_v63 = vld [vmem:[%s4348_s7 + $0x3f0] sm:$0xff] }
  0x38   : > { %844 = vst [vmem:[%s4353_s8 + $0x1f0] sm:$0xff] %v843_v62  ;;  %v847_v0 = vld [vmem:[%s4348_s7 + $0x400] sm:$0xff]  ;;  %v849_v1 = vld [vmem:[%s4348_s7 + $0x410] sm:$0xff]  ;;  %846 = vst [vmem:[%s4353_s8 + $0x1f8] sm:$0xff] %v845_v63 }
  0x39   : > { %848 = vst [vmem:[%s4353_s8 + $0x200] sm:$0xff] %v847_v0  ;;  %850 = vst [vmem:[%s4353_s8 + $0x208] sm:$0xff] %v849_v1  ;;  %v851_v2 = vld [vmem:[%s4348_s7 + $0x420] sm:$0xff]  ;;  %v853_v3 = vld [vmem:[%s4348_s7 + $0x430] sm:$0xff] }
  0x3a   : > { %v855_v4 = vld [vmem:[%s4348_s7 + $0x440] sm:$0xff]  ;;  %852 = vst [vmem:[%s4353_s8 + $0x210] sm:$0xff] %v851_v2  ;;  %854 = vst [vmem:[%s4353_s8 + $0x218] sm:$0xff] %v853_v3  ;;  %v857_v5 = vld [vmem:[%s4348_s7 + $0x450] sm:$0xff] }
  0x3b   : > { %856 = vst [vmem:[%s4353_s8 + $0x220] sm:$0xff] %v855_v4  ;;  %v859_v6 = vld [vmem:[%s4348_s7 + $0x460] sm:$0xff]  ;;  %v861_v7 = vld [vmem:[%s4348_s7 + $0x470] sm:$0xff]  ;;  %858 = vst [vmem:[%s4353_s8 + $0x228] sm:$0xff] %v857_v5 }
  0x3c   : > { %860 = vst [vmem:[%s4353_s8 + $0x230] sm:$0xff] %v859_v6  ;;  %862 = vst [vmem:[%s4353_s8 + $0x238] sm:$0xff] %v861_v7  ;;  %v863_v8 = vld [vmem:[%s4348_s7 + $0x480] sm:$0xff]  ;;  %v865_v9 = vld [vmem:[%s4348_s7 + $0x490] sm:$0xff] }
  0x3d   : > { %v867_v10 = vld [vmem:[%s4348_s7 + $0x4a0] sm:$0xff]  ;;  %864 = vst [vmem:[%s4353_s8 + $0x240] sm:$0xff] %v863_v8  ;;  %866 = vst [vmem:[%s4353_s8 + $0x248] sm:$0xff] %v865_v9  ;;  %v869_v11 = vld [vmem:[%s4348_s7 + $0x4b0] sm:$0xff] }
  0x3e   : > { %868 = vst [vmem:[%s4353_s8 + $0x250] sm:$0xff] %v867_v10  ;;  %v871_v12 = vld [vmem:[%s4348_s7 + $0x4c0] sm:$0xff]  ;;  %v873_v13 = vld [vmem:[%s4348_s7 + $0x4d0] sm:$0xff]  ;;  %870 = vst [vmem:[%s4353_s8 + $0x258] sm:$0xff] %v869_v11 }
  0x3f   : > { %872 = vst [vmem:[%s4353_s8 + $0x260] sm:$0xff] %v871_v12  ;;  %874 = vst [vmem:[%s4353_s8 + $0x268] sm:$0xff] %v873_v13  ;;  %v875_v14 = vld [vmem:[%s4348_s7 + $0x4e0] sm:$0xff]  ;;  %v877_v15 = vld [vmem:[%s4348_s7 + $0x4f0] sm:$0xff] }
  0x40   : > { %v879_v16 = vld [vmem:[%s4348_s7 + $0x500] sm:$0xff]  ;;  %876 = vst [vmem:[%s4353_s8 + $0x270] sm:$0xff] %v875_v14  ;;  %878 = vst [vmem:[%s4353_s8 + $0x278] sm:$0xff] %v877_v15  ;;  %v881_v17 = vld [vmem:[%s4348_s7 + $0x510] sm:$0xff] }
  0x41   : > { %880 = vst [vmem:[%s4353_s8 + $0x280] sm:$0xff] %v879_v16  ;;  %v883_v18 = vld [vmem:[%s4348_s7 + $0x520] sm:$0xff]  ;;  %v885_v19 = vld [vmem:[%s4348_s7 + $0x530] sm:$0xff]  ;;  %882 = vst [vmem:[%s4353_s8 + $0x288] sm:$0xff] %v881_v17 }
  0x42   : > { %884 = vst [vmem:[%s4353_s8 + $0x290] sm:$0xff] %v883_v18  ;;  %886 = vst [vmem:[%s4353_s8 + $0x298] sm:$0xff] %v885_v19  ;;  %v887_v20 = vld [vmem:[%s4348_s7 + $0x540] sm:$0xff]  ;;  %v889_v21 = vld [vmem:[%s4348_s7 + $0x550] sm:$0xff] }
  0x43   : > { %v891_v22 = vld [vmem:[%s4348_s7 + $0x560] sm:$0xff]  ;;  %888 = vst [vmem:[%s4353_s8 + $0x2a0] sm:$0xff] %v887_v20  ;;  %890 = vst [vmem:[%s4353_s8 + $0x2a8] sm:$0xff] %v889_v21  ;;  %v893_v23 = vld [vmem:[%s4348_s7 + $0x570] sm:$0xff] }
  0x44   : > { %892 = vst [vmem:[%s4353_s8 + $0x2b0] sm:$0xff] %v891_v22  ;;  %v895_v24 = vld [vmem:[%s4348_s7 + $0x580] sm:$0xff]  ;;  %v897_v25 = vld [vmem:[%s4348_s7 + $0x590] sm:$0xff]  ;;  %894 = vst [vmem:[%s4353_s8 + $0x2b8] sm:$0xff] %v893_v23 }
  0x45   : > { %896 = vst [vmem:[%s4353_s8 + $0x2c0] sm:$0xff] %v895_v24  ;;  %898 = vst [vmem:[%s4353_s8 + $0x2c8] sm:$0xff] %v897_v25  ;;  %v899_v26 = vld [vmem:[%s4348_s7 + $0x5a0] sm:$0xff]  ;;  %v901_v27 = vld [vmem:[%s4348_s7 + $0x5b0] sm:$0xff] }
  0x46   : > { %v903_v28 = vld [vmem:[%s4348_s7 + $0x5c0] sm:$0xff]  ;;  %900 = vst [vmem:[%s4353_s8 + $0x2d0] sm:$0xff] %v899_v26  ;;  %902 = vst [vmem:[%s4353_s8 + $0x2d8] sm:$0xff] %v901_v27  ;;  %v905_v29 = vld [vmem:[%s4348_s7 + $0x5d0] sm:$0xff] }
  0x47   : > { %904 = vst [vmem:[%s4353_s8 + $0x2e0] sm:$0xff] %v903_v28  ;;  %v907_v30 = vld [vmem:[%s4348_s7 + $0x5e0] sm:$0xff]  ;;  %v909_v31 = vld [vmem:[%s4348_s7 + $0x5f0] sm:$0xff]  ;;  %906 = vst [vmem:[%s4353_s8 + $0x2e8] sm:$0xff] %v905_v29 }
  0x48   : > { %908 = vst [vmem:[%s4353_s8 + $0x2f0] sm:$0xff] %v907_v30  ;;  %910 = vst [vmem:[%s4353_s8 + $0x2f8] sm:$0xff] %v909_v31  ;;  %v911_v32 = vld [vmem:[%s4348_s7 + $0x600] sm:$0xff]  ;;  %v913_v33 = vld [vmem:[%s4348_s7 + $0x610] sm:$0xff] }
  0x49   : > { %v915_v34 = vld [vmem:[%s4348_s7 + $0x620] sm:$0xff]  ;;  %912 = vst [vmem:[%s4353_s8 + $0x300] sm:$0xff] %v911_v32  ;;  %914 = vst [vmem:[%s4353_s8 + $0x308] sm:$0xff] %v913_v33  ;;  %v917_v35 = vld [vmem:[%s4348_s7 + $0x630] sm:$0xff] }
  0x4a   : > { %916 = vst [vmem:[%s4353_s8 + $0x310] sm:$0xff] %v915_v34  ;;  %v919_v36 = vld [vmem:[%s4348_s7 + $0x640] sm:$0xff]  ;;  %v921_v37 = vld [vmem:[%s4348_s7 + $0x650] sm:$0xff]  ;;  %918 = vst [vmem:[%s4353_s8 + $0x318] sm:$0xff] %v917_v35 }
  0x4b   : > { %920 = vst [vmem:[%s4353_s8 + $0x320] sm:$0xff] %v919_v36  ;;  %922 = vst [vmem:[%s4353_s8 + $0x328] sm:$0xff] %v921_v37  ;;  %v923_v38 = vld [vmem:[%s4348_s7 + $0x660] sm:$0xff]  ;;  %v925_v39 = vld [vmem:[%s4348_s7 + $0x670] sm:$0xff] }
  0x4c   : > { %v927_v40 = vld [vmem:[%s4348_s7 + $0x680] sm:$0xff]  ;;  %924 = vst [vmem:[%s4353_s8 + $0x330] sm:$0xff] %v923_v38  ;;  %926 = vst [vmem:[%s4353_s8 + $0x338] sm:$0xff] %v925_v39  ;;  %v929_v41 = vld [vmem:[%s4348_s7 + $0x690] sm:$0xff] }
  0x4d   : > { %928 = vst [vmem:[%s4353_s8 + $0x340] sm:$0xff] %v927_v40  ;;  %v931_v42 = vld [vmem:[%s4348_s7 + $0x6a0] sm:$0xff]  ;;  %v933_v43 = vld [vmem:[%s4348_s7 + $0x6b0] sm:$0xff]  ;;  %930 = vst [vmem:[%s4353_s8 + $0x348] sm:$0xff] %v929_v41 }
  0x4e   : > { %932 = vst [vmem:[%s4353_s8 + $0x350] sm:$0xff] %v931_v42  ;;  %934 = vst [vmem:[%s4353_s8 + $0x358] sm:$0xff] %v933_v43  ;;  %v935_v44 = vld [vmem:[%s4348_s7 + $0x6c0] sm:$0xff]  ;;  %v937_v45 = vld [vmem:[%s4348_s7 + $0x6d0] sm:$0xff] }
  0x4f   : > { %v939_v46 = vld [vmem:[%s4348_s7 + $0x6e0] sm:$0xff]  ;;  %936 = vst [vmem:[%s4353_s8 + $0x360] sm:$0xff] %v935_v44  ;;  %938 = vst [vmem:[%s4353_s8 + $0x368] sm:$0xff] %v937_v45  ;;  %v941_v47 = vld [vmem:[%s4348_s7 + $0x6f0] sm:$0xff] }
  0x50   : > { %940 = vst [vmem:[%s4353_s8 + $0x370] sm:$0xff] %v939_v46  ;;  %v943_v48 = vld [vmem:[%s4348_s7 + $0x700] sm:$0xff]  ;;  %v945_v49 = vld [vmem:[%s4348_s7 + $0x710] sm:$0xff]  ;;  %942 = vst [vmem:[%s4353_s8 + $0x378] sm:$0xff] %v941_v47 }
  0x51   : > { %944 = vst [vmem:[%s4353_s8 + $0x380] sm:$0xff] %v943_v48  ;;  %946 = vst [vmem:[%s4353_s8 + $0x388] sm:$0xff] %v945_v49  ;;  %v947_v50 = vld [vmem:[%s4348_s7 + $0x720] sm:$0xff]  ;;  %v949_v51 = vld [vmem:[%s4348_s7 + $0x730] sm:$0xff] }
  0x52   : > { %v951_v52 = vld [vmem:[%s4348_s7 + $0x740] sm:$0xff]  ;;  %948 = vst [vmem:[%s4353_s8 + $0x390] sm:$0xff] %v947_v50  ;;  %950 = vst [vmem:[%s4353_s8 + $0x398] sm:$0xff] %v949_v51  ;;  %v953_v53 = vld [vmem:[%s4348_s7 + $0x750] sm:$0xff] }
  0x53   : > { %952 = vst [vmem:[%s4353_s8 + $0x3a0] sm:$0xff] %v951_v52  ;;  %v955_v54 = vld [vmem:[%s4348_s7 + $0x760] sm:$0xff]  ;;  %v957_v55 = vld [vmem:[%s4348_s7 + $0x770] sm:$0xff]  ;;  %954 = vst [vmem:[%s4353_s8 + $0x3a8] sm:$0xff] %v953_v53 }
  0x54   : > { %956 = vst [vmem:[%s4353_s8 + $0x3b0] sm:$0xff] %v955_v54  ;;  %958 = vst [vmem:[%s4353_s8 + $0x3b8] sm:$0xff] %v957_v55  ;;  %v959_v56 = vld [vmem:[%s4348_s7 + $0x780] sm:$0xff]  ;;  %v961_v57 = vld [vmem:[%s4348_s7 + $0x790] sm:$0xff] }
  0x55   : > { %v963_v58 = vld [vmem:[%s4348_s7 + $0x7a0] sm:$0xff]  ;;  %960 = vst [vmem:[%s4353_s8 + $0x3c0] sm:$0xff] %v959_v56  ;;  %962 = vst [vmem:[%s4353_s8 + $0x3c8] sm:$0xff] %v961_v57  ;;  %v965_v59 = vld [vmem:[%s4348_s7 + $0x7b0] sm:$0xff] }
  0x56   : > { %964 = vst [vmem:[%s4353_s8 + $0x3d0] sm:$0xff] %v963_v58  ;;  %v967_v60 = vld [vmem:[%s4348_s7 + $0x7c0] sm:$0xff]  ;;  %v969_v61 = vld [vmem:[%s4348_s7 + $0x7d0] sm:$0xff]  ;;  %966 = vst [vmem:[%s4353_s8 + $0x3d8] sm:$0xff] %v965_v59 }
  0x57   : > { %968 = vst [vmem:[%s4353_s8 + $0x3e0] sm:$0xff] %v967_v60  ;;  %970 = vst [vmem:[%s4353_s8 + $0x3e8] sm:$0xff] %v969_v61  ;;  %v971_v62 = vld [vmem:[%s4348_s7 + $0x7e0] sm:$0xff]  ;;  %v973_v63 = vld [vmem:[%s4348_s7 + $0x7f0] sm:$0xff] }
  0x58   : > { %v975_v0 = vld [vmem:[%s4348_s7 + $0x800] sm:$0xff]  ;;  %972 = vst [vmem:[%s4353_s8 + $0x3f0] sm:$0xff] %v971_v62  ;;  %974 = vst [vmem:[%s4353_s8 + $0x3f8] sm:$0xff] %v973_v63  ;;  %v977_v1 = vld [vmem:[%s4348_s7 + $0x810] sm:$0xff] }
  0x59   : > { %976 = vst [vmem:[%s4353_s8 + $0x400] sm:$0xff] %v975_v0  ;;  %v979_v2 = vld [vmem:[%s4348_s7 + $0x820] sm:$0xff]  ;;  %v981_v3 = vld [vmem:[%s4348_s7 + $0x830] sm:$0xff]  ;;  %978 = vst [vmem:[%s4353_s8 + $0x408] sm:$0xff] %v977_v1 }
  0x5a   : > { %980 = vst [vmem:[%s4353_s8 + $0x410] sm:$0xff] %v979_v2  ;;  %982 = vst [vmem:[%s4353_s8 + $0x418] sm:$0xff] %v981_v3  ;;  %v983_v4 = vld [vmem:[%s4348_s7 + $0x840] sm:$0xff]  ;;  %v985_v5 = vld [vmem:[%s4348_s7 + $0x850] sm:$0xff] }
  0x5b   : > { %v987_v6 = vld [vmem:[%s4348_s7 + $0x860] sm:$0xff]  ;;  %984 = vst [vmem:[%s4353_s8 + $0x420] sm:$0xff] %v983_v4  ;;  %986 = vst [vmem:[%s4353_s8 + $0x428] sm:$0xff] %v985_v5  ;;  %v989_v7 = vld [vmem:[%s4348_s7 + $0x870] sm:$0xff] }
  0x5c   : > { %988 = vst [vmem:[%s4353_s8 + $0x430] sm:$0xff] %v987_v6  ;;  %v991_v8 = vld [vmem:[%s4348_s7 + $0x880] sm:$0xff]  ;;  %v993_v9 = vld [vmem:[%s4348_s7 + $0x890] sm:$0xff]  ;;  %990 = vst [vmem:[%s4353_s8 + $0x438] sm:$0xff] %v989_v7 }
  0x5d   : > { %992 = vst [vmem:[%s4353_s8 + $0x440] sm:$0xff] %v991_v8  ;;  %994 = vst [vmem:[%s4353_s8 + $0x448] sm:$0xff] %v993_v9  ;;  %v995_v10 = vld [vmem:[%s4348_s7 + $0x8a0] sm:$0xff]  ;;  %v997_v11 = vld [vmem:[%s4348_s7 + $0x8b0] sm:$0xff] }
  0x5e   : > { %v999_v12 = vld [vmem:[%s4348_s7 + $0x8c0] sm:$0xff]  ;;  %996 = vst [vmem:[%s4353_s8 + $0x450] sm:$0xff] %v995_v10  ;;  %998 = vst [vmem:[%s4353_s8 + $0x458] sm:$0xff] %v997_v11  ;;  %v1001_v13 = vld [vmem:[%s4348_s7 + $0x8d0] sm:$0xff] }
  0x5f   : > { %1000 = vst [vmem:[%s4353_s8 + $0x460] sm:$0xff] %v999_v12  ;;  %v1003_v14 = vld [vmem:[%s4348_s7 + $0x8e0] sm:$0xff]  ;;  %v1005_v15 = vld [vmem:[%s4348_s7 + $0x8f0] sm:$0xff]  ;;  %1002 = vst [vmem:[%s4353_s8 + $0x468] sm:$0xff] %v1001_v13 }
  0x60   : > { %1004 = vst [vmem:[%s4353_s8 + $0x470] sm:$0xff] %v1003_v14  ;;  %1006 = vst [vmem:[%s4353_s8 + $0x478] sm:$0xff] %v1005_v15  ;;  %v1007_v16 = vld [vmem:[%s4348_s7 + $0x900] sm:$0xff]  ;;  %v1009_v17 = vld [vmem:[%s4348_s7 + $0x910] sm:$0xff] }
  0x61   : > { %v1011_v18 = vld [vmem:[%s4348_s7 + $0x920] sm:$0xff]  ;;  %1008 = vst [vmem:[%s4353_s8 + $0x480] sm:$0xff] %v1007_v16  ;;  %1010 = vst [vmem:[%s4353_s8 + $0x488] sm:$0xff] %v1009_v17  ;;  %v1013_v19 = vld [vmem:[%s4348_s7 + $0x930] sm:$0xff] }
  0x62   : > { %1012 = vst [vmem:[%s4353_s8 + $0x490] sm:$0xff] %v1011_v18  ;;  %v1015_v20 = vld [vmem:[%s4348_s7 + $0x940] sm:$0xff]  ;;  %v1017_v21 = vld [vmem:[%s4348_s7 + $0x950] sm:$0xff]  ;;  %1014 = vst [vmem:[%s4353_s8 + $0x498] sm:$0xff] %v1013_v19 }
  0x63   : > { %1016 = vst [vmem:[%s4353_s8 + $0x4a0] sm:$0xff] %v1015_v20  ;;  %1018 = vst [vmem:[%s4353_s8 + $0x4a8] sm:$0xff] %v1017_v21  ;;  %v1019_v22 = vld [vmem:[%s4348_s7 + $0x960] sm:$0xff]  ;;  %v1021_v23 = vld [vmem:[%s4348_s7 + $0x970] sm:$0xff] }
  0x64   : > { %v1023_v24 = vld [vmem:[%s4348_s7 + $0x980] sm:$0xff]  ;;  %1020 = vst [vmem:[%s4353_s8 + $0x4b0] sm:$0xff] %v1019_v22  ;;  %1022 = vst [vmem:[%s4353_s8 + $0x4b8] sm:$0xff] %v1021_v23  ;;  %v1025_v25 = vld [vmem:[%s4348_s7 + $0x990] sm:$0xff] }
  0x65   : > { %1024 = vst [vmem:[%s4353_s8 + $0x4c0] sm:$0xff] %v1023_v24  ;;  %v1027_v26 = vld [vmem:[%s4348_s7 + $0x9a0] sm:$0xff]  ;;  %v1029_v27 = vld [vmem:[%s4348_s7 + $0x9b0] sm:$0xff]  ;;  %1026 = vst [vmem:[%s4353_s8 + $0x4c8] sm:$0xff] %v1025_v25 }
  0x66   : > { %1028 = vst [vmem:[%s4353_s8 + $0x4d0] sm:$0xff] %v1027_v26  ;;  %1030 = vst [vmem:[%s4353_s8 + $0x4d8] sm:$0xff] %v1029_v27  ;;  %v1031_v28 = vld [vmem:[%s4348_s7 + $0x9c0] sm:$0xff]  ;;  %v1033_v29 = vld [vmem:[%s4348_s7 + $0x9d0] sm:$0xff] }
  0x67   : > { %v1035_v30 = vld [vmem:[%s4348_s7 + $0x9e0] sm:$0xff]  ;;  %1032 = vst [vmem:[%s4353_s8 + $0x4e0] sm:$0xff] %v1031_v28  ;;  %1034 = vst [vmem:[%s4353_s8 + $0x4e8] sm:$0xff] %v1033_v29  ;;  %v1037_v31 = vld [vmem:[%s4348_s7 + $0x9f0] sm:$0xff] }
  0x68   : > { %1036 = vst [vmem:[%s4353_s8 + $0x4f0] sm:$0xff] %v1035_v30  ;;  %v1039_v32 = vld [vmem:[%s4348_s7 + $0xa00] sm:$0xff]  ;;  %v1041_v33 = vld [vmem:[%s4348_s7 + $0xa10] sm:$0xff]  ;;  %1038 = vst [vmem:[%s4353_s8 + $0x4f8] sm:$0xff] %v1037_v31 }
  0x69   : > { %1040 = vst [vmem:[%s4353_s8 + $0x500] sm:$0xff] %v1039_v32  ;;  %1042 = vst [vmem:[%s4353_s8 + $0x508] sm:$0xff] %v1041_v33  ;;  %v1043_v34 = vld [vmem:[%s4348_s7 + $0xa20] sm:$0xff]  ;;  %v1045_v35 = vld [vmem:[%s4348_s7 + $0xa30] sm:$0xff] }
  0x6a   : > { %v1047_v36 = vld [vmem:[%s4348_s7 + $0xa40] sm:$0xff]  ;;  %1044 = vst [vmem:[%s4353_s8 + $0x510] sm:$0xff] %v1043_v34  ;;  %1046 = vst [vmem:[%s4353_s8 + $0x518] sm:$0xff] %v1045_v35  ;;  %v1049_v37 = vld [vmem:[%s4348_s7 + $0xa50] sm:$0xff] }
  0x6b   : > { %1048 = vst [vmem:[%s4353_s8 + $0x520] sm:$0xff] %v1047_v36  ;;  %v1051_v38 = vld [vmem:[%s4348_s7 + $0xa60] sm:$0xff]  ;;  %v1053_v39 = vld [vmem:[%s4348_s7 + $0xa70] sm:$0xff]  ;;  %1050 = vst [vmem:[%s4353_s8 + $0x528] sm:$0xff] %v1049_v37 }
  0x6c   : > { %1052 = vst [vmem:[%s4353_s8 + $0x530] sm:$0xff] %v1051_v38  ;;  %1054 = vst [vmem:[%s4353_s8 + $0x538] sm:$0xff] %v1053_v39  ;;  %v1055_v40 = vld [vmem:[%s4348_s7 + $0xa80] sm:$0xff]  ;;  %v1057_v41 = vld [vmem:[%s4348_s7 + $0xa90] sm:$0xff] }
  0x6d   : > { %v1059_v42 = vld [vmem:[%s4348_s7 + $0xaa0] sm:$0xff]  ;;  %1056 = vst [vmem:[%s4353_s8 + $0x540] sm:$0xff] %v1055_v40  ;;  %1058 = vst [vmem:[%s4353_s8 + $0x548] sm:$0xff] %v1057_v41  ;;  %v1061_v43 = vld [vmem:[%s4348_s7 + $0xab0] sm:$0xff] }
  0x6e   : > { %1060 = vst [vmem:[%s4353_s8 + $0x550] sm:$0xff] %v1059_v42  ;;  %v1063_v44 = vld [vmem:[%s4348_s7 + $0xac0] sm:$0xff]  ;;  %v1065_v45 = vld [vmem:[%s4348_s7 + $0xad0] sm:$0xff]  ;;  %1062 = vst [vmem:[%s4353_s8 + $0x558] sm:$0xff] %v1061_v43 }
  0x6f   : > { %1064 = vst [vmem:[%s4353_s8 + $0x560] sm:$0xff] %v1063_v44  ;;  %1066 = vst [vmem:[%s4353_s8 + $0x568] sm:$0xff] %v1065_v45  ;;  %v1067_v46 = vld [vmem:[%s4348_s7 + $0xae0] sm:$0xff]  ;;  %v1069_v47 = vld [vmem:[%s4348_s7 + $0xaf0] sm:$0xff] }
  0x70   : > { %v1071_v48 = vld [vmem:[%s4348_s7 + $0xb00] sm:$0xff]  ;;  %1068 = vst [vmem:[%s4353_s8 + $0x570] sm:$0xff] %v1067_v46  ;;  %1070 = vst [vmem:[%s4353_s8 + $0x578] sm:$0xff] %v1069_v47  ;;  %v1073_v49 = vld [vmem:[%s4348_s7 + $0xb10] sm:$0xff] }
  0x71   : > { %1072 = vst [vmem:[%s4353_s8 + $0x580] sm:$0xff] %v1071_v48  ;;  %v1075_v50 = vld [vmem:[%s4348_s7 + $0xb20] sm:$0xff]  ;;  %v1077_v51 = vld [vmem:[%s4348_s7 + $0xb30] sm:$0xff]  ;;  %1074 = vst [vmem:[%s4353_s8 + $0x588] sm:$0xff] %v1073_v49 }
  0x72   : > { %1076 = vst [vmem:[%s4353_s8 + $0x590] sm:$0xff] %v1075_v50  ;;  %1078 = vst [vmem:[%s4353_s8 + $0x598] sm:$0xff] %v1077_v51  ;;  %v1079_v52 = vld [vmem:[%s4348_s7 + $0xb40] sm:$0xff]  ;;  %v1081_v53 = vld [vmem:[%s4348_s7 + $0xb50] sm:$0xff] }
  0x73   : > { %v1083_v54 = vld [vmem:[%s4348_s7 + $0xb60] sm:$0xff]  ;;  %1080 = vst [vmem:[%s4353_s8 + $0x5a0] sm:$0xff] %v1079_v52  ;;  %1082 = vst [vmem:[%s4353_s8 + $0x5a8] sm:$0xff] %v1081_v53  ;;  %v1085_v55 = vld [vmem:[%s4348_s7 + $0xb70] sm:$0xff] }
  0x74   : > { %1084 = vst [vmem:[%s4353_s8 + $0x5b0] sm:$0xff] %v1083_v54  ;;  %v1087_v56 = vld [vmem:[%s4348_s7 + $0xb80] sm:$0xff]  ;;  %v1089_v57 = vld [vmem:[%s4348_s7 + $0xb90] sm:$0xff]  ;;  %1086 = vst [vmem:[%s4353_s8 + $0x5b8] sm:$0xff] %v1085_v55 }
  0x75   : > { %1088 = vst [vmem:[%s4353_s8 + $0x5c0] sm:$0xff] %v1087_v56  ;;  %1090 = vst [vmem:[%s4353_s8 + $0x5c8] sm:$0xff] %v1089_v57  ;;  %v1091_v58 = vld [vmem:[%s4348_s7 + $0xba0] sm:$0xff]  ;;  %v1093_v59 = vld [vmem:[%s4348_s7 + $0xbb0] sm:$0xff] }
  0x76   : > { %v1095_v60 = vld [vmem:[%s4348_s7 + $0xbc0] sm:$0xff]  ;;  %1092 = vst [vmem:[%s4353_s8 + $0x5d0] sm:$0xff] %v1091_v58  ;;  %1094 = vst [vmem:[%s4353_s8 + $0x5d8] sm:$0xff] %v1093_v59  ;;  %v1097_v61 = vld [vmem:[%s4348_s7 + $0xbd0] sm:$0xff] }
  0x77   : > { %1096 = vst [vmem:[%s4353_s8 + $0x5e0] sm:$0xff] %v1095_v60  ;;  %v1099_v62 = vld [vmem:[%s4348_s7 + $0xbe0] sm:$0xff]  ;;  %v1101_v63 = vld [vmem:[%s4348_s7 + $0xbf0] sm:$0xff]  ;;  %1098 = vst [vmem:[%s4353_s8 + $0x5e8] sm:$0xff] %v1097_v61 }
  0x78   : > { %1100 = vst [vmem:[%s4353_s8 + $0x5f0] sm:$0xff] %v1099_v62  ;;  %1102 = vst [vmem:[%s4353_s8 + $0x5f8] sm:$0xff] %v1101_v63  ;;  %v1103_v0 = vld [vmem:[%s4348_s7 + $0xc00] sm:$0xff]  ;;  %v1105_v1 = vld [vmem:[%s4348_s7 + $0xc10] sm:$0xff] }
  0x79   : > { %v1107_v2 = vld [vmem:[%s4348_s7 + $0xc20] sm:$0xff]  ;;  %1104 = vst [vmem:[%s4353_s8 + $0x600] sm:$0xff] %v1103_v0  ;;  %1106 = vst [vmem:[%s4353_s8 + $0x608] sm:$0xff] %v1105_v1  ;;  %v1109_v3 = vld [vmem:[%s4348_s7 + $0xc30] sm:$0xff] }
  0x7a   : > { %1108 = vst [vmem:[%s4353_s8 + $0x610] sm:$0xff] %v1107_v2  ;;  %v1111_v4 = vld [vmem:[%s4348_s7 + $0xc40] sm:$0xff]  ;;  %v1113_v5 = vld [vmem:[%s4348_s7 + $0xc50] sm:$0xff]  ;;  %1110 = vst [vmem:[%s4353_s8 + $0x618] sm:$0xff] %v1109_v3 }
  0x7b   : > { %1112 = vst [vmem:[%s4353_s8 + $0x620] sm:$0xff] %v1111_v4  ;;  %1114 = vst [vmem:[%s4353_s8 + $0x628] sm:$0xff] %v1113_v5  ;;  %v1115_v6 = vld [vmem:[%s4348_s7 + $0xc60] sm:$0xff]  ;;  %v1117_v7 = vld [vmem:[%s4348_s7 + $0xc70] sm:$0xff] }
  0x7c   : > { %v1119_v8 = vld [vmem:[%s4348_s7 + $0xc80] sm:$0xff]  ;;  %1116 = vst [vmem:[%s4353_s8 + $0x630] sm:$0xff] %v1115_v6  ;;  %1118 = vst [vmem:[%s4353_s8 + $0x638] sm:$0xff] %v1117_v7  ;;  %v1121_v9 = vld [vmem:[%s4348_s7 + $0xc90] sm:$0xff] }
  0x7d   : > { %1120 = vst [vmem:[%s4353_s8 + $0x640] sm:$0xff] %v1119_v8  ;;  %v1123_v10 = vld [vmem:[%s4348_s7 + $0xca0] sm:$0xff]  ;;  %v1125_v11 = vld [vmem:[%s4348_s7 + $0xcb0] sm:$0xff]  ;;  %1122 = vst [vmem:[%s4353_s8 + $0x648] sm:$0xff] %v1121_v9 }
  0x7e   : > { %1124 = vst [vmem:[%s4353_s8 + $0x650] sm:$0xff] %v1123_v10  ;;  %1126 = vst [vmem:[%s4353_s8 + $0x658] sm:$0xff] %v1125_v11  ;;  %v1127_v12 = vld [vmem:[%s4348_s7 + $0xcc0] sm:$0xff]  ;;  %v1129_v13 = vld [vmem:[%s4348_s7 + $0xcd0] sm:$0xff] }
  0x7f   : > { %v1131_v14 = vld [vmem:[%s4348_s7 + $0xce0] sm:$0xff]  ;;  %1128 = vst [vmem:[%s4353_s8 + $0x660] sm:$0xff] %v1127_v12  ;;  %1130 = vst [vmem:[%s4353_s8 + $0x668] sm:$0xff] %v1129_v13  ;;  %v1133_v15 = vld [vmem:[%s4348_s7 + $0xcf0] sm:$0xff] }
  0x80   : > { %1132 = vst [vmem:[%s4353_s8 + $0x670] sm:$0xff] %v1131_v14  ;;  %v1135_v16 = vld [vmem:[%s4348_s7 + $0xd00] sm:$0xff]  ;;  %v1137_v17 = vld [vmem:[%s4348_s7 + $0xd10] sm:$0xff]  ;;  %1134 = vst [vmem:[%s4353_s8 + $0x678] sm:$0xff] %v1133_v15 }
  0x81   : > { %1136 = vst [vmem:[%s4353_s8 + $0x680] sm:$0xff] %v1135_v16  ;;  %1138 = vst [vmem:[%s4353_s8 + $0x688] sm:$0xff] %v1137_v17  ;;  %v1139_v18 = vld [vmem:[%s4348_s7 + $0xd20] sm:$0xff]  ;;  %v1141_v19 = vld [vmem:[%s4348_s7 + $0xd30] sm:$0xff] }
  0x82   : > { %v1143_v20 = vld [vmem:[%s4348_s7 + $0xd40] sm:$0xff]  ;;  %1140 = vst [vmem:[%s4353_s8 + $0x690] sm:$0xff] %v1139_v18  ;;  %1142 = vst [vmem:[%s4353_s8 + $0x698] sm:$0xff] %v1141_v19  ;;  %v1145_v21 = vld [vmem:[%s4348_s7 + $0xd50] sm:$0xff] }
  0x83   : > { %1144 = vst [vmem:[%s4353_s8 + $0x6a0] sm:$0xff] %v1143_v20  ;;  %v1147_v22 = vld [vmem:[%s4348_s7 + $0xd60] sm:$0xff]  ;;  %v1149_v23 = vld [vmem:[%s4348_s7 + $0xd70] sm:$0xff]  ;;  %1146 = vst [vmem:[%s4353_s8 + $0x6a8] sm:$0xff] %v1145_v21 }
  0x84   : > { %1148 = vst [vmem:[%s4353_s8 + $0x6b0] sm:$0xff] %v1147_v22  ;;  %1150 = vst [vmem:[%s4353_s8 + $0x6b8] sm:$0xff] %v1149_v23  ;;  %v1151_v24 = vld [vmem:[%s4348_s7 + $0xd80] sm:$0xff]  ;;  %v1153_v25 = vld [vmem:[%s4348_s7 + $0xd90] sm:$0xff] }
  0x85   : > { %v1155_v26 = vld [vmem:[%s4348_s7 + $0xda0] sm:$0xff]  ;;  %1152 = vst [vmem:[%s4353_s8 + $0x6c0] sm:$0xff] %v1151_v24  ;;  %1154 = vst [vmem:[%s4353_s8 + $0x6c8] sm:$0xff] %v1153_v25  ;;  %v1157_v27 = vld [vmem:[%s4348_s7 + $0xdb0] sm:$0xff] }
  0x86   : > { %1156 = vst [vmem:[%s4353_s8 + $0x6d0] sm:$0xff] %v1155_v26  ;;  %v1159_v28 = vld [vmem:[%s4348_s7 + $0xdc0] sm:$0xff]  ;;  %v1161_v29 = vld [vmem:[%s4348_s7 + $0xdd0] sm:$0xff]  ;;  %1158 = vst [vmem:[%s4353_s8 + $0x6d8] sm:$0xff] %v1157_v27 }
  0x87   : > { %1160 = vst [vmem:[%s4353_s8 + $0x6e0] sm:$0xff] %v1159_v28  ;;  %1162 = vst [vmem:[%s4353_s8 + $0x6e8] sm:$0xff] %v1161_v29  ;;  %v1163_v30 = vld [vmem:[%s4348_s7 + $0xde0] sm:$0xff]  ;;  %v1165_v31 = vld [vmem:[%s4348_s7 + $0xdf0] sm:$0xff] }
  0x88   : > { %v1167_v32 = vld [vmem:[%s4348_s7 + $0xe00] sm:$0xff]  ;;  %1164 = vst [vmem:[%s4353_s8 + $0x6f0] sm:$0xff] %v1163_v30  ;;  %1166 = vst [vmem:[%s4353_s8 + $0x6f8] sm:$0xff] %v1165_v31  ;;  %v1169_v33 = vld [vmem:[%s4348_s7 + $0xe10] sm:$0xff] }
  0x89   : > { %1168 = vst [vmem:[%s4353_s8 + $0x700] sm:$0xff] %v1167_v32  ;;  %v1171_v34 = vld [vmem:[%s4348_s7 + $0xe20] sm:$0xff]  ;;  %v1173_v35 = vld [vmem:[%s4348_s7 + $0xe30] sm:$0xff]  ;;  %1170 = vst [vmem:[%s4353_s8 + $0x708] sm:$0xff] %v1169_v33 }
  0x8a   : > { %1172 = vst [vmem:[%s4353_s8 + $0x710] sm:$0xff] %v1171_v34  ;;  %1174 = vst [vmem:[%s4353_s8 + $0x718] sm:$0xff] %v1173_v35  ;;  %v1175_v36 = vld [vmem:[%s4348_s7 + $0xe40] sm:$0xff]  ;;  %v1177_v37 = vld [vmem:[%s4348_s7 + $0xe50] sm:$0xff] }
  0x8b   : > { %v1179_v38 = vld [vmem:[%s4348_s7 + $0xe60] sm:$0xff]  ;;  %1176 = vst [vmem:[%s4353_s8 + $0x720] sm:$0xff] %v1175_v36  ;;  %1178 = vst [vmem:[%s4353_s8 + $0x728] sm:$0xff] %v1177_v37  ;;  %v1181_v39 = vld [vmem:[%s4348_s7 + $0xe70] sm:$0xff] }
  0x8c   : > { %1180 = vst [vmem:[%s4353_s8 + $0x730] sm:$0xff] %v1179_v38  ;;  %v1183_v40 = vld [vmem:[%s4348_s7 + $0xe80] sm:$0xff]  ;;  %v1185_v41 = vld [vmem:[%s4348_s7 + $0xe90] sm:$0xff]  ;;  %1182 = vst [vmem:[%s4353_s8 + $0x738] sm:$0xff] %v1181_v39 }
  0x8d   : > { %1184 = vst [vmem:[%s4353_s8 + $0x740] sm:$0xff] %v1183_v40  ;;  %1186 = vst [vmem:[%s4353_s8 + $0x748] sm:$0xff] %v1185_v41  ;;  %v1187_v42 = vld [vmem:[%s4348_s7 + $0xea0] sm:$0xff]  ;;  %v1189_v43 = vld [vmem:[%s4348_s7 + $0xeb0] sm:$0xff] }
  0x8e   : > { %v1191_v44 = vld [vmem:[%s4348_s7 + $0xec0] sm:$0xff]  ;;  %1188 = vst [vmem:[%s4353_s8 + $0x750] sm:$0xff] %v1187_v42  ;;  %1190 = vst [vmem:[%s4353_s8 + $0x758] sm:$0xff] %v1189_v43  ;;  %v1193_v45 = vld [vmem:[%s4348_s7 + $0xed0] sm:$0xff] }
  0x8f   : > { %1192 = vst [vmem:[%s4353_s8 + $0x760] sm:$0xff] %v1191_v44  ;;  %v1195_v46 = vld [vmem:[%s4348_s7 + $0xee0] sm:$0xff]  ;;  %v1197_v47 = vld [vmem:[%s4348_s7 + $0xef0] sm:$0xff]  ;;  %1194 = vst [vmem:[%s4353_s8 + $0x768] sm:$0xff] %v1193_v45 }
  0x90   : > { %1196 = vst [vmem:[%s4353_s8 + $0x770] sm:$0xff] %v1195_v46  ;;  %1198 = vst [vmem:[%s4353_s8 + $0x778] sm:$0xff] %v1197_v47  ;;  %v1199_v48 = vld [vmem:[%s4348_s7 + $0xf00] sm:$0xff]  ;;  %v1201_v49 = vld [vmem:[%s4348_s7 + $0xf10] sm:$0xff] }
  0x91   : > { %v1203_v50 = vld [vmem:[%s4348_s7 + $0xf20] sm:$0xff]  ;;  %1200 = vst [vmem:[%s4353_s8 + $0x780] sm:$0xff] %v1199_v48  ;;  %1202 = vst [vmem:[%s4353_s8 + $0x788] sm:$0xff] %v1201_v49  ;;  %v1205_v51 = vld [vmem:[%s4348_s7 + $0xf30] sm:$0xff] }
  0x92   : > { %1204 = vst [vmem:[%s4353_s8 + $0x790] sm:$0xff] %v1203_v50  ;;  %v1207_v52 = vld [vmem:[%s4348_s7 + $0xf40] sm:$0xff]  ;;  %v1209_v53 = vld [vmem:[%s4348_s7 + $0xf50] sm:$0xff]  ;;  %1206 = vst [vmem:[%s4353_s8 + $0x798] sm:$0xff] %v1205_v51 }
  0x93   : > { %1208 = vst [vmem:[%s4353_s8 + $0x7a0] sm:$0xff] %v1207_v52  ;;  %1210 = vst [vmem:[%s4353_s8 + $0x7a8] sm:$0xff] %v1209_v53  ;;  %v1211_v54 = vld [vmem:[%s4348_s7 + $0xf60] sm:$0xff]  ;;  %v1213_v55 = vld [vmem:[%s4348_s7 + $0xf70] sm:$0xff] }
  0x94   : > { %v1215_v56 = vld [vmem:[%s4348_s7 + $0xf80] sm:$0xff]  ;;  %1212 = vst [vmem:[%s4353_s8 + $0x7b0] sm:$0xff] %v1211_v54  ;;  %1214 = vst [vmem:[%s4353_s8 + $0x7b8] sm:$0xff] %v1213_v55  ;;  %v1217_v57 = vld [vmem:[%s4348_s7 + $0xf90] sm:$0xff] }
  0x95   : > { %1216 = vst [vmem:[%s4353_s8 + $0x7c0] sm:$0xff] %v1215_v56  ;;  %v1219_v58 = vld [vmem:[%s4348_s7 + $0xfa0] sm:$0xff]  ;;  %v1221_v59 = vld [vmem:[%s4348_s7 + $0xfb0] sm:$0xff]  ;;  %1218 = vst [vmem:[%s4353_s8 + $0x7c8] sm:$0xff] %v1217_v57 }
  0x96   : > { %1220 = vst [vmem:[%s4353_s8 + $0x7d0] sm:$0xff] %v1219_v58  ;;  %1222 = vst [vmem:[%s4353_s8 + $0x7d8] sm:$0xff] %v1221_v59  ;;  %v1223_v60 = vld [vmem:[%s4348_s7 + $0xfc0] sm:$0xff]  ;;  %v1225_v61 = vld [vmem:[%s4348_s7 + $0xfd0] sm:$0xff] }
  0x97   : > { %v1227_v62 = vld [vmem:[%s4348_s7 + $0xfe0] sm:$0xff]  ;;  %1224 = vst [vmem:[%s4353_s8 + $0x7e0] sm:$0xff] %v1223_v60  ;;  %1226 = vst [vmem:[%s4353_s8 + $0x7e8] sm:$0xff] %v1225_v61  ;;  %v1229_v63 = vld [vmem:[%s4348_s7 + $0xff0] sm:$0xff] }
  0x98   : > { %1228 = vst [vmem:[%s4353_s8 + $0x7f0] sm:$0xff] %v1227_v62  ;;  %1230 = vst [vmem:[%s4353_s8 + $0x7f8] sm:$0xff] %v1229_v63 }
  0x99 PF: > { %p3471_p7 = scmp.ge.s32.totalorder %s4263_s18, 1  ;;  %p1243_p8 = scmp.lt.s32.totalorder %s4263_s18, 19 }
  0x9b   : > { %p1244_p9 = pnand %p3471_p7, %p1243_p8 }
  0x9c   : > { %s1250_s9 = sand.u32 (!%p1244_p9), 1, %s4239_s12   ;;  %s3473_s10 = sshll.u32 (!%p1244_p9), %s4247_s14, 4 }
  0x9d   : > { %1247 = sbr.rel (%p1244_p9) target bundleno = 663 (0x297), region = 66  ;;  %s3472_s11 = sshll.u32 (!%p1244_p9), %s1250_s9, 11 }
  0x9e   : > { %p1292_p10 = scmp.lt.s32.totalorder (!%p1244_p9), %s3473_s10, 143  ;;  %s3474_s21 = sshll.u32 (!%p1244_p9), %s4251_s15, 1 }
  0x9f   : > { %p1301_p11 = scmp.lt.s32.totalorder (!%p1244_p9), %s3474_s21, 3  ;;  %s4886_s4 = scalar_lea.vmem (!%p1244_p9), [#allocation3], %s3472_s11 }
  0xa0   : > { %p3477_p12 = scmp.ne.s32.totalorder (!%p1244_p9), %s4247_s14, 0 }
  0xa4   : > { %s5247_s10 = smov (!%p1292_p10, %s3473_s10), 143  ;;  %s5249_s21 = smov (!%p1301_p11, %s3474_s21), 3 }
  0xa5   : > { %s4872_s24 = scalar_lea.vmem %s5230_s0, %s5247_s10  ;;  %s1303_s28 = scalar_lea.vmem %s5232_s2, %s5249_s21  ;;  %v4265_v0 = vmov (!%p3477_p12), 0.0  }
  0xa6   : > { %s3476_s12 = sshll.u32 %s5249_s21, 1  ;;  %1318 = sbr.rel (%p3477_p12) target bundleno = 173 (0xad), region = 74  ;;  %1319 = vst [vmem:[#allocation2] sm:$0xf] (!%p3477_p12), %v4265_v0 }
  0xa7   : > { %s4884_s15 = scalar_lea.vmem %s5233_s3, %s3476_s12 }
  0xad PF: > { %v3823_v1 = vld [vmem:[%s4886_s4 + $0x4] ss:$8 sps:$4 sm:$0xff]   ;;  %v3827_v3 = vld [vmem:[%s4886_s4] ss:$8 sps:$4 sm:$0xff]   ;;  %v3829_v5 = vld [vmem:[%s4886_s4 + $0x14] ss:$8 sps:$4 sm:$0xff]   ;;  %v1585_v39 = vlaneseq }
  0xae   : > { %v3825_v2 = vld [vmem:[%s4886_s4 + $0x404] ss:$8 sps:$4 sm:$0xff]   ;;  %2975 = vmatprep.subr.bf16.mxu1 %v3823_v1  ;;  %v3828_v4 = vld [vmem:[%s4886_s4 + $0x400] ss:$8 sps:$4 sm:$0xff]   ;;  %v3831_v6 = vld [vmem:[%s4886_s4 + $0x414] ss:$8 sps:$4 sm:$0xff]  }
  0xaf   : > { %3139 = vmatprep.subr.bf16.mxu0 %v3825_v2  ;;  %2976 = vmatpush1.bf16.msra.mxu1 %v3827_v3  ;;  %v3833_v7 = vld [vmem:[%s4886_s4 + $0x10] ss:$8 sps:$4 sm:$0xff]   ;;  %v3835_v9 = vld [vmem:[%s4886_s4 + $0x24] ss:$8 sps:$4 sm:$0xff]   ;;  %v3839_v11 = vld [vmem:[%s4886_s4 + $0x20] ss:$8 sps:$4 sm:$0xff]  }
  0xb0   : > { %3140 = vmatpush1.bf16.msra.mxu0 %v3828_v4  ;;  %2977 = vmatprep.subr.bf16.mxu1 %v3829_v5  ;;  %v3834_v8 = vld [vmem:[%s4886_s4 + $0x410] ss:$8 sps:$4 sm:$0xff]   ;;  %v3837_v10 = vld [vmem:[%s4886_s4 + $0x424] ss:$8 sps:$4 sm:$0xff]   ;;  %v3840_v12 = vld [vmem:[%s4886_s4 + $0x420] ss:$8 sps:$4 sm:$0xff]  }
  0xb1   : > { %3141 = vmatprep.subr.bf16.mxu0 %v3831_v6  ;;  %v3841_v13 = vld [vmem:[%s4886_s4 + $0x34] ss:$8 sps:$4 sm:$0xff]   ;;  %v3845_v15 = vld [vmem:[%s4886_s4 + $0x30] ss:$8 sps:$4 sm:$0xff]   ;;  %v3847_v17 = vld [vmem:[%s4886_s4 + $0x44] ss:$8 sps:$4 sm:$0xff]  }
  0xb2   : > { %v3843_v14 = vld [vmem:[%s4886_s4 + $0x434] ss:$8 sps:$4 sm:$0xff]   ;;  %v3846_v16 = vld [vmem:[%s4886_s4 + $0x430] ss:$8 sps:$4 sm:$0xff]   ;;  %v3849_v18 = vld [vmem:[%s4886_s4 + $0x444] ss:$8 sps:$4 sm:$0xff]  }
  0xb3   : > { %2978 = vmatpush1.bf16.msra.mxu1 %v3833_v7  ;;  %v3851_v19 = vld [vmem:[%s4886_s4 + $0x40] ss:$8 sps:$4 sm:$0xff]   ;;  %v3853_v21 = vld [vmem:[%s4886_s4 + $0x54] ss:$8 sps:$4 sm:$0xff]   ;;  %v3857_v23 = vld [vmem:[%s4886_s4 + $0x50] ss:$8 sps:$4 sm:$0xff]  }
  0xb4   : > { %3142 = vmatpush1.bf16.msra.mxu0 %v3834_v8  ;;  %2979 = vmatprep.subr.bf16.mxu1 %v3835_v9  ;;  %v3852_v20 = vld [vmem:[%s4886_s4 + $0x440] ss:$8 sps:$4 sm:$0xff]   ;;  %v3855_v22 = vld [vmem:[%s4886_s4 + $0x454] ss:$8 sps:$4 sm:$0xff]   ;;  %v3858_v24 = vld [vmem:[%s4886_s4 + $0x450] ss:$8 sps:$4 sm:$0xff]  }
  0xb5   : > { %3143 = vmatprep.subr.bf16.mxu0 %v3837_v10  ;;  %v3859_v25 = vld [vmem:[%s4886_s4 + $0x64] ss:$8 sps:$4 sm:$0xff]   ;;  %v3863_v27 = vld [vmem:[%s4886_s4 + $0x60] ss:$8 sps:$4 sm:$0xff]   ;;  %v3865_v29 = vld [vmem:[%s4886_s4 + $0x74] ss:$8 sps:$4 sm:$0xff]  }
  0xb6   : > { %v3861_v26 = vld [vmem:[%s4886_s4 + $0x464] ss:$8 sps:$4 sm:$0xff]   ;;  %v3864_v28 = vld [vmem:[%s4886_s4 + $0x460] ss:$8 sps:$4 sm:$0xff]   ;;  %v3867_v30 = vld [vmem:[%s4886_s4 + $0x474] ss:$8 sps:$4 sm:$0xff]  }
  0xb7   : > { %2980 = vmatpush1.bf16.msra.mxu1 %v3839_v11  ;;  %v3869_v31 = vld [vmem:[%s4886_s4 + $0x70] ss:$8 sps:$4 sm:$0xff]   ;;  %v3871_v33 = vld [vmem:[%s4886_s4 + $0x84] ss:$8 sps:$4 sm:$0xff]   ;;  %v3875_v35 = vld [vmem:[%s4886_s4 + $0x80] ss:$8 sps:$4 sm:$0xff]  }
  0xb8   : > { %3144 = vmatpush1.bf16.msra.mxu0 %v3840_v12  ;;  %2981 = vmatprep.subr.bf16.mxu1 %v3841_v13  ;;  %v3870_v32 = vld [vmem:[%s4886_s4 + $0x470] ss:$8 sps:$4 sm:$0xff]   ;;  %v3873_v34 = vld [vmem:[%s4886_s4 + $0x484] ss:$8 sps:$4 sm:$0xff]   ;;  %v3876_v36 = vld [vmem:[%s4886_s4 + $0x480] ss:$8 sps:$4 sm:$0xff]  }
  0xb9   : > { %3145 = vmatprep.subr.bf16.mxu0 %v3843_v14  ;;  %v4266_v37 = vmov 1966171168   ;;  %v3877_v40 = vld [vmem:[%s4886_s4 + $0x94] ss:$8 sps:$4 sm:$0xff]   ;;  %v3881_v42 = vld [vmem:[%s4886_s4 + $0x90] ss:$8 sps:$4 sm:$0xff]  }
  0xba   : > { %v1583_v38 = vunpack.c.l.s4 %v4266_v37  ;;  %v3879_v41 = vld [vmem:[%s4886_s4 + $0x494] ss:$8 sps:$4 sm:$0xff]   ;;  %v4928_v44 = vshrl.u32 %v1585_v39, 7  ;;  %v3882_v45 = vld [vmem:[%s4886_s4 + $0x490] ss:$8 sps:$4 sm:$0xff]   ;;  %v1322_v57 = vld [vmem:[%s4872_s24 + $0x8] sm:$0xff] }
  0xbb   : > { %2982 = vmatpush1.bf16.msra.mxu1 %v3845_v15  ;;  %v3883_v46 = vld [vmem:[%s4886_s4 + $0xa4] ss:$8 sps:$4 sm:$0xff]   ;;  %v3887_v48 = vld [vmem:[%s4886_s4 + $0xa0] ss:$8 sps:$4 sm:$0xff]   ;;  %v3889_v51 = vld [vmem:[%s4886_s4 + $0xb4] ss:$8 sps:$4 sm:$0xff]   ;;  %v1630_v14 = vcombine.high %v1322_v57, %v1322_v57 }
  0xbc   : > { %3146 = vmatpush1.bf16.msra.mxu0 %v3846_v16  ;;  %2983 = vmatprep.subr.bf16.mxu1 %v3847_v17  ;;  %v1584_v43 = vunpack.c.0.s8 %v1583_v38  ;;  %v3885_v47 = vld [vmem:[%s4886_s4 + $0x4a4] ss:$8 sps:$4 sm:$0xff]   ;;  %v3888_v49 = vld [vmem:[%s4886_s4 + $0x4a0] ss:$8 sps:$4 sm:$0xff]   ;;  %v3891_v52 = vld [vmem:[%s4886_s4 + $0x4b4] ss:$8 sps:$4 sm:$0xff]  }
  0xbd   : > { %3147 = vmatprep.subr.bf16.mxu0 %v3849_v18  ;;  %v1321_v53 = vld [vmem:[%s4872_s24] sm:$0xff]  ;;  %v3893_v54 = vld [vmem:[%s4886_s4 + $0xb0] ss:$8 sps:$4 sm:$0xff]   ;;  %v3895_v58 = vld [vmem:[%s4886_s4 + $0xc4] ss:$8 sps:$4 sm:$0xff]   ;;  %p3734_p13 = scmp.ne.s32.totalorder %s4247_s14, 8 }
  0xbe   : > { %v4936_v50 = vsub.s32 %v1584_v43, %v4928_v44  ;;  %v3894_v56 = vld [vmem:[%s4886_s4 + $0x4b0] ss:$8 sps:$4 sm:$0xff]   ;;  %v3897_v59 = vld [vmem:[%s4886_s4 + $0x4c4] ss:$8 sps:$4 sm:$0xff]   ;;  %v3899_v0 = vld [vmem:[%s4886_s4 + $0xc0] ss:$8 sps:$4 sm:$0xff]   ;;  %v1581_v13 = vcombine.high %v1321_v53, %v1321_v53 }
  0xbf   : > { %2984 = vmatpush1.bf16.msra.mxu1 %v3851_v19  ;;  %v3900_v1 = vld [vmem:[%s4886_s4 + $0x4c0] ss:$8 sps:$4 sm:$0xff]   ;;  %v3901_v2 = vld [vmem:[%s4886_s4 + $0xd4] ss:$8 sps:$4 sm:$0xff]   ;;  %v3905_v5 = vld [vmem:[%s4886_s4 + $0xd0] ss:$8 sps:$4 sm:$0xff]  }
  0xc0   : > { %3148 = vmatpush1.bf16.msra.mxu0 %v3852_v20  ;;  %2985 = vmatprep.subr.bf16.mxu1 %v3853_v21  ;;  %v1588_v55 = vrot.slane %v1321_v53, %v4936_v50  ;;  %v1637_v61 = vrot.slane %v1322_v57, %v4936_v50  ;;  %v3903_v3 = vld [vmem:[%s4886_s4 + $0x4d4] ss:$8 sps:$4 sm:$0xff]   ;;  %v3906_v6 = vld [vmem:[%s4886_s4 + $0x4d0] ss:$8 sps:$4 sm:$0xff]   ;;  %v3907_v7 = vld [vmem:[%s4886_s4 + $0xe4] ss:$8 sps:$4 sm:$0xff]   ;;  %v1595_v19 = vrot.slane %v1581_v13, %v4936_v50 }
  0xc1   : > { %3149 = vmatprep.subr.bf16.mxu0 %v3855_v22  ;;  %v3909_v8 = vld [vmem:[%s4886_s4 + $0x4e4] ss:$8 sps:$4 sm:$0xff]   ;;  %v3911_v9 = vld [vmem:[%s4886_s4 + $0xe0] ss:$8 sps:$4 sm:$0xff]   ;;  %v3913_v11 = vld [vmem:[%s4886_s4 + $0xf4] ss:$8 sps:$4 sm:$0xff]   ;;  %v1644_v20 = vrot.slane %v1630_v14, %v4936_v50 }
  0xc2   : > { %v1596_v60 = vcombine.high %v1588_v55, %v1588_v55  ;;  %v1645_v63 = vcombine.high %v1637_v61, %v1637_v61  ;;  %v3912_v10 = vld [vmem:[%s4886_s4 + $0x4e0] ss:$8 sps:$4 sm:$0xff]   ;;  %v3915_v12 = vld [vmem:[%s4886_s4 + $0x4f4] ss:$8 sps:$4 sm:$0xff]   ;;  %v3917_v15 = vld [vmem:[%s4886_s4 + $0xf0] ss:$8 sps:$4 sm:$0xff]   ;;  %v4972_v21 = vrot.slane %v1588_v55, %v4936_v50  ;;  %v4975_v22 = vrot.slane %v1637_v61, %v4936_v50 }
  0xc3   : > { %2986 = vmatpush1.bf16.msra.mxu1 %v3857_v23  ;;  %v3918_v16 = vld [vmem:[%s4886_s4 + $0x4f0] ss:$8 sps:$4 sm:$0xff]   ;;  %v3922_v17 = vld [vmem:[%s4886_s4 + $0x104] ss:$8 sps:$4 sm:$0xff]   ;;  %v1597_v23 = vcombine.high %v1595_v19, %v1595_v19  ;;  %v3933_v39 = vld [vmem:[%s4886_s4 + $0x120] ss:$8 sps:$4 sm:$0xff]  }
  0xc4   : > { %3150 = vmatpush1.bf16.msra.mxu0 %v3858_v24  ;;  %2987 = vmatprep.subr.bf16.mxu1 %v3859_v25  ;;  %v4949_v62 = vrot.slane %v1596_v60, %v4936_v50  ;;  %v1667_v4 = vrot.slane %v1645_v63, %v4936_v50  ;;  %v3926_v18 = vld [vmem:[%s4886_s4 + $0x504] ss:$8 sps:$4 sm:$0xff]   ;;  %v1646_v24 = vcombine.high %v1644_v20, %v1644_v20  ;;  %v3920_v25 = vld [vmem:[%s4886_s4 + $0x100] ss:$8 sps:$4 sm:$0xff]   ;;  %v3939_v43 = vld [vmem:[%s4886_s4 + $0x130] ss:$8 sps:$4 sm:$0xff]  }
  0xc5   : > { %3151 = vmatprep.subr.bf16.mxu0 %v3861_v26  ;;  %v3924_v26 = vld [vmem:[%s4886_s4 + $0x500] ss:$8 sps:$4 sm:$0xff]   ;;  %v3935_v37 = vld [vmem:[%s4886_s4 + $0x124] ss:$8 sps:$4 sm:$0xff]   ;;  %v3954_v53 = vld [vmem:[%s4886_s4 + $0x550] ss:$8 sps:$4 sm:$0xff]  }
  0xc6   : > { %3007 = vmatprep.mubr.bf16.mxu1 %v4949_v62  ;;  %3171 = vmatprep.mubr.bf16.mxu0 %v1667_v4  ;;  %v3938_v38 = vld [vmem:[%s4886_s4 + $0x524] ss:$8 sps:$4 sm:$0xff]   ;;  %v3960_v57 = vld [vmem:[%s4886_s4 + $0x560] ss:$8 sps:$4 sm:$0xff]   ;;  %v3963_v60 = vld [vmem:[%s4886_s4 + $0x170] ss:$8 sps:$4 sm:$0xff]  }
  0xc7   : > { %2988 = vmatpush1.bf16.msra.mxu1 %v3863_v27  ;;  %v3929_v27 = vld [vmem:[%s4886_s4 + $0x114] ss:$8 sps:$4 sm:$0xff]   ;;  %v3962_v55 = vld [vmem:[%s4886_s4 + $0x564] ss:$8 sps:$4 sm:$0xff]   ;;  %v3966_v61 = vld [vmem:[%s4886_s4 + $0x570] ss:$8 sps:$4 sm:$0xff]  }
  0xc8   : > { %3152 = vmatpush1.bf16.msra.mxu0 %v3864_v28  ;;  %2989 = vmatprep.subr.bf16.mxu1 %v3865_v29  ;;  %v3932_v28 = vld [vmem:[%s4886_s4 + $0x514] ss:$8 sps:$4 sm:$0xff]   ;;  %v4982_v29 = vrot.slane %v1597_v23, %v4936_v50  ;;  %v3974_v63 = vld [vmem:[%s4886_s4 + $0x584] ss:$8 sps:$4 sm:$0xff]   ;;  %v3990_v13 = vld [vmem:[%s4886_s4 + $0x5b0] ss:$8 sps:$4 sm:$0xff]  }
  0xc9   : > { %3153 = vmatprep.subr.bf16.mxu0 %v3867_v30  ;;  %v4985_v30 = vrot.slane %v1646_v24, %v4936_v50  ;;  %v3995_v14 = vld [vmem:[%s4886_s4 + $0x1c4] ss:$8 sps:$4 sm:$0xff]   ;;  %v4002_v23 = vld [vmem:[%s4886_s4 + $0x5d0] ss:$8 sps:$4 sm:$0xff]  }
  0xca   : > { %v4007_v24 = vld [vmem:[%s4886_s4 + $0x1e4] ss:$8 sps:$4 sm:$0xff]  }
  0xcb   : > { %2990 = vmatpush1.bf16.msra.mxu1 %v3869_v31  ;;  %v4988_v31 = vrot.slane %v1595_v19, %v4936_v50  ;;  %v4004_v19 = vld [vmem:[%s4886_s4 + $0x5d4] ss:$8 sps:$4 sm:$0xff]  }
  0xcc   : > { %3154 = vmatpush1.bf16.msra.mxu0 %v3870_v32  ;;  %2991 = vmatprep.subr.bf16.mxu1 %v3871_v33  ;;  %v1628_v32 = vcombine.high %v4949_v62, %v4949_v62  ;;  %v1677_v33 = vcombine.high %v1667_v4, %v1667_v4  ;;  %v3971_v62 = vld [vmem:[%s4886_s4 + $0x184] ss:$8 sps:$4 sm:$0xff]   ;;  %v3975_v4 = vld [vmem:[%s4886_s4 + $0x190] ss:$8 sps:$4 sm:$0xff]  }
  0xcd   : > { %3155 = vmatprep.subr.bf16.mxu0 %v3873_v34  ;;  %v4993_v34 = vrot.slane %v1644_v20, %v4936_v50  ;;  %v3953_v50 = vld [vmem:[%s4886_s4 + $0x154] ss:$8 sps:$4 sm:$0xff]   ;;  %v3999_v20 = vld [vmem:[%s4886_s4 + $0x1d0] ss:$8 sps:$4 sm:$0xff]  }
  0xcf   : > { %2992 = vmatpush1.bf16.msra.mxu1 %v3875_v35  ;;  %v3927_v35 = vld [vmem:[%s4886_s4 + $0x110] ss:$8 sps:$4 sm:$0xff]  }
  0xd0   : > { %3156 = vmatpush1.bf16.msra.mxu0 %v3876_v36  ;;  %2993 = vmatprep.subr.bf16.mxu1 %v3877_v40  ;;  %v3930_v36 = vld [vmem:[%s4886_s4 + $0x510] ss:$8 sps:$4 sm:$0xff]   ;;  %v3936_v40 = vld [vmem:[%s4886_s4 + $0x520] ss:$8 sps:$4 sm:$0xff]  }
  0xd1   : > { %3157 = vmatprep.subr.bf16.mxu0 %v3879_v41  ;;  %v3941_v41 = vld [vmem:[%s4886_s4 + $0x134] ss:$8 sps:$4 sm:$0xff]  }
  0xd3   : > { %2994 = vmatpush1.bf16.msra.mxu1 %v3881_v42  ;;  %v3944_v42 = vld [vmem:[%s4886_s4 + $0x534] ss:$8 sps:$4 sm:$0xff]  }
  0xd4   : > { %3158 = vmatpush1.bf16.msra.mxu0 %v3882_v45  ;;  %2995 = vmatprep.subr.bf16.mxu1 %v3883_v46  ;;  %v3942_v45 = vld [vmem:[%s4886_s4 + $0x530] ss:$8 sps:$4 sm:$0xff]   ;;  %v3947_v46 = vld [vmem:[%s4886_s4 + $0x144] ss:$8 sps:$4 sm:$0xff]  }
  0xd5   : > { %3159 = vmatprep.subr.bf16.mxu0 %v3885_v47  ;;  %v3950_v47 = vld [vmem:[%s4886_s4 + $0x544] ss:$8 sps:$4 sm:$0xff]  }
  0xd7   : > { %2996 = vmatpush1.bf16.msra.mxu1 %v3887_v48  ;;  %v3945_v48 = vld [vmem:[%s4886_s4 + $0x140] ss:$8 sps:$4 sm:$0xff]  }
  0xd8   : > { %3160 = vmatpush1.bf16.msra.mxu0 %v3888_v49  ;;  %2997 = vmatprep.subr.bf16.mxu1 %v3889_v51  ;;  %v3948_v49 = vld [vmem:[%s4886_s4 + $0x540] ss:$8 sps:$4 sm:$0xff]   ;;  %v3956_v51 = vld [vmem:[%s4886_s4 + $0x554] ss:$8 sps:$4 sm:$0xff]  }
  0xd9   : > { %3161 = vmatprep.subr.bf16.mxu0 %v3891_v52  ;;  %v3951_v52 = vld [vmem:[%s4886_s4 + $0x150] ss:$8 sps:$4 sm:$0xff]  }
  0xdb   : > { %2998 = vmatpush1.bf16.msra.mxu1 %v3893_v54  ;;  %v3959_v54 = vld [vmem:[%s4886_s4 + $0x164] ss:$8 sps:$4 sm:$0xff]  }
  0xdc   : > { %3162 = vmatpush1.bf16.msra.mxu0 %v3894_v56  ;;  %2999 = vmatprep.subr.bf16.mxu1 %v3895_v58  ;;  %v3957_v56 = vld [vmem:[%s4886_s4 + $0x160] ss:$8 sps:$4 sm:$0xff]   ;;  %v3965_v58 = vld [vmem:[%s4886_s4 + $0x174] ss:$8 sps:$4 sm:$0xff]  }
  0xdd   : > { %3163 = vmatprep.subr.bf16.mxu0 %v3897_v59  ;;  %v3968_v59 = vld [vmem:[%s4886_s4 + $0x574] ss:$8 sps:$4 sm:$0xff]  }
  0xdf   : > { %3000 = vmatpush1.bf16.msra.mxu1 %v3899_v0  ;;  %v3969_v0 = vld [vmem:[%s4886_s4 + $0x180] ss:$8 sps:$4 sm:$0xff]  }
  0xe0   : > { %3164 = vmatpush1.bf16.msra.mxu0 %v3900_v1  ;;  %3001 = vmatprep.subr.bf16.mxu1 %v3901_v2  ;;  %v3972_v1 = vld [vmem:[%s4886_s4 + $0x580] ss:$8 sps:$4 sm:$0xff]   ;;  %v3977_v2 = vld [vmem:[%s4886_s4 + $0x194] ss:$8 sps:$4 sm:$0xff]  }
  0xe1   : > { %3165 = vmatprep.subr.bf16.mxu0 %v3903_v3  ;;  %v3980_v3 = vld [vmem:[%s4886_s4 + $0x594] ss:$8 sps:$4 sm:$0xff]  }
  0xe3   : > { %3002 = vmatpush1.bf16.msra.mxu1 %v3905_v5  ;;  %v3978_v5 = vld [vmem:[%s4886_s4 + $0x590] ss:$8 sps:$4 sm:$0xff]  }
  0xe4   : > { %3166 = vmatpush1.bf16.msra.mxu0 %v3906_v6  ;;  %3003 = vmatprep.subr.bf16.mxu1 %v3907_v7  ;;  %v3983_v6 = vld [vmem:[%s4886_s4 + $0x1a4] ss:$8 sps:$4 sm:$0xff]  }
  0xe5   : > { %3167 = vmatprep.subr.bf16.mxu0 %v3909_v8  ;;  %v3986_v7 = vld [vmem:[%s4886_s4 + $0x5a4] ss:$8 sps:$4 sm:$0xff]   ;;  %v3981_v8 = vld [vmem:[%s4886_s4 + $0x1a0] ss:$8 sps:$4 sm:$0xff]  }
  0xe7   : > { %3004 = vmatpush1.bf16.msra.mxu1 %v3911_v9  ;;  %v3984_v9 = vld [vmem:[%s4886_s4 + $0x5a0] ss:$8 sps:$4 sm:$0xff]  }
  0xe8   : > { %3168 = vmatpush1.bf16.msra.mxu0 %v3912_v10  ;;  %3005 = vmatprep.subr.bf16.mxu1 %v3913_v11  ;;  %v3989_v10 = vld [vmem:[%s4886_s4 + $0x1b4] ss:$8 sps:$4 sm:$0xff]  }
  0xe9   : > { %3169 = vmatprep.subr.bf16.mxu0 %v3915_v12  ;;  %v3992_v11 = vld [vmem:[%s4886_s4 + $0x5b4] ss:$8 sps:$4 sm:$0xff]   ;;  %v3987_v12 = vld [vmem:[%s4886_s4 + $0x1b0] ss:$8 sps:$4 sm:$0xff]  }
  0xeb   : > { %3006 = vmatpush1.bf16.msra.mxu1 %v3917_v15  ;;  %v3998_v15 = vld [vmem:[%s4886_s4 + $0x5c4] ss:$8 sps:$4 sm:$0xff]  }
  0xec   : > { %3170 = vmatpush1.bf16.msra.mxu0 %v3918_v16  ;;  %3016 = vmatprep.subr.bf16.mxu1 %v3922_v17  ;;  %v3993_v16 = vld [vmem:[%s4886_s4 + $0x1c0] ss:$8 sps:$4 sm:$0xff]  }
  0xed   : > { %3180 = vmatprep.subr.bf16.mxu0 %v3926_v18  ;;  %v3996_v17 = vld [vmem:[%s4886_s4 + $0x5c0] ss:$8 sps:$4 sm:$0xff]   ;;  %v4001_v18 = vld [vmem:[%s4886_s4 + $0x1d4] ss:$8 sps:$4 sm:$0xff]  }
  0xee   : > { %3008 = vmatmul.mubr.bf16.vlgmr.msra.gmra.mrb[0].mxu1 %v4972_v21 }
  0xef   : > { %3172 = vmatmul.mubr.bf16.vlgmr.msra.gmra.mrb[0].mxu0 %v4975_v22  ;;  %3017 = vmatpush1.bf16.msra.mxu1 %v3920_v25  ;;  %v4010_v25 = vld [vmem:[%s4886_s4 + $0x5e4] ss:$8 sps:$4 sm:$0xff]  }
  0xf0   : > { %3181 = vmatpush1.bf16.msra.mxu0 %v3924_v26  ;;  %3018 = vmatprep.subr.bf16.mxu1 %v3929_v27  ;;  %v4005_v26 = vld [vmem:[%s4886_s4 + $0x1e0] ss:$8 sps:$4 sm:$0xff]  }
  0xf1   : > { %3182 = vmatprep.subr.bf16.mxu0 %v3932_v28  ;;  %3048 = vmatprep.mubr.bf16.mxu1 %v1628_v32  ;;  %v4008_v27 = vld [vmem:[%s4886_s4 + $0x5e0] ss:$8 sps:$4 sm:$0xff]   ;;  %v4013_v28 = vld [vmem:[%s4886_s4 + $0x1f4] ss:$8 sps:$4 sm:$0xff]  }
  0xf2   : > { %3212 = vmatprep.mubr.bf16.mxu0 %v1677_v33  ;;  %v4016_v32 = vld [vmem:[%s4886_s4 + $0x5f4] ss:$8 sps:$4 sm:$0xff]   ;;  %v4011_v33 = vld [vmem:[%s4886_s4 + $0x1f0] ss:$8 sps:$4 sm:$0xff]  }
  0xf3   : > { %3019 = vmatpush1.bf16.msra.mxu1 %v3927_v35  ;;  %v4014_v35 = vld [vmem:[%s4886_s4 + $0x5f0] ss:$8 sps:$4 sm:$0xff]  }
  0xf4   : > { %3183 = vmatpush1.bf16.msra.mxu0 %v3930_v36  ;;  %3020 = vmatprep.subr.bf16.mxu1 %v3935_v37  ;;  %v4019_v36 = vld [vmem:[%s4886_s4 + $0x204] ss:$8 sps:$4 sm:$0xff]  }
  0xf5   : > { %3184 = vmatprep.subr.bf16.mxu0 %v3938_v38  ;;  %v4022_v37 = vld [vmem:[%s4886_s4 + $0x604] ss:$8 sps:$4 sm:$0xff]   ;;  %v1626_v38 = vcombine.high %v4972_v21, %v4972_v21  ;;  %v4023_v21 = vld [vmem:[%s4886_s4 + $0x210] ss:$8 sps:$4 sm:$0xff]  }
  0xf7   : > { %3021 = vmatpush1.bf16.msra.mxu1 %v3933_v39  ;;  %v1675_v39 = vcombine.high %v4975_v22, %v4975_v22  ;;  %v4026_v22 = vld [vmem:[%s4886_s4 + $0x610] ss:$8 sps:$4 sm:$0xff]  }
  0xf8   : > { %3185 = vmatpush1.bf16.msra.mxu0 %v3936_v40  ;;  %3022 = vmatprep.subr.bf16.mxu1 %v3941_v41  ;;  %v4017_v40 = vld [vmem:[%s4886_s4 + $0x200] ss:$8 sps:$4 sm:$0xff]  }
  0xf9   : > { %3186 = vmatprep.subr.bf16.mxu0 %v3944_v42  ;;  %v4020_v41 = vld [vmem:[%s4886_s4 + $0x600] ss:$8 sps:$4 sm:$0xff]   ;;  %v4025_v42 = vld [vmem:[%s4886_s4 + $0x214] ss:$8 sps:$4 sm:$0xff]  }
  0xfb   : > { %3023 = vmatpush1.bf16.msra.mxu1 %v3939_v43  ;;  %v4028_v43 = vld [vmem:[%s4886_s4 + $0x614] ss:$8 sps:$4 sm:$0xff]  }
  0xfc   : > { %3187 = vmatpush1.bf16.msra.mxu0 %v3942_v45  ;;  %3024 = vmatprep.subr.bf16.mxu1 %v3947_v46  ;;  %v4031_v45 = vld [vmem:[%s4886_s4 + $0x224] ss:$8 sps:$4 sm:$0xff]  }
  0xfd   : > { %3188 = vmatprep.subr.bf16.mxu0 %v3950_v47  ;;  %v4034_v46 = vld [vmem:[%s4886_s4 + $0x624] ss:$8 sps:$4 sm:$0xff]   ;;  %v4029_v47 = vld [vmem:[%s4886_s4 + $0x220] ss:$8 sps:$4 sm:$0xff]  }
  0xff   : > { %3025 = vmatpush1.bf16.msra.mxu1 %v3945_v48  ;;  %v4032_v48 = vld [vmem:[%s4886_s4 + $0x620] ss:$8 sps:$4 sm:$0xff]  }
 0x100   : > { %3189 = vmatpush1.bf16.msra.mxu0 %v3948_v49  ;;  %3026 = vmatprep.subr.bf16.mxu1 %v3953_v50  ;;  %v4037_v49 = vld [vmem:[%s4886_s4 + $0x234] ss:$8 sps:$4 sm:$0xff]  }
 0x101   : > { %3190 = vmatprep.subr.bf16.mxu0 %v3956_v51  ;;  %v4040_v50 = vld [vmem:[%s4886_s4 + $0x634] ss:$8 sps:$4 sm:$0xff]   ;;  %v4035_v51 = vld [vmem:[%s4886_s4 + $0x230] ss:$8 sps:$4 sm:$0xff]  }
 0x103   : > { %3027 = vmatpush1.bf16.msra.mxu1 %v3951_v52  ;;  %v4038_v52 = vld [vmem:[%s4886_s4 + $0x630] ss:$8 sps:$4 sm:$0xff]  }
 0x104   : > { %3191 = vmatpush1.bf16.msra.mxu0 %v3954_v53  ;;  %3028 = vmatprep.subr.bf16.mxu1 %v3959_v54  ;;  %v4043_v53 = vld [vmem:[%s4886_s4 + $0x244] ss:$8 sps:$4 sm:$0xff]  }
 0x105   : > { %3192 = vmatprep.subr.bf16.mxu0 %v3962_v55  ;;  %v4046_v54 = vld [vmem:[%s4886_s4 + $0x644] ss:$8 sps:$4 sm:$0xff]   ;;  %v4041_v55 = vld [vmem:[%s4886_s4 + $0x240] ss:$8 sps:$4 sm:$0xff]  }
 0x107   : > { %3029 = vmatpush1.bf16.msra.mxu1 %v3957_v56  ;;  %v4044_v56 = vld [vmem:[%s4886_s4 + $0x640] ss:$8 sps:$4 sm:$0xff]  }
 0x108   : > { %3193 = vmatpush1.bf16.msra.mxu0 %v3960_v57  ;;  %3030 = vmatprep.subr.bf16.mxu1 %v3965_v58  ;;  %v4049_v57 = vld [vmem:[%s4886_s4 + $0x254] ss:$8 sps:$4 sm:$0xff]  }
 0x109   : > { %3194 = vmatprep.subr.bf16.mxu0 %v3968_v59  ;;  %v4052_v58 = vld [vmem:[%s4886_s4 + $0x654] ss:$8 sps:$4 sm:$0xff]   ;;  %v4047_v59 = vld [vmem:[%s4886_s4 + $0x250] ss:$8 sps:$4 sm:$0xff]  }
 0x10b   : > { %3031 = vmatpush1.bf16.msra.mxu1 %v3963_v60  ;;  %v4050_v60 = vld [vmem:[%s4886_s4 + $0x650] ss:$8 sps:$4 sm:$0xff]  }
 0x10c   : > { %3195 = vmatpush1.bf16.msra.mxu0 %v3966_v61  ;;  %3032 = vmatprep.subr.bf16.mxu1 %v3971_v62  ;;  %v4055_v61 = vld [vmem:[%s4886_s4 + $0x264] ss:$8 sps:$4 sm:$0xff]  }
 0x10d   : > { %3196 = vmatprep.subr.bf16.mxu0 %v3974_v63  ;;  %v4058_v62 = vld [vmem:[%s4886_s4 + $0x664] ss:$8 sps:$4 sm:$0xff]   ;;  %v4053_v63 = vld [vmem:[%s4886_s4 + $0x260] ss:$8 sps:$4 sm:$0xff]  }
 0x10f   : > { %3033 = vmatpush1.bf16.msra.mxu1 %v3969_v0  ;;  %v4056_v0 = vld [vmem:[%s4886_s4 + $0x660] ss:$8 sps:$4 sm:$0xff]  }
 0x110   : > { %3197 = vmatpush1.bf16.msra.mxu0 %v3972_v1  ;;  %3034 = vmatprep.subr.bf16.mxu1 %v3977_v2  ;;  %v4061_v1 = vld [vmem:[%s4886_s4 + $0x274] ss:$8 sps:$4 sm:$0xff]  }
 0x111   : > { %3198 = vmatprep.subr.bf16.mxu0 %v3980_v3  ;;  %v4064_v2 = vld [vmem:[%s4886_s4 + $0x674] ss:$8 sps:$4 sm:$0xff]   ;;  %v4059_v3 = vld [vmem:[%s4886_s4 + $0x270] ss:$8 sps:$4 sm:$0xff]  }
 0x113   : > { %3035 = vmatpush1.bf16.msra.mxu1 %v3975_v4  ;;  %v4062_v4 = vld [vmem:[%s4886_s4 + $0x670] ss:$8 sps:$4 sm:$0xff]  }
 0x114   : > { %3199 = vmatpush1.bf16.msra.mxu0 %v3978_v5  ;;  %3036 = vmatprep.subr.bf16.mxu1 %v3983_v6  ;;  %v4067_v5 = vld [vmem:[%s4886_s4 + $0x284] ss:$8 sps:$4 sm:$0xff]  }
 0x115   : > { %3200 = vmatprep.subr.bf16.mxu0 %v3986_v7  ;;  %v4070_v6 = vld [vmem:[%s4886_s4 + $0x684] ss:$8 sps:$4 sm:$0xff]   ;;  %v4065_v7 = vld [vmem:[%s4886_s4 + $0x280] ss:$8 sps:$4 sm:$0xff]  }
 0x117   : > { %3037 = vmatpush1.bf16.msra.mxu1 %v3981_v8  ;;  %v4068_v8 = vld [vmem:[%s4886_s4 + $0x680] ss:$8 sps:$4 sm:$0xff]  }
 0x118   : > { %3201 = vmatpush1.bf16.msra.mxu0 %v3984_v9  ;;  %3038 = vmatprep.subr.bf16.mxu1 %v3989_v10  ;;  %v4073_v9 = vld [vmem:[%s4886_s4 + $0x294] ss:$8 sps:$4 sm:$0xff]  }
 0x119   : > { %3202 = vmatprep.subr.bf16.mxu0 %v3992_v11  ;;  %v4076_v10 = vld [vmem:[%s4886_s4 + $0x694] ss:$8 sps:$4 sm:$0xff]   ;;  %v4071_v11 = vld [vmem:[%s4886_s4 + $0x290] ss:$8 sps:$4 sm:$0xff]  }
 0x11b   : > { %3039 = vmatpush1.bf16.msra.mxu1 %v3987_v12  ;;  %v4074_v12 = vld [vmem:[%s4886_s4 + $0x690] ss:$8 sps:$4 sm:$0xff]  }
 0x11c   : > { %3203 = vmatpush1.bf16.msra.mxu0 %v3990_v13  ;;  %3040 = vmatprep.subr.bf16.mxu1 %v3995_v14  ;;  %v4079_v13 = vld [vmem:[%s4886_s4 + $0x2a4] ss:$8 sps:$4 sm:$0xff]  }
 0x11d   : > { %3204 = vmatprep.subr.bf16.mxu0 %v3998_v15  ;;  %v4082_v14 = vld [vmem:[%s4886_s4 + $0x6a4] ss:$8 sps:$4 sm:$0xff]   ;;  %v4077_v15 = vld [vmem:[%s4886_s4 + $0x2a0] ss:$8 sps:$4 sm:$0xff]  }
 0x11f   : > { %3041 = vmatpush1.bf16.msra.mxu1 %v3993_v16  ;;  %v4080_v16 = vld [vmem:[%s4886_s4 + $0x6a0] ss:$8 sps:$4 sm:$0xff]  }
 0x120   : > { %3205 = vmatpush1.bf16.msra.mxu0 %v3996_v17  ;;  %3042 = vmatprep.subr.bf16.mxu1 %v4001_v18  ;;  %v4085_v17 = vld [vmem:[%s4886_s4 + $0x2b4] ss:$8 sps:$4 sm:$0xff]  }
 0x121   : > { %3206 = vmatprep.subr.bf16.mxu0 %v4004_v19  ;;  %v4088_v18 = vld [vmem:[%s4886_s4 + $0x6b4] ss:$8 sps:$4 sm:$0xff]   ;;  %v4083_v19 = vld [vmem:[%s4886_s4 + $0x2b0] ss:$8 sps:$4 sm:$0xff]  }
 0x123   : > { %3043 = vmatpush1.bf16.msra.mxu1 %v3999_v20  ;;  %v4086_v20 = vld [vmem:[%s4886_s4 + $0x6b0] ss:$8 sps:$4 sm:$0xff]  }
 0x124   : > { %3207 = vmatpush1.bf16.msra.mxu0 %v4002_v23  ;;  %3044 = vmatprep.subr.bf16.mxu1 %v4007_v24  ;;  %v4091_v23 = vld [vmem:[%s4886_s4 + $0x2c4] ss:$8 sps:$4 sm:$0xff]  }
 0x125   : > { %3208 = vmatprep.subr.bf16.mxu0 %v4010_v25  ;;  %v4094_v24 = vld [vmem:[%s4886_s4 + $0x6c4] ss:$8 sps:$4 sm:$0xff]   ;;  %v4089_v25 = vld [vmem:[%s4886_s4 + $0x2c0] ss:$8 sps:$4 sm:$0xff]  }
 0x127   : > { %3045 = vmatpush1.bf16.msra.mxu1 %v4005_v26  ;;  %v4092_v26 = vld [vmem:[%s4886_s4 + $0x6c0] ss:$8 sps:$4 sm:$0xff]  }
 0x128   : > { %3209 = vmatpush1.bf16.msra.mxu0 %v4008_v27  ;;  %3046 = vmatprep.subr.bf16.mxu1 %v4013_v28  ;;  %v4097_v27 = vld [vmem:[%s4886_s4 + $0x2d4] ss:$8 sps:$4 sm:$0xff]  }
 0x129   : > { %3210 = vmatprep.subr.bf16.mxu0 %v4016_v32  ;;  %v4100_v28 = vld [vmem:[%s4886_s4 + $0x6d4] ss:$8 sps:$4 sm:$0xff]   ;;  %v4095_v32 = vld [vmem:[%s4886_s4 + $0x2d0] ss:$8 sps:$4 sm:$0xff]  }
 0x12b   : > { %3047 = vmatpush1.bf16.msra.mxu1 %v4011_v33  ;;  %v4098_v33 = vld [vmem:[%s4886_s4 + $0x6d0] ss:$8 sps:$4 sm:$0xff]  }
 0x12c   : > { %3211 = vmatpush1.bf16.msra.mxu0 %v4014_v35  ;;  %3057 = vmatprep.subr.bf16.mxu1 %v4019_v36  ;;  %v4103_v35 = vld [vmem:[%s4886_s4 + $0x2e4] ss:$8 sps:$4 sm:$0xff]  }
 0x12d   : > { %3221 = vmatprep.subr.bf16.mxu0 %v4022_v37  ;;  %v4106_v36 = vld [vmem:[%s4886_s4 + $0x6e4] ss:$8 sps:$4 sm:$0xff]   ;;  %v4101_v37 = vld [vmem:[%s4886_s4 + $0x2e0] ss:$8 sps:$4 sm:$0xff]  }
 0x12e   : > { %3049 = vmatmul.mubr.bf16.vlgmr.msra.gmra.mrb[0].mxu1 %v1626_v38  ;;  %v4104_v38 = vld [vmem:[%s4886_s4 + $0x6e0] ss:$8 sps:$4 sm:$0xff]  }
 0x12f   : > { %3213 = vmatmul.mubr.bf16.vlgmr.msra.gmra.mrb[0].mxu0 %v1675_v39  ;;  %3058 = vmatpush1.bf16.msra.mxu1 %v4017_v40  ;;  %v4109_v39 = vld [vmem:[%s4886_s4 + $0x2f4] ss:$8 sps:$4 sm:$0xff]  }
 0x130   : > { %3222 = vmatpush1.bf16.msra.mxu0 %v4020_v41  ;;  %3059 = vmatprep.subr.bf16.mxu1 %v4025_v42  ;;  %v4112_v40 = vld [vmem:[%s4886_s4 + $0x6f4] ss:$8 sps:$4 sm:$0xff]   ;;  %v4107_v41 = vld [vmem:[%s4886_s4 + $0x2f0] ss:$8 sps:$4 sm:$0xff]  }
 0x131   : > { %3223 = vmatprep.subr.bf16.mxu0 %v4028_v43  ;;  %3089 = vmatprep.mubr.bf16.mxu1 %v4982_v29  ;;  %v4110_v42 = vld [vmem:[%s4886_s4 + $0x6f0] ss:$8 sps:$4 sm:$0xff]   ;;  %v4115_v43 = vld [vmem:[%s4886_s4 + $0x304] ss:$8 sps:$4 sm:$0xff]  }
 0x132   : > { %3253 = vmatprep.mubr.bf16.mxu0 %v4985_v30 }
 0x133   : > { %3060 = vmatpush1.bf16.msra.mxu1 %v4023_v21  ;;  %v4118_v21 = vld [vmem:[%s4886_s4 + $0x704] ss:$8 sps:$4 sm:$0xff]  }
 0x134   : > { %3224 = vmatpush1.bf16.msra.mxu0 %v4026_v22  ;;  %3061 = vmatprep.subr.bf16.mxu1 %v4031_v45  ;;  %v4113_v22 = vld [vmem:[%s4886_s4 + $0x300] ss:$8 sps:$4 sm:$0xff]  }
 0x135   : > { %3225 = vmatprep.subr.bf16.mxu0 %v4034_v46  ;;  %v4116_v45 = vld [vmem:[%s4886_s4 + $0x700] ss:$8 sps:$4 sm:$0xff]   ;;  %v4121_v46 = vld [vmem:[%s4886_s4 + $0x314] ss:$8 sps:$4 sm:$0xff]  }
 0x137   : > { %3062 = vmatpush1.bf16.msra.mxu1 %v4029_v47  ;;  %v4124_v47 = vld [vmem:[%s4886_s4 + $0x714] ss:$8 sps:$4 sm:$0xff]  }
 0x138   : > { %3226 = vmatpush1.bf16.msra.mxu0 %v4032_v48  ;;  %3063 = vmatprep.subr.bf16.mxu1 %v4037_v49  ;;  %v1629_v48 = vcombine.high %v4982_v29, %v4982_v29  ;;  %v1678_v49 = vcombine.high %v4985_v30, %v4985_v30  ;;  %v4127_v29 = vld [vmem:[%s4886_s4 + $0x324] ss:$8 sps:$4 sm:$0xff]   ;;  %v4125_v30 = vld [vmem:[%s4886_s4 + $0x320] ss:$8 sps:$4 sm:$0xff]  }
 0x139   : > { %3227 = vmatprep.subr.bf16.mxu0 %v4040_v50  ;;  %v4119_v50 = vld [vmem:[%s4886_s4 + $0x310] ss:$8 sps:$4 sm:$0xff]  }
 0x13b   : > { %3064 = vmatpush1.bf16.msra.mxu1 %v4035_v51  ;;  %v4122_v51 = vld [vmem:[%s4886_s4 + $0x710] ss:$8 sps:$4 sm:$0xff]  }
 0x13c   : > { %3228 = vmatpush1.bf16.msra.mxu0 %v4038_v52  ;;  %3065 = vmatprep.subr.bf16.mxu1 %v4043_v53  ;;  %v4130_v52 = vld [vmem:[%s4886_s4 + $0x724] ss:$8 sps:$4 sm:$0xff]   ;;  %v4128_v53 = vld [vmem:[%s4886_s4 + $0x720] ss:$8 sps:$4 sm:$0xff]  }
 0x13d   : > { %3229 = vmatprep.subr.bf16.mxu0 %v4046_v54  ;;  %v4133_v54 = vld [vmem:[%s4886_s4 + $0x334] ss:$8 sps:$4 sm:$0xff]  }
 0x13f   : > { %3066 = vmatpush1.bf16.msra.mxu1 %v4041_v55  ;;  %v4136_v55 = vld [vmem:[%s4886_s4 + $0x734] ss:$8 sps:$4 sm:$0xff]  }
 0x140   : > { %3230 = vmatpush1.bf16.msra.mxu0 %v4044_v56  ;;  %3067 = vmatprep.subr.bf16.mxu1 %v4049_v57  ;;  %v4131_v56 = vld [vmem:[%s4886_s4 + $0x330] ss:$8 sps:$4 sm:$0xff]  }
 0x141   : > { %3231 = vmatprep.subr.bf16.mxu0 %v4052_v58  ;;  %v4134_v57 = vld [vmem:[%s4886_s4 + $0x730] ss:$8 sps:$4 sm:$0xff]   ;;  %v4139_v58 = vld [vmem:[%s4886_s4 + $0x344] ss:$8 sps:$4 sm:$0xff]  }
 0x143   : > { %3068 = vmatpush1.bf16.msra.mxu1 %v4047_v59  ;;  %v4142_v59 = vld [vmem:[%s4886_s4 + $0x744] ss:$8 sps:$4 sm:$0xff]  }
 0x144   : > { %3232 = vmatpush1.bf16.msra.mxu0 %v4050_v60  ;;  %3069 = vmatprep.subr.bf16.mxu1 %v4055_v61  ;;  %v4137_v60 = vld [vmem:[%s4886_s4 + $0x340] ss:$8 sps:$4 sm:$0xff]  }
 0x145   : > { %3233 = vmatprep.subr.bf16.mxu0 %v4058_v62  ;;  %v4140_v61 = vld [vmem:[%s4886_s4 + $0x740] ss:$8 sps:$4 sm:$0xff]   ;;  %v4145_v62 = vld [vmem:[%s4886_s4 + $0x354] ss:$8 sps:$4 sm:$0xff]  }
 0x147   : > { %3070 = vmatpush1.bf16.msra.mxu1 %v4053_v63  ;;  %v4148_v63 = vld [vmem:[%s4886_s4 + $0x754] ss:$8 sps:$4 sm:$0xff]  }
 0x148   : > { %3234 = vmatpush1.bf16.msra.mxu0 %v4056_v0  ;;  %3071 = vmatprep.subr.bf16.mxu1 %v4061_v1  ;;  %v4143_v0 = vld [vmem:[%s4886_s4 + $0x350] ss:$8 sps:$4 sm:$0xff]  }
 0x149   : > { %3235 = vmatprep.subr.bf16.mxu0 %v4064_v2  ;;  %v4146_v1 = vld [vmem:[%s4886_s4 + $0x750] ss:$8 sps:$4 sm:$0xff]   ;;  %v4151_v2 = vld [vmem:[%s4886_s4 + $0x364] ss:$8 sps:$4 sm:$0xff]  }
 0x14b   : > { %3072 = vmatpush1.bf16.msra.mxu1 %v4059_v3  ;;  %v4154_v3 = vld [vmem:[%s4886_s4 + $0x764] ss:$8 sps:$4 sm:$0xff]  }
 0x14c   : > { %3236 = vmatpush1.bf16.msra.mxu0 %v4062_v4  ;;  %3073 = vmatprep.subr.bf16.mxu1 %v4067_v5  ;;  %v4149_v4 = vld [vmem:[%s4886_s4 + $0x360] ss:$8 sps:$4 sm:$0xff]  }
 0x14d   : > { %3237 = vmatprep.subr.bf16.mxu0 %v4070_v6  ;;  %v4152_v5 = vld [vmem:[%s4886_s4 + $0x760] ss:$8 sps:$4 sm:$0xff]   ;;  %v4157_v6 = vld [vmem:[%s4886_s4 + $0x374] ss:$8 sps:$4 sm:$0xff]  }
 0x14f   : > { %3074 = vmatpush1.bf16.msra.mxu1 %v4065_v7  ;;  %v4160_v7 = vld [vmem:[%s4886_s4 + $0x774] ss:$8 sps:$4 sm:$0xff]  }
 0x150   : > { %3238 = vmatpush1.bf16.msra.mxu0 %v4068_v8  ;;  %3075 = vmatprep.subr.bf16.mxu1 %v4073_v9  ;;  %v4155_v8 = vld [vmem:[%s4886_s4 + $0x370] ss:$8 sps:$4 sm:$0xff]  }
 0x151   : > { %3239 = vmatprep.subr.bf16.mxu0 %v4076_v10  ;;  %v4158_v9 = vld [vmem:[%s4886_s4 + $0x770] ss:$8 sps:$4 sm:$0xff]   ;;  %v4163_v10 = vld [vmem:[%s4886_s4 + $0x384] ss:$8 sps:$4 sm:$0xff]  }
 0x153   : > { %3076 = vmatpush1.bf16.msra.mxu1 %v4071_v11  ;;  %v4166_v11 = vld [vmem:[%s4886_s4 + $0x784] ss:$8 sps:$4 sm:$0xff]  }
 0x154   : > { %3240 = vmatpush1.bf16.msra.mxu0 %v4074_v12  ;;  %3077 = vmatprep.subr.bf16.mxu1 %v4079_v13  ;;  %v4161_v12 = vld [vmem:[%s4886_s4 + $0x380] ss:$8 sps:$4 sm:$0xff]  }
 0x155   : > { %3241 = vmatprep.subr.bf16.mxu0 %v4082_v14  ;;  %v4164_v13 = vld [vmem:[%s4886_s4 + $0x780] ss:$8 sps:$4 sm:$0xff]   ;;  %v4169_v14 = vld [vmem:[%s4886_s4 + $0x394] ss:$8 sps:$4 sm:$0xff]  }
 0x157   : > { %3078 = vmatpush1.bf16.msra.mxu1 %v4077_v15  ;;  %v4172_v15 = vld [vmem:[%s4886_s4 + $0x794] ss:$8 sps:$4 sm:$0xff]  }
 0x158   : > { %3242 = vmatpush1.bf16.msra.mxu0 %v4080_v16  ;;  %3079 = vmatprep.subr.bf16.mxu1 %v4085_v17  ;;  %v4167_v16 = vld [vmem:[%s4886_s4 + $0x390] ss:$8 sps:$4 sm:$0xff]  }
 0x159   : > { %3243 = vmatprep.subr.bf16.mxu0 %v4088_v18  ;;  %v4170_v17 = vld [vmem:[%s4886_s4 + $0x790] ss:$8 sps:$4 sm:$0xff]   ;;  %v4175_v18 = vld [vmem:[%s4886_s4 + $0x3a4] ss:$8 sps:$4 sm:$0xff]  }
 0x15b   : > { %3080 = vmatpush1.bf16.msra.mxu1 %v4083_v19  ;;  %v4178_v19 = vld [vmem:[%s4886_s4 + $0x7a4] ss:$8 sps:$4 sm:$0xff]  }
 0x15c   : > { %3244 = vmatpush1.bf16.msra.mxu0 %v4086_v20  ;;  %3081 = vmatprep.subr.bf16.mxu1 %v4091_v23  ;;  %v4173_v20 = vld [vmem:[%s4886_s4 + $0x3a0] ss:$8 sps:$4 sm:$0xff]  }
 0x15d   : > { %3245 = vmatprep.subr.bf16.mxu0 %v4094_v24  ;;  %v4176_v23 = vld [vmem:[%s4886_s4 + $0x7a0] ss:$8 sps:$4 sm:$0xff]   ;;  %v4181_v24 = vld [vmem:[%s4886_s4 + $0x3b4] ss:$8 sps:$4 sm:$0xff]  }
 0x15f   : > { %3082 = vmatpush1.bf16.msra.mxu1 %v4089_v25  ;;  %v4184_v25 = vld [vmem:[%s4886_s4 + $0x7b4] ss:$8 sps:$4 sm:$0xff]  }
 0x160   : > { %3246 = vmatpush1.bf16.msra.mxu0 %v4092_v26  ;;  %3083 = vmatprep.subr.bf16.mxu1 %v4097_v27  ;;  %v4179_v26 = vld [vmem:[%s4886_s4 + $0x3b0] ss:$8 sps:$4 sm:$0xff]  }
 0x161   : > { %3247 = vmatprep.subr.bf16.mxu0 %v4100_v28  ;;  %v4182_v27 = vld [vmem:[%s4886_s4 + $0x7b0] ss:$8 sps:$4 sm:$0xff]   ;;  %v4187_v28 = vld [vmem:[%s4886_s4 + $0x3c4] ss:$8 sps:$4 sm:$0xff]  }
 0x163   : > { %3084 = vmatpush1.bf16.msra.mxu1 %v4095_v32  ;;  %v4190_v32 = vld [vmem:[%s4886_s4 + $0x7c4] ss:$8 sps:$4 sm:$0xff]  }
 0x164   : > { %3248 = vmatpush1.bf16.msra.mxu0 %v4098_v33  ;;  %3085 = vmatprep.subr.bf16.mxu1 %v4103_v35  ;;  %v4185_v33 = vld [vmem:[%s4886_s4 + $0x3c0] ss:$8 sps:$4 sm:$0xff]  }
 0x165   : > { %3249 = vmatprep.subr.bf16.mxu0 %v4106_v36  ;;  %v4188_v35 = vld [vmem:[%s4886_s4 + $0x7c0] ss:$8 sps:$4 sm:$0xff]   ;;  %v4193_v36 = vld [vmem:[%s4886_s4 + $0x3d4] ss:$8 sps:$4 sm:$0xff]  }
 0x167   : > { %3086 = vmatpush1.bf16.msra.mxu1 %v4101_v37  ;;  %v4196_v37 = vld [vmem:[%s4886_s4 + $0x7d4] ss:$8 sps:$4 sm:$0xff]  }
 0x168   : > { %3250 = vmatpush1.bf16.msra.mxu0 %v4104_v38  ;;  %3087 = vmatprep.subr.bf16.mxu1 %v4109_v39  ;;  %v4191_v38 = vld [vmem:[%s4886_s4 + $0x3d0] ss:$8 sps:$4 sm:$0xff]  }
 0x169   : > { %3251 = vmatprep.subr.bf16.mxu0 %v4112_v40  ;;  %v4194_v39 = vld [vmem:[%s4886_s4 + $0x7d0] ss:$8 sps:$4 sm:$0xff]   ;;  %v4199_v40 = vld [vmem:[%s4886_s4 + $0x3e4] ss:$8 sps:$4 sm:$0xff]  }
 0x16b   : > { %3088 = vmatpush1.bf16.msra.mxu1 %v4107_v41  ;;  %v4202_v41 = vld [vmem:[%s4886_s4 + $0x7e4] ss:$8 sps:$4 sm:$0xff]  }
 0x16c   : > { %3252 = vmatpush1.bf16.msra.mxu0 %v4110_v42  ;;  %3098 = vmatprep.subr.bf16.mxu1 %v4115_v43  ;;  %v4197_v42 = vld [vmem:[%s4886_s4 + $0x3e0] ss:$8 sps:$4 sm:$0xff]  }
 0x16d   : > { %3262 = vmatprep.subr.bf16.mxu0 %v4118_v21  ;;  %v4200_v43 = vld [vmem:[%s4886_s4 + $0x7e0] ss:$8 sps:$4 sm:$0xff]   ;;  %v4205_v21 = vld [vmem:[%s4886_s4 + $0x3f4] ss:$8 sps:$4 sm:$0xff]  }
 0x16e   : > { %3090 = vmatmul.mubr.bf16.vlgmr.msra.gmra.mrb[0].mxu1 %v4988_v31 }
 0x16f   : > { %3254 = vmatmul.mubr.bf16.vlgmr.msra.gmra.mrb[0].mxu0 %v4993_v34  ;;  %3099 = vmatpush1.bf16.msra.mxu1 %v4113_v22  ;;  %v4208_v22 = vld [vmem:[%s4886_s4 + $0x7f4] ss:$8 sps:$4 sm:$0xff]  }
 0x170   : > { %3263 = vmatpush1.bf16.msra.mxu0 %v4116_v45  ;;  %3100 = vmatprep.subr.bf16.mxu1 %v4121_v46  ;;  %v4203_v45 = vld [vmem:[%s4886_s4 + $0x3f0] ss:$8 sps:$4 sm:$0xff]  }
 0x171   : > { %3264 = vmatprep.subr.bf16.mxu0 %v4124_v47  ;;  %3130 = vmatprep.mubr.bf16.mxu1 %v1629_v48  ;;  %v4206_v46 = vld [vmem:[%s4886_s4 + $0x7f0] ss:$8 sps:$4 sm:$0xff]   ;;  %v1627_v47 = vcombine.high %v4988_v31, %v4988_v31  ;;  %v1676_v48 = vcombine.high %v4993_v34, %v4993_v34 }
 0x172   : > { %3294 = vmatprep.mubr.bf16.mxu0 %v1678_v49  ;;  %v4267_v49 = vmov 1983009808  }
 0x173   : > { %3101 = vmatpush1.bf16.msra.mxu1 %v4119_v50  ;;  %v3307_v50 = vunpack.c.l.s4 %v4267_v49 }
 0x174   : > { %3265 = vmatpush1.bf16.msra.mxu0 %v4122_v51  ;;  %3102 = vmatprep.subr.bf16.mxu1 %v4127_v29 }
 0x175   : > { %3266 = vmatprep.subr.bf16.mxu0 %v4130_v52  ;;  %v3308_v51 = vunpack.c.0.s8 %v3307_v50 }
 0x177   : > { %3103 = vmatpush1.bf16.msra.mxu1 %v4125_v30 }
 0x178   : > { %3267 = vmatpush1.bf16.msra.mxu0 %v4128_v53  ;;  %3104 = vmatprep.subr.bf16.mxu1 %v4133_v54 }
 0x179   : > { %3268 = vmatprep.subr.bf16.mxu0 %v4136_v55 }
 0x17b   : > { %3105 = vmatpush1.bf16.msra.mxu1 %v4131_v56  ;;  %v3311_v56 = vsub.s32 %v3308_v51, %v4928_v44 }
 0x17c   : > { %3269 = vmatpush1.bf16.msra.mxu0 %v4134_v57  ;;  %3106 = vmatprep.subr.bf16.mxu1 %v4139_v58 }
 0x17d   : > { %3270 = vmatprep.subr.bf16.mxu0 %v4142_v59 }
 0x17f   : > { %3107 = vmatpush1.bf16.msra.mxu1 %v4137_v60  ;;  %v1320_v60 = vld [vmem:[#allocation2] sm:$0xf] }
 0x180   : > { %3271 = vmatpush1.bf16.msra.mxu0 %v4140_v61  ;;  %3108 = vmatprep.subr.bf16.mxu1 %v4145_v62 }
 0x181   : > { %3272 = vmatprep.subr.bf16.mxu0 %v4148_v63  ;;  %v3321_v63 = vld [vmem:[%s1303_s28] sm:$0x3] (!%p3734_p13) }
 0x183   : > { %3109 = vmatpush1.bf16.msra.mxu1 %v4143_v0  ;;  %v3325_v0 = vsub.s32 (!%p3734_p13), 0, %v4928_v44 }
 0x184   : > { %3273 = vmatpush1.bf16.msra.mxu0 %v4146_v1  ;;  %3110 = vmatprep.subr.bf16.mxu1 %v4151_v2  ;;  %v3329_v1 = vsub.s32 (!%p3734_p13), 1, %v4928_v44 }
 0x185   : > { %3274 = vmatprep.subr.bf16.mxu0 %v4154_v3  ;;  %v3326_v2 = vrot.slane (!%p3734_p13), %v3321_v63, %v3325_v0 }
 0x186   : > { %v3330_v3 = vrot.slane (!%p3734_p13), %v3321_v63, %v3329_v1 }
 0x187   : > { %3111 = vmatpush1.bf16.msra.mxu1 %v4149_v4 }
 0x188   : > { %3275 = vmatpush1.bf16.msra.mxu0 %v4152_v5  ;;  %3112 = vmatprep.subr.bf16.mxu1 %v4157_v6  ;;  %v3331_v4 = vcombine.low (!%p3734_p13), %v3326_v2, %v3330_v3 }
 0x189   : > { %3276 = vmatprep.subr.bf16.mxu0 %v4160_v7 }
 0x18a   : > { %v3338_v6 = vrot.slane (!%p3734_p13), %v3331_v4, %v3311_v56 }
 0x18b   : > { %3113 = vmatpush1.bf16.msra.mxu1 %v4155_v8 }
 0x18c   : > { %3277 = vmatpush1.bf16.msra.mxu0 %v4158_v9  ;;  %3114 = vmatprep.subr.bf16.mxu1 %v4163_v10 }
 0x18d   : > { %3278 = vmatprep.subr.bf16.mxu0 %v4166_v11 }
 0x18f   : > { %3115 = vmatpush1.bf16.msra.mxu1 %v4161_v12 }
 0x190   : > { %3279 = vmatpush1.bf16.msra.mxu0 %v4164_v13  ;;  %3116 = vmatprep.subr.bf16.mxu1 %v4169_v14 }
 0x191   : > { %3280 = vmatprep.subr.bf16.mxu0 %v4172_v15 }
 0x193   : > { %3117 = vmatpush1.bf16.msra.mxu1 %v4167_v16 }
 0x194   : > { %3281 = vmatpush1.bf16.msra.mxu0 %v4170_v17  ;;  %3118 = vmatprep.subr.bf16.mxu1 %v4175_v18 }
 0x195   : > { %3282 = vmatprep.subr.bf16.mxu0 %v4178_v19 }
 0x197   : > { %3119 = vmatpush1.bf16.msra.mxu1 %v4173_v20 }
 0x198   : > { %3283 = vmatpush1.bf16.msra.mxu0 %v4176_v23  ;;  %3120 = vmatprep.subr.bf16.mxu1 %v4181_v24 }
 0x199   : > { %3284 = vmatprep.subr.bf16.mxu0 %v4184_v25 }
 0x19b   : > { %3121 = vmatpush1.bf16.msra.mxu1 %v4179_v26 }
 0x19c   : > { %3285 = vmatpush1.bf16.msra.mxu0 %v4182_v27  ;;  %3122 = vmatprep.subr.bf16.mxu1 %v4187_v28 }
 0x19d   : > { %3286 = vmatprep.subr.bf16.mxu0 %v4190_v32 }
 0x19f   : > { %3123 = vmatpush1.bf16.msra.mxu1 %v4185_v33 }
 0x1a0   : > { %3287 = vmatpush1.bf16.msra.mxu0 %v4188_v35  ;;  %3124 = vmatprep.subr.bf16.mxu1 %v4193_v36 }
 0x1a1   : > { %3288 = vmatprep.subr.bf16.mxu0 %v4196_v37 }
 0x1a3   : > { %3125 = vmatpush1.bf16.msra.mxu1 %v4191_v38 }
 0x1a4   : > { %3289 = vmatpush1.bf16.msra.mxu0 %v4194_v39  ;;  %3126 = vmatprep.subr.bf16.mxu1 %v4199_v40 }
 0x1a5   : > { %3290 = vmatprep.subr.bf16.mxu0 %v4202_v41 }
 0x1a7   : > { %3127 = vmatpush1.bf16.msra.mxu1 %v4197_v42 }
 0x1a8   : > { %3291 = vmatpush1.bf16.msra.mxu0 %v4200_v43  ;;  %3128 = vmatprep.subr.bf16.mxu1 %v4205_v21 }
 0x1a9   : > { %3292 = vmatprep.subr.bf16.mxu0 %v4208_v22 }
 0x1ab   : > { %3129 = vmatpush1.bf16.msra.mxu1 %v4203_v45 }
 0x1ac   : > { %3293 = vmatpush1.bf16.msra.mxu0 %v4206_v46 }
 0x1ae   : > { %3131 = vmatmul.mubr.bf16.vlgmr.msra.gmra.mrb[0].mxu1 %v1627_v47 }
 0x1af   : > { %3295 = vmatmul.mubr.bf16.vlgmr.msra.gmra.mrb[0].mxu0 %v1676_v48 }
 0x281   : > { %v3132_v29 = vpop.f32.mrb[0].mxu1 }
 0x282   : > { %v3296_v52 = vpop.f32.mrb[0].mxu0  ;;  %v3134_v53 = vpop.f32.mrb[1].mxu1 }
 0x283   : > { %v3738_v30 = vadd.f32 %v3296_v52, %v3132_v29  ;;  %v3298_v54 = vpop.f32.mrb[1].mxu0  ;;  %v3136_v57 = vpop.f32.mrb[2].mxu1 }
 0x284   : > { %v3739_v55 = vadd.f32 %v3298_v54, %v3134_v53  ;;  %v3300_v31 = vpop.f32.mrb[2].mxu0  ;;  %v3137_v58 = vpop.f32.mrb[3].mxu1 }
 0x285   : > { %v3301_v59 = vpop.f32.mrb[3].mxu0 }
 0x286   : > { %v3305_v34 = vcombine.low %v3738_v30, %v3739_v55  ;;  %3319 = sbr.rel (%p3734_p13) target bundleno = 663 (0x297), region = 78 }
 0x288   : > { %v3312_v61 = vrot.slane %v3305_v34, %v3311_v56 }
 0x28a   : > { %v3314_v62 = vadd.f32 %v3312_v61, %v1320_v60 }
 0x28c   : > { %3315 = vst [vmem:[#allocation2] sm:$0xf] %v3314_v62 }
 0x293   : > { %v3320_v5 = vld [vmem:[#allocation2] sm:$0xf] }
 0x294   : > { %v3340_v7 = vadd.f32 %v3338_v6, %v3320_v5 }
 0x296   : > { %3341 = vst [vmem:[%s4884_s15] sm:$0xf] %v3340_v7 }
 0x297 PF: > { %s13_s18 = sadd.s32 1, %s4263_s18   ;;  %s5234_s12 = smov %s4243_s13 }
 0x298   : > { %p10_p0 = scmp.ge.s32.totalorder %s13_s18, 20   ;;  %s5235_s13 = smov %s4339_s25 }
 0x299   : > { %s5236_s14 = smov %s4255_s16  ;;  %s5237_s15 = smov %s4259_s17 }
 0x29a   : > { %s5238_s16 = smov %s5241_s19  ;;  %s5239_s17 = smov %s5245_s20 }
 0x29b   :  { %12 = sbr.rel (!%p10_p0) target bundleno = 4 (0x4), region = 119 }

// kernel: sphere_cnn_forward.11
= control target key start
LH: loop header
LB: loop body
LE: loop exit
PB: predicated region body
PF: predicated region fallthrough
CT: control target
= control target key end

     0   :  { %v30_v3 = vlaneseq  ;;  %v434_v10 = vmov 1983009808   ;;  %s548_s0 = inlined_call_operand.vmem [shape: f32[2,512], index: 0, kind: input, shape index: {}]   ;;  %s549_s1 = inlined_call_operand.vmem [shape: f32[16,512], index: 1, kind: input, shape index: {}]   ;;  %s550_s2 = inlined_call_operand.vmem [shape: s32[2,1], index: 2, kind: input, shape index: {}]   ;;  %s551_s3 = inlined_call_operand.hbm [shape: f32[1,1], index: 3, kind: output, shape index: {}]  }
   0x1   :  { %v464_v0 = vld [vmem:[%s549_s1] sm:$0xff]  ;;  %v469_v1 = vld [vmem:[%s549_s1 + $0x8] sm:$0xff]  ;;  %v474_v2 = vld [vmem:[%s549_s1 + $0x10] sm:$0xff]  ;;  %v28_v11 = vunpack.c.l.s4 %v434_v10 }
   0x2   :  { %v72_v4 = vld [vmem:[%s549_s1 + $0x18] sm:$0xff]  ;;  %v77_v5 = vmul.f32 %v464_v0, %v464_v0  ;;  %v78_v6 = vmul.f32 %v469_v1, %v469_v1  ;;  %v79_v7 = vmul.f32 %v474_v2, %v474_v2  ;;  %v488_v8 = vld [vmem:[%s549_s1 + $0x20] sm:$0xff]  ;;  %v74_v9 = vld [vmem:[%s549_s1 + $0x28] sm:$0xff]  ;;  %v31_v17 = vshrl.u32 %v30_v3, 7 }
   0x3   :  { %v75_v12 = vld [vmem:[%s549_s1 + $0x30] sm:$0xff]  ;;  %v76_v13 = vld [vmem:[%s549_s1 + $0x38] sm:$0xff]  ;;  %v81_v14 = vmul.f32 %v488_v8, %v488_v8  ;;  %v82_v15 = vmul.f32 %v74_v9, %v74_v9  ;;  %v504_v16 = vld [vmem:[%s548_s0] sm:$0xff]  ;;  %v80_v18 = vmul.f32 %v72_v4, %v72_v4 }
   0x4   :  { %v85_v19 = vadd.f32 %v78_v6, %v77_v5  ;;  %v83_v20 = vmul.f32 %v75_v12, %v75_v12  ;;  %v24_v21 = vmul.f32 %v504_v16, %v504_v16 }
   0x5   :  { %8 = vsyncpa [#allocation6], 0  ;;  %v90_v22 = vadd.f32 %v82_v15, %v81_v14  ;;  %v29_v23 = vunpack.c.0.s8 %v28_v11  ;;  %v84_v25 = vmul.f32 %v76_v13, %v76_v13  ;;  %vm47_vm0 = vcmask 1041408   ;;  %v269_v42 = vld [vmem:[%s550_s2] sm:$0x3]  ;;  %s422_s6 = scalar_lea.hbm %s551_s3, 16 }
   0x6   :  { %v86_v24 = vadd.f32 %v85_v19, %v79_v7  ;;  %v26_v26 = vcombine.high %v24_v21, %v24_v21  ;;  %v435_v43 = vmov 0   ;;  %v436_v50 = vmov 269488144   ;;  %p423_p0 = scmp.ne.s32.totalorder %s551_s3, %s422_s6  ;;  %p426_p1 = scmp.lt.u32.totalorder %s422_s6, %s551_s3 }
   0x7   :  { %v91_v27 = vadd.f32 %v90_v22, %v83_v20  ;;  %v32_v28 = vsub.s32 %v29_v23, %v31_v17  ;;  %402 = vset.pattern.permute.xlu1 %v435_v43  ;;  %403 = vset.pattern.permute.xlu0 %v435_v43  ;;  %v61_v51 = vunpack.c.l.s4 %v436_v50  ;;  %vm19_vm1 = vcmask 1024  }
   0x8   :  { %v87_v29 = vadd.f32 %v86_v24, %v80_v18  ;;  %v271_v14 = vand.u32 127, %v30_v3  ;;  %vm438_vm3 = vmmov 1   ;;  %vm283_vm7 = vcmask 123904   ;;  %p428_p2 = pnand %p426_p1, %p423_p0 }
   0x9   :  { %v33_v30 = vrot.slane %v24_v21, %v32_v28  ;;  %v40_v31 = vrot.slane %v26_v26, %v32_v28  ;;  %v92_v32 = vadd.f32 %v91_v27, %v84_v25  ;;  %v62_v53 = vunpack.c.0.s8 %v61_v51 }
   0xa   :  { %88 = vadd.xlane.f32.xlu0 %v87_v29  ;;  %vm279_vm5 = vcmp.lt.s32.totalorder %v271_v14, 10  ;;  %v439_v26 = vmov -1e+30  }
   0xb   :  { %v41_v33 = vcombine.high %v33_v30, %v33_v30  ;;  %v42_v34 = vcombine.high %v40_v31, %v40_v31  ;;  %v48_v35 = vsel %vm47_vm0, %v33_v30, 0.0  ;;  %v51_v37 = vsel %vm47_vm0, %v40_v31, 0.0  ;;  %20 = vst.msk [vmem:[#allocation2] sm:$0x3] %vm19_vm1, %v439_v26 }
   0xc   :  { %v65_v63 = vsub.s32 %v62_v53, %v31_v17 }
   0xd   :  { %v49_v36 = vsel %vm47_vm0, %v41_v33, 0.0  ;;  %v53_v39 = vsel %vm47_vm0, %v42_v34, 0.0 }
   0xe   :  { %93 = vadd.xlane.f32.xlu0 %v92_v32  ;;  %v50_v38 = vadd.f32 %v49_v36, %v48_v35 }
  0x10   :  { %v52_v40 = vadd.f32 %v51_v37, %v50_v38 }
  0x12   :  { %v54_v41 = vadd.f32 %v53_v39, %v52_v40  ;;  %v293_v27 = vld [vmem:[#allocation2] sm:$0x3] }
  0x14   :  { %55 = vadd.xlane.f32.xlu1 %v54_v41 }
  0x25   :  { %276 = vperm.xlu1 %402, %v269_v42  }
  0x97   :  { %v89_v44 = vpop.xlane.xlu0 %88 }
  0x98   :  { %v95_v45 = vmax.f32 %v89_v44, 1e-30 }
  0x9a   :  { %404 = vrsqrt.f32 %v95_v45 }
  0x9b   :  { %v94_v46 = vpop.xlane.xlu0 %93 }
  0x9c   :  { %v96_v47 = vmax.f32 %v94_v46, 1e-30 }
  0x9e   :  { %406 = vrsqrt.f32 %v96_v47 }
  0xa1   :  { %v56_v48 = vpop.xlane.xlu1 %55 }
  0xa2   :  { %v57_v49 = vmax.f32 %v56_v48, 1e-24 }
  0xa4   :  { %v405_v52 = vpop.eup %404  ;;  %408 = vrsqrt.f32 %v57_v49 }
  0xa5   :  { %v100_v54 = vmul.f32 %v405_v52, %v469_v1  ;;  %v102_v55 = vmul.f32 %v405_v52, %v72_v4  ;;  %v99_v56 = vmul.f32 %v405_v52, %v464_v0  ;;  %v101_v57 = vmul.f32 %v405_v52, %v474_v2  ;;  %v277_v15 = vpop.permute.xlu1 %276 }
  0xa6   :  { %vm278_vm2 = vcmp.eq.s32.totalorder %v271_v14, %v277_v15 }
  0xa7   :  { %vm290_vm4 = vmxor %vm278_vm2, %vm438_vm3 }
  0xa8   :  { %v407_v58 = vpop.eup %406  ;;  %vm520_vm6 = vmand %vm279_vm5, %vm290_vm4 }
  0xa9   :  { %v104_v59 = vmul.f32 %v407_v58, %v74_v9  ;;  %v106_v60 = vmul.f32 %v407_v58, %v76_v13  ;;  %v103_v61 = vmul.f32 %v407_v58, %v488_v8  ;;  %v105_v62 = vmul.f32 %v407_v58, %v75_v12 }
  0xaa   :  { %v437_v12 = vmov 0.0  }
  0xab   :  { %v384_v5 = vpack.c.bf16 %v104_v59, %v100_v54  ;;  %v388_v6 = vpack.c.bf16 %v106_v60, %v102_v55  ;;  %v386_v7 = vpack.c.bf16 %v103_v61, %v99_v56  ;;  %v390_v10 = vpack.c.bf16 %v105_v62, %v101_v57  ;;  %21 = vst.msk [vmem:[#allocation3] sm:$0x3] %vm19_vm1, %v437_v12 }
  0xac   :  { %22 = vst.msk [vmem:[#allocation4] sm:$0x3] %vm19_vm1, %v437_v12  ;;  %v280_v18 = vsel %vm278_vm2, 1.0, %v437_v12 }
  0xad   :  { %385 = vmatprep.subr.bf16.mxu1 %v384_v5  ;;  %389 = vmatprep.subr.bf16.mxu0 %v388_v6 }
  0xae   :  { %v409_v11 = vpop.eup %408  ;;  %387 = vmatpush1.bf16.xpose.msra.mxu1 %v386_v7  ;;  %391 = vmatpush1.bf16.xpose.msra.mxu0 %v390_v10 }
  0xaf   :  { %v66_v1 = vrot.slane %v409_v11, %v65_v63 }
  0xb1   :  { %v68_v0 = vmul.f32 %v66_v1, %v504_v16 }
  0xb2   :  { %v307_v60 = vld [vmem:[#allocation3] sm:$0x3] }
  0xb3   :  { %v115_v2 = vrot.slane %v68_v0, %v32_v28  ;;  %v108_v4 = vcombine.high %v68_v0, %v68_v0 }
  0xb5   :  { %v123_v9 = vcombine.high %v115_v2, %v115_v2  ;;  %v122_v13 = vrot.slane %v108_v4, %v32_v28  ;;  %v281_v28 = vld [vmem:[#allocation4] sm:$0x3] }
  0xb7   :  { %193 = vmatprep.mubr.f32.mxu1 %v123_v9  ;;  %v124_v8 = vcombine.high %v122_v13, %v122_v13 }
  0xb8   :  { %194 = vmatmul.mubr.f32.vlgmr.msra.gmra.mrb[0].mxu1 %v115_v2 }
  0xb9   :  { %263 = vmatprep.mubr.f32.mxu0 %v124_v8 }
  0xba   :  { %264 = vmatmul.mubr.f32.vlgmr.msra.gmra.mrb[0].mxu0 %v122_v13 }
 0x18b   :  { %v195_v16 = vpop.f32.mrb[0].mxu1 }
 0x18c   :  { %v197_v17 = vpop.f32.mrb[1].mxu1 }
 0x18d   :  { %v265_v19 = vpop.f32.mrb[0].mxu0 }
 0x18e   :  { %v266_v21 = vadd.f32 %v265_v19, %v195_v16  ;;  %v267_v22 = vpop.f32.mrb[1].mxu0 }
 0x190   :  { %v292_v23 = vsel %vm520_vm6, %v266_v21, -1e+30  ;;  %v282_v3 = vmul.f32 %v280_v18, %v266_v21 }
 0x191   :  { %v294_v24 = vsel %vm283_vm7, %v292_v23, -inf }
 0x192   :  { %295 = vmax.xlane.f32.xlu0 %v294_v24  ;;  %v284_v25 = vsel %vm283_vm7, %v282_v3, 0.0 }
 0x193   :  { %285 = vadd.xlane.f32.xlu1 %v284_v25 }
 0x21f   :  { %v296_v29 = vpop.xlane.xlu0 %295 }
 0x220   :  { %v297_v30 = vmax.f32 %v293_v27, %v296_v29  ;;  %v286_v31 = vpop.xlane.xlu1 %285 }
 0x221   :  { %v287_v32 = vadd.f32 %v286_v31, %v281_v28 }
 0x222   :  { %v308_v33 = vsub.f32 %v293_v27, %v297_v30  ;;  %317 = vst.msk [vmem:[#allocation2] sm:$0x3] %vm19_vm1, %v297_v30  ;;  %300 = vperm.xlu0 %403, %v297_v30  }
 0x223   :  { %289 = vst.msk [vmem:[#allocation4] sm:$0x3] %vm19_vm1, %v287_v32 }
 0x224   :  { %v309_v52 = vmul.f32 1.442695, %v308_v33 }
 0x229   :  { %v339_v55 = vld [vmem:[#allocation2] sm:$0x3] }
 0x22a   :  { %v321_v40 = vld [vmem:[#allocation4] sm:$0x3] }
 0x22b   :  { %v382_v41 = vclamps-f32 %v321_v40, 1.0  ;;  %v333_v50 = vmul.f32 -0.6536436, %v321_v40  ;;  %v383_v53 = vadd.f32 3.02721, %v321_v40 }
 0x22c   :  { %vm336_vm10 = vcmp.gt.f32.partialorder %v321_v40, 0.6536436 }
 0x22d   :  { %v324_v42 = vmul.f32 %v382_v41, %v382_v41 }
 0x22f   :  { %v325_v43 = vsub.f32 1.0, %v324_v42 }
 0x231   :  { %vm328_vm8 = vcmp.eq.f32.partialorder %v325_v43, inf  ;;  %v331_v47 = vand.u32 2147483648, %v325_v43  ;;  %vm330_vm9 = vcmp.eq.f32.partialorder %v325_v43, 0.0 }
 0x2a1   :  { %v301_v34 = vpop.permute.xlu0 %300 }
 0x2a2   :  { %v303_v35 = vsub.f32 %v266_v21, %v301_v34 }
 0x2a4   :  { %v304_v36 = vmul.f32 1.442695, %v303_v35 }
 0x2a6   :  { %410 = vpow2.f32 %v304_v36 }
 0x2a7   :  { %412 = vrsqrt.f32 %v325_v43 }
 0x2a8   :  { %414 = vpow2.f32 %v309_v52 }
 0x2b0   :  { %v411_v37 = vpop.eup %410 }
 0x2b1   :  { %v306_v38 = vsel %vm520_vm6, %v411_v37, 0.0  ;;  %v413_v44 = vpop.eup %412 }
 0x2b2   :  { %v312_v39 = vsel %vm283_vm7, %v306_v38, 0.0  ;;  %v327_v45 = vmul.f32 %v413_v44, %v325_v43  ;;  %v415_v59 = vpop.eup %414 }
 0x2b3   :  { %313 = vadd.xlane.f32.xlu0 %v312_v39  ;;  %v311_v63 = vmul.f32 %v415_v59, %v307_v60 }
 0x2b4   :  { %v329_v46 = vsel %vm328_vm8, %v325_v43, %v327_v45 }
 0x2b5   :  { %v332_v48 = vsel %vm330_vm9, %v331_v47, %v329_v46 }
 0x2b6   :  { %v334_v49 = vmul.f32 -0.7568025, %v332_v48 }
 0x2b8   :  { %v335_v51 = vsub.f32 %v333_v50, %v334_v49 }
 0x2ba   :  { %v338_v54 = vsel %vm336_vm10, %v335_v51, %v383_v53 }
 0x2bb   :  { %v340_v56 = vmax.f32 %v339_v55, %v338_v54 }
 0x2bd   :  { %v342_v57 = vsub.f32 %v339_v55, %v340_v56  ;;  %v346_v58 = vsub.f32 %v338_v54, %v340_v56 }
 0x2bf   :  { %v343_v61 = vmul.f32 1.442695, %v342_v57  ;;  %v347_v62 = vmul.f32 1.442695, %v346_v58 }
 0x2c1   :  { %416 = vpow2.f32 %v343_v61 }
 0x2c2   :  { %418 = vpow2.f32 %v347_v62 }
 0x2cb   :  { %v417_v7 = vpop.eup %416 }
 0x2cc   :  { %v419_v1 = vpop.eup %418 }
 0x340   :  { %v314_v5 = vpop.xlane.xlu0 %313 }
 0x341   :  { %v315_v6 = vadd.f32 %v314_v5, %v311_v63 }
 0x343   :  { %316 = vst.msk [vmem:[#allocation3] sm:$0x3] %vm19_vm1, %v315_v6 }
 0x34a   :  { %v341_v10 = vld [vmem:[#allocation3] sm:$0x3] }
 0x34b   :  { %v345_v11 = vmul.f32 %v417_v7, %v341_v10 }
 0x34d   :  { %v349_v0 = vadd.f32 %v419_v1, %v345_v11 }
 0x34f   :  { %420 = vlog2.f32 %v349_v0 }
 0x359   :  { %v421_v2 = vpop.eup %420 }
 0x35a   :  { %v351_v4 = vmul.f32 0.6931472, %v421_v2 }
 0x35c   :  { %v352_v9 = vadd.f32 %v351_v4, %v340_v56 }
 0x35e   :  { %v353_v13 = vsub.f32 %v352_v9, %v338_v54 }
 0x360   :  { %v354_v8 = vsel %vm19_vm1, %v353_v13, 0.0 }
 0x361   :  { %355 = vadd.xlane.f32.xlu1 %v354_v8 }
 0x3ee   :  { %v356_v12 = vpop.xlane.xlu1 %355 }
 0x3ef   :  { %v357_v14 = vrot.slane %v356_v12, 4 }
 0x3f1   :  { %v358_v15 = vadd.f32 %v357_v14, %v356_v12 }
 0x3f3   :  { %v359_v16 = vrot.slane %v358_v15, 2 }
 0x3f5   :  { %v360_v17 = vadd.f32 %v359_v16, %v358_v15 }
 0x3f7   :  { %v361_v18 = vrot.slane %v360_v17, 1 }
 0x3f9   :  { %v362_v19 = vadd.f32 %v361_v18, %v360_v17 }
 0x3fb   :  { %393 = vpush %v362_v19 }
 0x42c   :  { %s394_s2 = spop %393 }
 0x42d   :  { %s366_s30 = smul.f32 0.5, %s394_s2 }
 0x42f   :  { %368 = sst [smem:[#allocation5]] %s366_s30 }
 0x430   :  { %431 = shalt.err (!%p428_p2)
}
 0x431   :  { %s440_s11 = smov [#allocation5]  }
 0x432   :  { %376 = dma.smem_to_hbm %s440_s11, 16, %s551_s3, [#allocation6]  }
 0x433   :  { %432 = dma.done.wait [#allocation6], 16  }
 0x434   :  { %433 = vsyncadd [#allocation6], 4294967280 }
 0x435   :  { %380 = sfence }
 0x436   :  { %381 = vsyncpa [#allocation6], 1 }

</bundles_post_ra>
